<compile_context>
chip_gen: v7x
topology: tpu7x:2x2x1
jax: 0.10.0
libtpu: 0.0.40
codegen_flags: <defaults>
</compile_context>

<pallas_src>
import jax
import jax.numpy as jnp
from jax import lax
from jax.experimental import pallas as pl
from jax.experimental.pallas import tpu as pltpu

NEG_SLOPE_ATT = 0.2      # LeakyReLU inside GAT attention (PyG default)
EMB_PAD = 128            # dense4 output (3) zero-padded to 128 lanes


def _lrelu(v, slope):
    return jnp.where(v >= 0, v, slope * v)


def _pick_row_tile(n):
    """One row tile per TensorCore where possible; (8,128)-aligned; divides n."""
    if n % 128 != 0:
        return n   # TODO(synk): pad N to a 128 multiple instead of one big tile
    try:
        kind = jax.devices()[0].device_kind.lower()
    except Exception:
        kind = ""
    n_tc = 2 if ("v7" in kind or "tpu7" in kind) else 1   # v7x: 2 TCs per chip
    for t in (n // n_tc, 512, 256, 128):
        if t >= 128 and t % 128 == 0 and n % t == 0:
            return t
    return n


# ------------- fused stage: per-head proj + GAT attention + dense MLP -------------
def gat_mlp_kernel(adj_ref, xt_ref, xall_ref, wh_ref, att_src_ref, att_dst_ref,
                   bgat_ref, wa_ref, ba_ref, w1_ref, b1_ref, w2_ref, b2_ref,
                   w3_ref, b3_ref, w4_ref, b4_ref, emb_ref):
    adj = adj_ref[...]                                   # [T, N] bf16 mask
    x_all = xall_ref[...].astype(jnp.bfloat16)           # [N, F] (resident)
    x_t = xt_ref[...].astype(jnp.bfloat16)               # [T, F] (row tile)
    n_heads = wh_ref.shape[0]
    t = adj.shape[0]

    acc = jnp.zeros((t, wa_ref.shape[2]), jnp.float32)
    for h in range(n_heads):                             # unrolled (heads = 2)
        wh_h = wh_ref[h]                                 # [F, C] bf16
        # per-head projection, recomputed per row-tile (cheap) instead of HBM round-trip
        xw_all = jnp.dot(x_all, wh_h, preferred_element_type=jnp.float32)   # [N, C]
        xw_t = jnp.dot(x_t, wh_h, preferred_element_type=jnp.float32)       # [T, C]

        # attention scalars: a_src as a lane-dense [1, N] row on the MXU,
        # a_dst via VPU multiply + lane reduce (no width-1 MXU output, no tiny store)
        a_src = lax.dot_general(att_src_ref[h], xw_all, (((1,), (1,)), ((), ())),
                                preferred_element_type=jnp.float32)          # [1, N]
        a_dst = jnp.sum(xw_t * att_dst_ref[h], axis=-1, keepdims=True)       # [T, 1]

        # fused mask: one where; masked logits underflow exp() to exactly 0
        logits = jnp.where(adj > 0.0,
                           _lrelu(a_dst + a_src, NEG_SLOPE_ATT),
                           -1e30)                                            # [T, N]
        m = jnp.max(logits, axis=-1, keepdims=True)
        p = jnp.exp(logits - m)
        inv = pl.reciprocal(jnp.sum(p, axis=-1, keepdims=True), approx=True)
        alpha = (p * inv).astype(jnp.bfloat16)                               # [T, N]

        out_h = jnp.dot(alpha, xw_all.astype(jnp.bfloat16),
                        preferred_element_type=jnp.float32)                  # [T, C]
        h_act = jnp.maximum(out_h + bgat_ref[h], 0.0)        # ReLU on concat-half
        acc = acc + jnp.dot(h_act.astype(jnp.bfloat16), wa_ref[h],
                            preferred_element_type=jnp.float32)

    # densea..dense4: bf16 MXU operands, f32 accumulation, f32 bias adds
    y = jnp.maximum(acc + ba_ref[...], 0.0)                                  # [T, 256]
    z = jnp.maximum(jnp.dot(y.astype(jnp.bfloat16), w1_ref[...],
                            preferred_element_type=jnp.float32) + b1_ref[...], 0.0)
    z = jnp.maximum(jnp.dot(z.astype(jnp.bfloat16), w2_ref[...],
                            preferred_element_type=jnp.float32) + b2_ref[...], 0.0)
    z = jnp.maximum(jnp.dot(z.astype(jnp.bfloat16), w3_ref[...],
                            preferred_element_type=jnp.float32) + b3_ref[...], 0.0)
    emb_ref[...] = jnp.dot(z.astype(jnp.bfloat16), w4_ref[...],
                           preferred_element_type=jnp.float32) + b4_ref[...]


# ----------------------------- stage 2: cdist --------------------------------
def cdist_kernel(wi_ref, wall_ref, out_ref):
    wi = wi_ref[...]                                           # [T, DP] f32
    wj = wall_ref[...]                                         # [N, DP] f32 (resident)
    sq_i = jnp.sum(wi * wi, axis=-1, keepdims=True)            # [T, 1]
    ones_row = jnp.ones((1, wj.shape[-1]), jnp.float32)
    sq_j = lax.dot_general(ones_row, wj * wj, (((1,), (1,)), ((), ())),
                           preferred_element_type=jnp.float32)            # [1, N]
    gram = lax.dot_general(wi, wj, (((1,), (1,)), ((), ())),
                           preferred_element_type=jnp.float32)            # [T, N]
    d2 = jnp.maximum(sq_i + sq_j - 2.0 * gram, 0.0)
    out_ref[...] = jnp.sqrt(d2)


# ------------------------------ host wrapper ---------------------------------
def gat_net_forward(x, adj, params):
    (wh, att_src, att_dst, bgat, wa, ba,
     w1, b1, w2, b2, w3, b3, w4, b4) = params
    n, f_in = x.shape
    heads, _, c = wh.shape
    d_a = wa.shape[2]

    tile = _pick_row_tile(n)
    grid = (pl.cdiv(n, tile),)
    cparams = pltpu.CompilerParams(
        dimension_semantics=("parallel",))       # megacore sharding on v7x

    # bf16 copies of all MXU weights (f32 accumulation inside the kernel)
    wh_bf = wh.astype(jnp.bfloat16)
    wa_bf = wa.astype(jnp.bfloat16)
    w1_bf = w1.astype(jnp.bfloat16)
    w2_bf = w2.astype(jnp.bfloat16)
    w3_bf = w3.astype(jnp.bfloat16)
    # zero-pad dense4 (32 -> 3) to 128 output lanes: lane-dense embedding stores and
    # a lane-aligned gram contraction; zero columns do not change the distances.
    w4p = jnp.zeros((w4.shape[0], EMB_PAD), jnp.float32).at[:, :w4.shape[1]].set(w4)
    w4p_bf = w4p.astype(jnp.bfloat16)
    b4p = jnp.zeros((1, EMB_PAD), jnp.float32).at[:, :b4.shape[1]].set(b4)
    # adj only feeds the `> 0` compare -> ship it as bf16 (exact for 0/1)
    adj_bf = adj.astype(jnp.bfloat16)

    # ---- fused GAT + MLP (row-tiled, pipelined; weights & x stay resident) ----
    # NOTE: constant-index blocks are double-buffered by default; at these shapes
    # VMEM is ample, so pipeline_mode=pl.Buffered(1) is not needed yet.
    emb = pl.pallas_call(
        gat_mlp_kernel,
        out_shape=jax.ShapeDtypeStruct((n, EMB_PAD), jnp.float32),
        grid=grid,
        in_specs=[pl.BlockSpec((tile, n), lambda i: (i, 0)),            # adj row tile
                  pl.BlockSpec((tile, f_in), lambda i: (i, 0)),         # x row tile
                  pl.BlockSpec((n, f_in), lambda i: (0, 0)),            # x (resident)
                  pl.BlockSpec((heads, f_in, c), lambda i: (0, 0, 0)),  # Wh
                  pl.BlockSpec((heads, 1, c), lambda i: (0, 0, 0)),     # att_src
                  pl.BlockSpec((heads, 1, c), lambda i: (0, 0, 0)),     # att_dst
                  pl.BlockSpec((heads, 1, c), lambda i: (0, 0, 0)),     # GAT bias
                  pl.BlockSpec((heads, c, d_a), lambda i: (0, 0, 0)),   # densea (split)
                  pl.BlockSpec(ba.shape, lambda i: (0, 0)),
                  pl.BlockSpec(w1.shape, lambda i: (0, 0)),
                  pl.BlockSpec(b1.shape, lambda i: (0, 0)),
                  pl.BlockSpec(w2.shape, lambda i: (0, 0)),
                  pl.BlockSpec(b2.shape, lambda i: (0, 0)),
                  pl.BlockSpec(w3.shape, lambda i: (0, 0)),
                  pl.BlockSpec(b3.shape, lambda i: (0, 0)),
                  pl.BlockSpec((w4.shape[0], EMB_PAD), lambda i: (0, 0)),
                  pl.BlockSpec((1, EMB_PAD), lambda i: (0, 0))],
        out_specs=pl.BlockSpec((tile, EMB_PAD), lambda i: (i, 0)),
        compiler_params=cparams,
    )(adj_bf, x, x, wh_bf, att_src, att_dst, bgat, wa_bf, ba,
      w1_bf, b1, w2_bf, b2, w3_bf, b3, w4p_bf, b4p)

    # ---- pairwise L2 distances (row-tiled, f32 for the cancellation-prone gram) ----
    out = pl.pallas_call(
        cdist_kernel,
        out_shape=jax.ShapeDtypeStruct((n, n), jnp.float32),
        grid=grid,
        in_specs=[pl.BlockSpec((tile, EMB_PAD), lambda i: (i, 0)),
                  pl.BlockSpec((n, EMB_PAD), lambda i: (0, 0))],
        out_specs=pl.BlockSpec((tile, n), lambda i: (i, 0)),
        compiler_params=cparams,
    )(emb, emb)
    return out


# ---------------- pure-JAX f32 reference (for correctness check) ----------------
def reference(x, adj, wh, att_src, att_dst, bgat, wa, ba,
              w1, b1, w2, b2, w3, b3, w4, b4):
    acc = 0.0
    for hh in range(wh.shape[0]):
        xw = x @ wh[hh]
        a_src = (xw * att_src[hh]).sum(-1)
        a_dst = (xw * att_dst[hh]).sum(-1)
        e = _lrelu(a_dst[:, None] + a_src[None, :], NEG_SLOPE_ATT)
        logits = jnp.where(adj > 0, e, -1e30)
        p = jnp.exp(logits - logits.max(-1, keepdims=True))
        alpha = p / p.sum(-1, keepdims=True)
        h_act = jax.nn.relu(alpha @ xw + bgat[hh])
        acc = acc + h_act @ wa[hh]
    y = jax.nn.relu(acc + ba)
    z = jax.nn.relu(y @ w1 + b1)
    z = jax.nn.relu(z @ w2 + b2)
    z = jax.nn.relu(z @ w3 + b3)
    w = z @ w4 + b4
    diff = w[:, None, :] - w[None, :, :]
    return jnp.sqrt(jnp.maximum((diff * diff).sum(-1), 0.0))


if __name__ == "__main__":
    N, F_IN, HEADS, C = 256, 256, 2, 256   # small shapes consistent with the module

    key = jax.random.PRNGKey(0)
    ks = jax.random.split(key, 16)

    def glorot(k, shape):
        fan_in, fan_out = shape[-2], shape[-1]
        lim = (6.0 / (fan_in + fan_out)) ** 0.5
        return jax.random.uniform(k, shape, jnp.float32, -lim, lim)

    # node features
    x = jax.random.normal(ks[0], (N, F_IN), jnp.float32)

    # edge_index [2, E]: ring graph in both directions (row0 = src, row1 = dst)
    idx = jnp.arange(N, dtype=jnp.int32)
    src = jnp.concatenate([idx, (idx + 1) % N])
    dst = jnp.concatenate([(idx + 1) % N, idx])
    edge_index = jnp.stack([src, dst])                         # [2, 2N]

    # dense adjacency mask adj[dst, src] = 1, plus self-loops (GATConv default)
    adj = jnp.zeros((N, N), jnp.float32).at[edge_index[1], edge_index[0]].set(1.0)
    adj = jnp.maximum(adj, jnp.eye(N, dtype=jnp.float32))

    # GATConv(256, 256, heads=2, concat=True) parameters
    wh      = glorot(ks[1], (HEADS, F_IN, C))                  # per-head lin weight
    att_src = glorot(ks[2], (HEADS, 1, C))
    att_dst = glorot(ks[3], (HEADS, 1, C))
    bgat    = 0.05 * jax.random.normal(ks[4], (HEADS, 1, C), jnp.float32)

    # densea: Linear(512, 256) split into the two concat halves [2, 256, 256]
    wa = glorot(ks[5], (HEADS * C, 256)).reshape(HEADS, C, 256)
    ba = 0.05 * jax.random.normal(ks[6], (1, 256), jnp.float32)
    # dense1..dense4
    w1 = glorot(ks[7], (256, 128)); b1 = 0.05 * jax.random.normal(ks[8], (1, 128), jnp.float32)
    w2 = glorot(ks[9], (128, 64));  b2 = 0.05 * jax.random.normal(ks[10], (1, 64), jnp.float32)
    w3 = glorot(ks[11], (64, 32));  b3 = 0.05 * jax.random.normal(ks[12], (1, 32), jnp.float32)
    w4 = glorot(ks[13], (32, 3));   b4 = 0.05 * jax.random.normal(ks[14], (1, 3), jnp.float32)

    params = (wh, att_src, att_dst, bgat, wa, ba, w1, b1, w2, b2, w3, b3, w4, b4)

    out = jax.block_until_ready(gat_net_forward(x, adj, params))
    ref = reference(x, adj, *params)

    assert out.shape == (N, N)
    assert bool(jnp.all(jnp.isfinite(out)))
    # bf16 MXU operands (proj, attention aggregation, full dense chain) with f32
    # accumulation -> slightly looser tolerance vs the pure-f32 reference
    assert bool(jnp.allclose(out, ref, atol=7e-2, rtol=7e-2)), "mismatch vs JAX reference"

    print("KERNEL_OK")
</pallas_src>

<mosaic_0001>
module attributes {stable_mosaic.version = 11 : i64} {
  func.func @gat_mlp_kernel(%arg0: i32, %arg1: memref<256x256xbf16, #tpu.memory_space<vmem>>, %arg2: memref<256x256xf32, #tpu.memory_space<vmem>>, %arg3: memref<256x256xf32, #tpu.memory_space<vmem>>, %arg4: memref<2x256x256xbf16, #tpu.memory_space<vmem>>, %arg5: memref<2x1x256xf32, #tpu.memory_space<vmem>>, %arg6: memref<2x1x256xf32, #tpu.memory_space<vmem>>, %arg7: memref<2x1x256xf32, #tpu.memory_space<vmem>>, %arg8: memref<2x256x256xbf16, #tpu.memory_space<vmem>>, %arg9: memref<1x256xf32, #tpu.memory_space<vmem>>, %arg10: memref<256x128xbf16, #tpu.memory_space<vmem>>, %arg11: memref<1x128xf32, #tpu.memory_space<vmem>>, %arg12: memref<128x64xbf16, #tpu.memory_space<vmem>>, %arg13: memref<1x64xf32, #tpu.memory_space<vmem>>, %arg14: memref<64x32xbf16, #tpu.memory_space<vmem>>, %arg15: memref<1x32xf32, #tpu.memory_space<vmem>>, %arg16: memref<32x128xbf16, #tpu.memory_space<vmem>>, %arg17: memref<1x128xf32, #tpu.memory_space<vmem>>, %arg18: memref<256x128xf32, #tpu.memory_space<vmem>>) attributes {dimension_semantics = [#tpu.dimension_semantics<parallel>], iteration_bounds = array<i64: 1>, scalar_prefetch = 0 : i64, scratch_operands = 0 : i64, tpu.core_type = #tpu.core_type<tc>, window_params = [{transform_indices = @transform_0, window_bounds = array<i64: 256, 256>}, {transform_indices = @transform_1, window_bounds = array<i64: 256, 256>}, {pipeline_mode = #tpu.pipeline_mode<synchronous>, transform_indices = @transform_2, window_bounds = array<i64: 256, 256>}, {pipeline_mode = #tpu.pipeline_mode<synchronous>, transform_indices = @transform_3, window_bounds = array<i64: 2, 256, 256>}, {pipeline_mode = #tpu.pipeline_mode<synchronous>, transform_indices = @transform_4, window_bounds = array<i64: 2, 1, 256>}, {pipeline_mode = #tpu.pipeline_mode<synchronous>, transform_indices = @transform_5, window_bounds = array<i64: 2, 1, 256>}, {pipeline_mode = #tpu.pipeline_mode<synchronous>, transform_indices = @transform_6, window_bounds = array<i64: 2, 1, 256>}, {pipeline_mode = #tpu.pipeline_mode<synchronous>, transform_indices = @transform_7, window_bounds = array<i64: 2, 256, 256>}, {pipeline_mode = #tpu.pipeline_mode<synchronous>, transform_indices = @transform_8, window_bounds = array<i64: 1, 256>}, {pipeline_mode = #tpu.pipeline_mode<synchronous>, transform_indices = @transform_9, window_bounds = array<i64: 256, 128>}, {pipeline_mode = #tpu.pipeline_mode<synchronous>, transform_indices = @transform_10, window_bounds = array<i64: 1, 128>}, {pipeline_mode = #tpu.pipeline_mode<synchronous>, transform_indices = @transform_11, window_bounds = array<i64: 128, 64>}, {pipeline_mode = #tpu.pipeline_mode<synchronous>, transform_indices = @transform_12, window_bounds = array<i64: 1, 64>}, {pipeline_mode = #tpu.pipeline_mode<synchronous>, transform_indices = @transform_13, window_bounds = array<i64: 64, 32>}, {pipeline_mode = #tpu.pipeline_mode<synchronous>, transform_indices = @transform_14, window_bounds = array<i64: 1, 32>}, {pipeline_mode = #tpu.pipeline_mode<synchronous>, transform_indices = @transform_15, window_bounds = array<i64: 32, 128>}, {pipeline_mode = #tpu.pipeline_mode<synchronous>, transform_indices = @transform_16, window_bounds = array<i64: 1, 128>}, {transform_indices = @transform_17, window_bounds = array<i64: 256, 128>}]} {
    %c0 = arith.constant 0 : index
    %c0_0 = arith.constant 0 : index
    %0 = vector.load %arg1[%c0, %c0_0] : memref<256x256xbf16, #tpu.memory_space<vmem>>, vector<256x256xbf16>
    %c0_1 = arith.constant 0 : index
    %c0_2 = arith.constant 0 : index
    %1 = vector.load %arg3[%c0_1, %c0_2] : memref<256x256xf32, #tpu.memory_space<vmem>>, vector<256x256xf32>
    %2 = arith.truncf %1 : vector<256x256xf32> to vector<256x256xbf16>
    %c0_3 = arith.constant 0 : index
    %c0_4 = arith.constant 0 : index
    %3 = vector.load %arg2[%c0_3, %c0_4] : memref<256x256xf32, #tpu.memory_space<vmem>>, vector<256x256xf32>
    %4 = arith.truncf %3 : vector<256x256xf32> to vector<256x256xbf16>
    %cst = arith.constant 0.000000e+00 : f32
    %5 = vector.broadcast %cst : f32 to vector<256x256xf32>
    %c0_5 = arith.constant 0 : index
    %c0_6 = arith.constant 0 : index
    %c0_7 = arith.constant 0 : index
    %6 = vector.load %arg4[%c0_5, %c0_6, %c0_7] : memref<2x256x256xbf16, #tpu.memory_space<vmem>>, vector<1x256x256xbf16>
    %7 = vector.shape_cast %6 : vector<1x256x256xbf16> to vector<256x256xbf16>
    %cst_8 = arith.constant dense<0.000000e+00> : vector<256x256xf32>
    %8 = tpu.matmul %2, %7, %cst_8 {dimension_numbers = #tpu.dot_dimension_numbers<[1], [0], [0], [1], [0, 0, 1, 1], [], []>} : vector<256x256xbf16>, vector<256x256xbf16>, vector<256x256xf32> -> vector<256x256xf32>
    %cst_9 = arith.constant dense<0.000000e+00> : vector<256x256xf32>
    %9 = tpu.matmul %4, %7, %cst_9 {dimension_numbers = #tpu.dot_dimension_numbers<[1], [0], [0], [1], [0, 0, 1, 1], [], []>} : vector<256x256xbf16>, vector<256x256xbf16>, vector<256x256xf32> -> vector<256x256xf32>
    %c0_10 = arith.constant 0 : index
    %c0_11 = arith.constant 0 : index
    %c0_12 = arith.constant 0 : index
    %10 = vector.load %arg5[%c0_10, %c0_11, %c0_12] : memref<2x1x256xf32, #tpu.memory_space<vmem>>, vector<1x1x256xf32>
    %11 = vector.shape_cast %10 : vector<1x1x256xf32> to vector<1x256xf32>
    %cst_13 = arith.constant dense<0.000000e+00> : vector<1x256xf32>
    %12 = tpu.matmul %11, %8, %cst_13 {dimension_numbers = #tpu.dot_dimension_numbers<[1], [1], [0], [0], [0, 0, 1, 0], [], []>} : vector<1x256xf32>, vector<256x256xf32>, vector<1x256xf32> -> vector<1x256xf32>
    %c0_14 = arith.constant 0 : index
    %c0_15 = arith.constant 0 : index
    %c0_16 = arith.constant 0 : index
    %13 = vector.load %arg6[%c0_14, %c0_15, %c0_16] : memref<2x1x256xf32, #tpu.memory_space<vmem>>, vector<1x1x256xf32>
    %14 = vector.shape_cast %13 : vector<1x1x256xf32> to vector<1x256xf32>
    %15 = vector.broadcast %14 : vector<1x256xf32> to vector<256x256xf32>
    %16 = arith.mulf %9, %15 : vector<256x256xf32>
    %cst_17 = arith.constant dense<0.000000e+00> : vector<256xf32>
    %17 = vector.multi_reduction <add>, %16, %cst_17 [1] : vector<256x256xf32> to vector<256xf32>
    %18 = vector.shape_cast %17 : vector<256xf32> to vector<256x1xf32>
    %cst_18 = arith.constant 0.000000e+00 : bf16
    %19 = vector.broadcast %cst_18 : bf16 to vector<256x256xbf16>
    %20 = arith.cmpf ogt, %0, %19 : vector<256x256xbf16>
    %21 = vector.broadcast %18 : vector<256x1xf32> to vector<256x256xf32>
    %22 = vector.broadcast %12 : vector<1x256xf32> to vector<256x256xf32>
    %23 = arith.addf %21, %22 : vector<256x256xf32>
    %cst_19 = arith.constant 0.000000e+00 : f32
    %24 = vector.broadcast %cst_19 : f32 to vector<256x256xf32>
    %25 = arith.cmpf oge, %23, %24 : vector<256x256xf32>
    %cst_20 = arith.constant 2.000000e-01 : f32
    %26 = vector.broadcast %cst_20 : f32 to vector<256x256xf32>
    %27 = arith.mulf %26, %23 : vector<256x256xf32>
    %28 = arith.select %25, %23, %27 : vector<256x256xi1>, vector<256x256xf32>
    %cst_21 = arith.constant -1.000000e+30 : f32
    %29 = vector.broadcast %cst_21 : f32 to vector<256x256xf32>
    %30 = arith.select %20, %28, %29 : vector<256x256xi1>, vector<256x256xf32>
    %cst_22 = arith.constant dense<0xFF800000> : vector<256xf32>
    %31 = vector.multi_reduction <maximumf>, %30, %cst_22 [1] : vector<256x256xf32> to vector<256xf32>
    %32 = vector.shape_cast %31 : vector<256xf32> to vector<256x1xf32>
    %33 = vector.broadcast %32 : vector<256x1xf32> to vector<256x256xf32>
    %34 = arith.subf %30, %33 : vector<256x256xf32>
    %35 = math.exp %34 : vector<256x256xf32>
    %cst_23 = arith.constant dense<0.000000e+00> : vector<256xf32>
    %36 = vector.multi_reduction <add>, %35, %cst_23 [1] : vector<256x256xf32> to vector<256xf32>
    %37 = vector.shape_cast %36 : vector<256xf32> to vector<256x1xf32>
    %38 = tpu.reciprocal %37 {approx = true} : vector<256x1xf32> -> vector<256x1xf32>
    %39 = vector.broadcast %38 : vector<256x1xf32> to vector<256x256xf32>
    %40 = arith.mulf %35, %39 : vector<256x256xf32>
    %41 = arith.truncf %40 : vector<256x256xf32> to vector<256x256xbf16>
    %42 = arith.truncf %8 : vector<256x256xf32> to vector<256x256xbf16>
    %cst_24 = arith.constant dense<0.000000e+00> : vector<256x256xf32>
    %43 = tpu.matmul %41, %42, %cst_24 {dimension_numbers = #tpu.dot_dimension_numbers<[1], [0], [0], [1], [0, 0, 1, 1], [], []>} : vector<256x256xbf16>, vector<256x256xbf16>, vector<256x256xf32> -> vector<256x256xf32>
    %c0_25 = arith.constant 0 : index
    %c0_26 = arith.constant 0 : index
    %c0_27 = arith.constant 0 : index
    %44 = vector.load %arg7[%c0_25, %c0_26, %c0_27] : memref<2x1x256xf32, #tpu.memory_space<vmem>>, vector<1x1x256xf32>
    %45 = vector.shape_cast %44 : vector<1x1x256xf32> to vector<1x256xf32>
    %46 = vector.broadcast %45 : vector<1x256xf32> to vector<256x256xf32>
    %47 = arith.addf %43, %46 : vector<256x256xf32>
    %cst_28 = arith.constant 0.000000e+00 : f32
    %48 = vector.broadcast %cst_28 : f32 to vector<256x256xf32>
    %49 = arith.maximumf %47, %48 : vector<256x256xf32>
    %50 = arith.truncf %49 : vector<256x256xf32> to vector<256x256xbf16>
    %c0_29 = arith.constant 0 : index
    %c0_30 = arith.constant 0 : index
    %c0_31 = arith.constant 0 : index
    %51 = vector.load %arg8[%c0_29, %c0_30, %c0_31] : memref<2x256x256xbf16, #tpu.memory_space<vmem>>, vector<1x256x256xbf16>
    %52 = vector.shape_cast %51 : vector<1x256x256xbf16> to vector<256x256xbf16>
    %cst_32 = arith.constant dense<0.000000e+00> : vector<256x256xf32>
    %53 = tpu.matmul %50, %52, %cst_32 {dimension_numbers = #tpu.dot_dimension_numbers<[1], [0], [0], [1], [0, 0, 1, 1], [], []>} : vector<256x256xbf16>, vector<256x256xbf16>, vector<256x256xf32> -> vector<256x256xf32>
    %54 = arith.addf %5, %53 : vector<256x256xf32>
    %c1 = arith.constant 1 : index
    %c0_33 = arith.constant 0 : index
    %c0_34 = arith.constant 0 : index
    %55 = vector.load %arg4[%c1, %c0_33, %c0_34] : memref<2x256x256xbf16, #tpu.memory_space<vmem>>, vector<1x256x256xbf16>
    %56 = vector.shape_cast %55 : vector<1x256x256xbf16> to vector<256x256xbf16>
    %cst_35 = arith.constant dense<0.000000e+00> : vector<256x256xf32>
    %57 = tpu.matmul %2, %56, %cst_35 {dimension_numbers = #tpu.dot_dimension_numbers<[1], [0], [0], [1], [0, 0, 1, 1], [], []>} : vector<256x256xbf16>, vector<256x256xbf16>, vector<256x256xf32> -> vector<256x256xf32>
    %cst_36 = arith.constant dense<0.000000e+00> : vector<256x256xf32>
    %58 = tpu.matmul %4, %56, %cst_36 {dimension_numbers = #tpu.dot_dimension_numbers<[1], [0], [0], [1], [0, 0, 1, 1], [], []>} : vector<256x256xbf16>, vector<256x256xbf16>, vector<256x256xf32> -> vector<256x256xf32>
    %c1_37 = arith.constant 1 : index
    %c0_38 = arith.constant 0 : index
    %c0_39 = arith.constant 0 : index
    %59 = vector.load %arg5[%c1_37, %c0_38, %c0_39] : memref<2x1x256xf32, #tpu.memory_space<vmem>>, vector<1x1x256xf32>
    %60 = vector.shape_cast %59 : vector<1x1x256xf32> to vector<1x256xf32>
    %cst_40 = arith.constant dense<0.000000e+00> : vector<1x256xf32>
    %61 = tpu.matmul %60, %57, %cst_40 {dimension_numbers = #tpu.dot_dimension_numbers<[1], [1], [0], [0], [0, 0, 1, 0], [], []>} : vector<1x256xf32>, vector<256x256xf32>, vector<1x256xf32> -> vector<1x256xf32>
    %c1_41 = arith.constant 1 : index
    %c0_42 = arith.constant 0 : index
    %c0_43 = arith.constant 0 : index
    %62 = vector.load %arg6[%c1_41, %c0_42, %c0_43] : memref<2x1x256xf32, #tpu.memory_space<vmem>>, vector<1x1x256xf32>
    %63 = vector.shape_cast %62 : vector<1x1x256xf32> to vector<1x256xf32>
    %64 = vector.broadcast %63 : vector<1x256xf32> to vector<256x256xf32>
    %65 = arith.mulf %58, %64 : vector<256x256xf32>
    %cst_44 = arith.constant dense<0.000000e+00> : vector<256xf32>
    %66 = vector.multi_reduction <add>, %65, %cst_44 [1] : vector<256x256xf32> to vector<256xf32>
    %67 = vector.shape_cast %66 : vector<256xf32> to vector<256x1xf32>
    %cst_45 = arith.constant 0.000000e+00 : bf16
    %68 = vector.broadcast %cst_45 : bf16 to vector<256x256xbf16>
    %69 = arith.cmpf ogt, %0, %68 : vector<256x256xbf16>
    %70 = vector.broadcast %67 : vector<256x1xf32> to vector<256x256xf32>
    %71 = vector.broadcast %61 : vector<1x256xf32> to vector<256x256xf32>
    %72 = arith.addf %70, %71 : vector<256x256xf32>
    %cst_46 = arith.constant 0.000000e+00 : f32
    %73 = vector.broadcast %cst_46 : f32 to vector<256x256xf32>
    %74 = arith.cmpf oge, %72, %73 : vector<256x256xf32>
    %cst_47 = arith.constant 2.000000e-01 : f32
    %75 = vector.broadcast %cst_47 : f32 to vector<256x256xf32>
    %76 = arith.mulf %75, %72 : vector<256x256xf32>
    %77 = arith.select %74, %72, %76 : vector<256x256xi1>, vector<256x256xf32>
    %cst_48 = arith.constant -1.000000e+30 : f32
    %78 = vector.broadcast %cst_48 : f32 to vector<256x256xf32>
    %79 = arith.select %69, %77, %78 : vector<256x256xi1>, vector<256x256xf32>
    %cst_49 = arith.constant dense<0xFF800000> : vector<256xf32>
    %80 = vector.multi_reduction <maximumf>, %79, %cst_49 [1] : vector<256x256xf32> to vector<256xf32>
    %81 = vector.shape_cast %80 : vector<256xf32> to vector<256x1xf32>
    %82 = vector.broadcast %81 : vector<256x1xf32> to vector<256x256xf32>
    %83 = arith.subf %79, %82 : vector<256x256xf32>
    %84 = math.exp %83 : vector<256x256xf32>
    %cst_50 = arith.constant dense<0.000000e+00> : vector<256xf32>
    %85 = vector.multi_reduction <add>, %84, %cst_50 [1] : vector<256x256xf32> to vector<256xf32>
    %86 = vector.shape_cast %85 : vector<256xf32> to vector<256x1xf32>
    %87 = tpu.reciprocal %86 {approx = true} : vector<256x1xf32> -> vector<256x1xf32>
    %88 = vector.broadcast %87 : vector<256x1xf32> to vector<256x256xf32>
    %89 = arith.mulf %84, %88 : vector<256x256xf32>
    %90 = arith.truncf %89 : vector<256x256xf32> to vector<256x256xbf16>
    %91 = arith.truncf %57 : vector<256x256xf32> to vector<256x256xbf16>
    %cst_51 = arith.constant dense<0.000000e+00> : vector<256x256xf32>
    %92 = tpu.matmul %90, %91, %cst_51 {dimension_numbers = #tpu.dot_dimension_numbers<[1], [0], [0], [1], [0, 0, 1, 1], [], []>} : vector<256x256xbf16>, vector<256x256xbf16>, vector<256x256xf32> -> vector<256x256xf32>
    %c1_52 = arith.constant 1 : index
    %c0_53 = arith.constant 0 : index
    %c0_54 = arith.constant 0 : index
    %93 = vector.load %arg7[%c1_52, %c0_53, %c0_54] : memref<2x1x256xf32, #tpu.memory_space<vmem>>, vector<1x1x256xf32>
    %94 = vector.shape_cast %93 : vector<1x1x256xf32> to vector<1x256xf32>
    %95 = vector.broadcast %94 : vector<1x256xf32> to vector<256x256xf32>
    %96 = arith.addf %92, %95 : vector<256x256xf32>
    %cst_55 = arith.constant 0.000000e+00 : f32
    %97 = vector.broadcast %cst_55 : f32 to vector<256x256xf32>
    %98 = arith.maximumf %96, %97 : vector<256x256xf32>
    %99 = arith.truncf %98 : vector<256x256xf32> to vector<256x256xbf16>
    %c1_56 = arith.constant 1 : index
    %c0_57 = arith.constant 0 : index
    %c0_58 = arith.constant 0 : index
    %100 = vector.load %arg8[%c1_56, %c0_57, %c0_58] : memref<2x256x256xbf16, #tpu.memory_space<vmem>>, vector<1x256x256xbf16>
    %101 = vector.shape_cast %100 : vector<1x256x256xbf16> to vector<256x256xbf16>
    %cst_59 = arith.constant dense<0.000000e+00> : vector<256x256xf32>
    %102 = tpu.matmul %99, %101, %cst_59 {dimension_numbers = #tpu.dot_dimension_numbers<[1], [0], [0], [1], [0, 0, 1, 1], [], []>} : vector<256x256xbf16>, vector<256x256xbf16>, vector<256x256xf32> -> vector<256x256xf32>
    %103 = arith.addf %54, %102 : vector<256x256xf32>
    %c0_60 = arith.constant 0 : index
    %c0_61 = arith.constant 0 : index
    %104 = vector.load %arg9[%c0_60, %c0_61] : memref<1x256xf32, #tpu.memory_space<vmem>>, vector<1x256xf32>
    %105 = vector.broadcast %104 : vector<1x256xf32> to vector<256x256xf32>
    %106 = arith.addf %103, %105 : vector<256x256xf32>
    %cst_62 = arith.constant 0.000000e+00 : f32
    %107 = vector.broadcast %cst_62 : f32 to vector<256x256xf32>
    %108 = arith.maximumf %106, %107 : vector<256x256xf32>
    %109 = arith.truncf %108 : vector<256x256xf32> to vector<256x256xbf16>
    %c0_63 = arith.constant 0 : index
    %c0_64 = arith.constant 0 : index
    %110 = vector.load %arg10[%c0_63, %c0_64] : memref<256x128xbf16, #tpu.memory_space<vmem>>, vector<256x128xbf16>
    %cst_65 = arith.constant dense<0.000000e+00> : vector<256x128xf32>
    %111 = tpu.matmul %109, %110, %cst_65 {dimension_numbers = #tpu.dot_dimension_numbers<[1], [0], [0], [1], [0, 0, 1, 1], [], []>} : vector<256x256xbf16>, vector<256x128xbf16>, vector<256x128xf32> -> vector<256x128xf32>
    %c0_66 = arith.constant 0 : index
    %c0_67 = arith.constant 0 : index
    %112 = vector.load %arg11[%c0_66, %c0_67] : memref<1x128xf32, #tpu.memory_space<vmem>>, vector<1x128xf32>
    %113 = vector.broadcast %112 : vector<1x128xf32> to vector<256x128xf32>
    %114 = arith.addf %111, %113 : vector<256x128xf32>
    %cst_68 = arith.constant 0.000000e+00 : f32
    %115 = vector.broadcast %cst_68 : f32 to vector<256x128xf32>
    %116 = arith.maximumf %114, %115 : vector<256x128xf32>
    %117 = arith.truncf %116 : vector<256x128xf32> to vector<256x128xbf16>
    %c0_69 = arith.constant 0 : index
    %c0_70 = arith.constant 0 : index
    %118 = vector.load %arg12[%c0_69, %c0_70] : memref<128x64xbf16, #tpu.memory_space<vmem>>, vector<128x64xbf16>
    %cst_71 = arith.constant dense<0.000000e+00> : vector<256x64xf32>
    %119 = tpu.matmul %117, %118, %cst_71 {dimension_numbers = #tpu.dot_dimension_numbers<[1], [0], [0], [1], [0, 0, 1, 1], [], []>} : vector<256x128xbf16>, vector<128x64xbf16>, vector<256x64xf32> -> vector<256x64xf32>
    %c0_72 = arith.constant 0 : index
    %c0_73 = arith.constant 0 : index
    %120 = vector.load %arg13[%c0_72, %c0_73] : memref<1x64xf32, #tpu.memory_space<vmem>>, vector<1x64xf32>
    %121 = vector.broadcast %120 : vector<1x64xf32> to vector<256x64xf32>
    %122 = arith.addf %119, %121 : vector<256x64xf32>
    %cst_74 = arith.constant 0.000000e+00 : f32
    %123 = vector.broadcast %cst_74 : f32 to vector<256x64xf32>
    %124 = arith.maximumf %122, %123 : vector<256x64xf32>
    %125 = arith.truncf %124 : vector<256x64xf32> to vector<256x64xbf16>
    %c0_75 = arith.constant 0 : index
    %c0_76 = arith.constant 0 : index
    %126 = vector.load %arg14[%c0_75, %c0_76] : memref<64x32xbf16, #tpu.memory_space<vmem>>, vector<64x32xbf16>
    %cst_77 = arith.constant dense<0.000000e+00> : vector<256x32xf32>
    %127 = tpu.matmul %125, %126, %cst_77 {dimension_numbers = #tpu.dot_dimension_numbers<[1], [0], [0], [1], [0, 0, 1, 1], [], []>} : vector<256x64xbf16>, vector<64x32xbf16>, vector<256x32xf32> -> vector<256x32xf32>
    %c0_78 = arith.constant 0 : index
    %c0_79 = arith.constant 0 : index
    %128 = vector.load %arg15[%c0_78, %c0_79] : memref<1x32xf32, #tpu.memory_space<vmem>>, vector<1x32xf32>
    %129 = vector.broadcast %128 : vector<1x32xf32> to vector<256x32xf32>
    %130 = arith.addf %127, %129 : vector<256x32xf32>
    %cst_80 = arith.constant 0.000000e+00 : f32
    %131 = vector.broadcast %cst_80 : f32 to vector<256x32xf32>
    %132 = arith.maximumf %130, %131 : vector<256x32xf32>
    %133 = arith.truncf %132 : vector<256x32xf32> to vector<256x32xbf16>
    %c0_81 = arith.constant 0 : index
    %c0_82 = arith.constant 0 : index
    %134 = vector.load %arg16[%c0_81, %c0_82] : memref<32x128xbf16, #tpu.memory_space<vmem>>, vector<32x128xbf16>
    %cst_83 = arith.constant dense<0.000000e+00> : vector<256x128xf32>
    %135 = tpu.matmul %133, %134, %cst_83 {dimension_numbers = #tpu.dot_dimension_numbers<[1], [0], [0], [1], [0, 0, 1, 1], [], []>} : vector<256x32xbf16>, vector<32x128xbf16>, vector<256x128xf32> -> vector<256x128xf32>
    %c0_84 = arith.constant 0 : index
    %c0_85 = arith.constant 0 : index
    %136 = vector.load %arg17[%c0_84, %c0_85] : memref<1x128xf32, #tpu.memory_space<vmem>>, vector<1x128xf32>
    %137 = vector.broadcast %136 : vector<1x128xf32> to vector<256x128xf32>
    %138 = arith.addf %135, %137 : vector<256x128xf32>
    %c0_86 = arith.constant 0 : index
    %c0_87 = arith.constant 0 : index
    %139 = vector.load %arg18[%c0_86, %c0_87] : memref<256x128xf32, #tpu.memory_space<vmem>>, vector<256x128xf32>
    tpu.vector_store %arg18[%c0_86, %c0_87], %138 {strides = array<i32>} : memref<256x128xf32, #tpu.memory_space<vmem>>, vector<256x128xf32>,
    return
  }
  func.func @transform_0(%arg0: i32) -> (i32, i32) {
    %c0_i32 = arith.constant 0 : i32
    %c0_i32_0 = arith.constant 0 : i32
    return %arg0, %c0_i32 : i32, i32
  }
  func.func @transform_1(%arg0: i32) -> (i32, i32) {
    %c0_i32 = arith.constant 0 : i32
    %c0_i32_0 = arith.constant 0 : i32
    return %arg0, %c0_i32 : i32, i32
  }
  func.func @transform_2(%arg0: i32) -> (i32, i32) {
    %c0_i32 = arith.constant 0 : i32
    %c0_i32_0 = arith.constant 0 : i32
    %c0_i32_1 = arith.constant 0 : i32
    return %c0_i32, %c0_i32_0 : i32, i32
  }
  func.func @transform_3(%arg0: i32) -> (i32, i32, i32) {
    %c0_i32 = arith.constant 0 : i32
    %c0_i32_0 = arith.constant 0 : i32
    %c0_i32_1 = arith.constant 0 : i32
    %c0_i32_2 = arith.constant 0 : i32
    return %c0_i32, %c0_i32_0, %c0_i32_1 : i32, i32, i32
  }
  func.func @transform_4(%arg0: i32) -> (i32, i32, i32) {
    %c0_i32 = arith.constant 0 : i32
    %c0_i32_0 = arith.constant 0 : i32
    %c0_i32_1 = arith.constant 0 : i32
    %c0_i32_2 = arith.constant 0 : i32
    return %c0_i32, %c0_i32_0, %c0_i32_1 : i32, i32, i32
  }
  func.func @transform_5(%arg0: i32) -> (i32, i32, i32) {
    %c0_i32 = arith.constant 0 : i32
    %c0_i32_0 = arith.constant 0 : i32
    %c0_i32_1 = arith.constant 0 : i32
    %c0_i32_2 = arith.constant 0 : i32
    return %c0_i32, %c0_i32_0, %c0_i32_1 : i32, i32, i32
  }
  func.func @transform_6(%arg0: i32) -> (i32, i32, i32) {
    %c0_i32 = arith.constant 0 : i32
    %c0_i32_0 = arith.constant 0 : i32
    %c0_i32_1 = arith.constant 0 : i32
    %c0_i32_2 = arith.constant 0 : i32
    return %c0_i32, %c0_i32_0, %c0_i32_1 : i32, i32, i32
  }
  func.func @transform_7(%arg0: i32) -> (i32, i32, i32) {
    %c0_i32 = arith.constant 0 : i32
    %c0_i32_0 = arith.constant 0 : i32
    %c0_i32_1 = arith.constant 0 : i32
    %c0_i32_2 = arith.constant 0 : i32
    return %c0_i32, %c0_i32_0, %c0_i32_1 : i32, i32, i32
  }
  func.func @transform_8(%arg0: i32) -> (i32, i32) {
    %c0_i32 = arith.constant 0 : i32
    %c0_i32_0 = arith.constant 0 : i32
    %c0_i32_1 = arith.constant 0 : i32
    return %c0_i32, %c0_i32_0 : i32, i32
  }
  func.func @transform_9(%arg0: i32) -> (i32, i32) {
    %c0_i32 = arith.constant 0 : i32
    %c0_i32_0 = arith.constant 0 : i32
    %c0_i32_1 = arith.constant 0 : i32
    return %c0_i32, %c0_i32_0 : i32, i32
  }
  func.func @transform_10(%arg0: i32) -> (i32, i32) {
    %c0_i32 = arith.constant 0 : i32
    %c0_i32_0 = arith.constant 0 : i32
    %c0_i32_1 = arith.constant 0 : i32
    return %c0_i32, %c0_i32_0 : i32, i32
  }
  func.func @transform_11(%arg0: i32) -> (i32, i32) {
    %c0_i32 = arith.constant 0 : i32
    %c0_i32_0 = arith.constant 0 : i32
    %c0_i32_1 = arith.constant 0 : i32
    return %c0_i32, %c0_i32_0 : i32, i32
  }
  func.func @transform_12(%arg0: i32) -> (i32, i32) {
    %c0_i32 = arith.constant 0 : i32
    %c0_i32_0 = arith.constant 0 : i32
    %c0_i32_1 = arith.constant 0 : i32
    return %c0_i32, %c0_i32_0 : i32, i32
  }
  func.func @transform_13(%arg0: i32) -> (i32, i32) {
    %c0_i32 = arith.constant 0 : i32
    %c0_i32_0 = arith.constant 0 : i32
    %c0_i32_1 = arith.constant 0 : i32
    return %c0_i32, %c0_i32_0 : i32, i32
  }
  func.func @transform_14(%arg0: i32) -> (i32, i32) {
    %c0_i32 = arith.constant 0 : i32
    %c0_i32_0 = arith.constant 0 : i32
    %c0_i32_1 = arith.constant 0 : i32
    return %c0_i32, %c0_i32_0 : i32, i32
  }
  func.func @transform_15(%arg0: i32) -> (i32, i32) {
    %c0_i32 = arith.constant 0 : i32
    %c0_i32_0 = arith.constant 0 : i32
    %c0_i32_1 = arith.constant 0 : i32
    return %c0_i32, %c0_i32_0 : i32, i32
  }
  func.func @transform_16(%arg0: i32) -> (i32, i32) {
    %c0_i32 = arith.constant 0 : i32
    %c0_i32_0 = arith.constant 0 : i32
    %c0_i32_1 = arith.constant 0 : i32
    return %c0_i32, %c0_i32_0 : i32, i32
  }
  func.func @transform_17(%arg0: i32) -> (i32, i32) {
    %c0_i32 = arith.constant 0 : i32
    %c0_i32_0 = arith.constant 0 : i32
    return %arg0, %c0_i32 : i32, i32
  }
}

</mosaic_0001>

<bundles_post_ra>
// kernel: tpu_custom_call.1
= control target key start
LH: loop header
LB: loop body
LE: loop exit
PB: predicated region body
PF: predicated region fallthrough
CT: control target
= control target key end

     0   :  { %s12182_s0 = inlined_call_operand.hbm [shape: bf16[256,256], index: 0, kind: input, shape index: {}]   ;;  %s12183_s1 = inlined_call_operand.hbm [shape: f32[256,256], index: 1, kind: input, shape index: {}]   ;;  %s12184_s2 = inlined_call_operand.hbm [shape: f32[256,256], index: 2, kind: input, shape index: {}]   ;;  %s12185_s3 = inlined_call_operand.hbm [shape: bf16[2,256,256], index: 3, kind: input, shape index: {}]   ;;  %s12186_s4 = inlined_call_operand.hbm [shape: f32[2,1,256], index: 4, kind: input, shape index: {}]   ;;  %s12187_s5 = inlined_call_operand.hbm [shape: f32[2,1,256], index: 5, kind: input, shape index: {}]   ;;  %s12188_s6 = inlined_call_operand.hbm [shape: f32[2,1,256], index: 6, kind: input, shape index: {}]   ;;  %s12189_s7 = inlined_call_operand.hbm [shape: bf16[2,256,256], index: 7, kind: input, shape index: {}]   ;;  %s12190_s8 = inlined_call_operand.hbm [shape: f32[1,256], index: 8, kind: input, shape index: {}]   ;;  %s12191_s9 = inlined_call_operand.vmem [shape: bf16[256,128], index: 9, kind: input, shape index: {}]   ;;  %s12192_s10 = inlined_call_operand.vmem [shape: f32[1,128], index: 10, kind: input, shape index: {}]   ;;  %s12193_s11 = inlined_call_operand.vmem [shape: bf16[128,64], index: 11, kind: input, shape index: {}]   ;;  %s12194_s12 = inlined_call_operand.hbm [shape: f32[1,64], index: 12, kind: input, shape index: {}]   ;;  %s12195_s13 = inlined_call_operand.vmem [shape: bf16[64,32], index: 13, kind: input, shape index: {}]   ;;  %s12196_s14 = inlined_call_operand.vmem [shape: f32[1,32], index: 14, kind: input, shape index: {}]   ;;  %s12197_s15 = inlined_call_operand.vmem [shape: bf16[32,128], index: 15, kind: input, shape index: {}]   ;;  %s12198_s16 = inlined_call_operand.vmem [shape: f32[1,128], index: 16, kind: input, shape index: {}]   ;;  %s12199_s17 = inlined_call_operand.hbm [shape: f32[256,128], index: 17, kind: output, shape index: {}]  }
   0x1   :  { %12468 = sst [smem:[#allocation153_spill]] %s12182_s0 }
   0x2   :  { %12469 = sst [smem:[#allocation154_spill]] %s12183_s1 }
   0x3   :  { %12470 = sst [smem:[#allocation155_spill]] %s12199_s17 }
   0x4   :  { %22 = vsyncpa [#allocation3], 0 }
   0x5   :  { %23 = vsyncpa [#allocation6], 0 }
   0x6   :  { %24 = vsyncpa [#allocation9], 0 }
   0x7   :  { %25 = vsyncpa [#allocation12], 0 }
   0x8   :  { %26 = vsyncpa [#allocation15], 0 }
   0x9   :  { %27 = vsyncpa [#allocation18], 0 }
   0xa   :  { %28 = vsyncpa [#allocation4], 0  ;;  %s8386_s24 = smov [#allocation5]   ;;  %s12471_s28 = sld [smem:[#allocation154_spill]] }
   0xb   :  { %s46_s25 = sshll.u32 %s8386_s24, 4  ;;  %s47_s25 = int_to_ptr.vmem [resolvable:$true] %s46_s25 }
  0x10   :  { %s8130_s29 = scalar_lea.hbm %s12471_s28, 8192 }
  0x11   :  { %p8131_p0 = scmp.ne.s32.totalorder %s12471_s28, %s8130_s29  ;;  %p8134_p1 = scmp.lt.u32.totalorder %s8130_s29, %s12471_s28 }
  0x13   :  { %p8136_p2 = pnand %p8134_p1, %p8131_p0 }
  0x15   :  { %8139 = shalt.err (!%p8136_p2)
}
  0x16   :  { %s8140_s1 = scalar_lea.vmem %s47_s25, 8192  ;;  %p8145_p4 = scmp.lt.s32.totalorder %s47_s25, %s47_s25 }
  0x17   :  { %p8141_p3 = scmp.ne.s32.totalorder %s47_s25, %s8140_s1  ;;  %p8146_p5 = scmp.lt.s32.totalorder %s8140_s1, %s8140_s1 }
  0x19   :  { %p8147_p6 = por %p8146_p5, %p8145_p4 }
  0x1b   :  { %p8148_p7 = pnand %p8147_p6, %p8141_p3 }
  0x1d   :  { %8151 = shalt.err (!%p8148_p7)
}
  0x1e   :  { %s12203_s20 = smov 256   ;;  %s12204_s21 = smov 16  }
  0x1f   :  { %52 = dma.hbm_to_vmem [thread:$0]  %s12471_s28, 8192, %s47_s25, [#allocation6], %s12203_s20, %s12203_s20, %s12204_s21  }
  0x20   :  { %s8389_s24 = smov [#allocation8]   ;;  %s8152_s0 = scalar_lea.hbm %s12185_s3, 8192 }
  0x21   :  { %s70_s26 = sshll.u32 %s8389_s24, 4  ;;  %p8153_p8 = scmp.ne.s32.totalorder %s12185_s3, %s8152_s0  ;;  %s71_s26 = int_to_ptr.vmem [resolvable:$true] %s70_s26 }
  0x22   :  { %p8156_p9 = scmp.lt.u32.totalorder %s8152_s0, %s12185_s3 }
  0x24   :  { %p8158_p10 = pnand %p8156_p9, %p8153_p8 }
  0x26   :  { %8161 = shalt.err (!%p8158_p10)
}
  0x27   :  { %s8162_s17 = scalar_lea.vmem %s71_s26, 8192  ;;  %p8167_p12 = scmp.lt.s32.totalorder %s71_s26, %s71_s26 }
  0x28   :  { %p8163_p11 = scmp.ne.s32.totalorder %s71_s26, %s8162_s17  ;;  %p8168_p13 = scmp.lt.s32.totalorder %s8162_s17, %s8162_s17 }
  0x2a   :  { %p8169_p0 = por %p8168_p13, %p8167_p12 }
  0x2c   :  { %p8170_p1 = pnand %p8169_p0, %p8163_p11 }
  0x2e   :  { %8173 = shalt.err (!%p8170_p1)
}
  0x2f   :  { %s8390_s25 = smov 128   ;;  %s8391_s28 = smov 8  }
  0x30   :  { %76 = dma.hbm_to_vmem [thread:$0]  %s12185_s3, 8192, %s71_s26, [#allocation9], %s8390_s25, %s8390_s25, %s8391_s28  }
  0x31   :  { %s8392_s24 = smov [#allocation11]   ;;  %s8393_s29 = smov [#allocation14]  }
  0x32   :  { %s94_s27 = sshll.u32 %s8392_s24, 4  ;;  %s118_s0 = sshll.u32 %s8393_s29, 4  ;;  %s95_s27 = int_to_ptr.vmem [resolvable:$true] %s94_s27  ;;  %s8524_s0 = int_to_ptr.vmem [resolvable:$true] %s118_s0 }
  0x33   :  { %s8174_s18 = scalar_lea.hbm %s12187_s5, 64 }
  0x34   :  { %p8175_p2 = scmp.ne.s32.totalorder %s12187_s5, %s8174_s18  ;;  %p8178_p3 = scmp.lt.u32.totalorder %s8174_s18, %s12187_s5 }
  0x36   :  { %p8180_p4 = pnand %p8178_p3, %p8175_p2 }
  0x38   :  { %8183 = shalt.err (!%p8180_p4)
}
  0x39   :  { %s8184_s3 = scalar_lea.vmem %s95_s27, 64  ;;  %p8189_p6 = scmp.lt.s32.totalorder %s95_s27, %s95_s27 }
  0x3a   :  { %p8185_p5 = scmp.ne.s32.totalorder %s95_s27, %s8184_s3  ;;  %p8190_p7 = scmp.lt.s32.totalorder %s8184_s3, %s8184_s3 }
  0x3c   :  { %p8191_p8 = por %p8190_p7, %p8189_p6 }
  0x3e   :  { %p8192_p9 = pnand %p8191_p8, %p8185_p5 }
  0x40   :  { %8195 = shalt.err (!%p8192_p9)
}
  0x41   :  { %s12205_s26 = smov 32   ;;  %s8395_s22 = smov 2  }
  0x42   :  { %100 = dma.hbm_to_vmem [thread:$0]  %s12187_s5, 64, %s95_s27, [#allocation12], %s12205_s26, %s12205_s26, %s8395_s22  }
  0x43   :  { %s8196_s29 = scalar_lea.hbm %s12189_s7, 8192 }
  0x44   :  { %p8197_p10 = scmp.ne.s32.totalorder %s12189_s7, %s8196_s29  ;;  %p8200_p11 = scmp.lt.u32.totalorder %s8196_s29, %s12189_s7 }
  0x46   :  { %p8202_p12 = pnand %p8200_p11, %p8197_p10 }
  0x48   :  { %8205 = shalt.err (!%p8202_p12)
}
  0x49   :  { %s8206_s1 = scalar_lea.vmem %s8524_s0, 8192  ;;  %p8211_p0 = scmp.lt.s32.totalorder %s8524_s0, %s8524_s0 }
  0x4a   :  { %p8207_p13 = scmp.ne.s32.totalorder %s8524_s0, %s8206_s1  ;;  %p8212_p1 = scmp.lt.s32.totalorder %s8206_s1, %s8206_s1 }
  0x4c   :  { %p8213_p2 = por %p8212_p1, %p8211_p0 }
  0x4e   :  { %p8214_p3 = pnand %p8213_p2, %p8207_p13 }
  0x50   :  { %8217 = shalt.err (!%p8214_p3)
}
  0x51   :  { %124 = dma.hbm_to_vmem [thread:$0]  %s12189_s7, 8192, %s8524_s0, [#allocation15], %s8390_s25, %s8390_s25, %s8391_s28  }
  0x52   :  { %s8396_s3 = smov [#allocation2]   ;;  %s8397_s24 = smov [#allocation7]  }
  0x53   :  { %s34_s23 = sshll.u32 %s8396_s3, 4  ;;  %s58_s20 = sshll.u32 %s8397_s24, 4  ;;  %s35_s23 = int_to_ptr.vmem [resolvable:$true] %s34_s23  ;;  %s8561_s20 = int_to_ptr.vmem [resolvable:$true] %s58_s20 }
  0x54   :  { %s12472_s17 = sld [smem:[#allocation153_spill]] }
  0x5a   :  { %s8218_s30 = scalar_lea.hbm %s12472_s17, 4096 }
  0x5b   :  { %p8219_p4 = scmp.ne.s32.totalorder %s12472_s17, %s8218_s30  ;;  %p8222_p5 = scmp.lt.u32.totalorder %s8218_s30, %s12472_s17 }
  0x5d   :  { %p8224_p6 = pnand %p8222_p5, %p8219_p4 }
  0x5f   :  { %8227 = shalt.err (!%p8224_p6)
}
  0x60   :  { %s8228_s7 = scalar_lea.vmem %s35_s23, 4096  ;;  %p8233_p8 = scmp.lt.s32.totalorder %s35_s23, %s35_s23 }
  0x61   :  { %p8229_p7 = scmp.ne.s32.totalorder %s35_s23, %s8228_s7  ;;  %p8234_p9 = scmp.lt.s32.totalorder %s8228_s7, %s8228_s7 }
  0x63   :  { %p8235_p10 = por %p8234_p9, %p8233_p8 }
  0x65   :  { %p8236_p11 = pnand %p8235_p10, %p8229_p7 }
  0x67   :  { %8239 = shalt.err (!%p8236_p11)
}
  0x68   :  { %40 = dma.hbm_to_vmem [thread:$0]  %s12472_s17, 4096, %s35_s23, [#allocation3], %s8390_s25, %s8390_s25, %s8391_s28  }
  0x69   :  { %s8240_s26 = scalar_lea.hbm %s12184_s2, 8192 }
  0x6a   :  { %p8241_p12 = scmp.ne.s32.totalorder %s12184_s2, %s8240_s26  ;;  %p8244_p13 = scmp.lt.u32.totalorder %s8240_s26, %s12184_s2 }
  0x6c   :  { %p8246_p0 = pnand %p8244_p13, %p8241_p12 }
  0x6e   :  { %8249 = shalt.err (!%p8246_p0)
}
  0x6f   :  { %s8250_s18 = scalar_lea.vmem %s8561_s20, 8192  ;;  %p8255_p2 = scmp.lt.s32.totalorder %s8561_s20, %s8561_s20 }
  0x70   :  { %p8251_p1 = scmp.ne.s32.totalorder %s8561_s20, %s8250_s18  ;;  %p8256_p3 = scmp.lt.s32.totalorder %s8250_s18, %s8250_s18 }
  0x72   :  { %p8257_p4 = por %p8256_p3, %p8255_p2 }
  0x74   :  { %p8258_p5 = pnand %p8257_p4, %p8251_p1 }
  0x76   :  { %8261 = shalt.err (!%p8258_p5)
}
  0x77   :  { %s12473_s23 = smov 16   ;;  %s12474_s17 = smov 256  }
  0x78   :  { %64 = dma.hbm_to_vmem [thread:$0]  %s12184_s2, 8192, %s8561_s20, [#allocation6], %s12474_s17, %s12474_s17, %s12473_s23  }
  0x79   :  { %s8398_s7 = smov [#allocation10]   ;;  %s8399_s5 = smov [#allocation13]  }
  0x7a   :  { %s82_s0 = sshll.u32 %s8398_s7, 4  ;;  %s106_s27 = sshll.u32 %s8399_s5, 4  ;;  %s83_s0 = int_to_ptr.vmem [resolvable:$true] %s82_s0  ;;  %s8598_s27 = int_to_ptr.vmem [resolvable:$true] %s106_s27 }
  0x7b   :  { %s8262_s24 = scalar_lea.hbm %s12186_s4, 64 }
  0x7c   :  { %p8263_p6 = scmp.ne.s32.totalorder %s12186_s4, %s8262_s24  ;;  %p8266_p7 = scmp.lt.u32.totalorder %s8262_s24, %s12186_s4 }
  0x7e   :  { %p8268_p8 = pnand %p8266_p7, %p8263_p6 }
  0x80   :  { %8271 = shalt.err (!%p8268_p8)
}
  0x81   :  { %s8272_s2 = scalar_lea.vmem %s83_s0, 64  ;;  %p8277_p10 = scmp.lt.s32.totalorder %s83_s0, %s83_s0 }
  0x82   :  { %p8273_p9 = scmp.ne.s32.totalorder %s83_s0, %s8272_s2  ;;  %p8278_p11 = scmp.lt.s32.totalorder %s8272_s2, %s8272_s2 }
  0x84   :  { %p8279_p12 = por %p8278_p11, %p8277_p10 }
  0x86   :  { %p8280_p13 = pnand %p8279_p12, %p8273_p9 }
  0x88   :  { %8283 = shalt.err (!%p8280_p13)
}
  0x89   :  { %s12475_s20 = smov 32   ;;  %s8284_s7 = scalar_lea.hbm %s12188_s6, 64 }
  0x8a   :  { %88 = dma.hbm_to_vmem [thread:$0]  %s12186_s4, 64, %s83_s0, [#allocation9], %s12475_s20, %s12475_s20, %s8395_s22  }
  0x8b   :  { %p8285_p0 = scmp.ne.s32.totalorder %s12188_s6, %s8284_s7  ;;  %p8288_p1 = scmp.lt.u32.totalorder %s8284_s7, %s12188_s6 }
  0x8d   :  { %p8290_p2 = pnand %p8288_p1, %p8285_p0 }
  0x8f   :  { %8293 = shalt.err (!%p8290_p2)
}
  0x90   :  { %s8294_s21 = scalar_lea.vmem %s8598_s27, 64  ;;  %p8299_p4 = scmp.lt.s32.totalorder %s8598_s27, %s8598_s27 }
  0x91   :  { %p8295_p3 = scmp.ne.s32.totalorder %s8598_s27, %s8294_s21  ;;  %p8300_p5 = scmp.lt.s32.totalorder %s8294_s21, %s8294_s21 }
  0x93   :  { %p8301_p6 = por %p8300_p5, %p8299_p4 }
  0x95   :  { %p8302_p7 = pnand %p8301_p6, %p8295_p3 }
  0x97   :  { %8305 = shalt.err (!%p8302_p7)
}
  0x98   :  { %112 = dma.hbm_to_vmem [thread:$0]  %s12188_s6, 64, %s8598_s27, [#allocation12], %s12475_s20, %s12475_s20, %s8395_s22  }
  0x99   :  { %s8400_s29 = smov [#allocation16]   ;;  %s8401_s18 = smov [#allocation17]  }
  0x9a   :  { %s131_s30 = sshll.u32 %s8400_s29, 4  ;;  %s147_s2 = sshll.u32 %s8401_s18, 4  ;;  %s132_s30 = int_to_ptr.vmem [resolvable:$true] %s131_s30  ;;  %s148_s2 = int_to_ptr.vmem [resolvable:$true] %s147_s2 }
  0x9b   :  { %s8306_s19 = scalar_lea.hbm %s12190_s8, 32 }
  0x9c   :  { %p8307_p8 = scmp.ne.s32.totalorder %s12190_s8, %s8306_s19  ;;  %p8310_p9 = scmp.lt.u32.totalorder %s8306_s19, %s12190_s8 }
  0x9e   :  { %p8312_p10 = pnand %p8310_p9, %p8307_p8 }
  0xa0   :  { %8315 = shalt.err (!%p8312_p10)
}
  0xa1   :  { %s8316_s6 = scalar_lea.vmem %s132_s30, 32  ;;  %p8321_p12 = scmp.lt.s32.totalorder %s132_s30, %s132_s30 }
  0xa2   :  { %p8317_p11 = scmp.ne.s32.totalorder %s132_s30, %s8316_s6  ;;  %p8322_p13 = scmp.lt.s32.totalorder %s8316_s6, %s8316_s6 }
  0xa4   :  { %p8323_p0 = por %p8322_p13, %p8321_p12 }
  0xa6   :  { %p8324_p1 = pnand %p8323_p0, %p8317_p11 }
  0xa8   :  { %8327 = shalt.err (!%p8324_p1)
}
  0xa9   :  { %134 = dma.hbm_to_vmem [thread:$0]  %s12190_s8, 32, %s132_s30, [#allocation15]  }
  0xaa   :  { %s8328_s24 = scalar_lea.hbm %s12194_s12, 16 }
  0xab   :  { %p8329_p2 = scmp.ne.s32.totalorder %s12194_s12, %s8328_s24  ;;  %p8332_p3 = scmp.lt.u32.totalorder %s8328_s24, %s12194_s12 }
  0xad   :  { %p8334_p4 = pnand %p8332_p3, %p8329_p2 }
  0xaf   :  { %8337 = shalt.err (!%p8334_p4)
}
  0xb0   :  { %s8338_s18 = scalar_lea.vmem %s148_s2, 16  ;;  %s8342_s23 = scalar_lea.vmem %s148_s2, 32 }
  0xb1   :  { %p8339_p5 = scmp.ne.s32.totalorder %s148_s2, %s8338_s18  ;;  %p8343_p6 = scmp.lt.s32.totalorder %s148_s2, %s148_s2 }
  0xb2   :  { %p8344_p7 = scmp.lt.s32.totalorder %s8342_s23, %s8338_s18 }
  0xb4   :  { %p8345_p8 = por %p8344_p7, %p8343_p6 }
  0xb6   :  { %p8346_p9 = pnand %p8345_p8, %p8339_p5 }
  0xb8   :  { %8349 = shalt.err (!%p8346_p9)
}
  0xb9   :  { %150 = dma.hbm_to_vmem [thread:$0]  %s12194_s12, 16, %s148_s2, [#allocation18]  }
  0xba   :  { %8372 = dma.done.wait [#allocation3], 4096  }
  0xbb   :  { %8373 = vsyncadd [#allocation3], 4294963200 }
  0xbc   :  { %8374 = dma.done.wait [#allocation6], 16384  }
  0xbd   :  { %8375 = vsyncadd [#allocation6], 4294950912 }
  0xbe   :  { %8376 = dma.done.wait [#allocation9], 8256  }
  0xbf   :  { %8377 = vsyncadd [#allocation9], 4294959040 }
  0xc0   :  { %8378 = dma.done.wait [#allocation12], 128  }
  0xc1   :  { %8379 = vsyncadd [#allocation12], 4294967168 }
  0xc2   :  { %8380 = dma.done.wait [#allocation15], 8224  }
  0xc3   :  { %8381 = vsyncadd [#allocation15], 4294959072 }
  0xc4   :  { %8382 = dma.done.wait [#allocation18], 16  }
  0xc5   :  { %8383 = vsyncadd [#allocation18], 4294967280  ;;  %v7493_v0 = vld [vmem:[#allocation8 + $0x4] ss:$8 sps:$4 sm:$0xff]   ;;  %v7495_v1 = vld [vmem:[#allocation8] ss:$8 sps:$4 sm:$0xff]  }
  0xc6   :  { %608 = vmatprep.subr.bf16.mxu0 %v7493_v0  ;;  %v7496_v2 = vld [vmem:[#allocation8 + $0x14] ss:$8 sps:$4 sm:$0xff]   ;;  %801 = vmatprep.subr.bf16.mxu1 %v7493_v0  ;;  %v7498_v3 = vld [vmem:[#allocation8 + $0x10] ss:$8 sps:$4 sm:$0xff]   ;;  %v7499_v4 = vld [vmem:[#allocation8 + $0x24] ss:$8 sps:$4 sm:$0xff]  }
  0xc7   :  { %609 = vmatpush1.bf16.msra.mxu0 %v7495_v1  ;;  %802 = vmatpush1.bf16.msra.mxu1 %v7495_v1  ;;  %v7501_v5 = vld [vmem:[#allocation8 + $0x20] ss:$8 sps:$4 sm:$0xff]   ;;  %v7502_v6 = vld [vmem:[#allocation8 + $0x34] ss:$8 sps:$4 sm:$0xff]   ;;  %v7504_v7 = vld [vmem:[#allocation8 + $0x30] ss:$8 sps:$4 sm:$0xff]  }
  0xc8   :  { %610 = vmatprep.subr.bf16.mxu0 %v7496_v2  ;;  %803 = vmatprep.subr.bf16.mxu1 %v7496_v2  ;;  %v7505_v8 = vld [vmem:[#allocation8 + $0x44] ss:$8 sps:$4 sm:$0xff]   ;;  %v7507_v9 = vld [vmem:[#allocation8 + $0x40] ss:$8 sps:$4 sm:$0xff]   ;;  %v7508_v10 = vld [vmem:[#allocation8 + $0x54] ss:$8 sps:$4 sm:$0xff]  }
  0xc9   :  { %v7510_v11 = vld [vmem:[#allocation8 + $0x50] ss:$8 sps:$4 sm:$0xff]   ;;  %v7511_v12 = vld [vmem:[#allocation8 + $0x64] ss:$8 sps:$4 sm:$0xff]   ;;  %v7513_v16 = vld [vmem:[#allocation8 + $0x60] ss:$8 sps:$4 sm:$0xff]  }
  0xca   :  { %v225_v13 = vld [vmem:[#allocation7 + $0x8] sm:$0xff]  ;;  %v227_v14 = vld [vmem:[#allocation7 + $0x18] sm:$0xff]  ;;  %v224_v38 = vld [vmem:[#allocation7] sm:$0xff] }
  0xcb   :  { %611 = vmatpush1.bf16.msra.mxu0 %v7498_v3  ;;  %804 = vmatpush1.bf16.msra.mxu1 %v7498_v3  ;;  %v8659_v15 = vpack.c.bf16 %v227_v14, %v225_v13  ;;  %v7514_v17 = vld [vmem:[#allocation8 + $0x74] ss:$8 sps:$4 sm:$0xff]   ;;  %v7516_v18 = vld [vmem:[#allocation8 + $0x70] ss:$8 sps:$4 sm:$0xff]   ;;  %v7517_v19 = vld [vmem:[#allocation8 + $0x84] ss:$8 sps:$4 sm:$0xff]  }
  0xcc   :  { %612 = vmatprep.subr.bf16.mxu0 %v7499_v4  ;;  %805 = vmatprep.subr.bf16.mxu1 %v7499_v4  ;;  %v7519_v20 = vld [vmem:[#allocation8 + $0x80] ss:$8 sps:$4 sm:$0xff]   ;;  %v7520_v21 = vld [vmem:[#allocation8 + $0x94] ss:$8 sps:$4 sm:$0xff]   ;;  %v7522_v22 = vld [vmem:[#allocation8 + $0x90] ss:$8 sps:$4 sm:$0xff]  }
  0xcd   :  { %640 = vmatprep.mubr.bf16.mxu0 %v8659_v15  ;;  %v7523_v23 = vld [vmem:[#allocation8 + $0xa4] ss:$8 sps:$4 sm:$0xff]   ;;  %v7525_v24 = vld [vmem:[#allocation8 + $0xa0] ss:$8 sps:$4 sm:$0xff]   ;;  %v7526_v25 = vld [vmem:[#allocation8 + $0xb4] ss:$8 sps:$4 sm:$0xff]  }
  0xce   :  { %v7528_v26 = vld [vmem:[#allocation8 + $0xb0] ss:$8 sps:$4 sm:$0xff]   ;;  %v7529_v27 = vld [vmem:[#allocation8 + $0xc4] ss:$8 sps:$4 sm:$0xff]   ;;  %v7531_v28 = vld [vmem:[#allocation8 + $0xc0] ss:$8 sps:$4 sm:$0xff]  }
  0xcf   :  { %613 = vmatpush1.bf16.msra.mxu0 %v7501_v5  ;;  %806 = vmatpush1.bf16.msra.mxu1 %v7501_v5  ;;  %v7532_v29 = vld [vmem:[#allocation8 + $0xd4] ss:$8 sps:$4 sm:$0xff]   ;;  %v321_v30 = vld [vmem:[#allocation5 + $0x8] sm:$0xff]  ;;  %v7534_v32 = vld [vmem:[#allocation8 + $0xd0] ss:$8 sps:$4 sm:$0xff]  }
  0xd0   :  { %614 = vmatprep.subr.bf16.mxu0 %v7502_v6  ;;  %807 = vmatprep.subr.bf16.mxu1 %v7502_v6  ;;  %v323_v31 = vld [vmem:[#allocation5 + $0x18] sm:$0xff]  ;;  %v7535_v34 = vld [vmem:[#allocation8 + $0xe4] ss:$8 sps:$4 sm:$0xff]   ;;  %v7537_v35 = vld [vmem:[#allocation8 + $0xe0] ss:$8 sps:$4 sm:$0xff]  }
  0xd1   :  { %v8662_v33 = vpack.c.bf16 %v323_v31, %v321_v30  ;;  %v7538_v36 = vld [vmem:[#allocation8 + $0xf4] ss:$8 sps:$4 sm:$0xff]   ;;  %v7540_v37 = vld [vmem:[#allocation8 + $0xf0] ss:$8 sps:$4 sm:$0xff]   ;;  %v229_v40 = vld [vmem:[#allocation7 + $0x28] sm:$0xff] }
  0xd2   :  { %v226_v39 = vld [vmem:[#allocation7 + $0x10] sm:$0xff]  ;;  %v320_v41 = vld [vmem:[#allocation5] sm:$0xff]  ;;  %v231_v43 = vld [vmem:[#allocation7 + $0x38] sm:$0xff] }
  0xd3   :  { %615 = vmatpush1.bf16.msra.mxu0 %v7504_v7  ;;  %808 = vmatpush1.bf16.msra.mxu1 %v7504_v7  ;;  %12476 = vst [vmem:[#allocation27_spill] sm:$0xff] %v8662_v33  ;;  %v322_v42 = vld [vmem:[#allocation5 + $0x10] sm:$0xff]  ;;  %v325_v44 = vld [vmem:[#allocation5 + $0x28] sm:$0xff]  ;;  %v327_v45 = vld [vmem:[#allocation5 + $0x38] sm:$0xff]  ;;  %v8665_v46 = vpack.c.bf16 %v226_v39, %v224_v38  ;;  %v8669_v48 = vpack.c.bf16 %v231_v43, %v229_v40 }
  0xd4   :  { %616 = vmatprep.subr.bf16.mxu0 %v7505_v8  ;;  %809 = vmatprep.subr.bf16.mxu1 %v7505_v8  ;;  %v8667_v47 = vpack.c.bf16 %v322_v42, %v320_v41  ;;  %v8671_v49 = vpack.c.bf16 %v327_v45, %v325_v44  ;;  %v228_v50 = vld [vmem:[#allocation7 + $0x20] sm:$0xff]  ;;  %v230_v51 = vld [vmem:[#allocation7 + $0x30] sm:$0xff]  ;;  %v233_v52 = vld [vmem:[#allocation7 + $0x48] sm:$0xff] }
  0xd5   :  { %833 = vmatprep.mubr.bf16.mxu1 %v8662_v33  ;;  %12477 = vst [vmem:[#allocation28_spill] sm:$0xff] %v8665_v46  ;;  %12479 = vst [vmem:[#allocation30_spill] sm:$0xff] %v8669_v48  ;;  %v324_v53 = vld [vmem:[#allocation5 + $0x20] sm:$0xff]  ;;  %v326_v54 = vld [vmem:[#allocation5 + $0x30] sm:$0xff]  ;;  %v8677_v58 = vpack.c.bf16 %v230_v51, %v228_v50 }
  0xd6   :  { %12478 = vst [vmem:[#allocation29_spill] sm:$0xff] %v8667_v47  ;;  %12480 = vst [vmem:[#allocation31_spill] sm:$0xff] %v8671_v49  ;;  %v235_v55 = vld [vmem:[#allocation7 + $0x58] sm:$0xff]  ;;  %v329_v56 = vld [vmem:[#allocation5 + $0x48] sm:$0xff]  ;;  %v8679_v59 = vpack.c.bf16 %v326_v54, %v324_v53 }
  0xd7   :  { %617 = vmatpush1.bf16.msra.mxu0 %v7507_v9  ;;  %810 = vmatpush1.bf16.msra.mxu1 %v7507_v9  ;;  %v331_v57 = vld [vmem:[#allocation5 + $0x58] sm:$0xff]  ;;  %12481 = vst [vmem:[#allocation32_spill] sm:$0xff] %v8677_v58  ;;  %v8681_v60 = vpack.c.bf16 %v235_v55, %v233_v52  ;;  %v232_v62 = vld [vmem:[#allocation7 + $0x40] sm:$0xff]  ;;  %v234_v63 = vld [vmem:[#allocation7 + $0x50] sm:$0xff] }
  0xd8   :  { %618 = vmatprep.subr.bf16.mxu0 %v7508_v10  ;;  %811 = vmatprep.subr.bf16.mxu1 %v7508_v10  ;;  %12482 = vst [vmem:[#allocation33_spill] sm:$0xff] %v8679_v59  ;;  %v8683_v61 = vpack.c.bf16 %v331_v57, %v329_v56  ;;  %v328_v0 = vld [vmem:[#allocation5 + $0x40] sm:$0xff]  ;;  %v330_v1 = vld [vmem:[#allocation5 + $0x50] sm:$0xff]  ;;  %v237_v2 = vld [vmem:[#allocation7 + $0x68] sm:$0xff]  ;;  %v8689_v6 = vpack.c.bf16 %v234_v63, %v232_v62 }
  0xd9   :  { %12483 = vst [vmem:[#allocation34_spill] sm:$0xff] %v8681_v60  ;;  %v239_v3 = vld [vmem:[#allocation7 + $0x78] sm:$0xff]  ;;  %v333_v4 = vld [vmem:[#allocation5 + $0x68] sm:$0xff]  ;;  %v8691_v7 = vpack.c.bf16 %v330_v1, %v328_v0  ;;  %v236_v10 = vld [vmem:[#allocation7 + $0x60] sm:$0xff] }
  0xda   :  { %12484 = vst [vmem:[#allocation35_spill] sm:$0xff] %v8683_v61  ;;  %v335_v5 = vld [vmem:[#allocation5 + $0x78] sm:$0xff]  ;;  %12485 = vst [vmem:[#allocation36_spill] sm:$0xff] %v8689_v6  ;;  %v8693_v8 = vpack.c.bf16 %v239_v3, %v237_v2  ;;  %v334_v13 = vld [vmem:[#allocation5 + $0x70] sm:$0xff] }
  0xdb   :  { %619 = vmatpush1.bf16.msra.mxu0 %v7510_v11  ;;  %812 = vmatpush1.bf16.msra.mxu1 %v7510_v11  ;;  %12486 = vst [vmem:[#allocation37_spill] sm:$0xff] %v8691_v7  ;;  %v8695_v9 = vpack.c.bf16 %v335_v5, %v333_v4  ;;  %v238_v11 = vld [vmem:[#allocation7 + $0x70] sm:$0xff]  ;;  %v241_v14 = vld [vmem:[#allocation7 + $0x88] sm:$0xff]  ;;  %v343_v30 = vld [vmem:[#allocation5 + $0xb8] sm:$0xff] }
  0xdc   :  { %620 = vmatprep.subr.bf16.mxu0 %v7511_v12  ;;  %813 = vmatprep.subr.bf16.mxu1 %v7511_v12  ;;  %12487 = vst [vmem:[#allocation38_spill] sm:$0xff] %v8693_v8  ;;  %v332_v12 = vld [vmem:[#allocation5 + $0x60] sm:$0xff]  ;;  %v342_v39 = vld [vmem:[#allocation5 + $0xb0] sm:$0xff]  ;;  %v249_v40 = vld [vmem:[#allocation7 + $0xc8] sm:$0xff] }
  0xdd   :  { %12488 = vst [vmem:[#allocation39_spill] sm:$0xff] %v8695_v9  ;;  %v340_v38 = vld [vmem:[#allocation5 + $0xa0] sm:$0xff]  ;;  %v251_v41 = vld [vmem:[#allocation7 + $0xd8] sm:$0xff]  ;;  %v345_v42 = vld [vmem:[#allocation5 + $0xc8] sm:$0xff] }
  0xde   :  { %v347_v43 = vld [vmem:[#allocation5 + $0xd8] sm:$0xff]  ;;  %v8727_v45 = vpack.c.bf16 %v342_v39, %v340_v38  ;;  %v8729_v50 = vpack.c.bf16 %v251_v41, %v249_v40  ;;  %v248_v52 = vld [vmem:[#allocation7 + $0xc0] sm:$0xff]  ;;  %v250_v53 = vld [vmem:[#allocation7 + $0xd0] sm:$0xff] }
  0xdf   :  { %621 = vmatpush1.bf16.msra.mxu0 %v7513_v16  ;;  %814 = vmatpush1.bf16.msra.mxu1 %v7513_v16  ;;  %v243_v16 = vld [vmem:[#allocation7 + $0x98] sm:$0xff]  ;;  %v8731_v51 = vpack.c.bf16 %v347_v43, %v345_v42  ;;  %v344_v54 = vld [vmem:[#allocation5 + $0xc0] sm:$0xff]  ;;  %v346_v55 = vld [vmem:[#allocation5 + $0xd0] sm:$0xff]  ;;  %v8737_v0 = vpack.c.bf16 %v250_v53, %v248_v52 }
  0xe0   :  { %622 = vmatprep.subr.bf16.mxu0 %v7514_v17  ;;  %815 = vmatprep.subr.bf16.mxu1 %v7514_v17  ;;  %v337_v17 = vld [vmem:[#allocation5 + $0x88] sm:$0xff]  ;;  %12498 = vst [vmem:[#allocation49_spill] sm:$0xff] %v8727_v45  ;;  %12499 = vst [vmem:[#allocation50_spill] sm:$0xff] %v8729_v50  ;;  %v255_v57 = vld [vmem:[#allocation7 + $0xf8] sm:$0xff]  ;;  %v8739_v1 = vpack.c.bf16 %v346_v55, %v344_v54 }
  0xe1   :  { %12500 = vst [vmem:[#allocation51_spill] sm:$0xff] %v8731_v51  ;;  %v253_v56 = vld [vmem:[#allocation7 + $0xe8] sm:$0xff]  ;;  %v351_v63 = vld [vmem:[#allocation5 + $0xf8] sm:$0xff]  ;;  %12501 = vst [vmem:[#allocation52_spill] sm:$0xff] %v8737_v0 }
  0xe2   :  { %v349_v62 = vld [vmem:[#allocation5 + $0xe8] sm:$0xff]  ;;  %12502 = vst [vmem:[#allocation53_spill] sm:$0xff] %v8739_v1  ;;  %v8741_v2 = vpack.c.bf16 %v255_v57, %v253_v56  ;;  %v252_v4 = vld [vmem:[#allocation7 + $0xe0] sm:$0xff]  ;;  %v254_v5 = vld [vmem:[#allocation7 + $0xf0] sm:$0xff] }
  0xe3   :  { %623 = vmatpush1.bf16.msra.mxu0 %v7516_v18  ;;  %816 = vmatpush1.bf16.msra.mxu1 %v7516_v18  ;;  %v339_v18 = vld [vmem:[#allocation5 + $0x98] sm:$0xff]  ;;  %v8743_v3 = vpack.c.bf16 %v351_v63, %v349_v62  ;;  %v260_v42 = vld [vmem:[#allocation7 + $0x120] sm:$0xff]  ;;  %v262_v43 = vld [vmem:[#allocation7 + $0x130] sm:$0xff] }
  0xe4   :  { %624 = vmatprep.subr.bf16.mxu0 %v7517_v19  ;;  %817 = vmatprep.subr.bf16.mxu1 %v7517_v19  ;;  %v8701_v19 = vpack.c.bf16 %v238_v11, %v236_v10  ;;  %12503 = vst [vmem:[#allocation54_spill] sm:$0xff] %v8741_v2  ;;  %v257_v10 = vld [vmem:[#allocation7 + $0x108] sm:$0xff]  ;;  %v348_v11 = vld [vmem:[#allocation5 + $0xe0] sm:$0xff]  ;;  %v358_v54 = vld [vmem:[#allocation5 + $0x130] sm:$0xff]  ;;  %v8773_v62 = vpack.c.bf16 %v262_v43, %v260_v42 }
  0xe5   :  { %12504 = vst [vmem:[#allocation55_spill] sm:$0xff] %v8743_v3  ;;  %v265_v52 = vld [vmem:[#allocation7 + $0x148] sm:$0xff]  ;;  %v356_v53 = vld [vmem:[#allocation5 + $0x120] sm:$0xff]  ;;  %v267_v55 = vld [vmem:[#allocation7 + $0x158] sm:$0xff] }
  0xe6   :  { %12489 = vst [vmem:[#allocation40_spill] sm:$0xff] %v8701_v19  ;;  %v361_v56 = vld [vmem:[#allocation5 + $0x148] sm:$0xff]  ;;  %v363_v57 = vld [vmem:[#allocation5 + $0x158] sm:$0xff]  ;;  %12513 = vst [vmem:[#allocation64_spill] sm:$0xff] %v8773_v62  ;;  %v8775_v63 = vpack.c.bf16 %v358_v54, %v356_v53 }
  0xe7   :  { %625 = vmatpush1.bf16.msra.mxu0 %v7519_v20  ;;  %818 = vmatpush1.bf16.msra.mxu1 %v7519_v20  ;;  %v8703_v20 = vpack.c.bf16 %v334_v13, %v332_v12  ;;  %v350_v12 = vld [vmem:[#allocation5 + $0xf0] sm:$0xff]  ;;  %v259_v13 = vld [vmem:[#allocation7 + $0x118] sm:$0xff]  ;;  %v272_v43 = vld [vmem:[#allocation7 + $0x180] sm:$0xff] }
  0xe8   :  { %626 = vmatprep.subr.bf16.mxu0 %v7520_v21  ;;  %819 = vmatprep.subr.bf16.mxu1 %v7520_v21  ;;  %v8705_v21 = vpack.c.bf16 %v243_v16, %v241_v14  ;;  %v353_v14 = vld [vmem:[#allocation5 + $0x108] sm:$0xff]  ;;  %v355_v16 = vld [vmem:[#allocation5 + $0x118] sm:$0xff]  ;;  %12514 = vst [vmem:[#allocation65_spill] sm:$0xff] %v8775_v63 }
  0xe9   :  { %12490 = vst [vmem:[#allocation41_spill] sm:$0xff] %v8703_v20  ;;  %v277_v53 = vld [vmem:[#allocation7 + $0x1a8] sm:$0xff]  ;;  %v279_v54 = vld [vmem:[#allocation7 + $0x1b8] sm:$0xff] }
  0xea   :  { %12491 = vst [vmem:[#allocation42_spill] sm:$0xff] %v8705_v21 }
  0xeb   :  { %627 = vmatpush1.bf16.msra.mxu0 %v7522_v22  ;;  %820 = vmatpush1.bf16.msra.mxu1 %v7522_v22  ;;  %v8707_v22 = vpack.c.bf16 %v339_v18, %v337_v17  ;;  %v8749_v17 = vpack.c.bf16 %v254_v5, %v252_v4  ;;  %v8751_v18 = vpack.c.bf16 %v350_v12, %v348_v11  ;;  %v266_v11 = vld [vmem:[#allocation7 + $0x150] sm:$0xff]  ;;  %v360_v12 = vld [vmem:[#allocation5 + $0x140] sm:$0xff] }
  0xec   :  { %628 = vmatprep.subr.bf16.mxu0 %v7523_v23  ;;  %821 = vmatprep.subr.bf16.mxu1 %v7523_v23  ;;  %v240_v23 = vld [vmem:[#allocation7 + $0x80] sm:$0xff]  ;;  %v8777_v4 = vpack.c.bf16 %v267_v55, %v265_v52  ;;  %v8779_v5 = vpack.c.bf16 %v363_v57, %v361_v56  ;;  %v274_v52 = vld [vmem:[#allocation7 + $0x190] sm:$0xff]  ;;  %v8802_v56 = vpack.c.bf16 %v279_v54, %v277_v53 }
  0xed   :  { %12492 = vst [vmem:[#allocation43_spill] sm:$0xff] %v8707_v22  ;;  %12505 = vst [vmem:[#allocation56_spill] sm:$0xff] %v8749_v17  ;;  %v8800_v55 = vpack.c.bf16 %v274_v52, %v272_v43  ;;  %v276_v57 = vld [vmem:[#allocation7 + $0x1a0] sm:$0xff]  ;;  %v286_v53 = vld [vmem:[#allocation7 + $0x1f0] sm:$0xff] }
  0xee   :  { %12506 = vst [vmem:[#allocation57_spill] sm:$0xff] %v8751_v18  ;;  %12515 = vst [vmem:[#allocation66_spill] sm:$0xff] %v8777_v4  ;;  %v284_v52 = vld [vmem:[#allocation7 + $0x1e0] sm:$0xff] }
  0xef   :  { %629 = vmatpush1.bf16.msra.mxu0 %v7525_v24  ;;  %822 = vmatpush1.bf16.msra.mxu1 %v7525_v24  ;;  %v242_v24 = vld [vmem:[#allocation7 + $0x90] sm:$0xff]  ;;  %12516 = vst [vmem:[#allocation67_spill] sm:$0xff] %v8779_v5  ;;  %12522 = vst [vmem:[#allocation73_spill] sm:$0xff] %v8800_v55  ;;  %v8818_v54 = vpack.c.bf16 %v286_v53, %v284_v52 }
  0xf0   :  { %630 = vmatprep.subr.bf16.mxu0 %v7526_v25  ;;  %823 = vmatprep.subr.bf16.mxu1 %v7526_v25  ;;  %v336_v25 = vld [vmem:[#allocation5 + $0x80] sm:$0xff]  ;;  %v8713_v31 = vpack.c.bf16 %v242_v24, %v240_v23  ;;  %v8753_v23 = vpack.c.bf16 %v259_v13, %v257_v10  ;;  %v8755_v24 = vpack.c.bf16 %v355_v16, %v353_v14  ;;  %v362_v13 = vld [vmem:[#allocation5 + $0x150] sm:$0xff]  ;;  %v269_v14 = vld [vmem:[#allocation7 + $0x168] sm:$0xff] }
  0xf1   :  { %v264_v10 = vld [vmem:[#allocation7 + $0x140] sm:$0xff]  ;;  %v271_v16 = vld [vmem:[#allocation7 + $0x178] sm:$0xff]  ;;  %12523 = vst [vmem:[#allocation74_spill] sm:$0xff] %v8802_v56  ;;  %12528 = vst [vmem:[#allocation79_spill] sm:$0xff] %v8818_v54 }
  0xf2   :  { %12493 = vst [vmem:[#allocation44_spill] sm:$0xff] %v8713_v31  ;;  %12507 = vst [vmem:[#allocation58_spill] sm:$0xff] %v8753_v23 }
  0xf3   :  { %631 = vmatpush1.bf16.msra.mxu0 %v7528_v26  ;;  %824 = vmatpush1.bf16.msra.mxu1 %v7528_v26  ;;  %v338_v26 = vld [vmem:[#allocation5 + $0x90] sm:$0xff]  ;;  %12508 = vst [vmem:[#allocation59_spill] sm:$0xff] %v8755_v24 }
  0xf4   :  { %632 = vmatprep.subr.bf16.mxu0 %v7529_v27  ;;  %825 = vmatprep.subr.bf16.mxu1 %v7529_v27  ;;  %v245_v27 = vld [vmem:[#allocation7 + $0xa8] sm:$0xff] }
  0xf7   :  { %633 = vmatpush1.bf16.msra.mxu0 %v7531_v28  ;;  %826 = vmatpush1.bf16.msra.mxu1 %v7531_v28  ;;  %v247_v28 = vld [vmem:[#allocation7 + $0xb8] sm:$0xff] }
  0xf8   :  { %634 = vmatprep.subr.bf16.mxu0 %v7532_v29  ;;  %827 = vmatprep.subr.bf16.mxu1 %v7532_v29  ;;  %v341_v29 = vld [vmem:[#allocation5 + $0xa8] sm:$0xff] }
  0xfb   :  { %635 = vmatpush1.bf16.msra.mxu0 %v7534_v32  ;;  %828 = vmatpush1.bf16.msra.mxu1 %v7534_v32  ;;  %v8715_v32 = vpack.c.bf16 %v338_v26, %v336_v25  ;;  %v256_v25 = vld [vmem:[#allocation7 + $0x100] sm:$0xff]  ;;  %v258_v26 = vld [vmem:[#allocation7 + $0x110] sm:$0xff] }
  0xfc   :  { %636 = vmatprep.subr.bf16.mxu0 %v7535_v34  ;;  %829 = vmatprep.subr.bf16.mxu1 %v7535_v34  ;;  %v8717_v34 = vpack.c.bf16 %v247_v28, %v245_v27  ;;  %v261_v27 = vld [vmem:[#allocation7 + $0x128] sm:$0xff]  ;;  %v352_v28 = vld [vmem:[#allocation5 + $0x100] sm:$0xff]  ;;  %v8761_v38 = vpack.c.bf16 %v258_v26, %v256_v25  ;;  %v8785_v25 = vpack.c.bf16 %v266_v11, %v264_v10  ;;  %v278_v10 = vld [vmem:[#allocation7 + $0x1b0] sm:$0xff] }
  0xfd   :  { %12494 = vst [vmem:[#allocation45_spill] sm:$0xff] %v8715_v32  ;;  %v8787_v26 = vpack.c.bf16 %v362_v13, %v360_v12  ;;  %v281_v11 = vld [vmem:[#allocation7 + $0x1c8] sm:$0xff]  ;;  %v283_v12 = vld [vmem:[#allocation7 + $0x1d8] sm:$0xff]  ;;  %v8806_v13 = vpack.c.bf16 %v278_v10, %v276_v57  ;;  %v996_v57 = vlaneseq }
  0xfe   :  { %12495 = vst [vmem:[#allocation46_spill] sm:$0xff] %v8717_v34  ;;  %12509 = vst [vmem:[#allocation60_spill] sm:$0xff] %v8761_v38 }
  0xff   :  { %637 = vmatpush1.bf16.msra.mxu0 %v7537_v35  ;;  %830 = vmatpush1.bf16.msra.mxu1 %v7537_v35  ;;  %v8719_v35 = vpack.c.bf16 %v343_v30, %v341_v29  ;;  %v354_v29 = vld [vmem:[#allocation5 + $0x110] sm:$0xff]  ;;  %v263_v30 = vld [vmem:[#allocation7 + $0x138] sm:$0xff]  ;;  %12517 = vst [vmem:[#allocation68_spill] sm:$0xff] %v8785_v25  ;;  %12518 = vst [vmem:[#allocation69_spill] sm:$0xff] %v8787_v26  ;;  %v997_v10 = vshrl.u32 %v996_v57, 7 }
 0x100   :  { %638 = vmatprep.subr.bf16.mxu0 %v7538_v36  ;;  %831 = vmatprep.subr.bf16.mxu1 %v7538_v36  ;;  %v244_v36 = vld [vmem:[#allocation7 + $0xa0] sm:$0xff]  ;;  %v8763_v39 = vpack.c.bf16 %v354_v29, %v352_v28  ;;  %v8765_v40 = vpack.c.bf16 %v263_v30, %v261_v27  ;;  %v8789_v27 = vpack.c.bf16 %v271_v16, %v269_v14  ;;  %v270_v29 = vld [vmem:[#allocation7 + $0x170] sm:$0xff]  ;;  %v273_v30 = vld [vmem:[#allocation7 + $0x188] sm:$0xff] }
 0x101   :  { %12496 = vst [vmem:[#allocation47_spill] sm:$0xff] %v8719_v35  ;;  %v268_v28 = vld [vmem:[#allocation7 + $0x160] sm:$0xff]  ;;  %12524 = vst [vmem:[#allocation75_spill] sm:$0xff] %v8806_v13  ;;  %v8808_v14 = vpack.c.bf16 %v283_v12, %v281_v11 }
 0x102   :  { %12510 = vst [vmem:[#allocation61_spill] sm:$0xff] %v8763_v39  ;;  %12511 = vst [vmem:[#allocation62_spill] sm:$0xff] %v8765_v40  ;;  %v280_v16 = vld [vmem:[#allocation7 + $0x1c0] sm:$0xff] }
 0x103   :  { %639 = vmatpush1.bf16.msra.mxu0 %v7540_v37  ;;  %832 = vmatpush1.bf16.msra.mxu1 %v7540_v37  ;;  %v246_v37 = vld [vmem:[#allocation7 + $0xb0] sm:$0xff]  ;;  %12519 = vst [vmem:[#allocation70_spill] sm:$0xff] %v8789_v27  ;;  %12525 = vst [vmem:[#allocation76_spill] sm:$0xff] %v8808_v14  ;;  %v8821_v12 = vld [vmem:[#allocation10] sm:$0x3] }
 0x104   :  { %v8725_v44 = vpack.c.bf16 %v246_v37, %v244_v36  ;;  %v357_v36 = vld [vmem:[#allocation5 + $0x128] sm:$0xff]  ;;  %v359_v37 = vld [vmem:[#allocation5 + $0x138] sm:$0xff] }
 0x105   :  { %v8767_v41 = vpack.c.bf16 %v359_v37, %v357_v36  ;;  %v275_v36 = vld [vmem:[#allocation7 + $0x198] sm:$0xff]  ;;  %v8794_v37 = vpack.c.bf16 %v270_v29, %v268_v28  ;;  %v282_v28 = vld [vmem:[#allocation7 + $0x1d0] sm:$0xff]  ;;  %v285_v29 = vld [vmem:[#allocation7 + $0x1e8] sm:$0xff] }
 0x106   :  { %641 = vmatmul.mubr.bf16.vlgmr.msra.gmra.mrb[0].mxu0 %v8665_v46  ;;  %834 = vmatmul.mubr.bf16.vlgmr.msra.gmra.mrb[0].mxu1 %v8667_v47  ;;  %12497 = vst [vmem:[#allocation48_spill] sm:$0xff] %v8725_v44  ;;  %v8796_v42 = vpack.c.bf16 %v275_v36, %v273_v30  ;;  %v287_v30 = vld [vmem:[#allocation7 + $0x1f8] sm:$0xff]  ;;  %v8812_v36 = vpack.c.bf16 %v282_v28, %v280_v16  ;;  %v8823_v28 = vsub.s32 0, %v997_v10 }
 0x107   :  { %650 = vmatprep.mubr.bf16.mxu0 %v8669_v48  ;;  %843 = vmatprep.mubr.bf16.mxu1 %v8671_v49  ;;  %12512 = vst [vmem:[#allocation63_spill] sm:$0xff] %v8767_v41  ;;  %12520 = vst [vmem:[#allocation71_spill] sm:$0xff] %v8794_v37  ;;  %v8814_v43 = vpack.c.bf16 %v287_v30, %v285_v29  ;;  %v8825_v29 = vsub.s32 1, %v997_v10  ;;  %v364_v10 = vld [vmem:[#allocation5 + $0x160] sm:$0xff] }
 0x108   :  { %12521 = vst [vmem:[#allocation72_spill] sm:$0xff] %v8796_v42  ;;  %12526 = vst [vmem:[#allocation77_spill] sm:$0xff] %v8812_v36 }
 0x109   :  { %12527 = vst [vmem:[#allocation78_spill] sm:$0xff] %v8814_v43  ;;  %12529 = vst [vmem:[#allocation80_spill] sm:$0xff] %v8823_v28  ;;  %v1003_v52 = vrot.slane %v8821_v12, %v8825_v29 }
 0x10a   :  { %12530 = vst [vmem:[#allocation81_spill] sm:$0xff] %v8825_v29 }
 0x10e   :  { %651 = vmatmul.mubr.bf16.gmra.mrb[4].mxu0 %v8677_v58  ;;  %844 = vmatmul.mubr.bf16.gmra.mrb[4].mxu1 %v8679_v59  ;;  %v206_v59 = vld [vmem:[#allocation2 + $0x70] sm:$0xff] }
 0x10f   :  { %660 = vmatprep.mubr.bf16.mxu0 %v8681_v60  ;;  %853 = vmatprep.mubr.bf16.mxu1 %v8683_v61  ;;  %vm1263_vm15 = vcmp.gt.bf16.partialorder %v206_v59, 0 }
 0x116   :  { %661 = vmatmul.mubr.bf16.gmra.mrb[8].mxu0 %v8689_v6  ;;  %854 = vmatmul.mubr.bf16.gmra.mrb[8].mxu1 %v8691_v7  ;;  %v375_v7 = vld [vmem:[#allocation5 + $0x1b8] sm:$0xff] }
 0x117   :  { %670 = vmatprep.mubr.bf16.mxu0 %v8693_v8  ;;  %863 = vmatprep.mubr.bf16.mxu1 %v8695_v9  ;;  %v373_v9 = vld [vmem:[#allocation5 + $0x1a8] sm:$0xff] }
 0x11e   :  { %671 = vmatmul.mubr.bf16.gmra.mrb[12].mxu0 %v8701_v19  ;;  %864 = vmatmul.mubr.bf16.gmra.mrb[12].mxu1 %v8703_v20 }
 0x11f   :  { %680 = vmatprep.mubr.bf16.mxu0 %v8705_v21  ;;  %873 = vmatprep.mubr.bf16.mxu1 %v8707_v22  ;;  %v12571_v21 = vmov 0 }
 0x126   :  { %681 = vmatmul.mubr.bf16.gmra.mrb[16].mxu0 %v8713_v31  ;;  %874 = vmatmul.mubr.bf16.gmra.mrb[16].mxu1 %v8715_v32 }
 0x127   :  { %690 = vmatprep.mubr.bf16.mxu0 %v8717_v34  ;;  %883 = vmatprep.mubr.bf16.mxu1 %v8719_v35 }
 0x12e   :  { %691 = vmatmul.mubr.bf16.gmra.mrb[20].mxu0 %v8725_v44  ;;  %884 = vmatmul.mubr.bf16.gmra.mrb[20].mxu1 %v8727_v45 }
 0x12f   :  { %700 = vmatprep.mubr.bf16.mxu0 %v8729_v50  ;;  %893 = vmatprep.mubr.bf16.mxu1 %v8731_v51 }
 0x136   :  { %701 = vmatmul.mubr.bf16.gmra.mrb[24].mxu0 %v8737_v0  ;;  %894 = vmatmul.mubr.bf16.gmra.mrb[24].mxu1 %v8739_v1  ;;  %v371_v1 = vld [vmem:[#allocation5 + $0x198] sm:$0xff] }
 0x137   :  { %710 = vmatprep.mubr.bf16.mxu0 %v8741_v2  ;;  %903 = vmatprep.mubr.bf16.mxu1 %v8743_v3  ;;  %v369_v3 = vld [vmem:[#allocation5 + $0x188] sm:$0xff] }
 0x13e   :  { %711 = vmatmul.mubr.bf16.gmra.mrb[28].mxu0 %v8749_v17  ;;  %904 = vmatmul.mubr.bf16.gmra.mrb[28].mxu1 %v8751_v18 }
 0x13f   :  { %720 = vmatprep.mubr.bf16.mxu0 %v8753_v23  ;;  %913 = vmatprep.mubr.bf16.mxu1 %v8755_v24  ;;  %v367_v24 = vld [vmem:[#allocation5 + $0x178] sm:$0xff]  ;;  %v12552_v23 = vmov 0 }
 0x146   :  { %721 = vmatmul.mubr.bf16.gmra.mrb[32].mxu0 %v8761_v38  ;;  %914 = vmatmul.mubr.bf16.gmra.mrb[32].mxu1 %v8763_v39  ;;  %v365_v39 = vld [vmem:[#allocation5 + $0x168] sm:$0xff] }
 0x147   :  { %730 = vmatprep.mubr.bf16.mxu0 %v8765_v40  ;;  %923 = vmatprep.mubr.bf16.mxu1 %v8767_v41 }
 0x14e   :  { %731 = vmatmul.mubr.bf16.gmra.mrb[36].mxu0 %v8773_v62  ;;  %924 = vmatmul.mubr.bf16.gmra.mrb[36].mxu1 %v8775_v63 }
 0x14f   :  { %740 = vmatprep.mubr.bf16.mxu0 %v8777_v4  ;;  %933 = vmatprep.mubr.bf16.mxu1 %v8779_v5  ;;  %v209_v4 = vld [vmem:[#allocation2 + $0x88] sm:$0xff] }
 0x156   :  { %741 = vmatmul.mubr.bf16.gmra.mrb[40].mxu0 %v8785_v25  ;;  %934 = vmatmul.mubr.bf16.gmra.mrb[40].mxu1 %v8787_v26  ;;  %v1077_v26 = vld [vmem:[#allocation11] sm:$0x3] }
 0x157   :  { %750 = vmatprep.mubr.bf16.mxu0 %v8789_v27  ;;  %v8830_v53 = vrot.slane %v1077_v26, %v8823_v28  ;;  %v8833_v57 = vrot.slane %v1077_v26, %v8825_v29  ;;  %v207_v29 = vld [vmem:[#allocation2 + $0x78] sm:$0xff] }
 0x158   :  { %vm1264_vm14 = vcmp.gt.bf16.partialorder %v207_v29, 0  ;;  %v12548_v29 = vmov 0 }
 0x15e   :  { %751 = vmatmul.mubr.bf16.gmra.mrb[44].mxu0 %v8794_v37 }
 0x15f   :  { %760 = vmatprep.mubr.bf16.mxu0 %v8796_v42 }
 0x166   :  { %761 = vmatmul.mubr.bf16.gmra.mrb[48].mxu0 %v8800_v55  ;;  %v204_v55 = vld [vmem:[#allocation2 + $0x60] sm:$0xff] }
 0x167   :  { %770 = vmatprep.mubr.bf16.mxu0 %v8802_v56  ;;  %vm1261_vm13 = vcmp.gt.bf16.partialorder %v204_v55, 0 }
 0x16e   :  { %771 = vmatmul.mubr.bf16.gmra.mrb[52].mxu0 %v8806_v13 }
 0x16f   :  { %780 = vmatprep.mubr.bf16.mxu0 %v8808_v14  ;;  %v205_v14 = vld [vmem:[#allocation2 + $0x68] sm:$0xff] }
 0x170   :  { %vm1262_vm12 = vcmp.gt.bf16.partialorder %v205_v14, 0 }
 0x176   :  { %781 = vmatmul.mubr.bf16.gmra.mrb[56].mxu0 %v8812_v36  ;;  %v202_v36 = vld [vmem:[#allocation2 + $0x50] sm:$0xff] }
 0x177   :  { %790 = vmatprep.mubr.bf16.mxu0 %v8814_v43  ;;  %vm1259_vm11 = vcmp.gt.bf16.partialorder %v202_v36, 0 }
 0x17e   :  { %791 = vmatmul.mubr.bf16.gmra.mrb[60].mxu0 %v8818_v54  ;;  %v12543_v54 = vmov 0  }
 0x17f   :  { %1070 = vmatprep.mubr.f32.mxu0 %v1003_v52  ;;  %v8840_v52 = vpack.c.bf16 %v371_v1, %v369_v3  ;;  %v368_v1 = vld [vmem:[#allocation5 + $0x180] sm:$0xff]  ;;  %v370_v3 = vld [vmem:[#allocation5 + $0x190] sm:$0xff]  ;;  %v9027_v37 = vsel %vm1259_vm11, 65537, %v12543_v54  ;;  %v9031_v55 = vsel %vm1262_vm12, 65537, %v12543_v54  ;;  %v9035_v13 = vsel %vm1261_vm13, 65537, %v12543_v54 }
 0x180   :  { %v9038_v59 = vsel %vm1264_vm14, 65537, %v12543_v54  ;;  %v9057_v62 = vsel %vm1263_vm15, 65537, %v12543_v54 }
 0x181   :  { %12533 = vst [vmem:[#allocation84_spill] sm:$0xff] %v8840_v52 }
 0x1d9   :  { %v642_v11 = vpop.f32.mrb[0].mxu0  ;;  %v835_v18 = vpop.f32.mrb[0].mxu1 }
 0x1da   :  { %v644_v16 = vpop.f32.mrb[1].mxu0  ;;  %v837_v51 = vpop.f32.mrb[1].mxu1 }
 0x1db   :  { %v646_v30 = vpop.f32.mrb[2].mxu0  ;;  %v1090_v45 = vmul.f32 %v8833_v57, %v837_v51 }
 0x1dc   :  { %v7269_v5 = vpack.c.bf16 %v646_v30, %v642_v11  ;;  %v648_v63 = vpop.f32.mrb[3].mxu0  ;;  %v8835_v11 = vpack.c.bf16 %v367_v24, %v365_v39  ;;  %v366_v30 = vld [vmem:[#allocation5 + $0x170] sm:$0xff] }
 0x1dd   :  { %v7267_v41 = vpack.c.bf16 %v648_v63, %v644_v16  ;;  %v1089_v63 = vmul.f32 %v8830_v53, %v835_v18  ;;  %v8838_v26 = vpack.c.bf16 %v366_v30, %v364_v10 }
 0x1de   :  { %12531 = vst [vmem:[#allocation82_spill] sm:$0xff] %v8835_v11  ;;  %943 = vmatprep.mubr.bf16.mxu1 %v8835_v11 }
 0x1df   :  { %7268 = vmatprep.subr.bf16.mxu0 %v7267_v41  ;;  %2325 = vmatprep.subr.bf16.mxu1 %v7267_v41  ;;  %12532 = vst [vmem:[#allocation83_spill] sm:$0xff] %v8838_v26  ;;  %v839_v41 = vpop.f32.mrb[2].mxu1  ;;  %v1153_v22 = vadd.f32 %v1090_v45, %v1089_v63 }
 0x1e0   :  { %7270 = vmatpush1.bf16.xpose.msra.mxu0 %v7269_v5  ;;  %2326 = vmatpush1.bf16.msra.mxu1 %v7269_v5  ;;  %v841_v5 = vpop.f32.mrb[3].mxu1  ;;  %v1091_v24 = vmul.f32 %v8830_v53, %v839_v41 }
 0x1e1   :  { %v652_v16 = vpop.f32.mrb[4].mxu0  ;;  %944 = vmatmul.mubr.bf16.gmra.mrb[44].mxu1 %v8838_v26  ;;  %v845_v32 = vpop.f32.mrb[4].mxu1  ;;  %v1092_v18 = vmul.f32 %v8833_v57, %v841_v5  ;;  %1154 = vadd.xlane.f32.xlu0 %v1153_v22 }
 0x1e2   :  { %v654_v35 = vpop.f32.mrb[5].mxu0  ;;  %953 = vmatprep.mubr.bf16.mxu1 %v8840_v52  ;;  %v847_v51 = vpop.f32.mrb[5].mxu1  ;;  %v1093_v20 = vmul.f32 %v8830_v53, %v845_v32  ;;  %v8854_v32 = vpack.c.bf16 %v375_v7, %v373_v9  ;;  %v372_v7 = vld [vmem:[#allocation5 + $0x1a0] sm:$0xff]  ;;  %v374_v9 = vld [vmem:[#allocation5 + $0x1b0] sm:$0xff] }
 0x1e3   :  { %v656_v39 = vpop.f32.mrb[6].mxu0  ;;  %v849_v41 = vpop.f32.mrb[6].mxu1  ;;  %v1094_v26 = vmul.f32 %v8833_v57, %v847_v51  ;;  %v1156_v61 = vadd.f32 %v1092_v18, %v1091_v24  ;;  %v200_v52 = vld [vmem:[#allocation2 + $0x40] sm:$0xff] }
 0x1e4   :  { %v7273_v10 = vpack.c.bf16 %v656_v39, %v652_v16  ;;  %v658_v30 = vpop.f32.mrb[7].mxu0  ;;  %v851_v45 = vpop.f32.mrb[7].mxu1  ;;  %v1095_v63 = vmul.f32 %v8830_v53, %v849_v41  ;;  %v8851_v16 = vpack.c.bf16 %v370_v3, %v368_v1  ;;  %12535 = vst [vmem:[#allocation86_spill] sm:$0xff] %v8854_v32  ;;  %vm1257_vm9 = vcmp.gt.bf16.partialorder %v200_v52, 0  ;;  %v208_v52 = vld [vmem:[#allocation2 + $0x80] sm:$0xff] }
 0x1e5   :  { %v7271_v11 = vpack.c.bf16 %v658_v30, %v654_v35  ;;  %v1159_v5 = vadd.f32 %v1094_v26, %v1093_v20  ;;  %v1096_v39 = vmul.f32 %v8833_v57, %v851_v45  ;;  %1157 = vadd.xlane.f32.xlu0 %v1156_v61  ;;  %v377_v45 = vld [vmem:[#allocation5 + $0x1c8] sm:$0xff] }
 0x1e6   :  { %12534 = vst [vmem:[#allocation85_spill] sm:$0xff] %v8851_v16 }
 0x1e7   :  { %7272 = vmatprep.subr.bf16.mxu0 %v7271_v11  ;;  %2327 = vmatprep.subr.bf16.mxu1 %v7271_v11  ;;  %v1162_v30 = vadd.f32 %v1096_v39, %v1095_v63  ;;  %v379_v63 = vld [vmem:[#allocation5 + $0x1d8] sm:$0xff] }
 0x1e8   :  { %7274 = vmatpush1.bf16.xpose.msra.mxu0 %v7273_v10  ;;  %2328 = vmatpush1.bf16.msra.mxu1 %v7273_v10 }
 0x1e9   :  { %v662_v35 = vpop.f32.mrb[8].mxu0  ;;  %1160 = vadd.xlane.f32.xlu1 %v1159_v5  ;;  %v855_v22 = vpop.f32.mrb[8].mxu1  ;;  %954 = vmatmul.mubr.bf16.gmra.mrb[48].mxu1 %v8851_v16 }
 0x1ea   :  { %v664_v24 = vpop.f32.mrb[9].mxu0  ;;  %v857_v18 = vpop.f32.mrb[9].mxu1  ;;  %v1097_v51 = vmul.f32 %v8830_v53, %v855_v22  ;;  %963 = vmatprep.mubr.bf16.mxu1 %v8854_v32  ;;  %v8862_v22 = vpack.c.bf16 %v374_v9, %v372_v7 }
 0x1eb   :  { %v666_v41 = vpop.f32.mrb[10].mxu0  ;;  %v859_v11 = vpop.f32.mrb[10].mxu1  ;;  %v1098_v20 = vmul.f32 %v8833_v57, %v857_v18  ;;  %v8864_v18 = vpack.c.bf16 %v379_v63, %v377_v45  ;;  %v381_v63 = vld [vmem:[#allocation5 + $0x1e8] sm:$0xff] }
 0x1ec   :  { %v7277_v26 = vpack.c.bf16 %v666_v41, %v662_v35  ;;  %v668_v1 = vpop.f32.mrb[11].mxu0  ;;  %v861_v10 = vpop.f32.mrb[11].mxu1  ;;  %v1099_v61 = vmul.f32 %v8830_v53, %v859_v11  ;;  %12536 = vst [vmem:[#allocation87_spill] sm:$0xff] %v8862_v22 }
 0x1ed   :  { %v7275_v3 = vpack.c.bf16 %v668_v1, %v664_v24  ;;  %1163 = vadd.xlane.f32.xlu1 %v1162_v30  ;;  %v1165_v5 = vadd.f32 %v1098_v20, %v1097_v51  ;;  %v1100_v39 = vmul.f32 %v8833_v57, %v861_v10  ;;  %12537 = vst [vmem:[#allocation88_spill] sm:$0xff] %v8864_v18  ;;  %v378_v10 = vld [vmem:[#allocation5 + $0x1d0] sm:$0xff] }
 0x1ef   :  { %7276 = vmatprep.subr.bf16.mxu0 %v7275_v3  ;;  %2329 = vmatprep.subr.bf16.mxu1 %v7275_v3  ;;  %v1168_v35 = vadd.f32 %v1100_v39, %v1099_v61 }
 0x1f0   :  { %7278 = vmatpush1.bf16.xpose.msra.mxu0 %v7277_v26  ;;  %2330 = vmatpush1.bf16.msra.mxu1 %v7277_v26  ;;  %v376_v26 = vld [vmem:[#allocation5 + $0x1c0] sm:$0xff] }
 0x1f1   :  { %v672_v41 = vpop.f32.mrb[12].mxu0  ;;  %v865_v32 = vpop.f32.mrb[12].mxu1  ;;  %1166 = vadd.xlane.f32.xlu0 %v1165_v5  ;;  %1169 = vadd.xlane.f32.xlu1 %v1168_v35  ;;  %v383_v5 = vld [vmem:[#allocation5 + $0x1f8] sm:$0xff]  ;;  %v8872_v35 = vpack.c.bf16 %v378_v10, %v376_v26 }
 0x1f2   :  { %v674_v24 = vpop.f32.mrb[13].mxu0  ;;  %v867_v11 = vpop.f32.mrb[13].mxu1  ;;  %v1101_v30 = vmul.f32 %v8830_v53, %v865_v32  ;;  %964 = vmatmul.mubr.bf16.gmra.mrb[52].mxu1 %v8862_v22 }
 0x1f3   :  { %v676_v51 = vpop.f32.mrb[14].mxu0  ;;  %v869_v20 = vpop.f32.mrb[14].mxu1  ;;  %v1102_v1 = vmul.f32 %v8833_v57, %v867_v11  ;;  %973 = vmatprep.mubr.bf16.mxu1 %v8864_v18  ;;  %12538 = vst [vmem:[#allocation89_spill] sm:$0xff] %v8872_v35 }
 0x1f4   :  { %v7281_v7 = vpack.c.bf16 %v676_v51, %v672_v41  ;;  %v678_v9 = vpop.f32.mrb[15].mxu0  ;;  %v871_v61 = vpop.f32.mrb[15].mxu1  ;;  %v1103_v3 = vmul.f32 %v8830_v53, %v869_v20  ;;  %v8874_v41 = vpack.c.bf16 %v383_v5, %v381_v63 }
 0x1f5   :  { %v7279_v45 = vpack.c.bf16 %v678_v9, %v674_v24  ;;  %v1171_v39 = vadd.f32 %v1102_v1, %v1101_v30  ;;  %v1104_v32 = vmul.f32 %v8833_v57, %v871_v61 }
 0x1f6   :  { %12539 = vst [vmem:[#allocation90_spill] sm:$0xff] %v8874_v41 }
 0x1f7   :  { %7280 = vmatprep.subr.bf16.mxu0 %v7279_v45  ;;  %2331 = vmatprep.subr.bf16.mxu1 %v7279_v45  ;;  %v1174_v11 = vadd.f32 %v1104_v32, %v1103_v3  ;;  %v382_v3 = vld [vmem:[#allocation5 + $0x1f0] sm:$0xff] }
 0x1f8   :  { %7282 = vmatpush1.bf16.xpose.msra.mxu0 %v7281_v7  ;;  %2332 = vmatpush1.bf16.msra.mxu1 %v7281_v7  ;;  %v380_v7 = vld [vmem:[#allocation5 + $0x1e0] sm:$0xff] }
 0x1f9   :  { %v682_v51 = vpop.f32.mrb[16].mxu0  ;;  %v875_v18 = vpop.f32.mrb[16].mxu1  ;;  %1172 = vadd.xlane.f32.xlu0 %v1171_v39  ;;  %1175 = vadd.xlane.f32.xlu1 %v1174_v11 }
 0x1fa   :  { %v684_v20 = vpop.f32.mrb[17].mxu0  ;;  %v877_v24 = vpop.f32.mrb[17].mxu1  ;;  %v1105_v9 = vmul.f32 %v8830_v53, %v875_v18  ;;  %974 = vmatmul.mubr.bf16.gmra.mrb[56].mxu1 %v8872_v35  ;;  %v8882_v18 = vpack.c.bf16 %v382_v3, %v380_v7 }
 0x1fb   :  { %v686_v30 = vpop.f32.mrb[18].mxu0  ;;  %v879_v1 = vpop.f32.mrb[18].mxu1  ;;  %v1106_v26 = vmul.f32 %v8833_v57, %v877_v24  ;;  %983 = vmatprep.mubr.bf16.mxu1 %v8874_v41 }
 0x1fc   :  { %v7285_v10 = vpack.c.bf16 %v686_v30, %v682_v51  ;;  %v688_v61 = vpop.f32.mrb[19].mxu0  ;;  %v881_v45 = vpop.f32.mrb[19].mxu1  ;;  %v1107_v63 = vmul.f32 %v8830_v53, %v879_v1  ;;  %12540 = vst [vmem:[#allocation91_spill] sm:$0xff] %v8882_v18 }
 0x1fd   :  { %v7283_v5 = vpack.c.bf16 %v688_v61, %v684_v20  ;;  %v1177_v39 = vadd.f32 %v1106_v26, %v1105_v9  ;;  %v1108_v32 = vmul.f32 %v8833_v57, %v881_v45 }
 0x1ff   :  { %7284 = vmatprep.subr.bf16.mxu0 %v7283_v5  ;;  %2333 = vmatprep.subr.bf16.mxu1 %v7283_v5  ;;  %v1180_v11 = vadd.f32 %v1108_v32, %v1107_v63 }
 0x200   :  { %7286 = vmatpush1.bf16.xpose.msra.mxu0 %v7285_v10  ;;  %2334 = vmatpush1.bf16.msra.mxu1 %v7285_v10 }
 0x201   :  { %v692_v51 = vpop.f32.mrb[20].mxu0  ;;  %v885_v24 = vpop.f32.mrb[20].mxu1  ;;  %1178 = vadd.xlane.f32.xlu0 %v1177_v39  ;;  %1181 = vadd.xlane.f32.xlu1 %v1180_v11 }
 0x202   :  { %v694_v30 = vpop.f32.mrb[21].mxu0  ;;  %v887_v41 = vpop.f32.mrb[21].mxu1  ;;  %v1109_v35 = vmul.f32 %v8830_v53, %v885_v24  ;;  %984 = vmatmul.mubr.bf16.gmra.mrb[60].mxu1 %v8882_v18 }
 0x203   :  { %v696_v1 = vpop.f32.mrb[22].mxu0  ;;  %v889_v20 = vpop.f32.mrb[22].mxu1  ;;  %v1110_v9 = vmul.f32 %v8833_v57, %v887_v41 }
 0x204   :  { %v7289_v26 = vpack.c.bf16 %v696_v1, %v692_v51  ;;  %v698_v61 = vpop.f32.mrb[23].mxu0  ;;  %v891_v7 = vpop.f32.mrb[23].mxu1  ;;  %v1111_v3 = vmul.f32 %v8830_v53, %v889_v20 }
 0x205   :  { %v7287_v10 = vpack.c.bf16 %v698_v61, %v694_v30  ;;  %v1183_v45 = vadd.f32 %v1110_v9, %v1109_v35  ;;  %v1112_v63 = vmul.f32 %v8833_v57, %v891_v7 }
 0x207   :  { %7288 = vmatprep.subr.bf16.mxu0 %v7287_v10  ;;  %2335 = vmatprep.subr.bf16.mxu1 %v7287_v10  ;;  %v1186_v5 = vadd.f32 %v1112_v63, %v1111_v3 }
 0x208   :  { %7290 = vmatpush1.bf16.xpose.msra.mxu0 %v7289_v26  ;;  %2336 = vmatpush1.bf16.msra.mxu1 %v7289_v26 }
 0x209   :  { %v702_v39 = vpop.f32.mrb[24].mxu0  ;;  %v895_v32 = vpop.f32.mrb[24].mxu1  ;;  %1184 = vadd.xlane.f32.xlu0 %v1183_v45  ;;  %1187 = vadd.xlane.f32.xlu1 %v1186_v5 }
 0x20a   :  { %v704_v11 = vpop.f32.mrb[25].mxu0  ;;  %v897_v41 = vpop.f32.mrb[25].mxu1  ;;  %v1113_v51 = vmul.f32 %v8830_v53, %v895_v32 }
 0x20b   :  { %v706_v24 = vpop.f32.mrb[26].mxu0  ;;  %v899_v1 = vpop.f32.mrb[26].mxu1  ;;  %v1114_v30 = vmul.f32 %v8833_v57, %v897_v41 }
 0x20c   :  { %v7293_v35 = vpack.c.bf16 %v706_v24, %v702_v39  ;;  %v708_v20 = vpop.f32.mrb[27].mxu0  ;;  %v901_v9 = vpop.f32.mrb[27].mxu1  ;;  %v1115_v61 = vmul.f32 %v8830_v53, %v899_v1 }
 0x20d   :  { %v7291_v7 = vpack.c.bf16 %v708_v20, %v704_v11  ;;  %v1189_v3 = vadd.f32 %v1114_v30, %v1113_v51  ;;  %v1116_v26 = vmul.f32 %v8833_v57, %v901_v9 }
 0x20f   :  { %7292 = vmatprep.subr.bf16.mxu0 %v7291_v7  ;;  %2337 = vmatprep.subr.bf16.mxu1 %v7291_v7  ;;  %v1192_v10 = vadd.f32 %v1116_v26, %v1115_v61 }
 0x210   :  { %7294 = vmatpush1.bf16.xpose.msra.mxu0 %v7293_v35  ;;  %2338 = vmatpush1.bf16.msra.mxu1 %v7293_v35 }
 0x211   :  { %v712_v45 = vpop.f32.mrb[28].mxu0  ;;  %v905_v63 = vpop.f32.mrb[28].mxu1  ;;  %1190 = vadd.xlane.f32.xlu0 %v1189_v3  ;;  %1193 = vadd.xlane.f32.xlu1 %v1192_v10 }
 0x212   :  { %v714_v5 = vpop.f32.mrb[29].mxu0  ;;  %v907_v32 = vpop.f32.mrb[29].mxu1  ;;  %v1117_v39 = vmul.f32 %v8830_v53, %v905_v63 }
 0x213   :  { %v716_v41 = vpop.f32.mrb[30].mxu0  ;;  %v909_v24 = vpop.f32.mrb[30].mxu1  ;;  %v1118_v11 = vmul.f32 %v8833_v57, %v907_v32 }
 0x214   :  { %v7297_v51 = vpack.c.bf16 %v716_v41, %v712_v45  ;;  %v718_v1 = vpop.f32.mrb[31].mxu0  ;;  %v911_v30 = vpop.f32.mrb[31].mxu1  ;;  %v1119_v20 = vmul.f32 %v8830_v53, %v909_v24 }
 0x215   :  { %v7295_v9 = vpack.c.bf16 %v718_v1, %v714_v5  ;;  %v1195_v61 = vadd.f32 %v1118_v11, %v1117_v39  ;;  %v1120_v35 = vmul.f32 %v8833_v57, %v911_v30 }
 0x217   :  { %7296 = vmatprep.subr.bf16.mxu0 %v7295_v9  ;;  %2339 = vmatprep.subr.bf16.mxu1 %v7295_v9  ;;  %v1198_v7 = vadd.f32 %v1120_v35, %v1119_v20 }
 0x218   :  { %7298 = vmatpush1.bf16.xpose.msra.mxu0 %v7297_v51  ;;  %2340 = vmatpush1.bf16.msra.mxu1 %v7297_v51 }
 0x219   :  { %v722_v3 = vpop.f32.mrb[32].mxu0  ;;  %v915_v26 = vpop.f32.mrb[32].mxu1  ;;  %1196 = vadd.xlane.f32.xlu0 %v1195_v61  ;;  %1199 = vadd.xlane.f32.xlu1 %v1198_v7 }
 0x21a   :  { %v724_v10 = vpop.f32.mrb[33].mxu0  ;;  %v917_v63 = vpop.f32.mrb[33].mxu1  ;;  %v1121_v45 = vmul.f32 %v8830_v53, %v915_v26 }
 0x21b   :  { %v726_v32 = vpop.f32.mrb[34].mxu0  ;;  %v919_v41 = vpop.f32.mrb[34].mxu1  ;;  %v1122_v5 = vmul.f32 %v8833_v57, %v917_v63 }
 0x21c   :  { %v7301_v39 = vpack.c.bf16 %v726_v32, %v722_v3  ;;  %v728_v24 = vpop.f32.mrb[35].mxu0  ;;  %v921_v11 = vpop.f32.mrb[35].mxu1  ;;  %v1123_v1 = vmul.f32 %v8830_v53, %v919_v41 }
 0x21d   :  { %v7299_v30 = vpack.c.bf16 %v728_v24, %v724_v10  ;;  %v1201_v20 = vadd.f32 %v1122_v5, %v1121_v45  ;;  %v1124_v51 = vmul.f32 %v8833_v57, %v921_v11 }
 0x21f   :  { %7300 = vmatprep.subr.bf16.mxu0 %v7299_v30  ;;  %2341 = vmatprep.subr.bf16.mxu1 %v7299_v30  ;;  %v1204_v9 = vadd.f32 %v1124_v51, %v1123_v1 }
 0x220   :  { %7302 = vmatpush1.bf16.xpose.msra.mxu0 %v7301_v39  ;;  %2342 = vmatpush1.bf16.msra.mxu1 %v7301_v39 }
 0x221   :  { %v732_v61 = vpop.f32.mrb[36].mxu0  ;;  %v925_v35 = vpop.f32.mrb[36].mxu1  ;;  %1202 = vadd.xlane.f32.xlu0 %v1201_v20  ;;  %1205 = vadd.xlane.f32.xlu1 %v1204_v9 }
 0x222   :  { %v734_v7 = vpop.f32.mrb[37].mxu0  ;;  %v927_v26 = vpop.f32.mrb[37].mxu1  ;;  %v1125_v3 = vmul.f32 %v8830_v53, %v925_v35 }
 0x223   :  { %v736_v63 = vpop.f32.mrb[38].mxu0  ;;  %v929_v32 = vpop.f32.mrb[38].mxu1  ;;  %v1126_v10 = vmul.f32 %v8833_v57, %v927_v26 }
 0x224   :  { %v7305_v45 = vpack.c.bf16 %v736_v63, %v732_v61  ;;  %v738_v41 = vpop.f32.mrb[39].mxu0  ;;  %v931_v5 = vpop.f32.mrb[39].mxu1  ;;  %v1127_v24 = vmul.f32 %v8830_v53, %v929_v32 }
 0x225   :  { %v7303_v11 = vpack.c.bf16 %v738_v41, %v734_v7  ;;  %v1207_v1 = vadd.f32 %v1126_v10, %v1125_v3  ;;  %v1128_v39 = vmul.f32 %v8833_v57, %v931_v5 }
 0x227   :  { %7304 = vmatprep.subr.bf16.mxu0 %v7303_v11  ;;  %2343 = vmatprep.subr.bf16.mxu1 %v7303_v11  ;;  %v1210_v30 = vadd.f32 %v1128_v39, %v1127_v24 }
 0x228   :  { %7306 = vmatpush1.bf16.xpose.msra.mxu0 %v7305_v45  ;;  %2344 = vmatpush1.bf16.msra.mxu1 %v7305_v45 }
 0x229   :  { %v742_v20 = vpop.f32.mrb[40].mxu0  ;;  %v935_v51 = vpop.f32.mrb[40].mxu1  ;;  %1208 = vadd.xlane.f32.xlu0 %v1207_v1  ;;  %1211 = vadd.xlane.f32.xlu1 %v1210_v30 }
 0x22a   :  { %v744_v9 = vpop.f32.mrb[41].mxu0  ;;  %v937_v35 = vpop.f32.mrb[41].mxu1  ;;  %v1129_v61 = vmul.f32 %v8830_v53, %v935_v51 }
 0x22b   :  { %v746_v26 = vpop.f32.mrb[42].mxu0  ;;  %v939_v63 = vpop.f32.mrb[42].mxu1  ;;  %v1130_v7 = vmul.f32 %v8833_v57, %v937_v35 }
 0x22c   :  { %v7309_v3 = vpack.c.bf16 %v746_v26, %v742_v20  ;;  %v748_v32 = vpop.f32.mrb[43].mxu0  ;;  %v941_v10 = vpop.f32.mrb[43].mxu1  ;;  %v1131_v41 = vmul.f32 %v8830_v53, %v939_v63 }
 0x22d   :  { %v7307_v5 = vpack.c.bf16 %v748_v32, %v744_v9  ;;  %v1213_v24 = vadd.f32 %v1130_v7, %v1129_v61  ;;  %v1132_v45 = vmul.f32 %v8833_v57, %v941_v10 }
 0x22f   :  { %7308 = vmatprep.subr.bf16.mxu0 %v7307_v5  ;;  %2345 = vmatprep.subr.bf16.mxu1 %v7307_v5  ;;  %v1216_v11 = vadd.f32 %v1132_v45, %v1131_v41 }
 0x230   :  { %7310 = vmatpush1.bf16.xpose.msra.mxu0 %v7309_v3  ;;  %2346 = vmatpush1.bf16.msra.mxu1 %v7309_v3 }
 0x231   :  { %v752_v1 = vpop.f32.mrb[44].mxu0  ;;  %1214 = vadd.xlane.f32.xlu0 %v1213_v24  ;;  %1217 = vadd.xlane.f32.xlu1 %v1216_v11 }
 0x232   :  { %v754_v39 = vpop.f32.mrb[45].mxu0 }
 0x233   :  { %v756_v30 = vpop.f32.mrb[46].mxu0 }
 0x234   :  { %v7313_v51 = vpack.c.bf16 %v756_v30, %v752_v1  ;;  %v758_v20 = vpop.f32.mrb[47].mxu0 }
 0x235   :  { %v7311_v35 = vpack.c.bf16 %v758_v20, %v754_v39 }
 0x237   :  { %7312 = vmatprep.subr.bf16.mxu0 %v7311_v35  ;;  %2347 = vmatprep.subr.bf16.mxu1 %v7311_v35 }
 0x238   :  { %7314 = vmatpush1.bf16.xpose.msra.mxu0 %v7313_v51  ;;  %2348 = vmatpush1.bf16.msra.mxu1 %v7313_v51 }
 0x239   :  { %v762_v9 = vpop.f32.mrb[48].mxu0 }
 0x23a   :  { %v764_v61 = vpop.f32.mrb[49].mxu0 }
 0x23b   :  { %v766_v26 = vpop.f32.mrb[50].mxu0 }
 0x23c   :  { %v7317_v63 = vpack.c.bf16 %v766_v26, %v762_v9  ;;  %v768_v7 = vpop.f32.mrb[51].mxu0 }
 0x23d   :  { %v7315_v32 = vpack.c.bf16 %v768_v7, %v764_v61 }
 0x23f   :  { %7316 = vmatprep.subr.bf16.mxu0 %v7315_v32  ;;  %2349 = vmatprep.subr.bf16.mxu1 %v7315_v32  ;;  %v999_v32 = vrot.slane %v8821_v12, %v8823_v28 }
 0x240   :  { %7318 = vmatpush1.bf16.xpose.msra.mxu0 %v7317_v63  ;;  %2350 = vmatpush1.bf16.msra.mxu1 %v7317_v63 }
 0x241   :  { %v772_v3 = vpop.f32.mrb[52].mxu0 }
 0x242   :  { %v774_v10 = vpop.f32.mrb[53].mxu0 }
 0x243   :  { %v776_v41 = vpop.f32.mrb[54].mxu0 }
 0x244   :  { %v7321_v5 = vpack.c.bf16 %v776_v41, %v772_v3  ;;  %v778_v24 = vpop.f32.mrb[55].mxu0 }
 0x245   :  { %v7319_v45 = vpack.c.bf16 %v778_v24, %v774_v10 }
 0x247   :  { %7320 = vmatprep.subr.bf16.mxu0 %v7319_v45  ;;  %2351 = vmatprep.subr.bf16.mxu1 %v7319_v45 }
 0x248   :  { %7322 = vmatpush1.bf16.xpose.msra.mxu0 %v7321_v5  ;;  %2352 = vmatpush1.bf16.msra.mxu1 %v7321_v5 }
 0x249   :  { %v782_v11 = vpop.f32.mrb[56].mxu0 }
 0x24a   :  { %v784_v1 = vpop.f32.mrb[57].mxu0 }
 0x24b   :  { %v786_v39 = vpop.f32.mrb[58].mxu0 }
 0x24c   :  { %v7325_v30 = vpack.c.bf16 %v786_v39, %v782_v11  ;;  %v788_v51 = vpop.f32.mrb[59].mxu0 }
 0x24d   :  { %v7323_v20 = vpack.c.bf16 %v788_v51, %v784_v1 }
 0x24f   :  { %7324 = vmatprep.subr.bf16.mxu0 %v7323_v20  ;;  %2353 = vmatprep.subr.bf16.mxu1 %v7323_v20 }
 0x250   :  { %7326 = vmatpush1.bf16.xpose.msra.mxu0 %v7325_v30  ;;  %2354 = vmatpush1.bf16.msra.mxu1 %v7325_v30 }
 0x251   :  { %v792_v35 = vpop.f32.mrb[60].mxu0 }
 0x252   :  { %v794_v9 = vpop.f32.mrb[61].mxu0 }
 0x253   :  { %v796_v61 = vpop.f32.mrb[62].mxu0 }
 0x254   :  { %v7329_v26 = vpack.c.bf16 %v796_v61, %v792_v35  ;;  %v798_v63 = vpop.f32.mrb[63].mxu0 }
 0x255   :  { %v7327_v7 = vpack.c.bf16 %v798_v63, %v794_v9 }
 0x257   :  { %7328 = vmatprep.subr.bf16.mxu0 %v7327_v7  ;;  %2355 = vmatprep.subr.bf16.mxu1 %v7327_v7 }
 0x258   :  { %7330 = vmatpush1.bf16.xpose.msra.mxu0 %v7329_v26  ;;  %2356 = vmatpush1.bf16.msra.mxu1 %v7329_v26 }
 0x25f   :  { %1071 = vmatmul.mubr.f32.vlgmr.msra.gmra.mrb[64].mxu0 %v999_v32 }
 0x260   :  { %2871 = vmatprep.mubr.bf16.mxu0 %v8659_v15 }
 0x2b4   :  { %v945_v3 = vpop.f32.mrb[44].mxu1 }
 0x2b5   :  { %v947_v10 = vpop.f32.mrb[45].mxu1  ;;  %v1133_v11 = vmul.f32 %v8830_v53, %v945_v3 }
 0x2b6   :  { %v949_v41 = vpop.f32.mrb[46].mxu1  ;;  %v1134_v1 = vmul.f32 %v8833_v57, %v947_v10 }
 0x2b7   :  { %v951_v5 = vpop.f32.mrb[47].mxu1  ;;  %v1135_v24 = vmul.f32 %v8830_v53, %v949_v41 }
 0x2b8   :  { %v1136_v45 = vmul.f32 %v8833_v57, %v951_v5  ;;  %v8918_v51 = vadd.f32 %v1134_v1, %v1133_v11 }
 0x2ba   :  { %v8916_v30 = vadd.f32 %v1136_v45, %v1135_v24 }
 0x2bc   :  { %v955_v39 = vpop.f32.mrb[48].mxu1 }
 0x2bd   :  { %v957_v12 = vpop.f32.mrb[49].mxu1  ;;  %v1137_v61 = vmul.f32 %v8830_v53, %v955_v39 }
 0x2be   :  { %v959_v20 = vpop.f32.mrb[50].mxu1  ;;  %v1138_v26 = vmul.f32 %v8833_v57, %v957_v12 }
 0x2bf   :  { %v1139_v15 = vmul.f32 %v8830_v53, %v959_v20  ;;  %v961_v35 = vpop.f32.mrb[51].mxu1 }
 0x2c0   :  { %v1140_v9 = vmul.f32 %v8833_v57, %v961_v35  ;;  %v8926_v10 = vadd.f32 %v1138_v26, %v1137_v61 }
 0x2c2   :  { %v8924_v7 = vadd.f32 %v1140_v9, %v1139_v15 }
 0x2c5   :  { %v965_v63 = vpop.f32.mrb[52].mxu1 }
 0x2c6   :  { %v967_v32 = vpop.f32.mrb[53].mxu1  ;;  %v1141_v45 = vmul.f32 %v8830_v53, %v965_v63 }
 0x2c7   :  { %v969_v3 = vpop.f32.mrb[54].mxu1  ;;  %v1142_v11 = vmul.f32 %v8833_v57, %v967_v32 }
 0x2c8   :  { %v1143_v41 = vmul.f32 %v8830_v53, %v969_v3  ;;  %v971_v5 = vpop.f32.mrb[55].mxu1 }
 0x2c9   :  { %v1144_v24 = vmul.f32 %v8833_v57, %v971_v5  ;;  %v8934_v20 = vadd.f32 %v1142_v11, %v1141_v45 }
 0x2cb   :  { %v8932_v39 = vadd.f32 %v1144_v24, %v1143_v41 }
 0x2cd   :  { %v975_v1 = vpop.f32.mrb[56].mxu1 }
 0x2ce   :  { %v977_v12 = vpop.f32.mrb[57].mxu1  ;;  %v1145_v26 = vmul.f32 %v8830_v53, %v975_v1 }
 0x2cf   :  { %v979_v15 = vpop.f32.mrb[58].mxu1  ;;  %v1146_v3 = vmul.f32 %v8833_v57, %v977_v12  ;;  %v7541_v12 = vld [vmem:[#allocation8 + $0x100] ss:$8 sps:$4 sm:$0xff]  }
 0x2d0   :  { %v1147_v35 = vmul.f32 %v8830_v53, %v979_v15  ;;  %v981_v9 = vpop.f32.mrb[59].mxu1 }
 0x2d1   :  { %v1148_v61 = vmul.f32 %v8833_v57, %v981_v9  ;;  %v8942_v18 = vadd.f32 %v1146_v3, %v1145_v26  ;;  %v7544_v26 = vld [vmem:[#allocation8 + $0x110] ss:$8 sps:$4 sm:$0xff]   ;;  %v7549_v3 = vld [vmem:[#allocation8 + $0x124] ss:$8 sps:$4 sm:$0xff]  }
 0x2d3   :  { %v8940_v63 = vadd.f32 %v1148_v61, %v1147_v35  ;;  %v7543_v35 = vld [vmem:[#allocation8 + $0x104] ss:$8 sps:$4 sm:$0xff]   ;;  %v7546_v61 = vld [vmem:[#allocation8 + $0x114] ss:$8 sps:$4 sm:$0xff]  }
 0x2d4   :  { %2839 = vmatprep.subr.bf16.mxu0 %v7543_v35  ;;  %3032 = vmatprep.subr.bf16.mxu1 %v7543_v35  ;;  %v8954_v35 = vpop.xlane.xlu1 %1160 }
 0x2d5   :  { %v985_v5 = vpop.f32.mrb[60].mxu1  ;;  %2840 = vmatpush1.bf16.msra.mxu0 %v7541_v12  ;;  %v193_v12 = vld [vmem:[#allocation2 + $0x8] sm:$0xff] }
 0x2d6   :  { %v987_v32 = vpop.f32.mrb[61].mxu1  ;;  %v1149_v15 = vmul.f32 %v8830_v53, %v985_v5  ;;  %2841 = vmatprep.subr.bf16.mxu0 %v7546_v61  ;;  %v7553_v5 = vld [vmem:[#allocation8 + $0x140] ss:$8 sps:$4 sm:$0xff]   ;;  %vm1250_vm0 = vcmp.gt.bf16.partialorder %v193_v12, 0 }
 0x2d7   :  { %v989_v41 = vpop.f32.mrb[62].mxu1  ;;  %v1150_v9 = vmul.f32 %v8833_v57, %v987_v32  ;;  %v7558_v32 = vld [vmem:[#allocation8 + $0x154] ss:$8 sps:$4 sm:$0xff]   ;;  %v192_v61 = vld [vmem:[#allocation2] sm:$0xff]  ;;  %v201_v12 = vld [vmem:[#allocation2 + $0x48] sm:$0xff] }
 0x2d8   :  { %v1151_v24 = vmul.f32 %v8830_v53, %v989_v41  ;;  %v991_v45 = vpop.f32.mrb[63].mxu1  ;;  %v7547_v41 = vld [vmem:[#allocation8 + $0x120] ss:$8 sps:$4 sm:$0xff]   ;;  %v7550_v53 = vld [vmem:[#allocation8 + $0x130] ss:$8 sps:$4 sm:$0xff]   ;;  %vm1249_vm1 = vcmp.gt.bf16.partialorder %v192_v61, 0 }
 0x2d9   :  { %v1152_v11 = vmul.f32 %v8833_v57, %v991_v45  ;;  %v8950_v1 = vadd.f32 %v1150_v9, %v1149_v15  ;;  %2842 = vmatpush1.bf16.msra.mxu0 %v7544_v26  ;;  %v7552_v45 = vld [vmem:[#allocation8 + $0x134] ss:$8 sps:$4 sm:$0xff]   ;;  %v7555_v57 = vld [vmem:[#allocation8 + $0x144] ss:$8 sps:$4 sm:$0xff]   ;;  %v7559_v15 = vld [vmem:[#allocation8 + $0x160] ss:$8 sps:$4 sm:$0xff]   ;;  %v8952_v9 = vpop.xlane.xlu0 %1154 }
 0x2da   :  { %2843 = vmatprep.subr.bf16.mxu0 %v7549_v3  ;;  %v195_v26 = vld [vmem:[#allocation2 + $0x18] sm:$0xff]  ;;  %v194_v3 = vld [vmem:[#allocation2 + $0x10] sm:$0xff]  ;;  %vm1258_vm8 = vcmp.gt.bf16.partialorder %v201_v12, 0 }
 0x2db   :  { %v8948_v22 = vadd.f32 %v1152_v11, %v1151_v24  ;;  %12542 = vst [vmem:[#allocation93_spill] sm:$0xff] %v8950_v1  ;;  %v7556_v24 = vld [vmem:[#allocation8 + $0x150] ss:$8 sps:$4 sm:$0xff]   ;;  %v7561_v11 = vld [vmem:[#allocation8 + $0x164] ss:$8 sps:$4 sm:$0xff]   ;;  %vm1252_vm2 = vcmp.gt.bf16.partialorder %v195_v26, 0 }
 0x2dc   :  { %vm1251_vm3 = vcmp.gt.bf16.partialorder %v194_v3, 0  ;;  %v203_v3 = vld [vmem:[#allocation2 + $0x58] sm:$0xff]  ;;  %v213_v1 = vld [vmem:[#allocation2 + $0xa8] sm:$0xff] }
 0x2dd   :  { %12541 = vst [vmem:[#allocation92_spill] sm:$0xff] %v8948_v22  ;;  %2844 = vmatpush1.bf16.msra.mxu0 %v7547_v41  ;;  %v197_v41 = vld [vmem:[#allocation2 + $0x28] sm:$0xff]  ;;  %vm1260_vm10 = vcmp.gt.bf16.partialorder %v203_v3, 0  ;;  %v12545_v3 = vmov 0 }
 0x2de   :  { %2845 = vmatprep.subr.bf16.mxu0 %v7552_v45  ;;  %v196_v45 = vld [vmem:[#allocation2 + $0x20] sm:$0xff]  ;;  %vm1254_vm4 = vcmp.gt.bf16.partialorder %v197_v41, 0 }
 0x2df   :  { %vm1253_vm5 = vcmp.gt.bf16.partialorder %v196_v45, 0 }
 0x2e1   :  { %2846 = vmatpush1.bf16.msra.mxu0 %v7550_v53  ;;  %v8956_v53 = vpop.xlane.xlu0 %1157 }
 0x2e2   :  { %2847 = vmatprep.subr.bf16.mxu0 %v7555_v57  ;;  %v12254_v57 = vmov 0  }
 0x2e3   :  { %v8968_v16 = vsel %vm1252_vm2, 65537, %v12254_v57  ;;  %v8973_v49 = vsel %vm1251_vm3, 65537, %v12254_v57  ;;  %v8977_v45 = vsel %vm1254_vm4, 65537, %v12254_v57  ;;  %v8980_v61 = vsel %vm1253_vm5, 65537, %v12254_v57 }
 0x2e4   :  { %v9001_v56 = vsel %vm1258_vm8, 65537, %v12254_v57  ;;  %v9008_v47 = vsel %vm1257_vm9, 65537, %v12254_v57  ;;  %v9013_v12 = vsel %vm1260_vm10, 65537, %v12254_v57  ;;  %v12558_v2 = vunpack.c.l.b16 %v8968_v16 }
 0x2e5   :  { %2848 = vmatpush1.bf16.msra.mxu0 %v7553_v5  ;;  %v8959_v5 = vsel %vm1250_vm0, 65537, %v12254_v57  ;;  %vm1266_vm0 = vcmp.gt.bf16.partialorder %v209_v4, 0  ;;  %v12562_v44 = vunpack.c.h.b16 %v8968_v16  ;;  %v12570_v31 = vunpack.c.h.b16 %v8973_v49 }
 0x2e6   :  { %2849 = vmatprep.subr.bf16.mxu0 %v7558_v32  ;;  %v199_v32 = vld [vmem:[#allocation2 + $0x38] sm:$0xff]  ;;  %v1580_v26 = vunpack.c.h.b16 %v8959_v5  ;;  %v12544_v14 = vunpack.c.l.b16 %v8959_v5 }
 0x2e7   :  { %vm1256_vm6 = vcmp.gt.bf16.partialorder %v199_v32, 0  ;;  %v8982_v32 = vpop.xlane.xlu0 %1166  ;;  %vm9113_vm8 = vcmp.ne.s32.totalorder %v12562_v44, 0  ;;  %vm9146_vm11 = vcmp.ne.s32.totalorder %v12570_v31, 0 }
 0x2e8   :  { %v8987_v33 = vsel %vm1256_vm6, 65537, %v12254_v57  ;;  %vm9048_vm2 = vcmp.ne.s32.totalorder %v12544_v14, 0  ;;  %vm9052_vm3 = vcmp.ne.s32.totalorder %v1580_v26, 0  ;;  %v12559_v26 = vmov 0 }
 0x2e9   :  { %2850 = vmatpush1.bf16.msra.mxu0 %v7556_v24  ;;  %v8961_v24 = vpop.xlane.xlu1 %1163  ;;  %v12546_v3 = vsel %vm9048_vm2, 4294967295, %v12545_v3  ;;  %v12549_v29 = vsel %vm9052_vm3, 4294967295, %v12548_v29  ;;  %v12572_v21 = vsel %vm9146_vm11, 4294967295, %v12571_v21 }
 0x2ea   :  { %2851 = vmatprep.subr.bf16.mxu0 %v7561_v11  ;;  %v8964_v11 = vsel %vm1249_vm1, 65537, %v12254_v57  ;;  %vm1265_vm1 = vcmp.gt.bf16.partialorder %v208_v52, 0  ;;  %12547 = vst [vmem:[#allocation94_spill] sm:$0xff] %v12546_v3  ;;  %12550 = vst [vmem:[#allocation95_spill] sm:$0xff] %v12549_v29 }
 0x2eb   :  { %v1578_v41 = vunpack.c.h.b16 %v8964_v11  ;;  %v9017_v27 = vpop.xlane.xlu0 %1172  ;;  %12573 = vst [vmem:[#allocation101_spill] sm:$0xff] %v12572_v21 }
 0x2ed   :  { %2852 = vmatpush1.bf16.msra.mxu0 %v7559_v15  ;;  %v198_v15 = vld [vmem:[#allocation2 + $0x30] sm:$0xff]  ;;  %vm9065_vm6 = vcmp.ne.s32.totalorder %v1578_v41, 0  ;;  %v9081_v41 = vsel %vm1265_vm1, 65537, %v12543_v54 }
 0x2ee   :  { %vm1255_vm7 = vcmp.gt.bf16.partialorder %v198_v15, 0  ;;  %v8989_v15 = vpop.xlane.xlu1 %1169 }
 0x2ef   :  { %v8994_v43 = vsel %vm1255_vm7, 65537, %v12254_v57  ;;  %v211_v57 = vld [vmem:[#allocation2 + $0x98] sm:$0xff]  ;;  %v9083_v17 = vpop.xlane.xlu0 %1178  ;;  %vm9101_vm7 = vcmp.ne.s32.totalorder %v12558_v2, 0 }
 0x2f0   :  { %vm1268_vm4 = vcmp.gt.bf16.partialorder %v211_v57, 0  ;;  %v9091_v57 = vld [vmem:[#allocation2 + $0x90] sm:$0xff]  ;;  %v12560_v26 = vsel %vm9101_vm7, 4294967295, %v12559_v26 }
 0x2f1   :  { %v9089_v5 = vsel %vm1268_vm4, 65537, %v12543_v54  ;;  %12561 = vst [vmem:[#allocation98_spill] sm:$0xff] %v12560_v26  ;;  %vm1267_vm9 = vcmp.gt.bf16.partialorder %v9091_v57, 0  ;;  %v12608_v26 = vunpack.c.l.b16 %v8994_v43 }
 0x2f2   :  { %v9022_v40 = vpop.xlane.xlu1 %1175 }
 0x2f3   :  { %v9150_v8 = vpop.xlane.xlu0 %1184 }
 0x2f7   :  { %v9187_v29 = vpop.xlane.xlu0 %1190 }
 0x332   :  { %v1072_v42 = vpop.f32.mrb[64].mxu0 }
 0x333   :  { %v1074_v25 = vpop.f32.mrb[65].mxu0  ;;  %v9041_v38 = vrot.slane %v1072_v42, %v8823_v28  ;;  %v12551_v42 = vunpack.c.l.b16 %v8964_v11  ;;  %v9093_v11 = vpop.xlane.xlu1 %1181 }
 0x334   :  { %v9044_v36 = vrot.slane %v1074_v25, %v8823_v28  ;;  %v12555_v25 = vmov 0  ;;  %v9074_v28 = vsel %vm1266_vm0, 65537, %v12543_v54 }
 0x335   :  { %vm9061_vm5 = vcmp.ne.s32.totalorder %v12551_v42, 0  ;;  %v12556_v25 = vsel %vm9065_vm6, 4294967295, %v12555_v25  ;;  %v1291_v52 = vadd.f32 %v9041_v38, %v8956_v53  ;;  %v1289_v0 = vadd.f32 %v9041_v38, %v8952_v9 }
 0x336   :  { %v12553_v23 = vsel %vm9061_vm5, 4294967295, %v12552_v23  ;;  %12557 = vst [vmem:[#allocation97_spill] sm:$0xff] %v12556_v25  ;;  %v1292_v42 = vadd.f32 %v9044_v36, %v8956_v53  ;;  %v1290_v50 = vadd.f32 %v9044_v36, %v8952_v9  ;;  %v12563_v53 = vmov 0 }
 0x337   :  { %12554 = vst [vmem:[#allocation96_spill] sm:$0xff] %v12553_v23  ;;  %v12564_v53 = vsel %vm9113_vm8, 4294967295, %v12563_v53  ;;  %v1295_v4 = vadd.f32 %v9041_v38, %v8961_v24  ;;  %v1296_v14 = vadd.f32 %v9044_v36, %v8961_v24  ;;  %v1293_v44 = vadd.f32 %v9041_v38, %v8954_v35 }
 0x338   :  { %12565 = vst [vmem:[#allocation99_spill] sm:$0xff] %v12564_v53  ;;  %v9130_v16 = vadd.f32 %v9041_v38, %v8989_v15  ;;  %v1294_v34 = vadd.f32 %v9044_v36, %v8954_v35  ;;  %v9136_v2 = vadd.f32 %v9044_v36, %v8989_v15  ;;  %v12566_v24 = vunpack.c.l.b16 %v8973_v49 }
 0x339   :  { %v12567_v9 = vmov 0  ;;  %vm1355_vm12 = vcmp.ge.f32.partialorder %v1291_v52, 0.0  ;;  %vm1356_vm13 = vcmp.ge.f32.partialorder %v1292_v42, 0.0  ;;  %v1419_v19 = vmul.f32 0.2, %v1291_v52 }
 0x33a   :  { %vm9140_vm10 = vcmp.ne.s32.totalorder %v12566_v24, 0  ;;  %v1420_v35 = vmul.f32 0.2, %v1292_v42  ;;  %vm1353_vm14 = vcmp.ge.f32.partialorder %v1289_v0, 0.0  ;;  %vm1354_vm15 = vcmp.ge.f32.partialorder %v1290_v50, 0.0  ;;  %v9152_v24 = vpop.xlane.xlu1 %1187 }
 0x33b   :  { %v12568_v9 = vsel %vm9140_vm10, 4294967295, %v12567_v9  ;;  %v1417_v15 = vmul.f32 0.2, %v1289_v0  ;;  %v1418_v6 = vmul.f32 0.2, %v1290_v50  ;;  %v1483_v60 = vsel %vm1355_vm12, %v1291_v52, %v1419_v19 }
 0x33c   :  { %12569 = vst [vmem:[#allocation100_spill] sm:$0xff] %v12568_v9  ;;  %v1484_v58 = vsel %vm1356_vm13, %v1292_v42, %v1420_v35  ;;  %vm1359_vm0 = vcmp.ge.f32.partialorder %v1295_v4, 0.0  ;;  %vm1360_vm1 = vcmp.ge.f32.partialorder %v1296_v14, 0.0  ;;  %v9156_v49 = vsel %vm9048_vm2, %v1483_v60, -1e+30 }
 0x33d   :  { %12574 = vst [vmem:[#allocation102_spill] sm:$0xff] %v9156_v49  ;;  %v9160_v31 = vsel %vm9052_vm3, %v1484_v58, -1e+30  ;;  %v1481_v48 = vsel %vm1353_vm14, %v1289_v0, %v1417_v15  ;;  %v1482_v46 = vsel %vm1354_vm15, %v1290_v50, %v1418_v6  ;;  %v1423_v60 = vmul.f32 0.2, %v1295_v4 }
 0x33e   :  { %12575 = vst [vmem:[#allocation103_spill] sm:$0xff] %v9160_v31  ;;  %v1772_v22 = vmax.f32 %v9156_v49, %v9160_v31  ;;  %v9166_v19 = vsel %vm9061_vm5, %v1481_v48, -1e+30  ;;  %v9170_v42 = vsel %vm9065_vm6, %v1482_v46, -1e+30  ;;  %v12578_v52 = vunpack.c.l.b16 %v8977_v45 }
 0x33f   :  { %12576 = vst [vmem:[#allocation104_spill] sm:$0xff] %v9166_v19  ;;  %12577 = vst [vmem:[#allocation105_spill] sm:$0xff] %v9170_v42  ;;  %v12579_v58 = vmov 0  ;;  %v1769_v6 = vmax.f32 %v9166_v19, %v9170_v42  ;;  %v1424_v50 = vmul.f32 0.2, %v1296_v14  ;;  %vm1357_vm12 = vcmp.ge.f32.partialorder %v1293_v44, 0.0 }
 0x340   :  { %vm9174_vm4 = vcmp.ne.s32.totalorder %v12578_v52, 0  ;;  %vm1358_vm13 = vcmp.ge.f32.partialorder %v1294_v34, 0.0  ;;  %v12582_v48 = vunpack.c.h.b16 %v8977_v45  ;;  %v12583_v0 = vmov 0  ;;  %1773 = vmax.xlane.f32.xlu1 %v1772_v22  ;;  %v212_v52 = vld [vmem:[#allocation2 + $0xa0] sm:$0xff]  ;;  %v7562_v19 = vld [vmem:[#allocation8 + $0x170] ss:$8 sps:$4 sm:$0xff]  }
 0x341   :  { %v12580_v58 = vsel %vm9174_vm4, 4294967295, %v12579_v58  ;;  %v1487_v46 = vsel %vm1359_vm0, %v1295_v4, %v1423_v60  ;;  %v1421_v35 = vmul.f32 0.2, %v1293_v44  ;;  %v1422_v15 = vmul.f32 0.2, %v1294_v34  ;;  %1770 = vmax.xlane.f32.xlu0 %v1769_v6 }
 0x342   :  { %12581 = vst [vmem:[#allocation106_spill] sm:$0xff] %v12580_v58  ;;  %vm9182_vm14 = vcmp.ne.s32.totalorder %v12582_v48, 0  ;;  %v1297_v3 = vadd.f32 %v9041_v38, %v8982_v32  ;;  %v1298_v25 = vadd.f32 %v9044_v36, %v8982_v32  ;;  %v1488_v45 = vsel %vm1360_vm1, %v1296_v14, %v1424_v50  ;;  %v9210_v32 = vpop.xlane.xlu1 %1193  ;;  %v7564_v31 = vld [vmem:[#allocation8 + $0x174] ss:$8 sps:$4 sm:$0xff]  }
 0x343   :  { %v12584_v0 = vsel %vm9182_vm14, 4294967295, %v12583_v0  ;;  %v9196_v22 = vsel %vm9101_vm7, %v1487_v46, -1e+30  ;;  %v12587_v4 = vunpack.c.l.b16 %v8980_v61  ;;  %v12588_v60 = vmov 0  ;;  %2853 = vmatprep.subr.bf16.mxu0 %v7564_v31  ;;  %v7565_v31 = vld [vmem:[#allocation8 + $0x180] ss:$8 sps:$4 sm:$0xff]  }
 0x344   :  { %12585 = vst [vmem:[#allocation107_spill] sm:$0xff] %v12584_v0  ;;  %12586 = vst [vmem:[#allocation108_spill] sm:$0xff] %v9196_v22  ;;  %v12591_v48 = vunpack.c.h.b16 %v8980_v61  ;;  %v12592_v23 = vmov 0  ;;  %v9214_v14 = vsel %vm9113_vm8, %v1488_v45, -1e+30  ;;  %v1485_v6 = vsel %vm1357_vm12, %v1293_v44, %v1421_v35  ;;  %1223 = vadd.xlane.f32.xlu1 %v8916_v30  ;;  %2854 = vmatpush1.bf16.msra.mxu0 %v7562_v19 }
 0x345   :  { %vm9200_vm0 = vcmp.ne.s32.totalorder %v12587_v4, 0  ;;  %12595 = vst [vmem:[#allocation111_spill] sm:$0xff] %v9214_v14  ;;  %v1486_v50 = vsel %vm1358_vm13, %v1294_v34, %v1422_v15  ;;  %v1427_v46 = vmul.f32 0.2, %v9130_v16  ;;  %vm1363_vm1 = vcmp.ge.f32.partialorder %v9130_v16, 0.0  ;;  %1220 = vadd.xlane.f32.xlu0 %v8918_v51  ;;  %v9260_v51 = vpop.xlane.xlu0 %1196 }
 0x346   :  { %v12589_v60 = vsel %vm9200_vm0, 4294967295, %v12588_v60  ;;  %vm9206_vm15 = vcmp.ne.s32.totalorder %v12591_v48, 0  ;;  %v1428_v61 = vmul.f32 0.2, %v9136_v2  ;;  %v9224_v4 = vsel %vm1267_vm9, 65537, %v12543_v54  ;;  %v9276_v21 = vpop.xlane.xlu1 %1199 }
 0x347   :  { %12590 = vst [vmem:[#allocation109_spill] sm:$0xff] %v12589_v60  ;;  %v12593_v23 = vsel %vm9206_vm15, 4294967295, %v12592_v23  ;;  %v9229_v45 = vsel %vm9140_vm10, %v1485_v6, -1e+30  ;;  %v9233_v34 = vsel %vm9146_vm11, %v1486_v50, -1e+30  ;;  %v1303_v57 = vadd.f32 %v9041_v38, %v9022_v40 }
 0x348   :  { %12594 = vst [vmem:[#allocation110_spill] sm:$0xff] %v12593_v23  ;;  %12596 = vst [vmem:[#allocation112_spill] sm:$0xff] %v9229_v45  ;;  %vm12598_vm13 = vcmp.gt.bf16.partialorder %v213_v1, 0  ;;  %v1304_v30 = vadd.f32 %v9044_v36, %v9022_v40  ;;  %v1778_v35 = vmax.f32 %v9196_v22, %v9214_v14  ;;  %v1425_v15 = vmul.f32 0.2, %v1297_v3 }
 0x349   :  { %12597 = vst [vmem:[#allocation113_spill] sm:$0xff] %v9233_v34  ;;  %v9238_v44 = vsel %vm12598_vm13, 65537, %v12543_v54  ;;  %v1491_v48 = vsel %vm1363_vm1, %v9130_v16, %v1427_v46  ;;  %v1426_v6 = vmul.f32 0.2, %v1298_v25  ;;  %v12599_v1 = vunpack.c.l.b16 %v8987_v33 }
 0x34a   :  { %v12600_v50 = vmov 0  ;;  %v12603_v53 = vunpack.c.h.b16 %v8987_v33  ;;  %v12604_v40 = vmov 0  ;;  %v1301_v16 = vadd.f32 %v9041_v38, %v9017_v27  ;;  %1779 = vmax.xlane.f32.xlu1 %v1778_v35 }
 0x34b   :  { %vm9250_vm13 = vcmp.ne.s32.totalorder %v12599_v1, 0  ;;  %v1775_v46 = vmax.f32 %v9229_v45, %v9233_v34  ;;  %vm12607_vm1 = vcmp.ge.f32.partialorder %v9136_v2, 0.0  ;;  %vm9271_vm7 = vcmp.ne.s32.totalorder %v12608_v26, 0 }
 0x34c   :  { %v12601_v50 = vsel %vm9250_vm13, 4294967295, %v12600_v50  ;;  %vm9256_vm12 = vcmp.ne.s32.totalorder %v12603_v53, 0  ;;  %v1492_v1 = vsel %vm12607_vm1, %v9136_v2, %v1428_v61  ;;  %v12609_v33 = vmov 0 }
 0x34d   :  { %12602 = vst [vmem:[#allocation114_spill] sm:$0xff] %v12601_v50  ;;  %v12605_v40 = vsel %vm9256_vm12, 4294967295, %v12604_v40  ;;  %v12610_v33 = vsel %vm9271_vm7, 4294967295, %v12609_v33  ;;  %v1302_v9 = vadd.f32 %v9044_v36, %v9017_v27  ;;  %v12612_v34 = vunpack.c.h.b16 %v8994_v43  ;;  %1776 = vmax.xlane.f32.xlu0 %v1775_v46 }
 0x34e   :  { %12606 = vst [vmem:[#allocation115_spill] sm:$0xff] %v12605_v40  ;;  %12611 = vst [vmem:[#allocation116_spill] sm:$0xff] %v12610_v33  ;;  %v12613_v45 = vmov 0  ;;  %v9291_v53 = vsel %vm9174_vm4, %v1491_v48, -1e+30  ;;  %vm12617_vm1 = vcmp.ge.f32.partialorder %v1297_v3, 0.0  ;;  %1229 = vadd.xlane.f32.xlu1 %v8924_v7  ;;  %v1307_v46 = vadd.f32 %v9041_v38, %v9093_v11 }
 0x34f   :  { %vm9282_vm9 = vcmp.ne.s32.totalorder %v12612_v34, 0  ;;  %12616 = vst [vmem:[#allocation118_spill] sm:$0xff] %v9291_v53  ;;  %v1489_v27 = vsel %vm12617_vm1, %v1297_v3, %v1425_v15  ;;  %vm12618_vm8 = vcmp.ge.f32.partialorder %v1298_v25, 0.0  ;;  %vm12619_vm11 = vcmp.gt.bf16.partialorder %v212_v52, 0 }
 0x350   :  { %v12614_v45 = vsel %vm9282_vm9, 4294967295, %v12613_v45  ;;  %v1490_v35 = vsel %vm12618_vm8, %v1298_v25, %v1426_v6  ;;  %v9297_v43 = vsel %vm12619_vm11, 65537, %v12543_v54  ;;  %v9301_v34 = vsel %vm9182_vm14, %v1492_v1, -1e+30  ;;  %v9314_v6 = vpop.xlane.xlu0 %1202 }
 0x351   :  { %12615 = vst [vmem:[#allocation117_spill] sm:$0xff] %v12614_v45  ;;  %12620 = vst [vmem:[#allocation119_spill] sm:$0xff] %v9301_v34  ;;  %v1431_v26 = vmul.f32 0.2, %v1303_v57  ;;  %v1432_v2 = vmul.f32 0.2, %v1304_v30  ;;  %v1305_v1 = vadd.f32 %v9041_v38, %v9083_v17  ;;  %v9322_v7 = vadd.f32 %v9041_v38, %v9150_v8  ;;  %1226 = vadd.xlane.f32.xlu0 %v8926_v10 }
 0x352   :  { %vm1367_vm10 = vcmp.ge.f32.partialorder %v1303_v57, 0.0  ;;  %vm1368_vm3 = vcmp.ge.f32.partialorder %v1304_v30, 0.0  ;;  %vm1365_vm4 = vcmp.ge.f32.partialorder %v1301_v16, 0.0  ;;  %v1429_v48 = vmul.f32 0.2, %v1301_v16 }
 0x353   :  { %v9307_v3 = vsel %vm9200_vm0, %v1489_v27, -1e+30  ;;  %v9311_v25 = vsel %vm9206_vm15, %v1490_v35, -1e+30  ;;  %v1430_v52 = vmul.f32 0.2, %v1302_v9  ;;  %v9325_v27 = vpop.xlane.xlu1 %1205  ;;  %v9329_v35 = vadd.f32 %v9041_v38, %v9152_v24 }
 0x354   :  { %12621 = vst [vmem:[#allocation120_spill] sm:$0xff] %v9307_v3  ;;  %12622 = vst [vmem:[#allocation121_spill] sm:$0xff] %v9311_v25  ;;  %vm1366_vm8 = vcmp.ge.f32.partialorder %v1302_v9, 0.0  ;;  %v1784_v15 = vmax.f32 %v9291_v53, %v9301_v34  ;;  %v1495_v61 = vsel %vm1367_vm10, %v1303_v57, %v1431_v26  ;;  %v1496_v0 = vsel %vm1368_vm3, %v1304_v30, %v1432_v2 }
 0x355   :  { %v9337_v58 = vadd.f32 %v9041_v38, %v9187_v29  ;;  %v1308_v10 = vadd.f32 %v9044_v36, %v9093_v11  ;;  %v1781_v23 = vmax.f32 %v9307_v3, %v9311_v25  ;;  %v1493_v60 = vsel %vm1365_vm4, %v1301_v16, %v1429_v48 }
 0x356   :  { %v12623_v14 = vunpack.c.l.b16 %v9001_v56  ;;  %v12624_v34 = vmov 0  ;;  %v9352_v57 = vadd.f32 %v9041_v38, %v9210_v32  ;;  %v9356_v30 = vadd.f32 %v9041_v38, %v9260_v51  ;;  %1785 = vmax.xlane.f32.xlu1 %v1784_v15 }
 0x357   :  { %v1306_v11 = vadd.f32 %v9044_v36, %v9083_v17  ;;  %v1494_v2 = vsel %vm1366_vm8, %v1302_v9, %v1430_v52  ;;  %v12627_v16 = vunpack.c.h.b16 %v9001_v56  ;;  %v12631_v26 = vunpack.c.l.b16 %v9008_v47  ;;  %1782 = vmax.xlane.f32.xlu0 %v1781_v23  ;;  %v1212_v40 = vpop.xlane.xlu1 %1211 }
 0x358   :  { %vm9346_vm11 = vcmp.ne.s32.totalorder %v12623_v14, 0  ;;  %v12628_v14 = vmov 0  ;;  %v12632_v48 = vmov 0  ;;  %v12635_v25 = vunpack.c.h.b16 %v9008_v47 }
 0x359   :  { %v12625_v34 = vsel %vm9346_vm11, 4294967295, %v12624_v34  ;;  %vm9362_vm3 = vcmp.ne.s32.totalorder %v12627_v16, 0  ;;  %vm9368_vm10 = vcmp.ne.s32.totalorder %v12631_v26, 0  ;;  %v12636_v3 = vmov 0  ;;  %v1209_v16 = vpop.xlane.xlu0 %1208 }
 0x35a   :  { %12626 = vst [vmem:[#allocation122_spill] sm:$0xff] %v12625_v34  ;;  %v12629_v14 = vsel %vm9362_vm3, 4294967295, %v12628_v14  ;;  %v12633_v48 = vsel %vm9368_vm10, 4294967295, %v12632_v48  ;;  %vm9374_vm4 = vcmp.ne.s32.totalorder %v12635_v25, 0  ;;  %v9380_v17 = vadd.f32 %v9041_v38, %v9276_v21  ;;  %1235 = vadd.xlane.f32.xlu1 %v8932_v39  ;;  %v12712_v34 = vld [vmem:[#allocation93_spill] sm:$0xff] }
 0x35b   :  { %12630 = vst [vmem:[#allocation123_spill] sm:$0xff] %v12629_v14  ;;  %12634 = vst [vmem:[#allocation124_spill] sm:$0xff] %v12633_v48  ;;  %v12637_v3 = vsel %vm9374_vm4, 4294967295, %v12636_v3  ;;  %v9384_v56 = vadd.f32 %v9041_v38, %v9314_v6  ;;  %v9388_v9 = vsel %vm9250_vm13, %v1495_v61, -1e+30  ;;  %v9396_v25 = vadd.f32 %v9041_v38, %v9325_v27  ;;  %1232 = vadd.xlane.f32.xlu0 %v8934_v20  ;;  %v12808_v48 = vld [vmem:[#allocation112_spill] sm:$0xff] }
 0x35c   :  { %12638 = vst [vmem:[#allocation125_spill] sm:$0xff] %v12637_v3  ;;  %v9392_v47 = vsel %vm9256_vm12, %v1496_v0, -1e+30  ;;  %v9400_v52 = vsel %vm9271_vm7, %v1493_v60, -1e+30  ;;  %v1312_v23 = vadd.f32 %v9044_v36, %v9152_v24  ;;  %v9409_v50 = vadd.f32 %v9041_v38, %v1209_v16 }
 0x35d   :  { %12639 = vst [vmem:[#allocation126_spill] sm:$0xff] %v9392_v47  ;;  %v1435_v15 = vmul.f32 0.2, %v1307_v46  ;;  %v9406_v61 = vsel %vm9282_vm9, %v1494_v2, -1e+30  ;;  %v12640_v33 = vunpack.c.l.b16 %v9013_v12  ;;  %v12641_v53 = vmov 0 }
 0x35e   :  { %v1436_v0 = vmul.f32 0.2, %v1308_v10  ;;  %v1433_v26 = vmul.f32 0.2, %v1305_v1  ;;  %v1434_v60 = vmul.f32 0.2, %v1306_v11  ;;  %v12644_v24 = vunpack.c.h.b16 %v9013_v12 }
 0x35f   :  { %vm9414_vm1 = vcmp.ne.s32.totalorder %v12640_v33, 0  ;;  %v12645_v2 = vmov 0  ;;  %v9425_v45 = vadd.f32 %v9041_v38, %v1212_v40  ;;  %v1310_v39 = vadd.f32 %v9044_v36, %v9150_v8 }
 0x360   :  { %v12642_v53 = vsel %vm9414_vm1, 4294967295, %v12641_v53  ;;  %vm9420_vm13 = vcmp.ne.s32.totalorder %v12644_v24, 0  ;;  %v9431_v22 = vadd.f32 %v9044_v36, %v9187_v29  ;;  %vm1370_vm12 = vcmp.ge.f32.partialorder %v1306_v11, 0.0 }
 0x361   :  { %12643 = vst [vmem:[#allocation127_spill] sm:$0xff] %v12642_v53  ;;  %v12646_v2 = vsel %vm9420_vm13, 4294967295, %v12645_v2  ;;  %v12648_v33 = vunpack.c.l.b16 %v9027_v37  ;;  %v12649_v12 = vmov 0  ;;  %v12652_v24 = vunpack.c.h.b16 %v9027_v37 }
 0x362   :  { %12647 = vst [vmem:[#allocation128_spill] sm:$0xff] %v12646_v2  ;;  %v12653_v42 = vmov 0  ;;  %v9448_v8 = vadd.f32 %v9044_v36, %v9210_v32  ;;  %v1790_v20 = vmax.f32 %v9388_v9, %v9392_v47  ;;  %v1787_v29 = vmax.f32 %v9400_v52, %v9406_v61 }
 0x363   :  { %vm9436_vm8 = vcmp.ne.s32.totalorder %v12648_v33, 0  ;;  %vm9442_vm9 = vcmp.ne.s32.totalorder %v12652_v24, 0  ;;  %vm12656_vm7 = vcmp.ge.f32.partialorder %v1307_v46, 0.0  ;;  %vm12657_vm14 = vcmp.ge.f32.partialorder %v1308_v10, 0.0 }
 0x364   :  { %v12650_v12 = vsel %vm9436_vm8, 4294967295, %v12649_v12  ;;  %v12654_v42 = vsel %vm9442_vm9, 4294967295, %v12653_v42  ;;  %v1499_v33 = vsel %vm12656_vm7, %v1307_v46, %v1435_v15  ;;  %v1500_v37 = vsel %vm12657_vm14, %v1308_v10, %v1436_v0  ;;  %1791 = vmax.xlane.f32.xlu1 %v1790_v20  ;;  %v1215_v15 = vpop.xlane.xlu0 %1214  ;;  %1788 = vmax.xlane.f32.xlu0 %v1787_v29 }
 0x365   :  { %12651 = vst [vmem:[#allocation129_spill] sm:$0xff] %v12650_v12  ;;  %12655 = vst [vmem:[#allocation130_spill] sm:$0xff] %v12654_v42  ;;  %vm12658_vm15 = vcmp.ge.f32.partialorder %v1305_v1, 0.0  ;;  %vm1375_vm0 = vcmp.ge.f32.partialorder %v9329_v35, 0.0  ;;  %v1498_v32 = vsel %vm1370_vm12, %v1306_v11, %v1434_v60  ;;  %v1439_v49 = vmul.f32 0.2, %v9329_v35 }
 0x366   :  { %v1497_v24 = vsel %vm12658_vm15, %v1305_v1, %v1433_v26  ;;  %v1440_v54 = vmul.f32 0.2, %v1312_v23  ;;  %v1437_v47 = vmul.f32 0.2, %v9322_v7  ;;  %v9462_v46 = vadd.f32 %v9044_v36, %v9260_v51  ;;  %v7567_v51 = vld [vmem:[#allocation8 + $0x184] ss:$8 sps:$4 sm:$0xff]  }
 0x367   :  { %v9466_v10 = vadd.f32 %v9044_v36, %v9276_v21  ;;  %v9470_v1 = vadd.f32 %v9044_v36, %v9314_v6  ;;  %v1438_v11 = vmul.f32 0.2, %v1310_v39  ;;  %v12659_v0 = vunpack.c.l.b16 %v9031_v55  ;;  %2855 = vmatprep.subr.bf16.mxu0 %v7567_v51 }
 0x368   :  { %v12660_v26 = vmov 0  ;;  %v9480_v21 = vadd.f32 %v9044_v36, %v9325_v27  ;;  %v9484_v6 = vsel %vm9346_vm11, %v1499_v33, -1e+30  ;;  %vm1373_vm14 = vcmp.ge.f32.partialorder %v9322_v7, 0.0  ;;  %1241 = vadd.xlane.f32.xlu1 %v8940_v63  ;;  %1238 = vadd.xlane.f32.xlu0 %v8942_v18  ;;  %v7568_v63 = vld [vmem:[#allocation8 + $0x190] ss:$8 sps:$4 sm:$0xff]  }
 0x369   :  { %vm9474_vm7 = vcmp.ne.s32.totalorder %v12659_v0, 0  ;;  %vm1374_vm15 = vcmp.ge.f32.partialorder %v1310_v39, 0.0  ;;  %v12663_v60 = vunpack.c.h.b16 %v9031_v55  ;;  %v12664_v20 = vmov 0  ;;  %2856 = vmatpush1.bf16.msra.mxu0 %v7565_v31 }
 0x36a   :  { %v12661_v26 = vsel %vm9474_vm7, 4294967295, %v12660_v26  ;;  %v12667_v19 = vunpack.c.l.b16 %v9035_v13  ;;  %v12668_v29 = vmov 0  ;;  %v9500_v27 = vadd.f32 %v9044_v36, %v1209_v16 }
 0x36b   :  { %12662 = vst [vmem:[#allocation131_spill] sm:$0xff] %v12661_v26  ;;  %vm9489_vm12 = vcmp.ne.s32.totalorder %v12663_v60, 0  ;;  %v9504_v33 = vsel %vm9362_vm3, %v1500_v37, -1e+30  ;;  %v9508_v55 = vsel %vm9368_vm10, %v1497_v24, -1e+30  ;;  %v9515_v60 = vadd.f32 %v9044_v36, %v1212_v40 }
 0x36c   :  { %v12665_v20 = vsel %vm9489_vm12, 4294967295, %v12664_v20  ;;  %vm9495_vm2 = vcmp.ne.s32.totalorder %v12667_v19, 0  ;;  %v9512_v0 = vsel %vm9374_vm4, %v1498_v32, -1e+30  ;;  %v9518_v19 = vadd.f32 %v9041_v38, %v1215_v15 }
 0x36d   :  { %12666 = vst [vmem:[#allocation132_spill] sm:$0xff] %v12665_v20  ;;  %v12669_v29 = vsel %vm9495_vm2, 4294967295, %v12668_v29  ;;  %v1503_v16 = vsel %vm1375_vm0, %v9329_v35, %v1439_v49  ;;  %vm12671_vm3 = vcmp.ge.f32.partialorder %v1312_v23, 0.0  ;;  %v1501_v24 = vsel %vm1373_vm14, %v9322_v7, %v1437_v47 }
 0x36e   :  { %12670 = vst [vmem:[#allocation133_spill] sm:$0xff] %v12669_v29  ;;  %v1504_v37 = vsel %vm12671_vm3, %v1312_v23, %v1440_v54  ;;  %v1502_v32 = vsel %vm1374_vm15, %v1310_v39, %v1438_v11  ;;  %v1443_v40 = vmul.f32 0.2, %v9352_v57  ;;  %v12672_v51 = vunpack.c.h.b16 %v9035_v13  ;;  %v7570_v39 = vld [vmem:[#allocation8 + $0x194] ss:$8 sps:$4 sm:$0xff]  }
 0x36f   :  { %v12673_v14 = vmov 0  ;;  %v1796_v54 = vmax.f32 %v9484_v6, %v9504_v33  ;;  %v1793_v18 = vmax.f32 %v9508_v55, %v9512_v0  ;;  %v1444_v49 = vmul.f32 0.2, %v9448_v8  ;;  %2857 = vmatprep.subr.bf16.mxu0 %v7570_v39 }
 0x370   :  { %vm9531_vm4 = vcmp.ne.s32.totalorder %v12672_v51, 0  ;;  %v1441_v7 = vmul.f32 0.2, %v9337_v58  ;;  %v12676_v35 = vunpack.c.l.b16 %v9038_v59  ;;  %v12677_v13 = vmov 0  ;;  %2858 = vmatpush1.bf16.msra.mxu0 %v7568_v63  ;;  %v7573_v63 = vld [vmem:[#allocation8 + $0x1a4] ss:$8 sps:$4 sm:$0xff]  }
 0x371   :  { %v12674_v14 = vsel %vm9531_vm4, 4294967295, %v12673_v14  ;;  %v12680_v47 = vunpack.c.h.b16 %v9038_v59  ;;  %v12681_v23 = vmov 0  ;;  %v9555_v11 = vsel %vm9414_vm1, %v1503_v16, -1e+30  ;;  %1797 = vmax.xlane.f32.xlu1 %v1796_v54  ;;  %1794 = vmax.xlane.f32.xlu0 %v1793_v18 }
 0x372   :  { %12675 = vst [vmem:[#allocation134_spill] sm:$0xff] %v12674_v14  ;;  %vm9543_vm0 = vcmp.ne.s32.totalorder %v12676_v35, 0  ;;  %v9559_v31 = vsel %vm9420_vm13, %v1504_v37, -1e+30  ;;  %v12684_v51 = vunpack.c.l.b16 %v9057_v62  ;;  %v12685_v59 = vmov 0  ;;  %2859 = vmatprep.subr.bf16.mxu0 %v7573_v63 }
 0x373   :  { %v12678_v13 = vsel %vm9543_vm0, 4294967295, %v12677_v13  ;;  %vm9549_vm3 = vcmp.ne.s32.totalorder %v12680_v47, 0  ;;  %v12688_v35 = vunpack.c.h.b16 %v9057_v62  ;;  %v12689_v47 = vmov 0 }
 0x374   :  { %12679 = vst [vmem:[#allocation135_spill] sm:$0xff] %v12678_v13  ;;  %v12682_v23 = vsel %vm9549_vm3, 4294967295, %v12681_v23  ;;  %vm9565_vm11 = vcmp.ne.s32.totalorder %v12684_v51, 0  ;;  %v12692_v16 = vunpack.c.l.b16 %v9074_v28  ;;  %v12693_v37 = vmov 0 }
 0x375   :  { %12683 = vst [vmem:[#allocation136_spill] sm:$0xff] %v12682_v23  ;;  %v12686_v59 = vsel %vm9565_vm11, 4294967295, %v12685_v59  ;;  %vm9571_vm10 = vcmp.ne.s32.totalorder %v12688_v35, 0  ;;  %v9582_v2 = vadd.f32 %v9044_v36, %v1215_v15  ;;  %v9586_v51 = vsel %vm9436_vm8, %v1501_v24, -1e+30  ;;  %1244 = vadd.xlane.f32.xlu0 %v12712_v34 }
 0x376   :  { %12687 = vst [vmem:[#allocation137_spill] sm:$0xff] %v12686_v59  ;;  %v12690_v47 = vsel %vm9571_vm10, 4294967295, %v12689_v47  ;;  %vm9577_vm13 = vcmp.ne.s32.totalorder %v12692_v16, 0  ;;  %v9590_v62 = vsel %vm9442_vm9, %v1502_v32, -1e+30  ;;  %vm12696_vm14 = vcmp.ge.f32.partialorder %v9352_v57, 0.0 }
 0x377   :  { %12691 = vst [vmem:[#allocation138_spill] sm:$0xff] %v12690_v47  ;;  %v12694_v37 = vsel %vm9577_vm13, 4294967295, %v12693_v37  ;;  %v1507_v35 = vsel %vm12696_vm14, %v9352_v57, %v1443_v40  ;;  %v1442_v15 = vmul.f32 0.2, %v9431_v22  ;;  %v7571_v24 = vld [vmem:[#allocation8 + $0x1a0] ss:$8 sps:$4 sm:$0xff]   ;;  %v12699_v40 = vunpack.c.h.b16 %v9074_v28 }
 0x378   :  { %12695 = vst [vmem:[#allocation139_spill] sm:$0xff] %v12694_v37  ;;  %vm12697_vm9 = vcmp.ge.f32.partialorder %v9448_v8, 0.0  ;;  %vm12698_vm15 = vcmp.ge.f32.partialorder %v9337_v58, 0.0  ;;  %v1447_v18 = vmul.f32 0.2, %v9380_v17  ;;  %v12700_v39 = vmov 0  ;;  %2860 = vmatpush1.bf16.msra.mxu0 %v7571_v24 }
 0x379   :  { %v1508_v32 = vsel %vm12697_vm9, %v9448_v8, %v1444_v49  ;;  %v1505_v54 = vsel %vm12698_vm15, %v9337_v58, %v1441_v7  ;;  %v1448_v57 = vmul.f32 0.2, %v9466_v10  ;;  %vm9609_vm14 = vcmp.ne.s32.totalorder %v12699_v40, 0  ;;  %v12707_v28 = vld [vmem:[#allocation92_spill] sm:$0xff] }
 0x37a   :  { %v12701_v39 = vsel %vm9609_vm14, 4294967295, %v12700_v39  ;;  %v1802_v16 = vmax.f32 %v9555_v11, %v9559_v31  ;;  %v1445_v8 = vmul.f32 0.2, %v9356_v30  ;;  %v1446_v49 = vmul.f32 0.2, %v9462_v46  ;;  %1247 = vadd.xlane.f32.xlu1 %v12707_v28  ;;  %v12789_v47 = vld [vmem:[#allocation68_spill] sm:$0xff] }
 0x37b   :  { %12702 = vst [vmem:[#allocation140_spill] sm:$0xff] %v12701_v39  ;;  %v1451_v58 = vmul.f32 0.2, %v9396_v25  ;;  %v12703_v7 = vunpack.c.l.b16 %v9081_v41  ;;  %v12704_v53 = vmov 0  ;;  %v9627_v40 = vsel %vm9474_vm7, %v1507_v35, -1e+30 }
 0x37c   :  { %v12708_v42 = vunpack.c.h.b16 %v9081_v41  ;;  %v12709_v12 = vmov 0  ;;  %v9641_v35 = vsel %vm9489_vm12, %v1508_v32, -1e+30  ;;  %vm12713_vm15 = vcmp.ge.f32.partialorder %v9431_v22, 0.0  ;;  %v7576_v32 = vld [vmem:[#allocation8 + $0x1b4] ss:$8 sps:$4 sm:$0xff]  }
 0x37d   :  { %vm9620_vm9 = vcmp.ne.s32.totalorder %v12703_v7, 0  ;;  %v1218_v7 = vpop.xlane.xlu1 %1217  ;;  %v1506_v28 = vsel %vm12713_vm15, %v9431_v22, %v1442_v15  ;;  %v9648_v26 = vsel %vm9495_vm2, %v1505_v54, -1e+30  ;;  %v1799_v41 = vmax.f32 %v9586_v51, %v9590_v62  ;;  %v7574_v15 = vld [vmem:[#allocation8 + $0x1b0] ss:$8 sps:$4 sm:$0xff]   ;;  %2861 = vmatprep.subr.bf16.mxu0 %v7576_v32 }
 0x37e   :  { %v12705_v53 = vsel %vm9620_vm9, 4294967295, %v12704_v53  ;;  %vm9634_vm8 = vcmp.ne.s32.totalorder %v12708_v42, 0  ;;  %vm12714_vm6 = vcmp.ge.f32.partialorder %v9380_v17, 0.0  ;;  %vm12715_vm12 = vcmp.ge.f32.partialorder %v9466_v10, 0.0  ;;  %1803 = vmax.xlane.f32.xlu1 %v1802_v16  ;;  %2862 = vmatpush1.bf16.msra.mxu0 %v7574_v15 }
 0x37f   :  { %12706 = vst [vmem:[#allocation141_spill] sm:$0xff] %v12705_v53  ;;  %v12710_v12 = vsel %vm9634_vm8, 4294967295, %v12709_v12  ;;  %v1511_v42 = vsel %vm12714_vm6, %v9380_v17, %v1447_v18  ;;  %v1512_v34 = vsel %vm12715_vm12, %v9466_v10, %v1448_v57  ;;  %v1452_v22 = vmul.f32 0.2, %v9480_v21  ;;  %1800 = vmax.xlane.f32.xlu0 %v1799_v41  ;;  %v7580_v53 = vld [vmem:[#allocation8 + $0x1d0] ss:$8 sps:$4 sm:$0xff]  }
 0x380   :  { %12711 = vst [vmem:[#allocation92_spill] sm:$0xff] %v12710_v12  ;;  %vm12716_vm15 = vcmp.ge.f32.partialorder %v9356_v30, 0.0  ;;  %vm12717_vm1 = vcmp.ge.f32.partialorder %v9462_v46, 0.0  ;;  %vm12718_vm7 = vcmp.ge.f32.partialorder %v9396_v25, 0.0  ;;  %v1449_v18 = vmul.f32 0.2, %v9384_v56 }
 0x381   :  { %v1509_v54 = vsel %vm12716_vm15, %v9356_v30, %v1445_v8  ;;  %v1510_v24 = vsel %vm12717_vm1, %v9462_v46, %v1446_v49  ;;  %v1515_v17 = vsel %vm12718_vm7, %v9396_v25, %v1451_v58  ;;  %v12719_v10 = vunpack.c.l.b16 %v9089_v5 }
 0x382   :  { %v12720_v57 = vmov 0  ;;  %v9677_v63 = vadd.f32 %v9041_v38, %v1218_v7  ;;  %v9681_v30 = vsel %vm9531_vm4, %v1506_v28, -1e+30  ;;  %v1450_v25 = vmul.f32 0.2, %v9470_v1 }
 0x383   :  { %vm9672_vm6 = vcmp.ne.s32.totalorder %v12719_v10, 0  ;;  %v12723_v46 = vunpack.c.h.b16 %v9089_v5  ;;  %v12724_v8 = vmov 0  ;;  %v1808_v49 = vmax.f32 %v9627_v40, %v9641_v35 }
 0x384   :  { %v12721_v57 = vsel %vm9672_vm6, 4294967295, %v12720_v57  ;;  %v9695_v16 = vsel %vm9543_vm0, %v1511_v42, -1e+30  ;;  %v9699_v58 = vsel %vm9549_vm3, %v1512_v34, -1e+30  ;;  %v12727_v5 = vunpack.c.l.b16 %v9224_v4 }
 0x385   :  { %12722 = vst [vmem:[#allocation93_spill] sm:$0xff] %v12721_v57  ;;  %vm9687_vm7 = vcmp.ne.s32.totalorder %v12723_v46, 0  ;;  %v12728_v28 = vmov 0  ;;  %v12731_v41 = vunpack.c.h.b16 %v9224_v4  ;;  %v12732_v32 = vmov 0  ;;  %1809 = vmax.xlane.f32.xlu1 %v1808_v49 }
 0x386   :  { %v12725_v8 = vsel %vm9687_vm7, 4294967295, %v12724_v8  ;;  %vm9704_vm15 = vcmp.ne.s32.totalorder %v12727_v5, 0  ;;  %v9716_v42 = vsel %vm9565_vm11, %v1509_v54, -1e+30  ;;  %v9720_v34 = vsel %vm9571_vm10, %v1510_v24, -1e+30 }
 0x387   :  { %12726 = vst [vmem:[#allocation142_spill] sm:$0xff] %v12725_v8  ;;  %v12729_v28 = vsel %vm9704_vm15, 4294967295, %v12728_v28  ;;  %vm9710_vm1 = vcmp.ne.s32.totalorder %v12731_v41, 0  ;;  %vm12735_vm12 = vcmp.ge.f32.partialorder %v9480_v21, 0.0  ;;  %v9727_v4 = vsel %vm9577_vm13, %v1515_v17, -1e+30 }
 0x388   :  { %12730 = vst [vmem:[#allocation143_spill] sm:$0xff] %v12729_v28  ;;  %v12733_v32 = vsel %vm9710_vm1, 4294967295, %v12732_v32  ;;  %v1516_v10 = vsel %vm12735_vm12, %v9480_v21, %v1452_v22  ;;  %v1805_v46 = vmax.f32 %v9648_v26, %v9681_v30  ;;  %vm12736_vm3 = vcmp.ge.f32.partialorder %v9384_v56, 0.0  ;;  %v7577_v21 = vld [vmem:[#allocation8 + $0x1c0] ss:$8 sps:$4 sm:$0xff]   ;;  %v12788_v28 = vld [vmem:[#allocation103_spill] sm:$0xff] }
 0x389   :  { %12734 = vst [vmem:[#allocation144_spill] sm:$0xff] %v12733_v32  ;;  %v1513_v15 = vsel %vm12736_vm3, %v9384_v56, %v1449_v18  ;;  %v1455_v54 = vmul.f32 0.2, %v9425_v45  ;;  %v12737_v24 = vunpack.c.l.b16 %v9238_v44  ;;  %v12738_v5 = vmov 0  ;;  %v7579_v41 = vld [vmem:[#allocation8 + $0x1c4] ss:$8 sps:$4 sm:$0xff]  }
 0x38a   :  { %v1332_v22 = vadd.f32 %v9044_v36, %v1218_v7  ;;  %vm12741_vm12 = vcmp.ge.f32.partialorder %v9470_v1, 0.0  ;;  %v1456_v56 = vmul.f32 0.2, %v9515_v60  ;;  %v1453_v18 = vmul.f32 0.2, %v9409_v50  ;;  %1806 = vmax.xlane.f32.xlu0 %v1805_v46  ;;  %2863 = vmatprep.subr.bf16.mxu0 %v7579_v41 }
 0x38b   :  { %vm9738_vm10 = vcmp.ne.s32.totalorder %v12737_v24, 0  ;;  %v1514_v17 = vsel %vm12741_vm12, %v9470_v1, %v1450_v25  ;;  %v9750_v24 = vsel %vm9609_vm14, %v1516_v10, -1e+30  ;;  %vm1392_vm3 = vcmp.ge.f32.partialorder %v9515_v60, 0.0  ;;  %v7582_v10 = vld [vmem:[#allocation8 + $0x1d4] ss:$8 sps:$4 sm:$0xff]   ;;  %2864 = vmatpush1.bf16.msra.mxu0 %v7577_v21 }
 0x38c   :  { %v12739_v5 = vsel %vm9738_vm10, 4294967295, %v12738_v5  ;;  %v1454_v7 = vmul.f32 0.2, %v9500_v27  ;;  %v1814_v49 = vmax.f32 %v9695_v16, %v9699_v58  ;;  %v9759_v1 = vsel %vm9620_vm9, %v1513_v15, -1e+30  ;;  %2865 = vmatprep.subr.bf16.mxu0 %v7582_v10 }
 0x38d   :  { %12740 = vst [vmem:[#allocation145_spill] sm:$0xff] %v12739_v5  ;;  %v1618_v25 = vunpack.c.h.b16 %v9297_v43  ;;  %v1811_v46 = vmax.f32 %v9716_v42, %v9720_v34  ;;  %v9767_v39 = vsel %vm9634_vm8, %v1514_v17, -1e+30  ;;  %vm12742_vm0 = vcmp.ge.f32.partialorder %v9425_v45, 0.0 }
 0x38e   :  { %v1519_v37 = vsel %vm12742_vm0, %v9425_v45, %v1455_v54  ;;  %v1459_v15 = vmul.f32 0.2, %v9677_v63  ;;  %1815 = vmax.xlane.f32.xlu1 %v1814_v49  ;;  %v1520_v41 = vsel %vm1392_vm3, %v9515_v60, %v1456_v56  ;;  %vm12743_vm12 = vcmp.ge.f32.partialorder %v9409_v50, 0.0  ;;  %v7585_v49 = vld [vmem:[#allocation8 + $0x1e4] ss:$8 sps:$4 sm:$0xff]  }
 0x38f   :  { %v1517_v23 = vsel %vm12743_vm12, %v9409_v50, %v1453_v18  ;;  %vm1395_vm14 = vcmp.ge.f32.partialorder %v9677_v63, 0.0  ;;  %v1460_v17 = vmul.f32 0.2, %v1332_v22  ;;  %1812 = vmax.xlane.f32.xlu0 %v1811_v46  ;;  %vm12744_vm0 = vcmp.ge.f32.partialorder %v9500_v27, 0.0  ;;  %2866 = vmatpush1.bf16.msra.mxu0 %v7580_v53 }
 0x390   :  { %v1518_v45 = vsel %vm12744_vm0, %v9500_v27, %v1454_v7  ;;  %vm1396_vm13 = vcmp.ge.f32.partialorder %v1332_v22, 0.0  ;;  %v1457_v54 = vmul.f32 0.2, %v9518_v19  ;;  %v1458_v21 = vmul.f32 0.2, %v9582_v2  ;;  %2867 = vmatprep.subr.bf16.mxu0 %v7585_v49  ;;  %v12764_v49 = vld [vmem:[#allocation36_spill] sm:$0xff] }
 0x391   :  { %v1820_v60 = vmax.f32 %v9727_v4, %v9750_v24  ;;  %v9789_v50 = vsel %vm9672_vm6, %v1519_v37, -1e+30  ;;  %vm1393_vm3 = vcmp.ge.f32.partialorder %v9518_v19, 0.0  ;;  %vm1394_vm12 = vcmp.ge.f32.partialorder %v9582_v2, 0.0  ;;  %v7583_v7 = vld [vmem:[#allocation8 + $0x1e0] ss:$8 sps:$4 sm:$0xff]  }
 0x392   :  { %v1817_v56 = vmax.f32 %v9759_v1, %v9767_v39  ;;  %v9797_v27 = vsel %vm9687_vm7, %v1520_v41, -1e+30  ;;  %v1523_v18 = vsel %vm1395_vm14, %v9677_v63, %v1459_v15  ;;  %v9802_v37 = vsel %vm9704_vm15, %v1517_v23, -1e+30 }
 0x393   :  { %1821 = vmax.xlane.f32.xlu1 %v1820_v60  ;;  %v9806_v10 = vsel %vm9710_vm1, %v1518_v45, -1e+30  ;;  %v1524_v46 = vsel %vm1396_vm13, %v1332_v22, %v1460_v17  ;;  %v12745_v8 = vunpack.c.h.b16 %v9238_v44  ;;  %v12746_v41 = vmov 0  ;;  %2868 = vmatpush1.bf16.msra.mxu0 %v7583_v7  ;;  %v7588_v22 = vld [vmem:[#allocation8 + $0x1f4] ss:$8 sps:$4 sm:$0xff]   ;;  %v12763_v7 = vld [vmem:[#allocation34_spill] sm:$0xff] }
 0x394   :  { %1818 = vmax.xlane.f32.xlu0 %v1817_v56  ;;  %v1521_v53 = vsel %vm1393_vm3, %v9518_v19, %v1457_v54  ;;  %v1522_v63 = vsel %vm1394_vm12, %v9582_v2, %v1458_v21  ;;  %v12749_v23 = vunpack.c.l.b16 %v9297_v43  ;;  %v12750_v15 = vmov 0  ;;  %v7586_v19 = vld [vmem:[#allocation8 + $0x1f0] ss:$8 sps:$4 sm:$0xff]   ;;  %2869 = vmatprep.subr.bf16.mxu0 %v7588_v22  ;;  %v12761_v56 = vld [vmem:[#allocation30_spill] sm:$0xff] }
 0x395   :  { %vm9811_vm0 = vcmp.ne.s32.totalorder %v12745_v8, 0  ;;  %vm9823_vm7 = vcmp.ne.s32.totalorder %v1618_v25, 0  ;;  %v12753_v45 = vmov 0  ;;  %v1826_v44 = vmax.f32 %v9789_v50, %v9797_v27  ;;  %v12760_v60 = vld [vmem:[#allocation28_spill] sm:$0xff] }
 0x396   :  { %v12747_v41 = vsel %vm9811_vm0, 4294967295, %v12746_v41  ;;  %vm9819_vm14 = vcmp.ne.s32.totalorder %v12749_v23, 0  ;;  %v12754_v45 = vsel %vm9823_vm7, 4294967295, %v12753_v45  ;;  %v9831_v8 = vsel %vm9738_vm10, %v1523_v18, -1e+30  ;;  %v12762_v18 = vld [vmem:[#allocation32_spill] sm:$0xff] }
 0x397   :  { %12748 = vst [vmem:[#allocation146_spill] sm:$0xff] %v12747_v41  ;;  %v12751_v15 = vsel %vm9819_vm14, 4294967295, %v12750_v15  ;;  %12755 = vst [vmem:[#allocation148_spill] sm:$0xff] %v12754_v45  ;;  %v1823_v2 = vmax.f32 %v9802_v37, %v9806_v10  ;;  %v9837_v43 = vsel %vm9811_vm0, %v1524_v46, -1e+30  ;;  %1827 = vmax.xlane.f32.xlu1 %v1826_v44  ;;  %2870 = vmatpush1.bf16.msra.mxu0 %v7586_v19  ;;  %v12765_v46 = vld [vmem:[#allocation38_spill] sm:$0xff] }
 0x398   :  { %12752 = vst [vmem:[#allocation147_spill] sm:$0xff] %v12751_v15  ;;  %12756 = vst [vmem:[#allocation149_spill] sm:$0xff] %v9831_v8  ;;  %v9841_v25 = vsel %vm9819_vm14, %v1521_v53, -1e+30  ;;  %v9845_v17 = vsel %vm9823_vm7, %v1522_v63, -1e+30  ;;  %v1832_v54 = vmax.f32 %v9831_v8, %v9837_v43 }
 0x399   :  { %12757 = vst [vmem:[#allocation150_spill] sm:$0xff] %v9837_v43  ;;  %12758 = vst [vmem:[#allocation151_spill] sm:$0xff] %v9841_v25  ;;  %1824 = vmax.xlane.f32.xlu0 %v1823_v2  ;;  %v1829_v21 = vmax.f32 %v9841_v25, %v9845_v17  ;;  %v12766_v53 = vld [vmem:[#allocation40_spill] sm:$0xff]  ;;  %v12767_v63 = vld [vmem:[#allocation42_spill] sm:$0xff]  ;;  %v12792_v14 = vmov 0 }
 0x39a   :  { %12759 = vst [vmem:[#allocation152_spill] sm:$0xff] %v9845_v17  ;;  %2872 = vmatmul.mubr.bf16.vlgmr.msra.gmra.mrb[68].mxu0 %v12760_v60  ;;  %v12768_v23 = vld [vmem:[#allocation44_spill] sm:$0xff]  ;;  %v12769_v44 = vld [vmem:[#allocation46_spill] sm:$0xff]  ;;  %v12809_v25 = vld [vmem:[#allocation113_spill] sm:$0xff] }
 0x39b   :  { %1833 = vmax.xlane.f32.xlu1 %v1832_v54  ;;  %2881 = vmatprep.mubr.bf16.mxu0 %v12761_v56  ;;  %v12770_v2 = vld [vmem:[#allocation48_spill] sm:$0xff]  ;;  %v12771_v19 = vld [vmem:[#allocation50_spill] sm:$0xff] }
 0x39c   :  { %v12772_v22 = vld [vmem:[#allocation52_spill] sm:$0xff]  ;;  %v12773_v54 = vld [vmem:[#allocation54_spill] sm:$0xff] }
 0x39d   :  { %1830 = vmax.xlane.f32.xlu0 %v1829_v21  ;;  %v12774_v21 = vld [vmem:[#allocation56_spill] sm:$0xff]  ;;  %v12775_v60 = vld [vmem:[#allocation58_spill] sm:$0xff] }
 0x39e   :  { %v12776_v56 = vld [vmem:[#allocation60_spill] sm:$0xff]  ;;  %v12787_v45 = vld [vmem:[#allocation102_spill] sm:$0xff] }
 0x3a2   :  { %2882 = vmatmul.mubr.bf16.gmra.mrb[72].mxu0 %v12762_v18  ;;  %v215_v18 = vld [vmem:[#allocation2 + $0xb8] sm:$0xff] }
 0x3a3   :  { %2891 = vmatprep.mubr.bf16.mxu0 %v12763_v7  ;;  %v12777_v7 = vld [vmem:[#allocation62_spill] sm:$0xff]  ;;  %vm1272_vm13 = vcmp.gt.bf16.partialorder %v215_v18, 0 }
 0x3aa   :  { %2892 = vmatmul.mubr.bf16.gmra.mrb[76].mxu0 %v12764_v49  ;;  %v214_v49 = vld [vmem:[#allocation2 + $0xb0] sm:$0xff] }
 0x3ab   :  { %2901 = vmatprep.mubr.bf16.mxu0 %v12765_v46  ;;  %v217_v46 = vld [vmem:[#allocation2 + $0xc8] sm:$0xff]  ;;  %vm1271_vm3 = vcmp.gt.bf16.partialorder %v214_v49, 0 }
 0x3ac   :  { %vm1274_vm12 = vcmp.gt.bf16.partialorder %v217_v46, 0 }
 0x3b2   :  { %2902 = vmatmul.mubr.bf16.gmra.mrb[80].mxu0 %v12766_v53  ;;  %v216_v53 = vld [vmem:[#allocation2 + $0xc0] sm:$0xff] }
 0x3b3   :  { %2911 = vmatprep.mubr.bf16.mxu0 %v12767_v63  ;;  %v219_v63 = vld [vmem:[#allocation2 + $0xd8] sm:$0xff]  ;;  %vm1273_vm0 = vcmp.gt.bf16.partialorder %v216_v53, 0 }
 0x3b4   :  { %vm1276_vm10 = vcmp.gt.bf16.partialorder %v219_v63, 0 }
 0x3ba   :  { %2912 = vmatmul.mubr.bf16.gmra.mrb[84].mxu0 %v12768_v23  ;;  %v218_v23 = vld [vmem:[#allocation2 + $0xd0] sm:$0xff] }
 0x3bb   :  { %2921 = vmatprep.mubr.bf16.mxu0 %v12769_v44  ;;  %v12778_v44 = vmov 0   ;;  %vm1275_vm7 = vcmp.gt.bf16.partialorder %v218_v23, 0  ;;  %v222_v23 = vld [vmem:[#allocation2 + $0xf0] sm:$0xff] }
 0x3bc   :  { %v9874_v18 = vsel %vm1274_vm12, 65537, %v12778_v44  ;;  %v9877_v41 = vsel %vm1273_vm0, 65537, %v12778_v44  ;;  %v9880_v46 = vsel %vm1276_vm10, 65537, %v12778_v44  ;;  %v9883_v63 = vsel %vm1275_vm7, 65537, %v12778_v44 }
 0x3bd   :  { %v1628_v5 = vunpack.c.h.b16 %v9874_v18  ;;  %vm1279_vm7 = vcmp.gt.bf16.partialorder %v222_v23, 0 }
 0x3bf   :  { %vm9946_vm15 = vcmp.ne.s32.totalorder %v1628_v5, 0 }
 0x3c2   :  { %2922 = vmatmul.mubr.bf16.gmra.mrb[88].mxu0 %v12770_v2  ;;  %v1568_v2 = vsel %vm1272_vm13, 65537, %v12778_v44 }
 0x3c3   :  { %2931 = vmatprep.mubr.bf16.mxu0 %v12771_v19  ;;  %v221_v19 = vld [vmem:[#allocation2 + $0xe8] sm:$0xff]  ;;  %v1624_v49 = vunpack.c.h.b16 %v1568_v2 }
 0x3c4   :  { %vm1278_vm13 = vcmp.gt.bf16.partialorder %v221_v19, 0 }
 0x3c5   :  { %v9895_v57 = vsel %vm1278_vm13, 65537, %v12778_v44  ;;  %vm9897_vm10 = vcmp.ne.s32.totalorder %v1624_v49, 0 }
 0x3ca   :  { %2932 = vmatmul.mubr.bf16.gmra.mrb[92].mxu0 %v12772_v22  ;;  %v12779_v22 = vld [vmem:[#allocation64_spill] sm:$0xff] }
 0x3cb   :  { %2941 = vmatprep.mubr.bf16.mxu0 %v12773_v54  ;;  %v1567_v54 = vsel %vm1271_vm3, 65537, %v12778_v44 }
 0x3cc   :  { %v1621_v53 = vunpack.c.l.b16 %v1567_v54 }
 0x3ce   :  { %v1771_v12 = vpop.xlane.xlu0 %1770  ;;  %vm9916_vm0 = vcmp.ne.s32.totalorder %v1621_v53, 0 }
 0x3cf   :  { %v12793_v14 = vsel %vm9916_vm0, 4294967295, %v12792_v14 }
 0x3d0   :  { %12794 = vst [vmem:[#allocation32_spill] sm:$0xff] %v12793_v14 }
 0x3d2   :  { %2942 = vmatmul.mubr.bf16.gmra.mrb[96].mxu0 %v12774_v21  ;;  %v220_v21 = vld [vmem:[#allocation2 + $0xe0] sm:$0xff] }
 0x3d3   :  { %2951 = vmatprep.mubr.bf16.mxu0 %v12775_v60  ;;  %v12780_v60 = vld [vmem:[#allocation66_spill] sm:$0xff]  ;;  %vm1277_vm3 = vcmp.gt.bf16.partialorder %v220_v21, 0  ;;  %v1774_v21 = vpop.xlane.xlu1 %1773 }
 0x3d4   :  { %v9904_v32 = vsel %vm1277_vm3, 65537, %v12778_v44  ;;  %v1867_v19 = vsub.f32 %v12787_v45, %v1774_v21  ;;  %v1868_v15 = vsub.f32 %v12788_v28, %v1774_v21  ;;  %v12795_v21 = vld [vmem:[#allocation70_spill] sm:$0xff]  ;;  %v12803_v45 = vld [vmem:[#allocation111_spill] sm:$0xff] }
 0x3d6   :  { %v1933_v13 = vmul.f32 1.442695, %v1867_v19 }
 0x3d7   :  { %v1224_v53 = vpop.xlane.xlu1 %1223 }
 0x3d8   :  { %7715 = vpow2.f32 %v1933_v13  ;;  %v1336_v19 = vadd.f32 %v9044_v36, %v1224_v53 }
 0x3da   :  { %2952 = vmatmul.mubr.bf16.gmra.mrb[100].mxu0 %v12776_v56  ;;  %v1623_v56 = vunpack.c.l.b16 %v1568_v2  ;;  %v12781_v2 = vmov 0  ;;  %v1464_v28 = vmul.f32 0.2, %v1336_v19 }
 0x3db   :  { %2961 = vmatprep.mubr.bf16.mxu0 %v12777_v7  ;;  %v223_v7 = vld [vmem:[#allocation2 + $0xf8] sm:$0xff]  ;;  %v1780_v13 = vpop.xlane.xlu1 %1779 }
 0x3dc   :  { %vm1280_vm12 = vcmp.gt.bf16.partialorder %v223_v7, 0  ;;  %vm9887_vm14 = vcmp.ne.s32.totalorder %v1623_v56, 0  ;;  %v12791_v56 = vld [vmem:[#allocation105_spill] sm:$0xff]  ;;  %v1935_v7 = vmul.f32 1.442695, %v1868_v15  ;;  %v1335_v15 = vadd.f32 %v9041_v38, %v1224_v53 }
 0x3dd   :  { %v12782_v2 = vsel %vm9887_vm14, 4294967295, %v12781_v2  ;;  %v9911_v49 = vsel %vm1280_vm12, 65537, %v12778_v44  ;;  %v1866_v20 = vsub.f32 %v12791_v56, %v1771_v12  ;;  %v12796_v56 = vmov 0 }
 0x3de   :  { %12783 = vst [vmem:[#allocation28_spill] sm:$0xff] %v12782_v2  ;;  %7717 = vpow2.f32 %v1935_v7  ;;  %vm1399_vm3 = vcmp.ge.f32.partialorder %v1335_v15, 0.0  ;;  %vm1400_vm12 = vcmp.ge.f32.partialorder %v1336_v19, 0.0  ;;  %v12799_v53 = vmov 0  ;;  %v12802_v7 = vld [vmem:[#allocation108_spill] sm:$0xff]  ;;  %v12827_v2 = vld [vmem:[#allocation73_spill] sm:$0xff] }
 0x3df   :  { %v1872_v29 = vsub.f32 %v12803_v45, %v1780_v13  ;;  %v1528_v43 = vsel %vm1400_vm12, %v1336_v19, %v1464_v28  ;;  %v12810_v45 = vld [vmem:[#allocation72_spill] sm:$0xff]  ;;  %v1230_v8 = vpop.xlane.xlu1 %1229 }
 0x3e0   :  { %v9961_v5 = vsel %vm9897_vm10, %v1528_v43, -1e+30  ;;  %v1340_v19 = vadd.f32 %v9044_v36, %v1230_v8 }
 0x3e1   :  { %12811 = vst [vmem:[#allocation40_spill] sm:$0xff] %v9961_v5 }
 0x3e2   :  { %2962 = vmatmul.mubr.bf16.gmra.mrb[104].mxu0 %v12779_v22  ;;  %v1622_v22 = vunpack.c.h.b16 %v1567_v54  ;;  %v12784_v54 = vmov 0  ;;  %vm1404_vm12 = vcmp.ge.f32.partialorder %v1340_v19, 0.0 }
 0x3e3   :  { %2971 = vmatprep.mubr.bf16.mxu0 %v12780_v60  ;;  %v1627_v60 = vunpack.c.l.b16 %v9874_v18  ;;  %v12785_v54 = vsel %vm9897_vm10, 4294967295, %v12784_v54  ;;  %v12790_v18 = vld [vmem:[#allocation104_spill] sm:$0xff] }
 0x3e4   :  { %12786 = vst [vmem:[#allocation30_spill] sm:$0xff] %v12785_v54  ;;  %v1865_v59 = vsub.f32 %v12790_v18, %v1771_v12  ;;  %v1931_v12 = vmul.f32 1.442695, %v1866_v20  ;;  %vm9928_vm13 = vcmp.ne.s32.totalorder %v1622_v22, 0  ;;  %v1463_v22 = vmul.f32 0.2, %v1335_v15 }
 0x3e5   :  { %v12797_v56 = vsel %vm9928_vm13, 4294967295, %v12796_v56  ;;  %vm9940_vm1 = vcmp.ne.s32.totalorder %v1627_v60, 0 }
 0x3e6   :  { %v1929_v18 = vmul.f32 1.442695, %v1865_v59  ;;  %12798 = vst [vmem:[#allocation34_spill] sm:$0xff] %v12797_v56  ;;  %v12800_v53 = vsel %vm9940_vm1, 4294967295, %v12799_v53  ;;  %v1527_v3 = vsel %vm1399_vm3, %v1335_v15, %v1463_v22  ;;  %v1943_v22 = vmul.f32 1.442695, %v1872_v29 }
 0x3e7   :  { %12801 = vst [vmem:[#allocation36_spill] sm:$0xff] %v12800_v53  ;;  %v12829_v56 = vld [vmem:[#allocation120_spill] sm:$0xff] }
 0x3e8   :  { %7719 = vpow2.f32 %v1929_v18  ;;  %v12804_v18 = vmov 0 }
 0x3e9   :  { %7721 = vpow2.f32 %v1931_v12  ;;  %v12805_v18 = vsel %vm9946_vm15, 4294967295, %v12804_v18  ;;  %v12807_v12 = vld [vmem:[#allocation71_spill] sm:$0xff] }
 0x3ea   :  { %2972 = vmatmul.mubr.bf16.gmra.mrb[108].mxu0 %v12789_v47  ;;  %v9926_v47 = vsel %vm1279_vm7, 65537, %v12778_v44  ;;  %v1871_v44 = vsub.f32 %v12802_v7, %v1780_v13  ;;  %12806 = vst [vmem:[#allocation38_spill] sm:$0xff] %v12805_v18  ;;  %v9956_v7 = vsel %vm9887_vm14, %v1527_v3, -1e+30  ;;  %v1339_v3 = vadd.f32 %v9041_v38, %v1230_v8 }
 0x3eb   :  { %2981 = vmatprep.mubr.bf16.mxu0 %v12795_v21  ;;  %v1221_v21 = vpop.xlane.xlu0 %1220 }
 0x3ec   :  { %v1333_v20 = vadd.f32 %v9041_v38, %v1221_v21  ;;  %v1334_v59 = vadd.f32 %v9044_v36, %v1221_v21  ;;  %v1941_v15 = vmul.f32 1.442695, %v1871_v44  ;;  %vm1403_vm3 = vcmp.ge.f32.partialorder %v1339_v3, 0.0 }
 0x3ee   :  { %vm1397_vm7 = vcmp.ge.f32.partialorder %v1333_v20, 0.0  ;;  %vm1398_vm6 = vcmp.ge.f32.partialorder %v1334_v59, 0.0  ;;  %v1461_v23 = vmul.f32 0.2, %v1333_v20  ;;  %v1462_v28 = vmul.f32 0.2, %v1334_v59 }
 0x3ef   :  { %v1777_v21 = vpop.xlane.xlu0 %1776  ;;  %7723 = vpow2.f32 %v1941_v15  ;;  %v12820_v15 = vmov 0 }
 0x3f0   :  { %v1869_v17 = vsub.f32 %v12808_v48, %v1777_v21  ;;  %v1870_v60 = vsub.f32 %v12809_v25, %v1777_v21  ;;  %v1525_v13 = vsel %vm1397_vm7, %v1333_v20, %v1461_v23  ;;  %v1838_v25 = vmax.f32 %v9956_v7, %v9961_v5  ;;  %v9979_v23 = vpop.eup %7715 }
 0x3f1   :  { %v9970_v29 = vsel %vm9916_vm0, %v1525_v13, -1e+30  ;;  %7725 = vpow2.f32 %v1943_v22  ;;  %v1526_v20 = vsel %vm1398_vm6, %v1334_v59, %v1462_v28  ;;  %12813 = vst [vmem:[#allocation44_spill] sm:$0xff] %v9979_v23  ;;  %v12815_v21 = vunpack.c.l.b16 %v9877_v41  ;;  %v9997_v59 = vpop.eup %7717  ;;  %v1786_v13 = vpop.xlane.xlu1 %1785 }
 0x3f2   :  { %2982 = vmatmul.mubr.bf16.gmra.mrb[112].mxu0 %v12807_v12  ;;  %v1937_v12 = vmul.f32 1.442695, %v1869_v17  ;;  %v1939_v48 = vmul.f32 1.442695, %v1870_v60  ;;  %12812 = vst [vmem:[#allocation42_spill] sm:$0xff] %v9970_v29  ;;  %1839 = vmax.xlane.f32.xlu1 %v1838_v25  ;;  %v12816_v60 = vmov 0  ;;  %v10001_v28 = vpop.eup %7719 }
 0x3f3   :  { %2991 = vmatprep.mubr.bf16.mxu0 %v12810_v45  ;;  %v1227_v44 = vpop.xlane.xlu0 %1226  ;;  %v9983_v8 = vsel %vm9928_vm13, %v1526_v20, -1e+30  ;;  %vm9987_vm7 = vcmp.ne.s32.totalorder %v12815_v21, 0  ;;  %v12819_v45 = vunpack.c.h.b16 %v9877_v41  ;;  %12823 = vst [vmem:[#allocation52_spill] sm:$0xff] %v9997_v59  ;;  %v1468_v25 = vmul.f32 0.2, %v1340_v19 }
 0x3f4   :  { %v9973_v43 = vadd.f32 %v9041_v38, %v1227_v44  ;;  %v9976_v17 = vadd.f32 %v9044_v36, %v1227_v44  ;;  %7727 = vpow2.f32 %v1937_v12  ;;  %12814 = vst [vmem:[#allocation46_spill] sm:$0xff] %v9983_v8  ;;  %v12817_v60 = vsel %vm9987_vm7, 4294967295, %v12816_v60  ;;  %12824 = vst [vmem:[#allocation54_spill] sm:$0xff] %v10001_v28  ;;  %v12825_v44 = vld [vmem:[#allocation118_spill] sm:$0xff]  ;;  %v12826_v21 = vld [vmem:[#allocation119_spill] sm:$0xff] }
 0x3f5   :  { %12818 = vst [vmem:[#allocation48_spill] sm:$0xff] %v12817_v60  ;;  %vm9993_vm10 = vcmp.ne.s32.totalorder %v12819_v45, 0  ;;  %7729 = vpow2.f32 %v1939_v48  ;;  %v1835_v22 = vmax.f32 %v9970_v29, %v9983_v8  ;;  %v1467_v12 = vmul.f32 0.2, %v1339_v3  ;;  %v10009_v48 = vpop.eup %7721  ;;  %v12830_v8 = vld [vmem:[#allocation121_spill] sm:$0xff] }
 0x3f6   :  { %v12821_v15 = vsel %vm9993_vm10, 4294967295, %v12820_v15  ;;  %v1875_v20 = vsub.f32 %v12825_v44, %v1786_v13  ;;  %v1876_v54 = vsub.f32 %v12826_v21, %v1786_v13  ;;  %v2060_v45 = vadd.f32 %v9997_v59, %v9979_v23  ;;  %12828 = vst [vmem:[#allocation56_spill] sm:$0xff] %v10009_v48 }
 0x3f7   :  { %12822 = vst [vmem:[#allocation50_spill] sm:$0xff] %v12821_v15  ;;  %v1783_v41 = vpop.xlane.xlu0 %1782  ;;  %1836 = vmax.xlane.f32.xlu0 %v1835_v22  ;;  %v1531_v5 = vsel %vm1403_vm3, %v1339_v3, %v1467_v12  ;;  %v1532_v44 = vsel %vm1404_vm12, %v1340_v19, %v1468_v25  ;;  %v2057_v59 = vadd.f32 %v10009_v48, %v10001_v28  ;;  %v12831_v22 = vunpack.c.l.b16 %v9880_v46  ;;  %v1236_v12 = vpop.xlane.xlu1 %1235  ;;  %v12852_v48 = vld [vmem:[#allocation126_spill] sm:$0xff] }
 0x3f8   :  { %v1873_v14 = vsub.f32 %v12829_v56, %v1783_v41  ;;  %v1874_v29 = vsub.f32 %v12830_v8, %v1783_v41  ;;  %v1949_v13 = vmul.f32 1.442695, %v1875_v20  ;;  %v1951_v21 = vmul.f32 1.442695, %v1876_v54  ;;  %2061 = vadd.xlane.f32.xlu1 %v2060_v45  ;;  %v12835_v8 = vld [vmem:[#allocation74_spill] sm:$0xff] }
 0x3f9   :  { %vm10023_vm6 = vcmp.ne.s32.totalorder %v12831_v22, 0  ;;  %v12832_v56 = vmov 0  ;;  %v10030_v54 = vsel %vm9946_vm15, %v1532_v44, -1e+30  ;;  %v12837_v25 = vunpack.c.h.b16 %v9880_v46  ;;  %v10050_v22 = vpop.eup %7723 }
 0x3fa   :  { %2992 = vmatmul.mubr.bf16.gmra.mrb[116].mxu0 %v12827_v2  ;;  %v10019_v2 = vsel %vm9940_vm1, %v1531_v5, -1e+30  ;;  %v12833_v56 = vsel %vm10023_vm6, 4294967295, %v12832_v56  ;;  %v1945_v3 = vmul.f32 1.442695, %v1873_v14  ;;  %12836 = vst [vmem:[#allocation60_spill] sm:$0xff] %v10030_v54  ;;  %7731 = vpow2.f32 %v1949_v13 }
 0x3fb   :  { %12834 = vst [vmem:[#allocation58_spill] sm:$0xff] %v12833_v56  ;;  %3001 = vmatprep.mubr.bf16.mxu0 %v12835_v8  ;;  %v1947_v19 = vmul.f32 1.442695, %v1874_v29  ;;  %vm10034_vm3 = vcmp.ne.s32.totalorder %v12837_v25, 0  ;;  %v12838_v5 = vmov 0  ;;  %v1343_v41 = vadd.f32 %v9041_v38, %v1236_v12  ;;  %v1233_v14 = vpop.xlane.xlu0 %1232  ;;  %2058 = vadd.xlane.f32.xlu0 %v2057_v59  ;;  %v1792_v59 = vpop.xlane.xlu1 %1791 }
 0x3fc   :  { %v12839_v5 = vsel %vm10034_vm3, 4294967295, %v12838_v5  ;;  %v1344_v45 = vadd.f32 %v9044_v36, %v1236_v12  ;;  %v1844_v29 = vmax.f32 %v10019_v2, %v10030_v54  ;;  %7733 = vpow2.f32 %v1951_v21  ;;  %v10054_v12 = vpop.eup %7725 }
 0x3fd   :  { %12840 = vst [vmem:[#allocation62_spill] sm:$0xff] %v12839_v5  ;;  %v10044_v44 = vadd.f32 %v9041_v38, %v1233_v14  ;;  %v10047_v46 = vadd.f32 %v9044_v36, %v1233_v14  ;;  %7735 = vpow2.f32 %v1945_v3  ;;  %v1465_v13 = vmul.f32 0.2, %v9973_v43 }
 0x3fe   :  { %1845 = vmax.xlane.f32.xlu1 %v1844_v29  ;;  %v1466_v8 = vmul.f32 0.2, %v9976_v17  ;;  %7737 = vpow2.f32 %v1947_v19  ;;  %v1471_v21 = vmul.f32 0.2, %v1343_v41  ;;  %v1472_v25 = vmul.f32 0.2, %v1344_v45  ;;  %v10068_v18 = vpop.eup %7727 }
 0x3ff   :  { %v12841_v14 = vunpack.c.l.b16 %v9883_v63  ;;  %v12842_v20 = vmov 0  ;;  %v12845_v3 = vunpack.c.h.b16 %v9883_v63  ;;  %v12846_v29 = vmov 0  ;;  %12849 = vst [vmem:[#allocation102_spill] sm:$0xff] %v10068_v18  ;;  %v1789_v23 = vpop.xlane.xlu0 %1788  ;;  %v12853_v63 = vld [vmem:[#allocation75_spill] sm:$0xff]  ;;  %v1242_v15 = vpop.xlane.xlu1 %1241 }
 0x400   :  { %vm12850_vm15 = vcmp.ge.f32.partialorder %v9973_v43, 0.0  ;;  %vm12851_vm1 = vcmp.ge.f32.partialorder %v9976_v17, 0.0  ;;  %v1880_v28 = vsub.f32 %v12852_v48, %v1792_v59  ;;  %vm12877_vm13 = vcmp.ge.f32.partialorder %v10047_v46, 0.0 }
 0x401   :  { %vm10058_vm14 = vcmp.ne.s32.totalorder %v12841_v14, 0  ;;  %vm10064_vm12 = vcmp.ne.s32.totalorder %v12845_v3, 0  ;;  %v1529_v19 = vsel %vm12850_vm15, %v9973_v43, %v1465_v13  ;;  %v1530_v53 = vsel %vm12851_vm1, %v9976_v17, %v1466_v8  ;;  %v10079_v3 = vpop.eup %7729 }
 0x402   :  { %v12843_v20 = vsel %vm10058_vm14, 4294967295, %v12842_v20  ;;  %v12847_v29 = vsel %vm10064_vm12, 4294967295, %v12846_v29  ;;  %v1879_v14 = vsub.f32 %v9388_v9, %v1792_v59  ;;  %3002 = vmatmul.mubr.bf16.gmra.mrb[120].mxu0 %v12853_v63  ;;  %v10083_v54 = vsel %vm9987_vm7, %v1529_v19, -1e+30  ;;  %v12854_v9 = vld [vmem:[#allocation76_spill] sm:$0xff] }
 0x403   :  { %12844 = vst [vmem:[#allocation64_spill] sm:$0xff] %v12843_v20  ;;  %12848 = vst [vmem:[#allocation66_spill] sm:$0xff] %v12847_v29  ;;  %v10087_v43 = vsel %vm9993_vm10, %v1530_v53, -1e+30  ;;  %v1877_v13 = vsub.f32 %v9400_v52, %v1789_v23  ;;  %v1878_v17 = vsub.f32 %v9406_v61, %v1789_v23  ;;  %3011 = vmatprep.mubr.bf16.mxu0 %v12854_v9  ;;  %v1959_v59 = vmul.f32 1.442695, %v1880_v28  ;;  %v1239_v28 = vpop.xlane.xlu0 %1238 }
 0x404   :  { %v1841_v48 = vmax.f32 %v10083_v54, %v10087_v43  ;;  %v1957_v8 = vmul.f32 1.442695, %v1879_v14  ;;  %v2066_v63 = vadd.f32 %v10054_v12, %v10050_v22  ;;  %v2063_v53 = vadd.f32 %v10079_v3, %v10068_v18  ;;  %v12874_v18 = vld [vmem:[#allocation77_spill] sm:$0xff] }
 0x405   :  { %v1953_v19 = vmul.f32 1.442695, %v1877_v13  ;;  %v1955_v60 = vmul.f32 1.442695, %v1878_v17  ;;  %vm12855_vm1 = vcmp.ge.f32.partialorder %v1343_v41, 0.0  ;;  %v10100_v61 = vadd.f32 %v9041_v38, %v1242_v15 }
 0x406   :  { %v1535_v52 = vsel %vm12855_vm1, %v1343_v41, %v1471_v21  ;;  %1842 = vmax.xlane.f32.xlu0 %v1841_v48  ;;  %7739 = vpow2.f32 %v1957_v8  ;;  %2067 = vadd.xlane.f32.xlu1 %v2066_v63  ;;  %v10103_v23 = vadd.f32 %v9044_v36, %v1242_v15  ;;  %vm12856_vm15 = vcmp.ge.f32.partialorder %v1344_v45, 0.0  ;;  %v10122_v15 = vpop.eup %7731 }
 0x407   :  { %v1536_v14 = vsel %vm12856_vm15, %v1344_v45, %v1472_v25  ;;  %7741 = vpow2.f32 %v1959_v59  ;;  %v10107_v13 = vadd.f32 %v9041_v38, %v1239_v28  ;;  %v10110_v17 = vadd.f32 %v9044_v36, %v1239_v28  ;;  %v10136_v8 = vpop.eup %7733  ;;  %v1795_v56 = vpop.xlane.xlu0 %1794 }
 0x408   :  { %v10114_v41 = vsel %vm10023_vm6, %v1535_v52, -1e+30  ;;  %v12857_v21 = vunpack.c.l.b16 %v9895_v57  ;;  %v12858_v9 = vmov 0  ;;  %7743 = vpow2.f32 %v1953_v19  ;;  %v1798_v52 = vpop.xlane.xlu1 %1797 }
 0x409   :  { %v10126_v45 = vsel %vm10034_vm3, %v1536_v14, -1e+30  ;;  %v12861_v25 = vunpack.c.h.b16 %v9895_v57  ;;  %v12862_v48 = vmov 0  ;;  %7745 = vpow2.f32 %v1955_v60  ;;  %v10154_v60 = vpop.eup %7735 }
 0x40a   :  { %vm10118_vm1 = vcmp.ne.s32.totalorder %v12857_v21, 0  ;;  %v1850_v59 = vmax.f32 %v10114_v41, %v10126_v45  ;;  %v1469_v63 = vmul.f32 0.2, %v10044_v44  ;;  %v1470_v19 = vmul.f32 0.2, %v10047_v46  ;;  %12873 = vst [vmem:[#allocation70_spill] sm:$0xff] %v10154_v60  ;;  %2064 = vadd.xlane.f32.xlu0 %v2063_v53  ;;  %3012 = vmatmul.mubr.bf16.gmra.mrb[124].mxu0 %v12874_v18 }
 0x40b   :  { %v12859_v9 = vsel %vm10118_vm1, 4294967295, %v12858_v9  ;;  %vm10132_vm6 = vcmp.ne.s32.totalorder %v12861_v25, 0  ;;  %v12865_v28 = vunpack.c.l.b16 %v9904_v32  ;;  %v12866_v14 = vmov 0 }
 0x40c   :  { %12860 = vst [vmem:[#allocation103_spill] sm:$0xff] %v12859_v9  ;;  %v12863_v48 = vsel %vm10132_vm6, 4294967295, %v12862_v48  ;;  %v12869_v57 = vunpack.c.h.b16 %v9904_v32  ;;  %v12870_v21 = vmov 0  ;;  %v1883_v25 = vsub.f32 %v9484_v6, %v1798_v52  ;;  %v10162_v32 = vpop.eup %7737  ;;  %1851 = vmax.xlane.f32.xlu1 %v1850_v59 }
 0x40d   :  { %12864 = vst [vmem:[#allocation68_spill] sm:$0xff] %v12863_v48  ;;  %vm10144_vm10 = vcmp.ne.s32.totalorder %v12865_v28, 0  ;;  %v1884_v5 = vsub.f32 %v9504_v33, %v1798_v52  ;;  %v2072_v28 = vadd.f32 %v10136_v8, %v10122_v15  ;;  %vm1411_vm3 = vcmp.ge.f32.partialorder %v10100_v61, 0.0  ;;  %12875 = vst [vmem:[#allocation108_spill] sm:$0xff] %v10162_v32 }
 0x40e   :  { %v12867_v14 = vsel %vm10144_vm10, 4294967295, %v12866_v14  ;;  %vm10150_vm15 = vcmp.ne.s32.totalorder %v12869_v57, 0  ;;  %vm12876_vm7 = vcmp.ge.f32.partialorder %v10044_v44, 0.0  ;;  %v1534_v6 = vsel %vm12877_vm13, %v10047_v46, %v1470_v19 }
 0x40f   :  { %12868 = vst [vmem:[#allocation104_spill] sm:$0xff] %v12867_v14  ;;  %v12871_v21 = vsel %vm10150_vm15, 4294967295, %v12870_v21  ;;  %v1533_v57 = vsel %vm12876_vm7, %v10044_v44, %v1469_v63  ;;  %v1881_v33 = vsub.f32 %v9508_v55, %v1795_v56  ;;  %v1882_v53 = vsub.f32 %v9512_v0, %v1795_v56  ;;  %v12878_v63 = vld [vmem:[#allocation78_spill] sm:$0xff]  ;;  %v1248_v56 = vpop.xlane.xlu1 %1247 }
 0x410   :  { %12872 = vst [vmem:[#allocation105_spill] sm:$0xff] %v12871_v21  ;;  %v10174_v52 = vsel %vm10058_vm14, %v1533_v57, -1e+30  ;;  %v10178_v18 = vsel %vm10064_vm12, %v1534_v6, -1e+30  ;;  %v2069_v44 = vadd.f32 %v10162_v32, %v10154_v60  ;;  %3021 = vmatprep.mubr.bf16.mxu0 %v12878_v63  ;;  %v10186_v57 = vadd.f32 %v9041_v38, %v1248_v56  ;;  %2073 = vadd.xlane.f32.xlu1 %v2072_v28 }
 0x411   :  { %v1965_v59 = vmul.f32 1.442695, %v1883_v25  ;;  %v1847_v46 = vmax.f32 %v10174_v52, %v10178_v18  ;;  %v1967_v55 = vmul.f32 1.442695, %v1884_v5  ;;  %v1961_v19 = vmul.f32 1.442695, %v1881_v33  ;;  %v1245_v25 = vpop.xlane.xlu0 %1244 }
 0x412   :  { %v1963_v0 = vmul.f32 1.442695, %v1882_v53  ;;  %v10189_v6 = vadd.f32 %v9044_v36, %v1248_v56  ;;  %v10193_v63 = vadd.f32 %v9041_v38, %v1245_v25  ;;  %v10196_v5 = vadd.f32 %v9044_v36, %v1245_v25  ;;  %v10199_v53 = vpop.eup %7739 }
 0x413   :  { %7747 = vpow2.f32 %v1965_v59  ;;  %1848 = vmax.xlane.f32.xlu0 %v1847_v46  ;;  %v1475_v33 = vmul.f32 0.2, %v10100_v61  ;;  %v1476_v59 = vmul.f32 0.2, %v10103_v23  ;;  %vm1409_vm7 = vcmp.ge.f32.partialorder %v10107_v13, 0.0  ;;  %v10204_v46 = vpop.eup %7741 }
 0x414   :  { %7749 = vpow2.f32 %v1967_v55  ;;  %v1473_v36 = vmul.f32 0.2, %v10107_v13  ;;  %v1474_v28 = vmul.f32 0.2, %v10110_v17  ;;  %v1804_v55 = vpop.xlane.xlu1 %1803  ;;  %v10211_v56 = vpop.eup %7743  ;;  %vm12879_vm12 = vcmp.ge.f32.partialorder %v10103_v23, 0.0 }
 0x415   :  { %7751 = vpow2.f32 %v1961_v19  ;;  %v1539_v38 = vsel %vm1411_vm3, %v10100_v61, %v1475_v33  ;;  %v1540_v19 = vsel %vm12879_vm12, %v10103_v23, %v1476_v59  ;;  %v1888_v29 = vsub.f32 %v9559_v31, %v1804_v55  ;;  %v1801_v61 = vpop.xlane.xlu0 %1800  ;;  %v12888_v23 = vld [vmem:[#allocation79_spill] sm:$0xff]  ;;  %v10235_v59 = vpop.eup %7745 }
 0x416   :  { %7753 = vpow2.f32 %v1963_v0  ;;  %v10218_v25 = vsel %vm10118_vm1, %v1539_v38, -1e+30  ;;  %v1887_v0 = vsub.f32 %v9555_v11, %v1804_v55  ;;  %v12880_v33 = vunpack.c.l.b16 %v9911_v49  ;;  %3022 = vmatmul.mubr.bf16.gmra.mrb[128].mxu0 %v12888_v23 }
 0x417   :  { %v12881_v20 = vmov 0  ;;  %v12884_v60 = vunpack.c.h.b16 %v9911_v49  ;;  %v12885_v32 = vmov 0  ;;  %2070 = vadd.xlane.f32.xlu0 %v2069_v44  ;;  %v10239_v11 = vsel %vm10132_vm6, %v1540_v19, -1e+30 }
 0x418   :  { %vm10224_vm3 = vcmp.ne.s32.totalorder %v12880_v33, 0  ;;  %v1537_v31 = vsel %vm1409_vm7, %v10107_v13, %v1473_v36  ;;  %vm12889_vm12 = vcmp.ge.f32.partialorder %v10110_v17, 0.0  ;;  %v12890_v38 = vunpack.c.l.b16 %v9926_v47 }
 0x419   :  { %v12882_v20 = vsel %vm10224_vm3, 4294967295, %v12881_v20  ;;  %vm10230_vm13 = vcmp.ne.s32.totalorder %v12884_v60, 0  ;;  %v1538_v49 = vsel %vm12889_vm12, %v10110_v17, %v1474_v28  ;;  %v1885_v60 = vsub.f32 %v9586_v51, %v1801_v61 }
 0x41a   :  { %12883 = vst [vmem:[#allocation111_spill] sm:$0xff] %v12882_v20  ;;  %v12886_v32 = vsel %vm10230_vm13, 4294967295, %v12885_v32  ;;  %vm10250_vm1 = vcmp.ne.s32.totalorder %v12890_v38, 0  ;;  %v12891_v55 = vmov 0  ;;  %v1856_v44 = vmax.f32 %v10218_v25, %v10239_v11 }
 0x41b   :  { %12887 = vst [vmem:[#allocation71_spill] sm:$0xff] %v12886_v32  ;;  %v12892_v55 = vsel %vm10250_vm1, 4294967295, %v12891_v55  ;;  %v10258_v19 = vsel %vm10144_vm10, %v1537_v31, -1e+30  ;;  %v10262_v13 = vsel %vm10150_vm15, %v1538_v49, -1e+30  ;;  %v12894_v51 = vunpack.c.h.b16 %v9926_v47  ;;  %v1810_v31 = vpop.xlane.xlu1 %1809 }
 0x41c   :  { %12893 = vst [vmem:[#allocation112_spill] sm:$0xff] %v12892_v55  ;;  %v1973_v17 = vmul.f32 1.442695, %v1887_v0  ;;  %v12895_v36 = vmov 0  ;;  %v1853_v28 = vmax.f32 %v10258_v19, %v10262_v13  ;;  %v1975_v33 = vmul.f32 1.442695, %v1888_v29  ;;  %1857 = vmax.xlane.f32.xlu1 %v1856_v44 }
 0x41d   :  { %vm10266_vm7 = vcmp.ne.s32.totalorder %v12894_v51, 0  ;;  %v1886_v23 = vsub.f32 %v9590_v62, %v1801_v61  ;;  %v1969_v38 = vmul.f32 1.442695, %v1885_v60  ;;  %v2078_v49 = vadd.f32 %v10204_v46, %v10199_v53  ;;  %v1807_v51 = vpop.xlane.xlu0 %1806  ;;  %v10280_v61 = vpop.eup %7747 }
 0x41e   :  { %v12896_v36 = vsel %vm10266_vm7, 4294967295, %v12895_v36  ;;  %7755 = vpow2.f32 %v1973_v17  ;;  %v2075_v47 = vadd.f32 %v10235_v59, %v10211_v56  ;;  %v1891_v0 = vsub.f32 %v9627_v40, %v1810_v31  ;;  %1854 = vmax.xlane.f32.xlu0 %v1853_v28  ;;  %v10284_v17 = vpop.eup %7749 }
 0x41f   :  { %12897 = vst [vmem:[#allocation113_spill] sm:$0xff] %v12896_v36  ;;  %7757 = vpow2.f32 %v1975_v33  ;;  %v1971_v48 = vmul.f32 1.442695, %v1886_v23  ;;  %v1892_v29 = vsub.f32 %v9641_v35, %v1810_v31  ;;  %v1889_v62 = vsub.f32 %v9648_v26, %v1807_v51  ;;  %v1816_v28 = vpop.xlane.xlu1 %1815  ;;  %v10287_v33 = vpop.eup %7751 }
 0x420   :  { %7759 = vpow2.f32 %v1969_v38  ;;  %v1981_v60 = vmul.f32 1.442695, %v1891_v0  ;;  %v1890_v44 = vsub.f32 %v9681_v30, %v1807_v51  ;;  %2079 = vadd.xlane.f32.xlu1 %v2078_v49  ;;  %v1479_v35 = vmul.f32 0.2, %v10186_v57  ;;  %v10291_v38 = vpop.eup %7753 }
 0x421   :  { %7761 = vpow2.f32 %v1971_v48  ;;  %v1983_v40 = vmul.f32 1.442695, %v1892_v29  ;;  %v1977_v9 = vmul.f32 1.442695, %v1889_v62  ;;  %v1480_v23 = vmul.f32 0.2, %v10189_v6  ;;  %v1813_v30 = vpop.xlane.xlu0 %1812 }
 0x422   :  { %7763 = vpow2.f32 %v1981_v60  ;;  %v1979_v26 = vmul.f32 1.442695, %v1890_v44  ;;  %2076 = vadd.xlane.f32.xlu0 %v2075_v47  ;;  %vm1413_vm12 = vcmp.ge.f32.partialorder %v10193_v63, 0.0  ;;  %vm1414_vm15 = vcmp.ge.f32.partialorder %v10196_v5, 0.0 }
 0x423   :  { %7765 = vpow2.f32 %v1983_v40  ;;  %v1477_v48 = vmul.f32 0.2, %v10193_v63  ;;  %vm12898_vm6 = vcmp.ge.f32.partialorder %v10186_v57, 0.0  ;;  %vm12899_vm10 = vcmp.ge.f32.partialorder %v10189_v6, 0.0  ;;  %v1822_v29 = vpop.xlane.xlu1 %1821 }
 0x424   :  { %7767 = vpow2.f32 %v1977_v9  ;;  %v1543_v31 = vsel %vm12898_vm6, %v10186_v57, %v1479_v35  ;;  %v1544_v49 = vsel %vm12899_vm10, %v10189_v6, %v1480_v23  ;;  %v1478_v0 = vmul.f32 0.2, %v10196_v5 }
 0x425   :  { %7769 = vpow2.f32 %v1979_v26  ;;  %v10305_v47 = vsel %vm10224_vm3, %v1543_v31, -1e+30  ;;  %v10309_v51 = vsel %vm10230_vm13, %v1544_v49, -1e+30  ;;  %v1541_v9 = vsel %vm1413_vm12, %v10193_v63, %v1477_v48  ;;  %v1819_v44 = vpop.xlane.xlu0 %1818 }
 0x426   :  { %v1862_v57 = vmax.f32 %v10305_v47, %v10309_v51  ;;  %v1542_v62 = vsel %vm1414_vm15, %v10196_v5, %v1478_v0  ;;  %v10317_v6 = vsel %vm10250_vm1, %v1541_v9, -1e+30  ;;  %v1895_v60 = vsub.f32 %v9695_v16, %v1816_v28 }
 0x427   :  { %v10322_v40 = vsel %vm10266_vm7, %v1542_v62, -1e+30  ;;  %v1896_v26 = vsub.f32 %v9699_v58, %v1816_v28  ;;  %v1893_v63 = vsub.f32 %v9716_v42, %v1813_v30  ;;  %v1894_v35 = vsub.f32 %v9720_v34, %v1813_v30  ;;  %v1828_v30 = vpop.xlane.xlu1 %1827 }
 0x428   :  { %v10327_v23 = vpop.eup %7755  ;;  %1863 = vmax.xlane.f32.xlu1 %v1862_v57  ;;  %v1859_v5 = vmax.f32 %v10317_v6, %v10322_v40  ;;  %v1989_v48 = vmul.f32 1.442695, %v1895_v60  ;;  %v2084_v16 = vadd.f32 %v10284_v17, %v10280_v61  ;;  %v2081_v31 = vadd.f32 %v10291_v38, %v10287_v33 }
 0x429   :  { %v10335_v49 = vpop.eup %7757  ;;  %v1991_v58 = vmul.f32 1.442695, %v1896_v26  ;;  %v1985_v28 = vmul.f32 1.442695, %v1893_v63  ;;  %v1987_v42 = vmul.f32 1.442695, %v1894_v35  ;;  %v1899_v34 = vsub.f32 %v9727_v4, %v1822_v29  ;;  %v1825_v60 = vpop.xlane.xlu0 %1824 }
 0x42a   :  { %v10338_v0 = vpop.eup %7759  ;;  %1860 = vmax.xlane.f32.xlu0 %v1859_v5  ;;  %7771 = vpow2.f32 %v1989_v48  ;;  %v1900_v9 = vsub.f32 %v9750_v24, %v1822_v29  ;;  %v1897_v57 = vsub.f32 %v9759_v1, %v1819_v44  ;;  %v1898_v62 = vsub.f32 %v9767_v39, %v1819_v44 }
 0x42b   :  { %v10343_v32 = vpop.eup %7761  ;;  %7773 = vpow2.f32 %v1991_v58  ;;  %v1997_v26 = vmul.f32 1.442695, %v1899_v34  ;;  %v1903_v63 = vsub.f32 %v9789_v50, %v1828_v30  ;;  %v1904_v4 = vsub.f32 %v9797_v27, %v1828_v30  ;;  %v1834_v44 = vpop.xlane.xlu1 %1833  ;;  %v12900_v30 = vld [vmem:[#allocation149_spill] sm:$0xff] }
 0x42c   :  { %v10347_v35 = vpop.eup %7763  ;;  %7775 = vpow2.f32 %v1985_v28  ;;  %2085 = vadd.xlane.f32.xlu1 %v2084_v16  ;;  %v1999_v5 = vmul.f32 1.442695, %v1900_v9  ;;  %v1993_v48 = vmul.f32 1.442695, %v1897_v57  ;;  %v1995_v1 = vmul.f32 1.442695, %v1898_v62 }
 0x42d   :  { %v10349_v24 = vpop.eup %7765  ;;  %7777 = vpow2.f32 %v1987_v42  ;;  %v2005_v39 = vmul.f32 1.442695, %v1903_v63  ;;  %v1901_v29 = vsub.f32 %v9802_v37, %v1825_v60  ;;  %v1902_v50 = vsub.f32 %v9806_v10, %v1825_v60  ;;  %v1831_v28 = vpop.xlane.xlu0 %1830  ;;  %v12901_v9 = vld [vmem:[#allocation150_spill] sm:$0xff]  ;;  %v12902_v62 = vld [vmem:[#allocation151_spill] sm:$0xff] }
 0x42e   :  { %v10352_v58 = vpop.eup %7767  ;;  %2082 = vadd.xlane.f32.xlu0 %v2081_v31  ;;  %7779 = vpow2.f32 %v1997_v26  ;;  %v2090_v27 = vadd.f32 %v10335_v49, %v10327_v23  ;;  %v2087_v16 = vadd.f32 %v10343_v32, %v10338_v0  ;;  %v2007_v42 = vmul.f32 1.442695, %v1904_v4  ;;  %v12903_v26 = vld [vmem:[#allocation152_spill] sm:$0xff] }
 0x42f   :  { %v10359_v34 = vpop.eup %7769  ;;  %7781 = vpow2.f32 %v1999_v5  ;;  %v1907_v37 = vsub.f32 %v12900_v30, %v1834_v44  ;;  %v1908_v57 = vsub.f32 %v12901_v9, %v1834_v44  ;;  %v2001_v31 = vmul.f32 1.442695, %v1901_v29 }
 0x430   :  { %7783 = vpow2.f32 %v1993_v48  ;;  %2091 = vadd.xlane.f32.xlu1 %v2090_v27  ;;  %v1905_v10 = vsub.f32 %v12902_v62, %v1831_v28  ;;  %v2003_v60 = vmul.f32 1.442695, %v1902_v50  ;;  %v1906_v63 = vsub.f32 %v12903_v26, %v1831_v28 }
 0x431   :  { %7785 = vpow2.f32 %v1995_v1  ;;  %v2096_v20 = vadd.f32 %v10349_v24, %v10347_v35  ;;  %v2013_v5 = vmul.f32 1.442695, %v1907_v37  ;;  %v2093_v4 = vadd.f32 %v10359_v34, %v10352_v58 }
 0x432   :  { %7787 = vpow2.f32 %v2005_v39  ;;  %2088 = vadd.xlane.f32.xlu0 %v2087_v16  ;;  %v2015_v44 = vmul.f32 1.442695, %v1908_v57  ;;  %v2009_v29 = vmul.f32 1.442695, %v1905_v10  ;;  %v2011_v50 = vmul.f32 1.442695, %v1906_v63 }
 0x433   :  { %7789 = vpow2.f32 %v2007_v42 }
 0x434   :  { %v10369_v48 = vpop.eup %7771  ;;  %7791 = vpow2.f32 %v2001_v31  ;;  %2097 = vadd.xlane.f32.xlu1 %v2096_v20 }
 0x435   :  { %v10371_v1 = vpop.eup %7773  ;;  %7793 = vpow2.f32 %v2003_v60 }
 0x436   :  { %v10373_v27 = vpop.eup %7775  ;;  %7795 = vpow2.f32 %v2013_v5  ;;  %2094 = vadd.xlane.f32.xlu0 %v2093_v4  ;;  %v2102_v39 = vadd.f32 %v10371_v1, %v10369_v48 }
 0x437   :  { %v10377_v16 = vpop.eup %7777  ;;  %7797 = vpow2.f32 %v2015_v44 }
 0x438   :  { %v10379_v28 = vpop.eup %7779  ;;  %7799 = vpow2.f32 %v2009_v29  ;;  %2103 = vadd.xlane.f32.xlu1 %v2102_v39  ;;  %v2099_v20 = vadd.f32 %v10377_v16, %v10373_v27 }
 0x439   :  { %v10383_v42 = vpop.eup %7781  ;;  %7801 = vpow2.f32 %v2011_v50 }
 0x43a   :  { %v10385_v30 = vpop.eup %7783  ;;  %2100 = vadd.xlane.f32.xlu0 %v2099_v20  ;;  %v2108_v37 = vadd.f32 %v10383_v42, %v10379_v28 }
 0x43b   :  { %v10389_v9 = vpop.eup %7785 }
 0x43c   :  { %v10391_v57 = vpop.eup %7787  ;;  %2109 = vadd.xlane.f32.xlu1 %v2108_v37  ;;  %v2105_v31 = vadd.f32 %v10389_v9, %v10385_v30 }
 0x43d   :  { %12904 = vst [vmem:[#allocation72_spill] sm:$0xff] %v10391_v57  ;;  %v10395_v62 = vpop.eup %7789 }
 0x43e   :  { %12905 = vst [vmem:[#allocation118_spill] sm:$0xff] %v10395_v62  ;;  %v10397_v10 = vpop.eup %7791  ;;  %2106 = vadd.xlane.f32.xlu0 %v2105_v31  ;;  %v2114_v60 = vadd.f32 %v10395_v62, %v10391_v57 }
 0x43f   :  { %12906 = vst [vmem:[#allocation119_spill] sm:$0xff] %v10397_v10  ;;  %v10401_v26 = vpop.eup %7793 }
 0x440   :  { %12907 = vst [vmem:[#allocation73_spill] sm:$0xff] %v10401_v26  ;;  %v10403_v63 = vpop.eup %7795  ;;  %2115 = vadd.xlane.f32.xlu1 %v2114_v60  ;;  %v2111_v5 = vadd.f32 %v10401_v26, %v10397_v10 }
 0x441   :  { %12908 = vst [vmem:[#allocation120_spill] sm:$0xff] %v10403_v63  ;;  %v10407_v4 = vpop.eup %7797 }
 0x442   :  { %12909 = vst [vmem:[#allocation121_spill] sm:$0xff] %v10407_v4  ;;  %v10409_v44 = vpop.eup %7799  ;;  %2112 = vadd.xlane.f32.xlu0 %v2111_v5  ;;  %v2120_v29 = vadd.f32 %v10407_v4, %v10403_v63 }
 0x443   :  { %12910 = vst [vmem:[#allocation74_spill] sm:$0xff] %v10409_v44  ;;  %v10413_v50 = vpop.eup %7801 }
 0x444   :  { %12911 = vst [vmem:[#allocation126_spill] sm:$0xff] %v10413_v50  ;;  %2121 = vadd.xlane.f32.xlu1 %v2120_v29  ;;  %v2117_v39 = vadd.f32 %v10413_v50, %v10409_v44 }
 0x446   :  { %2118 = vadd.xlane.f32.xlu0 %v2117_v39 }
 0x46d   :  { %v2873_v20 = vpop.f32.mrb[68].mxu0 }
 0x46e   :  { %v2875_v37 = vpop.f32.mrb[69].mxu0 }
 0x46f   :  { %v2877_v31 = vpop.f32.mrb[70].mxu0 }
 0x470   :  { %v10417_v60 = vpack.c.bf16 %v2877_v31, %v2873_v20  ;;  %v2879_v36 = vpop.f32.mrb[71].mxu0 }
 0x471   :  { %v10419_v55 = vpack.c.bf16 %v2879_v36, %v2875_v37 }
 0x472   :  { %12912 = vst [vmem:[#allocation75_spill] sm:$0xff] %v10417_v60 }
 0x473   :  { %12913 = vst [vmem:[#allocation76_spill] sm:$0xff] %v10419_v55  ;;  %7332 = vmatprep.subr.bf16.mxu0 %v10419_v55 }
 0x474   :  { %7334 = vmatpush1.bf16.xpose.msra.mxu0 %v10417_v60 }
 0x475   :  { %v2883_v5 = vpop.f32.mrb[72].mxu0 }
 0x476   :  { %v2885_v21 = vpop.f32.mrb[73].mxu0 }
 0x477   :  { %v2887_v14 = vpop.f32.mrb[74].mxu0 }
 0x478   :  { %v10423_v29 = vpack.c.bf16 %v2887_v14, %v2883_v5  ;;  %v2889_v63 = vpop.f32.mrb[75].mxu0  ;;  %v12918_v5 = vld [vmem:[#allocation40_spill] sm:$0xff] }
 0x479   :  { %v10425_v44 = vpack.c.bf16 %v2889_v63, %v2885_v21 }
 0x47a   :  { %12914 = vst [vmem:[#allocation77_spill] sm:$0xff] %v10423_v29 }
 0x47b   :  { %12915 = vst [vmem:[#allocation78_spill] sm:$0xff] %v10425_v44  ;;  %7336 = vmatprep.subr.bf16.mxu0 %v10425_v44 }
 0x47c   :  { %7338 = vmatpush1.bf16.xpose.msra.mxu0 %v10423_v29 }
 0x47d   :  { %v2893_v39 = vpop.f32.mrb[76].mxu0 }
 0x47e   :  { %v2895_v20 = vpop.f32.mrb[77].mxu0 }
 0x47f   :  { %v2897_v36 = vpop.f32.mrb[78].mxu0  ;;  %v1840_v60 = vpop.xlane.xlu1 %1839 }
 0x480   :  { %v10429_v37 = vpack.c.bf16 %v2897_v36, %v2893_v39  ;;  %v2899_v31 = vpop.f32.mrb[79].mxu0  ;;  %v1911_v14 = vsub.f32 %v9956_v7, %v1840_v60  ;;  %v1912_v21 = vsub.f32 %v12918_v5, %v1840_v60 }
 0x481   :  { %v10431_v55 = vpack.c.bf16 %v2899_v31, %v2895_v20  ;;  %v12920_v20 = vld [vmem:[#allocation42_spill] sm:$0xff] }
 0x482   :  { %12916 = vst [vmem:[#allocation79_spill] sm:$0xff] %v10429_v37  ;;  %v2021_v44 = vmul.f32 1.442695, %v1911_v14  ;;  %v2023_v50 = vmul.f32 1.442695, %v1912_v21 }
 0x483   :  { %12917 = vst [vmem:[#allocation149_spill] sm:$0xff] %v10431_v55  ;;  %7340 = vmatprep.subr.bf16.mxu0 %v10431_v55  ;;  %v12921_v55 = vld [vmem:[#allocation46_spill] sm:$0xff] }
 0x484   :  { %7342 = vmatpush1.bf16.xpose.msra.mxu0 %v10429_v37  ;;  %v1837_v57 = vpop.xlane.xlu0 %1836  ;;  %7803 = vpow2.f32 %v2021_v44 }
 0x485   :  { %v2903_v63 = vpop.f32.mrb[80].mxu0  ;;  %v1909_v31 = vsub.f32 %v12920_v20, %v1837_v57  ;;  %v1910_v10 = vsub.f32 %v12921_v55, %v1837_v57  ;;  %v2062_v62 = vpop.xlane.xlu1 %2061  ;;  %7805 = vpow2.f32 %v2023_v50 }
 0x486   :  { %v2905_v4 = vpop.f32.mrb[81].mxu0  ;;  %7807 = vrcp.f32 %v2062_v62 }
 0x487   :  { %v2907_v29 = vpop.f32.mrb[82].mxu0  ;;  %v2017_v60 = vmul.f32 1.442695, %v1909_v31  ;;  %v2019_v5 = vmul.f32 1.442695, %v1910_v10 }
 0x488   :  { %v10437_v39 = vpack.c.bf16 %v2907_v29, %v2903_v63  ;;  %v2909_v36 = vpop.f32.mrb[83].mxu0  ;;  %v2059_v14 = vpop.xlane.xlu0 %2058  ;;  %v12923_v63 = vld [vmem:[#allocation60_spill] sm:$0xff] }
 0x489   :  { %v10441_v7 = vpack.c.bf16 %v2909_v36, %v2905_v4  ;;  %7809 = vpow2.f32 %v2017_v60 }
 0x48a   :  { %12919 = vst [vmem:[#allocation150_spill] sm:$0xff] %v10437_v39  ;;  %7811 = vpow2.f32 %v2019_v5 }
 0x48b   :  { %12922 = vst [vmem:[#allocation151_spill] sm:$0xff] %v10441_v7  ;;  %7344 = vmatprep.subr.bf16.mxu0 %v10441_v7  ;;  %v1846_v21 = vpop.xlane.xlu1 %1845  ;;  %7813 = vrcp.f32 %v2059_v14 }
 0x48c   :  { %v1915_v44 = vsub.f32 %v10019_v2, %v1846_v21  ;;  %v1916_v20 = vsub.f32 %v12923_v63, %v1846_v21  ;;  %7346 = vmatpush1.bf16.xpose.msra.mxu0 %v10437_v39  ;;  %v12930_v39 = vld [vmem:[#allocation54_spill] sm:$0xff] }
 0x48d   :  { %v2913_v29 = vpop.f32.mrb[84].mxu0 }
 0x48e   :  { %v2915_v37 = vpop.f32.mrb[85].mxu0  ;;  %v2029_v57 = vmul.f32 1.442695, %v1915_v44  ;;  %v2031_v4 = vmul.f32 1.442695, %v1916_v20  ;;  %v10451_v36 = vpop.eup %7803 }
 0x48f   :  { %v2917_v55 = vpop.f32.mrb[86].mxu0  ;;  %12926 = vst [vmem:[#allocation42_spill] sm:$0xff] %v10451_v36  ;;  %v10454_v60 = vpop.eup %7805 }
 0x490   :  { %v10447_v10 = vpack.c.bf16 %v2917_v55, %v2913_v29  ;;  %v2919_v62 = vpop.f32.mrb[87].mxu0  ;;  %7815 = vpow2.f32 %v2029_v57  ;;  %12927 = vst [vmem:[#allocation46_spill] sm:$0xff] %v10454_v60  ;;  %v7808_v21 = vpop.eup %7807  ;;  %v2126_v29 = vadd.f32 %v10454_v60, %v10451_v36 }
 0x491   :  { %v10449_v50 = vpack.c.bf16 %v2919_v62, %v2915_v37  ;;  %7817 = vpow2.f32 %v2031_v4 }
 0x492   :  { %12924 = vst [vmem:[#allocation152_spill] sm:$0xff] %v10447_v10  ;;  %2127 = vadd.xlane.f32.xlu1 %v2126_v29 }
 0x493   :  { %12925 = vst [vmem:[#allocation40_spill] sm:$0xff] %v10449_v50  ;;  %v1843_v31 = vpop.xlane.xlu0 %1842  ;;  %v2068_v2 = vpop.xlane.xlu1 %2067  ;;  %7348 = vmatprep.subr.bf16.mxu0 %v10449_v50  ;;  %v12929_v50 = vld [vmem:[#allocation52_spill] sm:$0xff] }
 0x494   :  { %v1913_v5 = vsub.f32 %v10083_v54, %v1843_v31  ;;  %v1914_v14 = vsub.f32 %v10087_v43, %v1843_v31  ;;  %7819 = vrcp.f32 %v2068_v2  ;;  %v10460_v55 = vpop.eup %7809  ;;  %7350 = vmatpush1.bf16.xpose.msra.mxu0 %v10447_v10  ;;  %v12928_v54 = vld [vmem:[#allocation44_spill] sm:$0xff]  ;;  %v2188_v36 = vmul.f32 %v7808_v21, %v12929_v50 }
 0x495   :  { %v2923_v37 = vpop.f32.mrb[88].mxu0  ;;  %v10463_v62 = vpop.eup %7811  ;;  %v2187_v43 = vmul.f32 %v7808_v21, %v12928_v54  ;;  %v12931_v54 = vld [vmem:[#allocation56_spill] sm:$0xff] }
 0x496   :  { %v2025_v44 = vmul.f32 1.442695, %v1913_v5  ;;  %v2027_v63 = vmul.f32 1.442695, %v1914_v14  ;;  %v2925_v20 = vpop.f32.mrb[89].mxu0  ;;  %v7814_v2 = vpop.eup %7813  ;;  %v2123_v10 = vadd.f32 %v10463_v62, %v10460_v55 }
 0x497   :  { %v2065_v57 = vpop.xlane.xlu0 %2064  ;;  %v2927_v4 = vpop.f32.mrb[90].mxu0  ;;  %v2185_v7 = vmul.f32 %v7814_v2, %v12930_v39 }
 0x498   :  { %7821 = vpow2.f32 %v2025_v44  ;;  %v10467_v60 = vpack.c.bf16 %v2927_v4, %v2923_v37  ;;  %v2929_v5 = vpop.f32.mrb[91].mxu0  ;;  %v2186_v44 = vmul.f32 %v7814_v2, %v12931_v54  ;;  %2124 = vadd.xlane.f32.xlu0 %v2123_v10  ;;  %v8100_v54 = vld [vmem:[#allocation8 + $0x114] ss:$8 sps:$4 sm:$0xff]  }
 0x499   :  { %v1852_v31 = vpop.xlane.xlu1 %1851  ;;  %7823 = vpow2.f32 %v2027_v63  ;;  %v10475_v26 = vpack.c.bf16 %v2929_v5, %v2925_v20 }
 0x49a   :  { %v1919_v14 = vsub.f32 %v10114_v41, %v1852_v31  ;;  %v1920_v29 = vsub.f32 %v10126_v45, %v1852_v31  ;;  %7825 = vrcp.f32 %v2065_v57  ;;  %v10477_v37 = vpop.eup %7815  ;;  %v2250_v4 = vpack.c.bf16 %v2188_v36, %v2186_v44 }
 0x49b   :  { %v2249_v41 = vpack.c.bf16 %v2187_v43, %v2185_v7  ;;  %7352 = vmatprep.subr.bf16.mxu0 %v10475_v26  ;;  %v10480_v45 = vpop.eup %7817 }
 0x49c   :  { %v2037_v50 = vmul.f32 1.442695, %v1919_v14  ;;  %v2039_v21 = vmul.f32 1.442695, %v1920_v29  ;;  %2357 = vmatprep.mubr.bf16.mxu1 %v2250_v4  ;;  %v2132_v10 = vadd.f32 %v10480_v45, %v10477_v37  ;;  %7354 = vmatpush1.bf16.xpose.msra.mxu0 %v10467_v60 }
 0x49d   :  { %v2074_v31 = vpop.xlane.xlu1 %2073  ;;  %v2933_v20 = vpop.f32.mrb[92].mxu0  ;;  %2358 = vmatmul.mubr.bf16.vlgmr.msra.gmra.mrb[64].mxu1 %v2249_v41 }
 0x49e   :  { %7827 = vpow2.f32 %v2037_v50  ;;  %v2935_v5 = vpop.f32.mrb[93].mxu0  ;;  %v7820_v43 = vpop.eup %7819  ;;  %2133 = vadd.xlane.f32.xlu1 %v2132_v10 }
 0x49f   :  { %7829 = vpow2.f32 %v2039_v21  ;;  %v2937_v7 = vpop.f32.mrb[94].mxu0  ;;  %v2192_v4 = vmul.f32 %v7820_v43, %v10054_v12  ;;  %v2191_v41 = vmul.f32 %v7820_v43, %v10050_v22  ;;  %v12933_v22 = vld [vmem:[#allocation102_spill] sm:$0xff] }
 0x4a0   :  { %v1849_v63 = vpop.xlane.xlu0 %1848  ;;  %7831 = vrcp.f32 %v2074_v31  ;;  %v2939_v29 = vpop.f32.mrb[95].mxu0  ;;  %v8102_v43 = vld [vmem:[#allocation8 + $0x124] ss:$8 sps:$4 sm:$0xff]  }
 0x4a1   :  { %v1917_v39 = vsub.f32 %v10174_v52, %v1849_v63  ;;  %v1918_v57 = vsub.f32 %v10178_v18, %v1849_v63  ;;  %v8099_v52 = vld [vmem:[#allocation8 + $0x100] ss:$8 sps:$4 sm:$0xff]   ;;  %v10487_v18 = vpack.c.bf16 %v2937_v7, %v2933_v20  ;;  %v10489_v44 = vpack.c.bf16 %v2939_v29, %v2935_v5  ;;  %v8101_v5 = vld [vmem:[#allocation8 + $0x110] ss:$8 sps:$4 sm:$0xff]  }
 0x4a2   :  { %3033 = vmatpush1.bf16.msra.mxu1 %v8099_v52  ;;  %v10491_v50 = vpop.eup %7821 }
 0x4a3   :  { %v2033_v2 = vmul.f32 1.442695, %v1917_v39  ;;  %v2035_v36 = vmul.f32 1.442695, %v1918_v57  ;;  %3034 = vmatprep.subr.bf16.mxu1 %v8100_v54  ;;  %12932 = vst [vmem:[#allocation60_spill] sm:$0xff] %v10491_v50  ;;  %v10493_v21 = vpop.eup %7823  ;;  %7356 = vmatprep.subr.bf16.mxu0 %v10489_v44 }
 0x4a4   :  { %v2071_v14 = vpop.xlane.xlu0 %2070  ;;  %v7826_v39 = vpop.eup %7825  ;;  %v2129_v10 = vadd.f32 %v10493_v21, %v10491_v50  ;;  %7358 = vmatpush1.bf16.xpose.msra.mxu0 %v10487_v18 }
 0x4a5   :  { %7833 = vpow2.f32 %v2033_v2  ;;  %v2190_v12 = vmul.f32 %v7826_v39, %v10079_v3  ;;  %v2189_v7 = vmul.f32 %v7826_v39, %v12933_v22  ;;  %v8103_v39 = vld [vmem:[#allocation8 + $0x120] ss:$8 sps:$4 sm:$0xff]  }
 0x4a6   :  { %7835 = vpow2.f32 %v2035_v36  ;;  %3035 = vmatpush1.bf16.msra.mxu1 %v8101_v5  ;;  %2130 = vadd.xlane.f32.xlu0 %v2129_v10 }
 0x4a7   :  { %7837 = vrcp.f32 %v2071_v14  ;;  %3036 = vmatprep.subr.bf16.mxu1 %v8102_v43  ;;  %v2943_v14 = vpop.f32.mrb[96].mxu0  ;;  %v2252_v50 = vpack.c.bf16 %v2192_v4, %v2190_v12 }
 0x4a8   :  { %v10506_v29 = vpop.eup %7827 }
 0x4a9   :  { %v1858_v63 = vpop.xlane.xlu1 %1857  ;;  %v10509_v3 = vpop.eup %7829  ;;  %2367 = vmatprep.mubr.bf16.mxu1 %v2252_v50  ;;  %v8105_v50 = vld [vmem:[#allocation8 + $0x130] ss:$8 sps:$4 sm:$0xff]  }
 0x4aa   :  { %v1923_v57 = vsub.f32 %v10218_v25, %v1858_v63  ;;  %v1924_v31 = vsub.f32 %v10239_v11, %v1858_v63  ;;  %v2945_v11 = vpop.f32.mrb[97].mxu0  ;;  %3037 = vmatpush1.bf16.msra.mxu1 %v8103_v39  ;;  %v2138_v10 = vadd.f32 %v10509_v3, %v10506_v29 }
 0x4ab   :  { %v1855_v20 = vpop.xlane.xlu0 %1854 }
 0x4ac   :  { %v1921_v2 = vsub.f32 %v10258_v19, %v1855_v20  ;;  %v1922_v36 = vsub.f32 %v10262_v13, %v1855_v20  ;;  %v2045_v25 = vmul.f32 1.442695, %v1923_v57  ;;  %v2047_v52 = vmul.f32 1.442695, %v1924_v31  ;;  %v2947_v13 = vpop.f32.mrb[98].mxu0  ;;  %2139 = vadd.xlane.f32.xlu1 %v2138_v10 }
 0x4ad   :  { %v2080_v5 = vpop.xlane.xlu1 %2079  ;;  %v2251_v19 = vpack.c.bf16 %v2191_v41, %v2189_v7  ;;  %v10511_v20 = vpack.c.bf16 %v2947_v13, %v2943_v14  ;;  %v2949_v57 = vpop.f32.mrb[99].mxu0  ;;  %v12935_v13 = vld [vmem:[#allocation70_spill] sm:$0xff] }
 0x4ae   :  { %v2041_v54 = vmul.f32 1.442695, %v1921_v2  ;;  %v2043_v63 = vmul.f32 1.442695, %v1922_v36  ;;  %7839 = vpow2.f32 %v2045_v25  ;;  %v8104_v2 = vld [vmem:[#allocation8 + $0x134] ss:$8 sps:$4 sm:$0xff]   ;;  %v10515_v4 = vpack.c.bf16 %v2949_v57, %v2945_v11  ;;  %v7832_v41 = vpop.eup %7831 }
 0x4af   :  { %7841 = vpow2.f32 %v2047_v52  ;;  %v2077_v31 = vpop.xlane.xlu0 %2076  ;;  %3038 = vmatprep.subr.bf16.mxu1 %v8104_v2  ;;  %2368 = vmatmul.mubr.bf16.gmra.mrb[68].mxu1 %v2251_v19  ;;  %v10517_v36 = vpop.eup %7833  ;;  %v2196_v14 = vmul.f32 %v7832_v41, %v10136_v8  ;;  %v2195_v25 = vmul.f32 %v7832_v41, %v10122_v15  ;;  %v8106_v52 = vld [vmem:[#allocation8 + $0x144] ss:$8 sps:$4 sm:$0xff]  }
 0x4b0   :  { %7843 = vpow2.f32 %v2041_v54  ;;  %7360 = vmatprep.subr.bf16.mxu0 %v10515_v4  ;;  %v10520_v12 = vpop.eup %7835  ;;  %3039 = vmatpush1.bf16.msra.mxu1 %v8105_v50  ;;  %v2953_v11 = vpop.f32.mrb[100].mxu0  ;;  %v8107_v50 = vld [vmem:[#allocation8 + $0x140] ss:$8 sps:$4 sm:$0xff]  }
 0x4b1   :  { %7845 = vpow2.f32 %v2043_v63  ;;  %v7838_v22 = vpop.eup %7837  ;;  %v2135_v43 = vadd.f32 %v10520_v12, %v10517_v36  ;;  %3040 = vmatprep.subr.bf16.mxu1 %v8106_v52  ;;  %v2955_v57 = vpop.f32.mrb[101].mxu0  ;;  %7362 = vmatpush1.bf16.xpose.msra.mxu0 %v10511_v20 }
 0x4b2   :  { %7847 = vrcp.f32 %v2080_v5  ;;  %v12934_v5 = vld [vmem:[#allocation108_spill] sm:$0xff]  ;;  %v2193_v39 = vmul.f32 %v7838_v22, %v12935_v13  ;;  %v2957_v10 = vpop.f32.mrb[102].mxu0 }
 0x4b3   :  { %7849 = vrcp.f32 %v2077_v31  ;;  %v2194_v19 = vmul.f32 %v7838_v22, %v12934_v5  ;;  %2136 = vadd.xlane.f32.xlu0 %v2135_v43  ;;  %v8108_v5 = vld [vmem:[#allocation8 + $0x154] ss:$8 sps:$4 sm:$0xff]   ;;  %v10533_v22 = vpack.c.bf16 %v2957_v10, %v2953_v11 }
 0x4b4   :  { %3041 = vmatpush1.bf16.msra.mxu1 %v8107_v50  ;;  %v2253_v52 = vpack.c.bf16 %v2195_v25, %v2193_v39  ;;  %v8109_v39 = vld [vmem:[#allocation8 + $0x150] ss:$8 sps:$4 sm:$0xff]  }
 0x4b5   :  { %v1864_v7 = vpop.xlane.xlu1 %1863  ;;  %3042 = vmatprep.subr.bf16.mxu1 %v8108_v5 }
 0x4b6   :  { %v1927_v54 = vsub.f32 %v10305_v47, %v1864_v7  ;;  %v1928_v63 = vsub.f32 %v10309_v51, %v1864_v7  ;;  %v2959_v47 = vpop.f32.mrb[103].mxu0  ;;  %v2254_v7 = vpack.c.bf16 %v2196_v14, %v2194_v19 }
 0x4b7   :  { %v1861_v31 = vpop.xlane.xlu0 %1860  ;;  %v10535_v43 = vpack.c.bf16 %v2959_v47, %v2955_v57  ;;  %v2963_v57 = vpop.f32.mrb[104].mxu0 }
 0x4b8   :  { %v2053_v8 = vmul.f32 1.442695, %v1927_v54  ;;  %v2055_v2 = vmul.f32 1.442695, %v1928_v63  ;;  %v1925_v15 = vsub.f32 %v10317_v6, %v1861_v31  ;;  %v1926_v41 = vsub.f32 %v10322_v40, %v1861_v31  ;;  %v10537_v13 = vpop.eup %7839  ;;  %2377 = vmatprep.mubr.bf16.mxu1 %v2254_v7  ;;  %3043 = vmatpush1.bf16.msra.mxu1 %v8109_v39  ;;  %v8112_v39 = vld [vmem:[#allocation8 + $0x174] ss:$8 sps:$4 sm:$0xff]  }
 0x4b9   :  { %v2086_v51 = vpop.xlane.xlu1 %2085  ;;  %v10539_v6 = vpop.eup %7841  ;;  %7364 = vmatprep.subr.bf16.mxu0 %v10535_v43  ;;  %2378 = vmatmul.mubr.bf16.gmra.mrb[72].mxu1 %v2253_v52 }
 0x4ba   :  { %7851 = vpow2.f32 %v2053_v8  ;;  %v2049_v54 = vmul.f32 1.442695, %v1925_v15  ;;  %v2051_v63 = vmul.f32 1.442695, %v1926_v41  ;;  %v10542_v14 = vpop.eup %7843  ;;  %v2144_v25 = vadd.f32 %v10539_v6, %v10537_v13  ;;  %v8110_v8 = vld [vmem:[#allocation8 + $0x164] ss:$8 sps:$4 sm:$0xff]   ;;  %7366 = vmatpush1.bf16.xpose.msra.mxu0 %v10533_v22 }
 0x4bb   :  { %7853 = vpow2.f32 %v2055_v2  ;;  %v2083_v40 = vpop.xlane.xlu0 %2082  ;;  %v10546_v11 = vpop.eup %7845  ;;  %3044 = vmatprep.subr.bf16.mxu1 %v8110_v8  ;;  %v8113_v8 = vld [vmem:[#allocation8 + $0x170] ss:$8 sps:$4 sm:$0xff]  }
 0x4bc   :  { %7855 = vpow2.f32 %v2049_v54  ;;  %v7848_v31 = vpop.eup %7847  ;;  %2145 = vadd.xlane.f32.xlu1 %v2144_v25  ;;  %v2141_v10 = vadd.f32 %v10546_v11, %v10542_v14  ;;  %v2965_v2 = vpop.f32.mrb[105].mxu0 }
 0x4bd   :  { %7857 = vpow2.f32 %v2051_v63  ;;  %v2092_v19 = vpop.xlane.xlu1 %2091  ;;  %v7850_v15 = vpop.eup %7849  ;;  %v2200_v41 = vmul.f32 %v7848_v31, %v10204_v46  ;;  %v2199_v47 = vmul.f32 %v7848_v31, %v10199_v53 }
 0x4be   :  { %7859 = vrcp.f32 %v2086_v51  ;;  %v2967_v7 = vpop.f32.mrb[106].mxu0  ;;  %2142 = vadd.xlane.f32.xlu0 %v2141_v10  ;;  %v2198_v51 = vmul.f32 %v7850_v15, %v10235_v59  ;;  %v2197_v52 = vmul.f32 %v7850_v15, %v10211_v56 }
 0x4bf   :  { %7861 = vrcp.f32 %v2083_v40  ;;  %v2089_v50 = vpop.xlane.xlu0 %2088  ;;  %v10555_v5 = vpack.c.bf16 %v2967_v7, %v2963_v57  ;;  %v2969_v54 = vpop.f32.mrb[107].mxu0  ;;  %v8111_v40 = vld [vmem:[#allocation8 + $0x160] ss:$8 sps:$4 sm:$0xff]  }
 0x4c0   :  { %7863 = vrcp.f32 %v2092_v19  ;;  %3045 = vmatpush1.bf16.msra.mxu1 %v8111_v40  ;;  %v10557_v46 = vpack.c.bf16 %v2969_v54, %v2965_v2  ;;  %v2256_v25 = vpack.c.bf16 %v2200_v41, %v2198_v51  ;;  %v2255_v53 = vpack.c.bf16 %v2199_v47, %v2197_v52  ;;  %v2973_v19 = vpop.f32.mrb[108].mxu0  ;;  %v8114_v41 = vld [vmem:[#allocation8 + $0x184] ss:$8 sps:$4 sm:$0xff]  }
 0x4c1   :  { %7865 = vrcp.f32 %v2089_v50  ;;  %v2098_v63 = vpop.xlane.xlu1 %2097  ;;  %3046 = vmatprep.subr.bf16.mxu1 %v8112_v39  ;;  %v2975_v2 = vpop.f32.mrb[109].mxu0 }
 0x4c2   :  { %7867 = vrcp.f32 %v2098_v63  ;;  %7368 = vmatprep.subr.bf16.mxu0 %v10557_v46  ;;  %2387 = vmatprep.mubr.bf16.mxu1 %v2256_v25  ;;  %v2977_v50 = vpop.f32.mrb[110].mxu0 }
 0x4c3   :  { %v2095_v31 = vpop.xlane.xlu0 %2094  ;;  %2388 = vmatmul.mubr.bf16.gmra.mrb[76].mxu1 %v2255_v53  ;;  %7370 = vmatpush1.bf16.xpose.msra.mxu0 %v10555_v5  ;;  %v10573_v51 = vpack.c.bf16 %v2977_v50, %v2973_v19  ;;  %v2979_v52 = vpop.f32.mrb[111].mxu0 }
 0x4c4   :  { %v10560_v59 = vpop.eup %7851  ;;  %7869 = vrcp.f32 %v2095_v31  ;;  %3047 = vmatpush1.bf16.msra.mxu1 %v8113_v8  ;;  %v10577_v53 = vpack.c.bf16 %v2979_v52, %v2975_v2 }
 0x4c5   :  { %v10562_v56 = vpop.eup %7853  ;;  %3048 = vmatprep.subr.bf16.mxu1 %v8114_v41  ;;  %v2104_v63 = vpop.xlane.xlu1 %2103  ;;  %v8115_v41 = vld [vmem:[#allocation8 + $0x180] ss:$8 sps:$4 sm:$0xff]  }
 0x4c6   :  { %v10564_v57 = vpop.eup %7855  ;;  %v2150_v10 = vadd.f32 %v10562_v56, %v10560_v59  ;;  %7372 = vmatprep.subr.bf16.mxu0 %v10577_v53  ;;  %7871 = vrcp.f32 %v2104_v63  ;;  %v2983_v52 = vpop.f32.mrb[112].mxu0 }
 0x4c7   :  { %12936 = vst [vmem:[#allocation44_spill] sm:$0xff] %v10564_v57  ;;  %v10568_v15 = vpop.eup %7857  ;;  %v2101_v8 = vpop.xlane.xlu0 %2100 }
 0x4c8   :  { %v7860_v47 = vpop.eup %7859  ;;  %2151 = vadd.xlane.f32.xlu1 %v2150_v10  ;;  %v2147_v7 = vadd.f32 %v10568_v15, %v10564_v57  ;;  %3049 = vmatpush1.bf16.msra.mxu1 %v8115_v41  ;;  %v8116_v57 = vld [vmem:[#allocation8 + $0x194] ss:$8 sps:$4 sm:$0xff]   ;;  %7873 = vrcp.f32 %v2101_v8  ;;  %v2985_v63 = vpop.f32.mrb[113].mxu0  ;;  %v8119_v41 = vld [vmem:[#allocation8 + $0x1a0] ss:$8 sps:$4 sm:$0xff]  }
 0x4c9   :  { %v7862_v54 = vpop.eup %7861  ;;  %v2204_v40 = vmul.f32 %v7860_v47, %v10284_v17  ;;  %v2203_v25 = vmul.f32 %v7860_v47, %v10280_v61  ;;  %3050 = vmatprep.subr.bf16.mxu1 %v8116_v57 }
 0x4ca   :  { %v7864_v39 = vpop.eup %7863  ;;  %2148 = vadd.xlane.f32.xlu0 %v2147_v7  ;;  %v2202_v31 = vmul.f32 %v7862_v54, %v10291_v38  ;;  %v2201_v10 = vmul.f32 %v7862_v54, %v10287_v33  ;;  %v8117_v33 = vld [vmem:[#allocation8 + $0x190] ss:$8 sps:$4 sm:$0xff]   ;;  %v8118_v54 = vld [vmem:[#allocation8 + $0x1a4] ss:$8 sps:$4 sm:$0xff]  }
 0x4cb   :  { %v7866_v19 = vpop.eup %7865  ;;  %v2208_v50 = vmul.f32 %v7864_v39, %v10335_v49  ;;  %v2207_v57 = vmul.f32 %v7864_v39, %v10327_v23  ;;  %7374 = vmatpush1.bf16.xpose.msra.mxu0 %v10573_v51  ;;  %v8120_v39 = vld [vmem:[#allocation8 + $0x1b4] ss:$8 sps:$4 sm:$0xff]  }
 0x4cc   :  { %v2258_v61 = vpack.c.bf16 %v2204_v40, %v2202_v31  ;;  %v2257_v17 = vpack.c.bf16 %v2203_v25, %v2201_v10  ;;  %v2206_v2 = vmul.f32 %v7866_v19, %v10343_v32  ;;  %v7868_v47 = vpop.eup %7867  ;;  %3051 = vmatpush1.bf16.msra.mxu1 %v8117_v33  ;;  %v2205_v49 = vmul.f32 %v7866_v19, %v10338_v0  ;;  %v2987_v25 = vpop.f32.mrb[114].mxu0 }
 0x4cd   :  { %3052 = vmatprep.subr.bf16.mxu1 %v8118_v54  ;;  %v2212_v32 = vmul.f32 %v7868_v47, %v10349_v24  ;;  %v2110_v31 = vpop.xlane.xlu1 %2109  ;;  %v2989_v8 = vpop.f32.mrb[115].mxu0 }
 0x4ce   :  { %v7870_v38 = vpop.eup %7869  ;;  %2397 = vmatprep.mubr.bf16.mxu1 %v2258_v61  ;;  %v2260_v7 = vpack.c.bf16 %v2208_v50, %v2206_v2  ;;  %v2107_v10 = vpop.xlane.xlu0 %2106  ;;  %v10589_v50 = vpack.c.bf16 %v2987_v25, %v2983_v52  ;;  %v10591_v0 = vpack.c.bf16 %v2989_v8, %v2985_v63  ;;  %v2259_v23 = vpack.c.bf16 %v2207_v57, %v2205_v49  ;;  %v8124_v25 = vld [vmem:[#allocation8 + $0x1d4] ss:$8 sps:$4 sm:$0xff]  }
 0x4cf   :  { %2398 = vmatmul.mubr.bf16.gmra.mrb[80].mxu1 %v2257_v17  ;;  %v2210_v40 = vmul.f32 %v7870_v38, %v10359_v34  ;;  %7875 = vrcp.f32 %v2110_v31  ;;  %v8121_v34 = vld [vmem:[#allocation8 + $0x1b0] ss:$8 sps:$4 sm:$0xff]   ;;  %v8122_v17 = vld [vmem:[#allocation8 + $0x1c4] ss:$8 sps:$4 sm:$0xff]   ;;  %v2993_v2 = vpop.f32.mrb[116].mxu0  ;;  %v2209_v33 = vmul.f32 %v7870_v38, %v10352_v58  ;;  %v2211_v52 = vmul.f32 %v7868_v47, %v10347_v35 }
 0x4d0   :  { %2407 = vmatprep.mubr.bf16.mxu1 %v2260_v7  ;;  %3053 = vmatpush1.bf16.msra.mxu1 %v8119_v41  ;;  %7877 = vrcp.f32 %v2107_v10  ;;  %v7872_v24 = vpop.eup %7871  ;;  %v2995_v49 = vpop.f32.mrb[117].mxu0  ;;  %v8125_v38 = vld [vmem:[#allocation8 + $0x1d0] ss:$8 sps:$4 sm:$0xff]   ;;  %v8126_v41 = vld [vmem:[#allocation8 + $0x1e4] ss:$8 sps:$4 sm:$0xff]  }
 0x4d1   :  { %3054 = vmatprep.subr.bf16.mxu1 %v8120_v39  ;;  %v2262_v19 = vpack.c.bf16 %v2212_v32, %v2210_v40  ;;  %7376 = vmatprep.subr.bf16.mxu0 %v10591_v0  ;;  %v2116_v7 = vpop.xlane.xlu1 %2115  ;;  %v2216_v63 = vmul.f32 %v7872_v24, %v10371_v1  ;;  %v8123_v40 = vld [vmem:[#allocation8 + $0x1c0] ss:$8 sps:$4 sm:$0xff]   ;;  %v2997_v32 = vpop.f32.mrb[118].mxu0  ;;  %v2261_v58 = vpack.c.bf16 %v2211_v52, %v2209_v33 }
 0x4d2   :  { %v7874_v61 = vpop.eup %7873  ;;  %v2113_v57 = vpop.xlane.xlu0 %2112  ;;  %v10599_v31 = vpack.c.bf16 %v2997_v32, %v2993_v2  ;;  %7879 = vrcp.f32 %v2116_v7 }
 0x4d3   :  { %7378 = vmatpush1.bf16.xpose.msra.mxu0 %v10589_v50  ;;  %v2214_v54 = vmul.f32 %v7874_v61, %v10377_v16  ;;  %v2999_v8 = vpop.f32.mrb[119].mxu0  ;;  %7881 = vrcp.f32 %v2113_v57  ;;  %v8127_v57 = vld [vmem:[#allocation8 + $0x1e0] ss:$8 sps:$4 sm:$0xff]  }
 0x4d4   :  { %3055 = vmatpush1.bf16.msra.mxu1 %v8121_v34  ;;  %v10601_v10 = vpack.c.bf16 %v2999_v8, %v2995_v49  ;;  %v2213_v34 = vmul.f32 %v7874_v61, %v10373_v27  ;;  %v8129_v61 = vld [vmem:[#allocation8 + $0x1f0] ss:$8 sps:$4 sm:$0xff]   ;;  %v12937_v8 = vld [vmem:[#allocation73_spill] sm:$0xff] }
 0x4d5   :  { %3056 = vmatprep.subr.bf16.mxu1 %v8122_v17  ;;  %v2264_v47 = vpack.c.bf16 %v2216_v63, %v2214_v54  ;;  %v3003_v1 = vpop.f32.mrb[120].mxu0  ;;  %v2215_v17 = vmul.f32 %v7872_v24, %v10369_v48  ;;  %v8128_v63 = vld [vmem:[#allocation8 + $0x1f4] ss:$8 sps:$4 sm:$0xff]  }
 0x4d6   :  { %7380 = vmatprep.subr.bf16.mxu0 %v10601_v10  ;;  %v2119_v33 = vpop.xlane.xlu0 %2118 }
 0x4d7   :  { %2408 = vmatmul.mubr.bf16.gmra.mrb[84].mxu1 %v2259_v23  ;;  %v3005_v23 = vpop.f32.mrb[121].mxu0  ;;  %v2263_v27 = vpack.c.bf16 %v2215_v17, %v2213_v34 }
 0x4d8   :  { %2417 = vmatprep.mubr.bf16.mxu1 %v2262_v19  ;;  %3057 = vmatpush1.bf16.msra.mxu1 %v8123_v40  ;;  %v3007_v39 = vpop.f32.mrb[122].mxu0  ;;  %v2122_v19 = vpop.xlane.xlu1 %2121 }
 0x4d9   :  { %3058 = vmatprep.subr.bf16.mxu1 %v8124_v25  ;;  %v7876_v35 = vpop.eup %7875  ;;  %v10607_v2 = vpack.c.bf16 %v3007_v39, %v3003_v1  ;;  %v3009_v7 = vpop.f32.mrb[123].mxu0  ;;  %7883 = vrcp.f32 %v2122_v19 }
 0x4da   :  { %v7878_v16 = vpop.eup %7877  ;;  %v2220_v49 = vmul.f32 %v7876_v35, %v10383_v42  ;;  %v10611_v54 = vpack.c.bf16 %v3009_v7, %v3005_v23  ;;  %7885 = vrcp.f32 %v2119_v33  ;;  %v2219_v32 = vmul.f32 %v7876_v35, %v10379_v28  ;;  %v12939_v35 = vld [vmem:[#allocation119_spill] sm:$0xff]  ;;  %v12940_v33 = vld [vmem:[#allocation72_spill] sm:$0xff] }
 0x4db   :  { %7382 = vmatpush1.bf16.xpose.msra.mxu0 %v10599_v31  ;;  %v2218_v52 = vmul.f32 %v7878_v16, %v10389_v9  ;;  %v2217_v9 = vmul.f32 %v7878_v16, %v10385_v30 }
 0x4dc   :  { %3059 = vmatpush1.bf16.msra.mxu1 %v8125_v38  ;;  %7384 = vmatprep.subr.bf16.mxu0 %v10611_v54  ;;  %v7880_v48 = vpop.eup %7879 }
 0x4dd   :  { %3060 = vmatprep.subr.bf16.mxu1 %v8126_v41  ;;  %v2266_v24 = vpack.c.bf16 %v2220_v49, %v2218_v52  ;;  %v7882_v40 = vpop.eup %7881  ;;  %v3013_v42 = vpop.f32.mrb[124].mxu0  ;;  %v2265_v19 = vpack.c.bf16 %v2219_v32, %v2217_v9  ;;  %v2223_v52 = vmul.f32 %v7880_v48, %v12940_v33  ;;  %v12951_v33 = vld [vmem:[#allocation149_spill] sm:$0xff] }
 0x4de   :  { %v3015_v25 = vpop.f32.mrb[125].mxu0  ;;  %v2221_v16 = vmul.f32 %v7882_v40, %v12939_v35  ;;  %v12949_v35 = vld [vmem:[#allocation78_spill] sm:$0xff] }
 0x4df   :  { %2418 = vmatmul.mubr.bf16.gmra.mrb[88].mxu1 %v2261_v58  ;;  %v2222_v58 = vmul.f32 %v7882_v40, %v12937_v8  ;;  %v3017_v1 = vpop.f32.mrb[126].mxu0  ;;  %v3226_v8 = vld [vmem:[#allocation10 + $0x2] sm:$0x3]  ;;  %v12943_v40 = vld [vmem:[#allocation74_spill] sm:$0xff] }
 0x4e0   :  { %2427 = vmatprep.mubr.bf16.mxu1 %v2264_v47  ;;  %3061 = vmatpush1.bf16.msra.mxu1 %v8127_v57  ;;  %v12938_v47 = vld [vmem:[#allocation118_spill] sm:$0xff]  ;;  %v10619_v41 = vpack.c.bf16 %v3017_v1, %v3013_v42  ;;  %v3019_v23 = vpop.f32.mrb[127].mxu0  ;;  %v2267_v32 = vpack.c.bf16 %v2223_v52, %v2221_v16  ;;  %v12950_v16 = vld [vmem:[#allocation77_spill] sm:$0xff] }
 0x4e1   :  { %3062 = vmatprep.subr.bf16.mxu1 %v8128_v63  ;;  %v2224_v38 = vmul.f32 %v7880_v48, %v12938_v47  ;;  %v10621_v39 = vpack.c.bf16 %v3019_v23, %v3015_v25  ;;  %v12941_v57 = vld [vmem:[#allocation126_spill] sm:$0xff]  ;;  %v12944_v48 = vld [vmem:[#allocation120_spill] sm:$0xff] }
 0x4e2   :  { %v12946_v23 = vld [vmem:[#allocation76_spill] sm:$0xff]  ;;  %v12954_v52 = vld [vmem:[#allocation150_spill] sm:$0xff] }
 0x4e3   :  { %7386 = vmatpush1.bf16.xpose.msra.mxu0 %v10607_v2  ;;  %v7884_v17 = vpop.eup %7883  ;;  %v2268_v7 = vpack.c.bf16 %v2224_v38, %v2222_v58  ;;  %v12945_v38 = vld [vmem:[#allocation81_spill] sm:$0xff] }
 0x4e4   :  { %3063 = vmatpush1.bf16.msra.mxu1 %v8129_v61  ;;  %7388 = vmatprep.subr.bf16.mxu0 %v10621_v39  ;;  %v7886_v30 = vpop.eup %7885  ;;  %v2227_v47 = vmul.f32 %v7884_v17, %v12944_v48  ;;  %v3235_v1 = vrot.slane %v3226_v8, %v12945_v38 }
 0x4e5   :  { %v2226_v63 = vmul.f32 %v7886_v30, %v12941_v57  ;;  %v2225_v58 = vmul.f32 %v7886_v30, %v12943_v40  ;;  %v12952_v30 = vld [vmem:[#allocation79_spill] sm:$0xff]  ;;  %v12956_v57 = vld [vmem:[#allocation152_spill] sm:$0xff] }
 0x4e6   :  { %3302 = vmatprep.mubr.f32.mxu0 %v3235_v1 }
 0x4e7   :  { %2428 = vmatmul.mubr.bf16.gmra.mrb[92].mxu1 %v2263_v27  ;;  %v12942_v27 = vld [vmem:[#allocation121_spill] sm:$0xff] }
 0x4e8   :  { %2437 = vmatprep.mubr.bf16.mxu1 %v2266_v24  ;;  %v2228_v24 = vmul.f32 %v7884_v17, %v12942_v27  ;;  %v12953_v17 = vld [vmem:[#allocation151_spill] sm:$0xff] }
 0x4e9   :  { %v3023_v34 = vpop.f32.mrb[128].mxu0 }
 0x4ea   :  { %v3025_v28 = vpop.f32.mrb[129].mxu0  ;;  %v2270_v25 = vpack.c.bf16 %v2228_v24, %v2226_v63  ;;  %v12959_v63 = vld [vmem:[#allocation60_spill] sm:$0xff] }
 0x4eb   :  { %7390 = vmatpush1.bf16.xpose.msra.mxu0 %v10619_v41  ;;  %v3027_v49 = vpop.f32.mrb[130].mxu0 }
 0x4ec   :  { %v10629_v61 = vpack.c.bf16 %v3027_v49, %v3023_v34  ;;  %v3029_v42 = vpop.f32.mrb[131].mxu0  ;;  %v12955_v49 = vld [vmem:[#allocation40_spill] sm:$0xff] }
 0x4ed   :  { %v7391_v9 = vpack.c.bf16 %v3029_v42, %v3025_v28  ;;  %v12948_v28 = vld [vmem:[#allocation75_spill] sm:$0xff] }
 0x4ef   :  { %2438 = vmatmul.mubr.bf16.gmra.mrb[96].mxu1 %v2265_v19  ;;  %7392 = vmatprep.subr.bf16.mxu0 %v7391_v9  ;;  %v12947_v19 = vld [vmem:[#allocation80_spill] sm:$0xff] }
 0x4f0   :  { %2447 = vmatprep.mubr.bf16.mxu1 %v2268_v7  ;;  %v3231_v34 = vrot.slane %v3226_v8, %v12947_v19  ;;  %v2269_v7 = vpack.c.bf16 %v2227_v47, %v2225_v58 }
 0x4f3   :  { %7394 = vmatpush1.bf16.xpose.msra.mxu0 %v10629_v61 }
 0x4f4   :  { %4367 = vmatprep.subr.bf16.mxu0 %v12946_v23 }
 0x4f7   :  { %2448 = vmatmul.mubr.bf16.gmra.mrb[100].mxu1 %v2267_v32 }
 0x4f8   :  { %2457 = vmatprep.mubr.bf16.mxu1 %v2270_v25 }
 0x4fa   :  { %3303 = vmatmul.mubr.f32.vlgmr.msra.gmra.mrb[66].mxu0 %v3231_v34 }
 0x4fb   :  { %4368 = vmatpush1.bf16.msra.mxu0 %v12948_v28 }
 0x4fc   :  { %4369 = vmatprep.subr.bf16.mxu0 %v12949_v35 }
 0x4ff   :  { %2458 = vmatmul.mubr.bf16.gmra.mrb[104].mxu1 %v2269_v7  ;;  %4370 = vmatpush1.bf16.msra.mxu0 %v12950_v16 }
 0x500   :  { %4371 = vmatprep.subr.bf16.mxu0 %v12951_v33  ;;  %v12960_v33 = vld [vmem:[#allocation44_spill] sm:$0xff] }
 0x503   :  { %4372 = vmatpush1.bf16.msra.mxu0 %v12952_v30 }
 0x504   :  { %4373 = vmatprep.subr.bf16.mxu0 %v12953_v17 }
 0x507   :  { %4374 = vmatpush1.bf16.msra.mxu0 %v12954_v52  ;;  %v12963_v52 = vld [vmem:[#allocation31_spill] sm:$0xff] }
 0x508   :  { %4375 = vmatprep.subr.bf16.mxu0 %v12955_v49  ;;  %v2313_v49 = vld [vmem:[#allocation13] sm:$0x3] }
 0x50b   :  { %4376 = vmatpush1.bf16.msra.mxu0 %v12956_v57  ;;  %v12965_v57 = vld [vmem:[#allocation35_spill] sm:$0xff] }
 0x50c   :  { %4377 = vmatprep.subr.bf16.mxu0 %v10475_v26 }
 0x50f   :  { %4378 = vmatpush1.bf16.msra.mxu0 %v10467_v60 }
 0x510   :  { %4379 = vmatprep.subr.bf16.mxu0 %v10489_v44 }
 0x513   :  { %4380 = vmatpush1.bf16.msra.mxu0 %v10487_v18 }
 0x514   :  { %4381 = vmatprep.subr.bf16.mxu0 %v10515_v4 }
 0x517   :  { %4382 = vmatpush1.bf16.msra.mxu0 %v10511_v20  ;;  %v12957_v20 = vld [vmem:[#allocation46_spill] sm:$0xff] }
 0x518   :  { %4383 = vmatprep.subr.bf16.mxu0 %v10535_v43 }
 0x51b   :  { %4384 = vmatpush1.bf16.msra.mxu0 %v10533_v22  ;;  %v12958_v22 = vld [vmem:[#allocation42_spill] sm:$0xff] }
 0x51c   :  { %4385 = vmatprep.subr.bf16.mxu0 %v10557_v46 }
 0x51f   :  { %4386 = vmatpush1.bf16.msra.mxu0 %v10555_v5  ;;  %v2128_v26 = vpop.xlane.xlu1 %2127 }
 0x520   :  { %4387 = vmatprep.subr.bf16.mxu0 %v10577_v53  ;;  %7887 = vrcp.f32 %v2128_v26 }
 0x523   :  { %4388 = vmatpush1.bf16.msra.mxu0 %v10573_v51 }
 0x524   :  { %4389 = vmatprep.subr.bf16.mxu0 %v10591_v0 }
 0x525   :  { %v2125_v60 = vpop.xlane.xlu0 %2124 }
 0x526   :  { %7889 = vrcp.f32 %v2125_v60 }
 0x527   :  { %4390 = vmatpush1.bf16.msra.mxu0 %v10589_v50 }
 0x528   :  { %4391 = vmatprep.subr.bf16.mxu0 %v10601_v10 }
 0x52a   :  { %v7888_v44 = vpop.eup %7887 }
 0x52b   :  { %4392 = vmatpush1.bf16.msra.mxu0 %v10599_v31  ;;  %v2134_v18 = vpop.xlane.xlu1 %2133  ;;  %v2232_v4 = vmul.f32 %v7888_v44, %v12957_v20  ;;  %v2231_v43 = vmul.f32 %v7888_v44, %v12958_v22 }
 0x52c   :  { %4393 = vmatprep.subr.bf16.mxu0 %v10611_v54  ;;  %7891 = vrcp.f32 %v2134_v18 }
 0x52f   :  { %4394 = vmatpush1.bf16.msra.mxu0 %v10607_v2 }
 0x530   :  { %4395 = vmatprep.subr.bf16.mxu0 %v10621_v39  ;;  %v7890_v5 = vpop.eup %7889 }
 0x531   :  { %v2230_v51 = vmul.f32 %v7890_v5, %v10463_v62  ;;  %v2229_v53 = vmul.f32 %v7890_v5, %v10460_v55 }
 0x533   :  { %4396 = vmatpush1.bf16.msra.mxu0 %v10619_v41  ;;  %v2131_v46 = vpop.xlane.xlu0 %2130  ;;  %v2272_v50 = vpack.c.bf16 %v2232_v4, %v2230_v51  ;;  %v2271_v0 = vpack.c.bf16 %v2231_v43, %v2229_v53  ;;  %v12966_v51 = vld [vmem:[#allocation37_spill] sm:$0xff] }
 0x534   :  { %4397 = vmatprep.subr.bf16.mxu0 %v7391_v9  ;;  %7893 = vrcp.f32 %v2131_v46 }
 0x535   :  { %2467 = vmatprep.mubr.bf16.mxu1 %v2272_v50 }
 0x536   :  { %2468 = vmatmul.mubr.bf16.gmra.mrb[108].mxu1 %v2271_v0  ;;  %v7892_v10 = vpop.eup %7891 }
 0x537   :  { %4398 = vmatpush1.bf16.msra.mxu0 %v10629_v61  ;;  %v2236_v54 = vmul.f32 %v7892_v10, %v10480_v45  ;;  %v2235_v41 = vmul.f32 %v7892_v10, %v10477_v37 }
 0x539   :  { %v2140_v31 = vpop.xlane.xlu1 %2139 }
 0x53a   :  { %7895 = vrcp.f32 %v2140_v31  ;;  %v12968_v31 = vld [vmem:[#allocation39_spill] sm:$0xff] }
 0x53e   :  { %v7894_v39 = vpop.eup %7893 }
 0x53f   :  { %v2234_v62 = vmul.f32 %v7894_v39, %v10493_v21  ;;  %v2233_v55 = vmul.f32 %v7894_v39, %v12959_v63  ;;  %v12970_v63 = vld [vmem:[#allocation41_spill] sm:$0xff] }
 0x540   :  { %v2137_v2 = vpop.xlane.xlu0 %2136 }
 0x541   :  { %7897 = vrcp.f32 %v2137_v2  ;;  %v2274_v27 = vpack.c.bf16 %v2236_v54, %v2234_v62  ;;  %v2273_v24 = vpack.c.bf16 %v2235_v41, %v2233_v55 }
 0x543   :  { %2477 = vmatprep.mubr.bf16.mxu1 %v2274_v27 }
 0x544   :  { %v7896_v61 = vpop.eup %7895  ;;  %2478 = vmatmul.mubr.bf16.gmra.mrb[112].mxu1 %v2273_v24 }
 0x545   :  { %v2240_v32 = vmul.f32 %v7896_v61, %v10509_v3  ;;  %v2239_v45 = vmul.f32 %v7896_v61, %v10506_v29  ;;  %v12971_v61 = vld [vmem:[#allocation43_spill] sm:$0xff] }
 0x549   :  { %v2146_v42 = vpop.xlane.xlu1 %2145 }
 0x54a   :  { %7899 = vrcp.f32 %v2146_v42 }
 0x54b   :  { %v2143_v9 = vpop.xlane.xlu0 %2142  ;;  %v7898_v25 = vpop.eup %7897 }
 0x54c   :  { %7901 = vrcp.f32 %v2143_v9  ;;  %v2238_v37 = vmul.f32 %v7898_v25, %v10520_v12  ;;  %v2237_v21 = vmul.f32 %v7898_v25, %v10517_v36 }
 0x54e   :  { %v2276_v8 = vpack.c.bf16 %v2240_v32, %v2238_v37  ;;  %v2275_v40 = vpack.c.bf16 %v2239_v45, %v2237_v21 }
 0x550   :  { %2487 = vmatprep.mubr.bf16.mxu1 %v2276_v8 }
 0x551   :  { %2488 = vmatmul.mubr.bf16.gmra.mrb[116].mxu1 %v2275_v40  ;;  %v12974_v40 = vld [vmem:[#allocation45_spill] sm:$0xff] }
 0x554   :  { %v7900_v48 = vpop.eup %7899 }
 0x555   :  { %v2152_v58 = vpop.xlane.xlu1 %2151  ;;  %v2244_v1 = vmul.f32 %v7900_v48, %v10539_v6  ;;  %v2243_v23 = vmul.f32 %v7900_v48, %v10537_v13 }
 0x556   :  { %7903 = vrcp.f32 %v2152_v58  ;;  %v7902_v3 = vpop.eup %7901 }
 0x557   :  { %v2149_v47 = vpop.xlane.xlu0 %2148  ;;  %v2242_v29 = vmul.f32 %v7902_v3, %v10546_v11  ;;  %v2241_v12 = vmul.f32 %v7902_v3, %v10542_v14  ;;  %v12961_v11 = vld [vmem:[#allocation27_spill] sm:$0xff]  ;;  %v12962_v14 = vld [vmem:[#allocation29_spill] sm:$0xff] }
 0x558   :  { %7905 = vrcp.f32 %v2149_v47 }
 0x559   :  { %v2278_v34 = vpack.c.bf16 %v2244_v1, %v2242_v29  ;;  %v2277_v36 = vpack.c.bf16 %v2243_v23, %v2241_v12  ;;  %v12975_v1 = vld [vmem:[#allocation47_spill] sm:$0xff] }
 0x55b   :  { %2497 = vmatprep.mubr.bf16.mxu1 %v2278_v34 }
 0x55c   :  { %2498 = vmatmul.mubr.bf16.gmra.mrb[120].mxu1 %v2277_v36 }
 0x560   :  { %v7904_v7 = vpop.eup %7903 }
 0x561   :  { %v2248_v28 = vmul.f32 %v7904_v7, %v10562_v56  ;;  %v2247_v35 = vmul.f32 %v7904_v7, %v10560_v59  ;;  %v10691_v56 = vrot.slane %v2313_v49, %v12947_v19  ;;  %v10694_v59 = vrot.slane %v2313_v49, %v12945_v38 }
 0x562   :  { %v7906_v16 = vpop.eup %7905 }
 0x563   :  { %v2246_v6 = vmul.f32 %v7906_v16, %v10568_v15  ;;  %v2245_v13 = vmul.f32 %v7906_v16, %v12960_v33  ;;  %v12964_v15 = vld [vmem:[#allocation33_spill] sm:$0xff] }
 0x565   :  { %v2280_v30 = vpack.c.bf16 %v2248_v28, %v2246_v6  ;;  %v2279_v17 = vpack.c.bf16 %v2247_v35, %v2245_v13  ;;  %v12978_v6 = vld [vmem:[#allocation49_spill] sm:$0xff] }
 0x567   :  { %2507 = vmatprep.mubr.bf16.mxu1 %v2280_v30  ;;  %v12979_v30 = vld [vmem:[#allocation51_spill] sm:$0xff] }
 0x568   :  { %2508 = vmatmul.mubr.bf16.gmra.mrb[124].mxu1 %v2279_v17 }
 0x569   :  { %3064 = vmatprep.mubr.bf16.mxu1 %v12961_v11 }
 0x570   :  { %3065 = vmatmul.mubr.bf16.vlgmr.msra.gmra.mrb[128].mxu1 %v12962_v14  ;;  %v2359_v26 = vpop.f32.mrb[64].mxu1 }
 0x571   :  { %3074 = vmatprep.mubr.bf16.mxu1 %v12963_v52  ;;  %v2360_v60 = vadd.f32 %v2359_v26, %v10691_v56  ;;  %v2361_v18 = vpop.f32.mrb[65].mxu1 }
 0x572   :  { %v2362_v44 = vadd.f32 %v2361_v18, %v10694_v59  ;;  %v2363_v20 = vpop.f32.mrb[66].mxu1 }
 0x573   :  { %v2364_v4 = vadd.f32 %v2363_v20, %v10691_v56  ;;  %v2365_v22 = vpop.f32.mrb[67].mxu1  ;;  %v2518_v5 = vmax.f32 %v2360_v60, 0.0  ;;  %v12982_v20 = vld [vmem:[#allocation53_spill] sm:$0xff] }
 0x574   :  { %v2366_v43 = vadd.f32 %v2365_v22, %v10694_v59  ;;  %v2519_v53 = vmax.f32 %v2362_v44, 0.0 }
 0x575   :  { %v2520_v46 = vmax.f32 %v2364_v4, 0.0  ;;  %v12983_v4 = vld [vmem:[#allocation55_spill] sm:$0xff] }
 0x576   :  { %v2521_v50 = vmax.f32 %v2366_v43, 0.0 }
 0x577   :  { %v10703_v0 = vpack.c.bf16 %v2520_v46, %v2518_v5 }
 0x578   :  { %3075 = vmatmul.mubr.bf16.gmra.mrb[132].mxu1 %v12964_v15  ;;  %v10706_v10 = vpack.c.bf16 %v2521_v50, %v2519_v53 }
 0x579   :  { %3084 = vmatprep.mubr.bf16.mxu1 %v12965_v57  ;;  %12967 = vst [vmem:[#allocation52_spill] sm:$0xff] %v10703_v0 }
 0x57a   :  { %12969 = vst [vmem:[#allocation54_spill] sm:$0xff] %v10706_v10 }
 0x580   :  { %3085 = vmatmul.mubr.bf16.gmra.mrb[136].mxu1 %v12966_v51 }
 0x581   :  { %3094 = vmatprep.mubr.bf16.mxu1 %v12968_v31 }
 0x582   :  { %v2369_v2 = vpop.f32.mrb[68].mxu1 }
 0x583   :  { %v2370_v54 = vadd.f32 %v2369_v2, %v10691_v56  ;;  %v2371_v41 = vpop.f32.mrb[69].mxu1 }
 0x584   :  { %v2372_v39 = vadd.f32 %v2371_v41, %v10694_v59  ;;  %v2373_v62 = vpop.f32.mrb[70].mxu1 }
 0x585   :  { %v2374_v55 = vadd.f32 %v2373_v62, %v10691_v56  ;;  %v2375_v27 = vpop.f32.mrb[71].mxu1  ;;  %v2522_v42 = vmax.f32 %v2370_v54, 0.0  ;;  %v12984_v62 = vld [vmem:[#allocation57_spill] sm:$0xff] }
 0x586   :  { %v2376_v24 = vadd.f32 %v2375_v27, %v10694_v59  ;;  %v2523_v32 = vmax.f32 %v2372_v39, 0.0 }
 0x587   :  { %v2524_v9 = vmax.f32 %v2374_v55, 0.0  ;;  %v12986_v55 = vld [vmem:[#allocation59_spill] sm:$0xff] }
 0x588   :  { %3095 = vmatmul.mubr.bf16.gmra.mrb[140].mxu1 %v12970_v63  ;;  %v2525_v45 = vmax.f32 %v2376_v24, 0.0 }
 0x589   :  { %3104 = vmatprep.mubr.bf16.mxu1 %v12971_v61  ;;  %v10714_v25 = vpack.c.bf16 %v2524_v9, %v2522_v42 }
 0x58a   :  { %v10716_v37 = vpack.c.bf16 %v2525_v45, %v2523_v32 }
 0x58b   :  { %12972 = vst [vmem:[#allocation56_spill] sm:$0xff] %v10714_v25 }
 0x58c   :  { %12973 = vst [vmem:[#allocation102_spill] sm:$0xff] %v10716_v37  ;;  %v2379_v21 = vpop.f32.mrb[72].mxu1 }
 0x58d   :  { %v2380_v8 = vadd.f32 %v2379_v21, %v10691_v56  ;;  %v2381_v58 = vpop.f32.mrb[73].mxu1 }
 0x58e   :  { %v2382_v48 = vadd.f32 %v2381_v58, %v10694_v59  ;;  %v2383_v47 = vpop.f32.mrb[74].mxu1 }
 0x58f   :  { %v2384_v23 = vadd.f32 %v2383_v47, %v10691_v56  ;;  %v2385_v3 = vpop.f32.mrb[75].mxu1  ;;  %v2526_v12 = vmax.f32 %v2380_v8, 0.0 }
 0x590   :  { %3105 = vmatmul.mubr.bf16.gmra.mrb[144].mxu1 %v12974_v40  ;;  %v2386_v29 = vadd.f32 %v2385_v3, %v10694_v59  ;;  %v2527_v36 = vmax.f32 %v2382_v48, 0.0  ;;  %v12990_v3 = vld [vmem:[#allocation63_spill] sm:$0xff] }
 0x591   :  { %3114 = vmatprep.mubr.bf16.mxu1 %v12975_v1  ;;  %v2528_v34 = vmax.f32 %v2384_v23, 0.0  ;;  %v12988_v1 = vld [vmem:[#allocation61_spill] sm:$0xff] }
 0x592   :  { %v2529_v7 = vmax.f32 %v2386_v29, 0.0 }
 0x593   :  { %v10724_v28 = vpack.c.bf16 %v2528_v34, %v2526_v12 }
 0x594   :  { %v10726_v35 = vpack.c.bf16 %v2529_v7, %v2527_v36 }
 0x595   :  { %12976 = vst [vmem:[#allocation108_spill] sm:$0xff] %v10724_v28  ;;  %v13101_v28 = vld [vmem:[#allocation148_spill] sm:$0xff] }
 0x596   :  { %12977 = vst [vmem:[#allocation70_spill] sm:$0xff] %v10726_v35  ;;  %v2389_v16 = vpop.f32.mrb[76].mxu1 }
 0x597   :  { %v2390_v33 = vadd.f32 %v2389_v16, %v10691_v56  ;;  %v2391_v13 = vpop.f32.mrb[77].mxu1 }
 0x598   :  { %3115 = vmatmul.mubr.bf16.gmra.mrb[148].mxu1 %v12978_v6  ;;  %v2392_v17 = vadd.f32 %v2391_v13, %v10694_v59  ;;  %v2393_v11 = vpop.f32.mrb[78].mxu1 }
 0x599   :  { %3124 = vmatprep.mubr.bf16.mxu1 %v12979_v30  ;;  %v2394_v14 = vadd.f32 %v2393_v11, %v10691_v56  ;;  %v2395_v52 = vpop.f32.mrb[79].mxu1  ;;  %v2530_v15 = vmax.f32 %v2390_v33, 0.0 }
 0x59a   :  { %v2396_v49 = vadd.f32 %v2395_v52, %v10694_v59  ;;  %v2531_v26 = vmax.f32 %v2392_v17, 0.0  ;;  %v12992_v52 = vld [vmem:[#allocation65_spill] sm:$0xff] }
 0x59b   :  { %v2532_v57 = vmax.f32 %v2394_v14, 0.0 }
 0x59c   :  { %v2533_v60 = vmax.f32 %v2396_v49, 0.0 }
 0x59d   :  { %v10734_v18 = vpack.c.bf16 %v2532_v57, %v2530_v15  ;;  %v12994_v15 = vld [vmem:[#allocation67_spill] sm:$0xff] }
 0x59e   :  { %v10736_v44 = vpack.c.bf16 %v2533_v60, %v2531_v26 }
 0x59f   :  { %12980 = vst [vmem:[#allocation73_spill] sm:$0xff] %v10734_v18 }
 0x5a0   :  { %12981 = vst [vmem:[#allocation118_spill] sm:$0xff] %v10736_v44  ;;  %3125 = vmatmul.mubr.bf16.gmra.mrb[152].mxu1 %v12982_v20 }
 0x5a1   :  { %3134 = vmatprep.mubr.bf16.mxu1 %v12983_v4 }
 0x5a2   :  { %v2399_v22 = vpop.f32.mrb[80].mxu1 }
 0x5a3   :  { %v2400_v43 = vadd.f32 %v2399_v22, %v10691_v56  ;;  %v2401_v5 = vpop.f32.mrb[81].mxu1 }
 0x5a4   :  { %v2402_v46 = vadd.f32 %v2401_v5, %v10694_v59  ;;  %v2403_v51 = vpop.f32.mrb[82].mxu1 }
 0x5a5   :  { %v2404_v53 = vadd.f32 %v2403_v51, %v10691_v56  ;;  %v2405_v50 = vpop.f32.mrb[83].mxu1  ;;  %v2534_v2 = vmax.f32 %v2400_v43, 0.0 }
 0x5a6   :  { %v2406_v31 = vadd.f32 %v2405_v50, %v10694_v59  ;;  %v2535_v41 = vmax.f32 %v2402_v46, 0.0 }
 0x5a7   :  { %v2536_v54 = vmax.f32 %v2404_v53, 0.0 }
 0x5a8   :  { %v2537_v39 = vmax.f32 %v2406_v31, 0.0  ;;  %3135 = vmatmul.mubr.bf16.gmra.mrb[156].mxu1 %v12984_v62 }
 0x5a9   :  { %v10745_v63 = vpack.c.bf16 %v2536_v54, %v2534_v2  ;;  %3144 = vmatprep.mubr.bf16.mxu1 %v12986_v55  ;;  %v12996_v2 = vld [vmem:[#allocation69_spill] sm:$0xff] }
 0x5aa   :  { %v10748_v27 = vpack.c.bf16 %v2537_v39, %v2535_v41  ;;  %v2409_v24 = vpop.f32.mrb[84].mxu1  ;;  %v12998_v41 = vld [vmem:[#allocation82_spill] sm:$0xff] }
 0x5ab   :  { %12985 = vst [vmem:[#allocation119_spill] sm:$0xff] %v10745_v63  ;;  %v2410_v61 = vadd.f32 %v2409_v24, %v10691_v56  ;;  %v2411_v42 = vpop.f32.mrb[85].mxu1  ;;  %v13093_v63 = vld [vmem:[#allocation144_spill] sm:$0xff] }
 0x5ac   :  { %12987 = vst [vmem:[#allocation72_spill] sm:$0xff] %v10748_v27  ;;  %v2412_v9 = vadd.f32 %v2411_v42, %v10694_v59  ;;  %v2413_v32 = vpop.f32.mrb[86].mxu1 }
 0x5ad   :  { %v2414_v45 = vadd.f32 %v2413_v32, %v10691_v56  ;;  %v2415_v21 = vpop.f32.mrb[87].mxu1  ;;  %v2538_v40 = vmax.f32 %v2410_v61, 0.0 }
 0x5ae   :  { %v2416_v8 = vadd.f32 %v2415_v21, %v10694_v59  ;;  %v2539_v48 = vmax.f32 %v2412_v9, 0.0 }
 0x5af   :  { %v2540_v58 = vmax.f32 %v2414_v45, 0.0 }
 0x5b0   :  { %v2541_v47 = vmax.f32 %v2416_v8, 0.0  ;;  %3145 = vmatmul.mubr.bf16.gmra.mrb[160].mxu1 %v12988_v1  ;;  %v13002_v1 = vld [vmem:[#allocation84_spill] sm:$0xff] }
 0x5b1   :  { %v10755_v23 = vpack.c.bf16 %v2540_v58, %v2538_v40  ;;  %3154 = vmatprep.mubr.bf16.mxu1 %v12990_v3 }
 0x5b2   :  { %v10758_v29 = vpack.c.bf16 %v2541_v47, %v2539_v48  ;;  %v2419_v12 = vpop.f32.mrb[88].mxu1  ;;  %v13000_v48 = vld [vmem:[#allocation83_spill] sm:$0xff] }
 0x5b3   :  { %12989 = vst [vmem:[#allocation126_spill] sm:$0xff] %v10755_v23  ;;  %v2420_v34 = vadd.f32 %v2419_v12, %v10691_v56  ;;  %v2421_v36 = vpop.f32.mrb[89].mxu1 }
 0x5b4   :  { %12991 = vst [vmem:[#allocation121_spill] sm:$0xff] %v10758_v29  ;;  %v2422_v7 = vadd.f32 %v2421_v36, %v10694_v59  ;;  %v2423_v16 = vpop.f32.mrb[90].mxu1 }
 0x5b5   :  { %v2424_v6 = vadd.f32 %v2423_v16, %v10691_v56  ;;  %v2425_v33 = vpop.f32.mrb[91].mxu1  ;;  %v2542_v30 = vmax.f32 %v2420_v34, 0.0 }
 0x5b6   :  { %v2426_v13 = vadd.f32 %v2425_v33, %v10694_v59  ;;  %v2543_v11 = vmax.f32 %v2422_v7, 0.0 }
 0x5b7   :  { %v2544_v17 = vmax.f32 %v2424_v6, 0.0 }
 0x5b8   :  { %v2545_v14 = vmax.f32 %v2426_v13, 0.0  ;;  %3155 = vmatmul.mubr.bf16.gmra.mrb[164].mxu1 %v12992_v52  ;;  %v13004_v52 = vld [vmem:[#allocation85_spill] sm:$0xff] }
 0x5b9   :  { %v10765_v49 = vpack.c.bf16 %v2544_v17, %v2542_v30  ;;  %3164 = vmatprep.mubr.bf16.mxu1 %v12994_v15 }
 0x5ba   :  { %v10768_v57 = vpack.c.bf16 %v2545_v14, %v2543_v11  ;;  %v2429_v26 = vpop.f32.mrb[92].mxu1 }
 0x5bb   :  { %12993 = vst [vmem:[#allocation74_spill] sm:$0xff] %v10765_v49  ;;  %v2430_v60 = vadd.f32 %v2429_v26, %v10691_v56  ;;  %v2431_v20 = vpop.f32.mrb[93].mxu1  ;;  %v13006_v26 = vld [vmem:[#allocation86_spill] sm:$0xff] }
 0x5bc   :  { %12995 = vst [vmem:[#allocation120_spill] sm:$0xff] %v10768_v57  ;;  %v2432_v4 = vadd.f32 %v2431_v20, %v10694_v59  ;;  %v2433_v22 = vpop.f32.mrb[94].mxu1 }
 0x5bd   :  { %v2434_v43 = vadd.f32 %v2433_v22, %v10691_v56  ;;  %v2435_v5 = vpop.f32.mrb[95].mxu1  ;;  %v2546_v51 = vmax.f32 %v2430_v60, 0.0 }
 0x5be   :  { %v2436_v46 = vadd.f32 %v2435_v5, %v10694_v59  ;;  %v2547_v50 = vmax.f32 %v2432_v4, 0.0 }
 0x5bf   :  { %v2548_v53 = vmax.f32 %v2434_v43, 0.0 }
 0x5c0   :  { %v2549_v31 = vmax.f32 %v2436_v46, 0.0  ;;  %3165 = vmatmul.mubr.bf16.gmra.mrb[168].mxu1 %v12996_v2 }
 0x5c1   :  { %v10775_v54 = vpack.c.bf16 %v2548_v53, %v2546_v51  ;;  %3174 = vmatprep.mubr.bf16.mxu1 %v12998_v41 }
 0x5c2   :  { %v10778_v39 = vpack.c.bf16 %v2549_v31, %v2547_v50  ;;  %v2439_v62 = vpop.f32.mrb[96].mxu1 }
 0x5c3   :  { %12997 = vst [vmem:[#allocation76_spill] sm:$0xff] %v10775_v54  ;;  %v2440_v55 = vadd.f32 %v2439_v62, %v10691_v56  ;;  %v2441_v24 = vpop.f32.mrb[97].mxu1  ;;  %v13008_v62 = vld [vmem:[#allocation87_spill] sm:$0xff] }
 0x5c4   :  { %12999 = vst [vmem:[#allocation75_spill] sm:$0xff] %v10778_v39  ;;  %v2442_v61 = vadd.f32 %v2441_v24, %v10694_v59  ;;  %v2443_v42 = vpop.f32.mrb[98].mxu1  ;;  %v13010_v24 = vld [vmem:[#allocation88_spill] sm:$0xff] }
 0x5c5   :  { %v2444_v9 = vadd.f32 %v2443_v42, %v10691_v56  ;;  %v2445_v32 = vpop.f32.mrb[99].mxu1  ;;  %v2550_v21 = vmax.f32 %v2440_v55, 0.0  ;;  %v13012_v42 = vld [vmem:[#allocation89_spill] sm:$0xff] }
 0x5c6   :  { %v2446_v45 = vadd.f32 %v2445_v32, %v10694_v59  ;;  %v2551_v40 = vmax.f32 %v2442_v61, 0.0  ;;  %v13014_v32 = vld [vmem:[#allocation91_spill] sm:$0xff] }
 0x5c7   :  { %v2552_v8 = vmax.f32 %v2444_v9, 0.0  ;;  %v13013_v9 = vld [vmem:[#allocation90_spill] sm:$0xff] }
 0x5c8   :  { %v2553_v58 = vmax.f32 %v2446_v45, 0.0  ;;  %3175 = vmatmul.mubr.bf16.gmra.mrb[172].mxu1 %v13000_v48 }
 0x5c9   :  { %v10785_v47 = vpack.c.bf16 %v2552_v8, %v2550_v21  ;;  %3184 = vmatprep.mubr.bf16.mxu1 %v13002_v1 }
 0x5ca   :  { %v10788_v3 = vpack.c.bf16 %v2553_v58, %v2551_v40  ;;  %v2449_v12 = vpop.f32.mrb[100].mxu1 }
 0x5cb   :  { %13001 = vst [vmem:[#allocation78_spill] sm:$0xff] %v10785_v47  ;;  %v2450_v34 = vadd.f32 %v2449_v12, %v10691_v56  ;;  %v2451_v36 = vpop.f32.mrb[101].mxu1  ;;  %v13079_v47 = vld [vmem:[#allocation138_spill] sm:$0xff] }
 0x5cc   :  { %13003 = vst [vmem:[#allocation77_spill] sm:$0xff] %v10788_v3  ;;  %v2452_v7 = vadd.f32 %v2451_v36, %v10694_v59  ;;  %v2453_v16 = vpop.f32.mrb[102].mxu1 }
 0x5cd   :  { %v2454_v6 = vadd.f32 %v2453_v16, %v10691_v56  ;;  %v2455_v33 = vpop.f32.mrb[103].mxu1  ;;  %v2554_v30 = vmax.f32 %v2450_v34, 0.0 }
 0x5ce   :  { %v2456_v13 = vadd.f32 %v2455_v33, %v10694_v59  ;;  %v2555_v11 = vmax.f32 %v2452_v7, 0.0  ;;  %v10819_v33 = vpop.f32.mrb[66].mxu0 }
 0x5cf   :  { %v2556_v17 = vmax.f32 %v2454_v6, 0.0 }
 0x5d0   :  { %v2557_v14 = vmax.f32 %v2456_v13, 0.0  ;;  %3185 = vmatmul.mubr.bf16.gmra.mrb[176].mxu1 %v13004_v52 }
 0x5d1   :  { %v10795_v15 = vpack.c.bf16 %v2556_v17, %v2554_v30  ;;  %3194 = vmatprep.mubr.bf16.mxu1 %v13006_v26  ;;  %v10823_v30 = vpop.f32.mrb[67].mxu0 }
 0x5d2   :  { %v10798_v60 = vpack.c.bf16 %v2557_v14, %v2555_v11  ;;  %v2459_v20 = vpop.f32.mrb[104].mxu1 }
 0x5d3   :  { %13005 = vst [vmem:[#allocation149_spill] sm:$0xff] %v10795_v15  ;;  %v2460_v4 = vadd.f32 %v2459_v20, %v10691_v56  ;;  %v2461_v22 = vpop.f32.mrb[105].mxu1 }
 0x5d4   :  { %13007 = vst [vmem:[#allocation79_spill] sm:$0xff] %v10798_v60  ;;  %v2462_v43 = vadd.f32 %v2461_v22, %v10694_v59  ;;  %v2463_v5 = vpop.f32.mrb[106].mxu1 }
 0x5d5   :  { %v2464_v46 = vadd.f32 %v2463_v5, %v10691_v56  ;;  %v2465_v51 = vpop.f32.mrb[107].mxu1  ;;  %v2558_v50 = vmax.f32 %v2460_v4, 0.0 }
 0x5d6   :  { %v2466_v53 = vadd.f32 %v2465_v51, %v10694_v59  ;;  %v2559_v2 = vmax.f32 %v2462_v43, 0.0 }
 0x5d7   :  { %v2560_v31 = vmax.f32 %v2464_v46, 0.0 }
 0x5d8   :  { %v2561_v41 = vmax.f32 %v2466_v53, 0.0  ;;  %3195 = vmatmul.mubr.bf16.gmra.mrb[180].mxu1 %v13008_v62 }
 0x5d9   :  { %v10805_v55 = vpack.c.bf16 %v2560_v31, %v2558_v50  ;;  %3204 = vmatprep.mubr.bf16.mxu1 %v13010_v24 }
 0x5da   :  { %v10808_v61 = vpack.c.bf16 %v2561_v41, %v2559_v2 }
 0x5db   :  { %13009 = vst [vmem:[#allocation151_spill] sm:$0xff] %v10805_v55 }
 0x5dc   :  { %13011 = vst [vmem:[#allocation150_spill] sm:$0xff] %v10808_v61 }
 0x5e0   :  { %3205 = vmatmul.mubr.bf16.gmra.mrb[184].mxu1 %v13012_v42 }
 0x5e1   :  { %3214 = vmatprep.mubr.bf16.mxu1 %v13013_v9 }
 0x5e8   :  { %3215 = vmatmul.mubr.bf16.gmra.mrb[188].mxu1 %v13014_v32 }
 0x609   :  { %v2469_v45 = vpop.f32.mrb[108].mxu1 }
 0x60a   :  { %v2470_v21 = vadd.f32 %v2469_v45, %v10691_v56  ;;  %v2471_v8 = vpop.f32.mrb[109].mxu1 }
 0x60b   :  { %v2472_v40 = vadd.f32 %v2471_v8, %v10694_v59  ;;  %v2473_v58 = vpop.f32.mrb[110].mxu1 }
 0x60c   :  { %v2474_v48 = vadd.f32 %v2473_v58, %v10691_v56  ;;  %v2475_v1 = vpop.f32.mrb[111].mxu1  ;;  %v2562_v34 = vmax.f32 %v2470_v21, 0.0 }
 0x60d   :  { %v2476_v12 = vadd.f32 %v2475_v1, %v10694_v59  ;;  %v2563_v7 = vmax.f32 %v2472_v40, 0.0 }
 0x60e   :  { %v2564_v36 = vmax.f32 %v2474_v48, 0.0 }
 0x60f   :  { %v2565_v16 = vmax.f32 %v2476_v12, 0.0 }
 0x610   :  { %v10817_v6 = vpack.c.bf16 %v2564_v36, %v2562_v34 }
 0x611   :  { %v10821_v13 = vpack.c.bf16 %v2565_v16, %v2563_v7 }
 0x612   :  { %13015 = vst [vmem:[#allocation40_spill] sm:$0xff] %v10817_v6  ;;  %v13066_v6 = vld [vmem:[#allocation130_spill] sm:$0xff] }
 0x613   :  { %13016 = vst [vmem:[#allocation152_spill] sm:$0xff] %v10821_v13 }
 0x617   :  { %v2479_v17 = vpop.f32.mrb[112].mxu1 }
 0x618   :  { %v2480_v11 = vadd.f32 %v2479_v17, %v10691_v56  ;;  %v2481_v14 = vpop.f32.mrb[113].mxu1 }
 0x619   :  { %v2482_v52 = vadd.f32 %v2481_v14, %v10694_v59  ;;  %v2483_v26 = vpop.f32.mrb[114].mxu1 }
 0x61a   :  { %v2484_v20 = vadd.f32 %v2483_v26, %v10691_v56  ;;  %v2485_v4 = vpop.f32.mrb[115].mxu1  ;;  %v2566_v43 = vmax.f32 %v2480_v11, 0.0 }
 0x61b   :  { %v2486_v22 = vadd.f32 %v2485_v4, %v10694_v59  ;;  %v2567_v46 = vmax.f32 %v2482_v52, 0.0 }
 0x61c   :  { %v2568_v5 = vmax.f32 %v2484_v20, 0.0 }
 0x61d   :  { %v2569_v51 = vmax.f32 %v2486_v22, 0.0 }
 0x61e   :  { %v10829_v53 = vpack.c.bf16 %v2568_v5, %v2566_v43 }
 0x61f   :  { %v10831_v50 = vpack.c.bf16 %v2569_v51, %v2567_v46  ;;  %v3310_v51 = vld [vmem:[#allocation11 + $0x2] sm:$0x3] }
 0x620   :  { %13017 = vst [vmem:[#allocation46_spill] sm:$0xff] %v10829_v53  ;;  %v13058_v53 = vld [vmem:[#allocation125_spill] sm:$0xff] }
 0x621   :  { %13018 = vst [vmem:[#allocation42_spill] sm:$0xff] %v10831_v50 }
 0x624   :  { %v2489_v31 = vpop.f32.mrb[116].mxu1 }
 0x625   :  { %v2490_v2 = vadd.f32 %v2489_v31, %v10691_v56  ;;  %v2491_v41 = vpop.f32.mrb[117].mxu1 }
 0x626   :  { %v2492_v62 = vadd.f32 %v2491_v41, %v10694_v59  ;;  %v2493_v24 = vpop.f32.mrb[118].mxu1 }
 0x627   :  { %v2494_v42 = vadd.f32 %v2493_v24, %v10691_v56  ;;  %v2495_v9 = vpop.f32.mrb[119].mxu1  ;;  %v2570_v45 = vmax.f32 %v2490_v2, 0.0 }
 0x628   :  { %v2496_v32 = vadd.f32 %v2495_v9, %v10694_v59  ;;  %v2571_v8 = vmax.f32 %v2492_v62, 0.0 }
 0x629   :  { %v2572_v21 = vmax.f32 %v2494_v42, 0.0  ;;  %v10854_v42 = vrot.slane %v3310_v51, %v12947_v19 }
 0x62a   :  { %v2573_v40 = vmax.f32 %v2496_v32, 0.0 }
 0x62b   :  { %v10837_v58 = vpack.c.bf16 %v2572_v21, %v2570_v45  ;;  %v10857_v45 = vrot.slane %v3310_v51, %v12945_v38 }
 0x62c   :  { %v10839_v48 = vpack.c.bf16 %v2573_v40, %v2571_v8 }
 0x62d   :  { %13019 = vst [vmem:[#allocation60_spill] sm:$0xff] %v10837_v58  ;;  %v13050_v58 = vld [vmem:[#allocation117_spill] sm:$0xff] }
 0x62e   :  { %13020 = vst [vmem:[#allocation44_spill] sm:$0xff] %v10839_v48 }
 0x62f   :  { %v2499_v1 = vpop.f32.mrb[120].mxu1 }
 0x630   :  { %v2500_v12 = vadd.f32 %v2499_v1, %v10691_v56  ;;  %v2501_v34 = vpop.f32.mrb[121].mxu1 }
 0x631   :  { %v2502_v36 = vadd.f32 %v2501_v34, %v10694_v59  ;;  %v2503_v7 = vpop.f32.mrb[122].mxu1 }
 0x632   :  { %v2504_v16 = vadd.f32 %v2503_v7, %v10691_v56  ;;  %v2505_v17 = vpop.f32.mrb[123].mxu1  ;;  %v2574_v14 = vmax.f32 %v2500_v12, 0.0 }
 0x633   :  { %v2506_v11 = vadd.f32 %v2505_v17, %v10694_v59  ;;  %v2575_v26 = vmax.f32 %v2502_v36, 0.0 }
 0x634   :  { %v2576_v52 = vmax.f32 %v2504_v16, 0.0 }
 0x635   :  { %v2577_v20 = vmax.f32 %v2506_v11, 0.0 }
 0x636   :  { %v10845_v4 = vpack.c.bf16 %v2576_v52, %v2574_v14 }
 0x637   :  { %v10847_v22 = vpack.c.bf16 %v2577_v20, %v2575_v26 }
 0x638   :  { %13021 = vst [vmem:[#allocation27_spill] sm:$0xff] %v10845_v4  ;;  %v13042_v4 = vld [vmem:[#allocation110_spill] sm:$0xff] }
 0x639   :  { %13022 = vst [vmem:[#allocation29_spill] sm:$0xff] %v10847_v22 }
 0x63b   :  { %v2509_v43 = vpop.f32.mrb[124].mxu1 }
 0x63c   :  { %v2510_v5 = vadd.f32 %v2509_v43, %v10691_v56  ;;  %v2511_v46 = vpop.f32.mrb[125].mxu1 }
 0x63d   :  { %v2512_v31 = vadd.f32 %v2511_v46, %v10694_v59  ;;  %v2513_v2 = vpop.f32.mrb[126].mxu1 }
 0x63e   :  { %v2514_v41 = vadd.f32 %v2513_v2, %v10691_v56  ;;  %v2515_v62 = vpop.f32.mrb[127].mxu1  ;;  %v2578_v9 = vmax.f32 %v2510_v5, 0.0 }
 0x63f   :  { %v2516_v24 = vadd.f32 %v2515_v62, %v10694_v59  ;;  %v2579_v21 = vmax.f32 %v2512_v31, 0.0 }
 0x640   :  { %v2580_v32 = vmax.f32 %v2514_v41, 0.0 }
 0x641   :  { %v2581_v8 = vmax.f32 %v2516_v24, 0.0 }
 0x642   :  { %v10859_v40 = vpack.c.bf16 %v2580_v32, %v2578_v9 }
 0x643   :  { %v10861_v1 = vpack.c.bf16 %v2581_v8, %v2579_v21  ;;  %v3066_v12 = vpop.f32.mrb[128].mxu1 }
 0x644   :  { %13023 = vst [vmem:[#allocation31_spill] sm:$0xff] %v10859_v40  ;;  %v3322_v56 = vmul.f32 %v10854_v42, %v3066_v12  ;;  %v3068_v34 = vpop.f32.mrb[129].mxu1  ;;  %v13034_v40 = vld [vmem:[#allocation101_spill] sm:$0xff] }
 0x645   :  { %13024 = vst [vmem:[#allocation33_spill] sm:$0xff] %v10861_v1  ;;  %v3323_v59 = vmul.f32 %v10857_v45, %v3068_v34  ;;  %v3070_v36 = vpop.f32.mrb[130].mxu1 }
 0x646   :  { %v3324_v7 = vmul.f32 %v10854_v42, %v3070_v36  ;;  %v3072_v16 = vpop.f32.mrb[131].mxu1 }
 0x647   :  { %v3325_v17 = vmul.f32 %v10857_v45, %v3072_v16  ;;  %v3386_v11 = vadd.f32 %v3323_v59, %v3322_v56 }
 0x649   :  { %3387 = vadd.xlane.f32.xlu0 %v3386_v11  ;;  %v3389_v14 = vadd.f32 %v3325_v17, %v3324_v7 }
 0x64b   :  { %3390 = vadd.xlane.f32.xlu1 %v3389_v14  ;;  %v3076_v52 = vpop.f32.mrb[132].mxu1 }
 0x64c   :  { %v3326_v26 = vmul.f32 %v10854_v42, %v3076_v52  ;;  %v3078_v20 = vpop.f32.mrb[133].mxu1 }
 0x64d   :  { %v3327_v43 = vmul.f32 %v10857_v45, %v3078_v20  ;;  %v3080_v5 = vpop.f32.mrb[134].mxu1 }
 0x64e   :  { %v3328_v46 = vmul.f32 %v10854_v42, %v3080_v5  ;;  %v3082_v51 = vpop.f32.mrb[135].mxu1 }
 0x64f   :  { %v3392_v31 = vadd.f32 %v3327_v43, %v3326_v26  ;;  %v3329_v2 = vmul.f32 %v10857_v45, %v3082_v51 }
 0x651   :  { %v3395_v41 = vadd.f32 %v3329_v2, %v3328_v46  ;;  %3393 = vadd.xlane.f32.xlu0 %v3392_v31 }
 0x653   :  { %3396 = vadd.xlane.f32.xlu1 %v3395_v41  ;;  %v3086_v62 = vpop.f32.mrb[136].mxu1 }
 0x654   :  { %v3330_v24 = vmul.f32 %v10854_v42, %v3086_v62  ;;  %v3088_v9 = vpop.f32.mrb[137].mxu1 }
 0x655   :  { %v3331_v32 = vmul.f32 %v10857_v45, %v3088_v9  ;;  %v3090_v21 = vpop.f32.mrb[138].mxu1 }
 0x656   :  { %v3332_v8 = vmul.f32 %v10854_v42, %v3090_v21  ;;  %v3092_v12 = vpop.f32.mrb[139].mxu1 }
 0x657   :  { %v3398_v56 = vadd.f32 %v3331_v32, %v3330_v24  ;;  %v3333_v34 = vmul.f32 %v10857_v45, %v3092_v12 }
 0x659   :  { %v3401_v59 = vadd.f32 %v3333_v34, %v3332_v8  ;;  %3399 = vadd.xlane.f32.xlu0 %v3398_v56 }
 0x65b   :  { %3402 = vadd.xlane.f32.xlu1 %v3401_v59  ;;  %v3096_v36 = vpop.f32.mrb[140].mxu1 }
 0x65c   :  { %v3334_v7 = vmul.f32 %v10854_v42, %v3096_v36  ;;  %v3098_v16 = vpop.f32.mrb[141].mxu1 }
 0x65d   :  { %v3335_v17 = vmul.f32 %v10857_v45, %v3098_v16  ;;  %v3100_v11 = vpop.f32.mrb[142].mxu1 }
 0x65e   :  { %v3336_v14 = vmul.f32 %v10854_v42, %v3100_v11  ;;  %v3102_v52 = vpop.f32.mrb[143].mxu1 }
 0x65f   :  { %v3404_v26 = vadd.f32 %v3335_v17, %v3334_v7  ;;  %v3337_v20 = vmul.f32 %v10857_v45, %v3102_v52 }
 0x661   :  { %v3407_v43 = vadd.f32 %v3337_v20, %v3336_v14  ;;  %3405 = vadd.xlane.f32.xlu0 %v3404_v26 }
 0x663   :  { %3408 = vadd.xlane.f32.xlu1 %v3407_v43  ;;  %v3106_v5 = vpop.f32.mrb[144].mxu1 }
 0x664   :  { %v3338_v46 = vmul.f32 %v10854_v42, %v3106_v5  ;;  %v3108_v51 = vpop.f32.mrb[145].mxu1 }
 0x665   :  { %v3339_v31 = vmul.f32 %v10857_v45, %v3108_v51  ;;  %v3110_v2 = vpop.f32.mrb[146].mxu1 }
 0x666   :  { %v3340_v41 = vmul.f32 %v10854_v42, %v3110_v2  ;;  %v3112_v62 = vpop.f32.mrb[147].mxu1 }
 0x667   :  { %v3410_v24 = vadd.f32 %v3339_v31, %v3338_v46  ;;  %v3341_v9 = vmul.f32 %v10857_v45, %v3112_v62 }
 0x669   :  { %v3413_v32 = vadd.f32 %v3341_v9, %v3340_v41  ;;  %3411 = vadd.xlane.f32.xlu0 %v3410_v24 }
 0x66b   :  { %3414 = vadd.xlane.f32.xlu1 %v3413_v32  ;;  %v3116_v21 = vpop.f32.mrb[148].mxu1 }
 0x66c   :  { %v3342_v8 = vmul.f32 %v10854_v42, %v3116_v21  ;;  %v3118_v12 = vpop.f32.mrb[149].mxu1 }
 0x66d   :  { %v3343_v56 = vmul.f32 %v10857_v45, %v3118_v12  ;;  %v3120_v34 = vpop.f32.mrb[150].mxu1 }
 0x66e   :  { %v3344_v59 = vmul.f32 %v10854_v42, %v3120_v34  ;;  %v3122_v36 = vpop.f32.mrb[151].mxu1 }
 0x66f   :  { %v3416_v7 = vadd.f32 %v3343_v56, %v3342_v8  ;;  %v3345_v16 = vmul.f32 %v10857_v45, %v3122_v36 }
 0x671   :  { %v3419_v17 = vadd.f32 %v3345_v16, %v3344_v59  ;;  %3417 = vadd.xlane.f32.xlu0 %v3416_v7 }
 0x673   :  { %3420 = vadd.xlane.f32.xlu1 %v3419_v17  ;;  %v3126_v11 = vpop.f32.mrb[152].mxu1 }
 0x674   :  { %v3346_v14 = vmul.f32 %v10854_v42, %v3126_v11  ;;  %v3128_v52 = vpop.f32.mrb[153].mxu1 }
 0x675   :  { %v3347_v26 = vmul.f32 %v10857_v45, %v3128_v52  ;;  %v3130_v20 = vpop.f32.mrb[154].mxu1 }
 0x676   :  { %v3348_v43 = vmul.f32 %v10854_v42, %v3130_v20  ;;  %v3132_v5 = vpop.f32.mrb[155].mxu1 }
 0x677   :  { %v3422_v46 = vadd.f32 %v3347_v26, %v3346_v14  ;;  %v3349_v51 = vmul.f32 %v10857_v45, %v3132_v5 }
 0x679   :  { %v3425_v31 = vadd.f32 %v3349_v51, %v3348_v43  ;;  %3423 = vadd.xlane.f32.xlu0 %v3422_v46 }
 0x67b   :  { %3426 = vadd.xlane.f32.xlu1 %v3425_v31  ;;  %v3136_v2 = vpop.f32.mrb[156].mxu1 }
 0x67c   :  { %v3350_v41 = vmul.f32 %v10854_v42, %v3136_v2  ;;  %v3138_v62 = vpop.f32.mrb[157].mxu1 }
 0x67d   :  { %v3351_v24 = vmul.f32 %v10857_v45, %v3138_v62  ;;  %v3140_v9 = vpop.f32.mrb[158].mxu1 }
 0x67e   :  { %v3352_v32 = vmul.f32 %v10854_v42, %v3140_v9  ;;  %v3142_v21 = vpop.f32.mrb[159].mxu1 }
 0x67f   :  { %v3428_v8 = vadd.f32 %v3351_v24, %v3350_v41  ;;  %v3353_v12 = vmul.f32 %v10857_v45, %v3142_v21 }
 0x681   :  { %v3431_v56 = vadd.f32 %v3353_v12, %v3352_v32  ;;  %3429 = vadd.xlane.f32.xlu0 %v3428_v8 }
 0x683   :  { %3432 = vadd.xlane.f32.xlu1 %v3431_v56  ;;  %v3146_v34 = vpop.f32.mrb[160].mxu1 }
 0x684   :  { %v3354_v59 = vmul.f32 %v10854_v42, %v3146_v34  ;;  %v3148_v36 = vpop.f32.mrb[161].mxu1 }
 0x685   :  { %v3355_v7 = vmul.f32 %v10857_v45, %v3148_v36  ;;  %v3150_v16 = vpop.f32.mrb[162].mxu1 }
 0x686   :  { %v3356_v17 = vmul.f32 %v10854_v42, %v3150_v16  ;;  %v3152_v11 = vpop.f32.mrb[163].mxu1 }
 0x687   :  { %v3434_v14 = vadd.f32 %v3355_v7, %v3354_v59  ;;  %v3357_v52 = vmul.f32 %v10857_v45, %v3152_v11 }
 0x689   :  { %v3437_v26 = vadd.f32 %v3357_v52, %v3356_v17  ;;  %3435 = vadd.xlane.f32.xlu0 %v3434_v14 }
 0x68b   :  { %3438 = vadd.xlane.f32.xlu1 %v3437_v26  ;;  %v3156_v20 = vpop.f32.mrb[164].mxu1 }
 0x68c   :  { %v3358_v43 = vmul.f32 %v10854_v42, %v3156_v20  ;;  %v3158_v5 = vpop.f32.mrb[165].mxu1 }
 0x68d   :  { %v3359_v46 = vmul.f32 %v10857_v45, %v3158_v5  ;;  %v3160_v51 = vpop.f32.mrb[166].mxu1 }
 0x68e   :  { %v3360_v31 = vmul.f32 %v10854_v42, %v3160_v51  ;;  %v3162_v2 = vpop.f32.mrb[167].mxu1 }
 0x68f   :  { %v3440_v41 = vadd.f32 %v3359_v46, %v3358_v43  ;;  %v3361_v62 = vmul.f32 %v10857_v45, %v3162_v2 }
 0x691   :  { %v3443_v24 = vadd.f32 %v3361_v62, %v3360_v31  ;;  %3441 = vadd.xlane.f32.xlu0 %v3440_v41 }
 0x693   :  { %3444 = vadd.xlane.f32.xlu1 %v3443_v24  ;;  %v3166_v9 = vpop.f32.mrb[168].mxu1 }
 0x694   :  { %v3362_v32 = vmul.f32 %v10854_v42, %v3166_v9  ;;  %v3168_v21 = vpop.f32.mrb[169].mxu1 }
 0x695   :  { %v3363_v8 = vmul.f32 %v10857_v45, %v3168_v21  ;;  %v3170_v12 = vpop.f32.mrb[170].mxu1 }
 0x696   :  { %v3364_v56 = vmul.f32 %v10854_v42, %v3170_v12  ;;  %v3172_v34 = vpop.f32.mrb[171].mxu1 }
 0x697   :  { %v3446_v59 = vadd.f32 %v3363_v8, %v3362_v32  ;;  %v3365_v36 = vmul.f32 %v10857_v45, %v3172_v34 }
 0x699   :  { %v3449_v7 = vadd.f32 %v3365_v36, %v3364_v56  ;;  %3447 = vadd.xlane.f32.xlu0 %v3446_v59 }
 0x69b   :  { %3450 = vadd.xlane.f32.xlu1 %v3449_v7  ;;  %v3176_v16 = vpop.f32.mrb[172].mxu1 }
 0x69c   :  { %v3366_v17 = vmul.f32 %v10854_v42, %v3176_v16  ;;  %v3178_v11 = vpop.f32.mrb[173].mxu1 }
 0x69d   :  { %v3367_v14 = vmul.f32 %v10857_v45, %v3178_v11  ;;  %v3180_v52 = vpop.f32.mrb[174].mxu1 }
 0x69e   :  { %v3368_v26 = vmul.f32 %v10854_v42, %v3180_v52  ;;  %v3182_v20 = vpop.f32.mrb[175].mxu1 }
 0x69f   :  { %v10910_v43 = vadd.f32 %v3367_v14, %v3366_v17  ;;  %v3369_v5 = vmul.f32 %v10857_v45, %v3182_v20 }
 0x6a1   :  { %v10913_v46 = vadd.f32 %v3369_v5, %v3368_v26 }
 0x6a3   :  { %v3186_v51 = vpop.f32.mrb[176].mxu1 }
 0x6a4   :  { %v3370_v31 = vmul.f32 %v10854_v42, %v3186_v51  ;;  %v3188_v2 = vpop.f32.mrb[177].mxu1 }
 0x6a5   :  { %v3371_v41 = vmul.f32 %v10857_v45, %v3188_v2  ;;  %v3190_v62 = vpop.f32.mrb[178].mxu1 }
 0x6a6   :  { %v3372_v24 = vmul.f32 %v10854_v42, %v3190_v62  ;;  %v3192_v9 = vpop.f32.mrb[179].mxu1 }
 0x6a7   :  { %v10918_v32 = vadd.f32 %v3371_v41, %v3370_v31  ;;  %v3373_v21 = vmul.f32 %v10857_v45, %v3192_v9 }
 0x6a9   :  { %v10921_v8 = vadd.f32 %v3373_v21, %v3372_v24 }
 0x6ab   :  { %v3196_v12 = vpop.f32.mrb[180].mxu1 }
 0x6ac   :  { %v3374_v56 = vmul.f32 %v10854_v42, %v3196_v12  ;;  %v3198_v34 = vpop.f32.mrb[181].mxu1 }
 0x6ad   :  { %v3375_v59 = vmul.f32 %v10857_v45, %v3198_v34  ;;  %v3200_v36 = vpop.f32.mrb[182].mxu1 }
 0x6ae   :  { %v3376_v7 = vmul.f32 %v10854_v42, %v3200_v36  ;;  %v3202_v16 = vpop.f32.mrb[183].mxu1 }
 0x6af   :  { %v10926_v17 = vadd.f32 %v3375_v59, %v3374_v56  ;;  %v3377_v11 = vmul.f32 %v10857_v45, %v3202_v16 }
 0x6b1   :  { %v10929_v14 = vadd.f32 %v3377_v11, %v3376_v7 }
 0x6b3   :  { %v3206_v52 = vpop.f32.mrb[184].mxu1 }
 0x6b4   :  { %v3378_v26 = vmul.f32 %v10854_v42, %v3206_v52  ;;  %v3208_v20 = vpop.f32.mrb[185].mxu1  ;;  %v10949_v52 = vrot.slane %v10819_v33, %v12947_v19 }
 0x6b5   :  { %v3379_v5 = vmul.f32 %v10857_v45, %v3208_v20  ;;  %v3210_v51 = vpop.f32.mrb[186].mxu1 }
 0x6b6   :  { %v3380_v31 = vmul.f32 %v10854_v42, %v3210_v51  ;;  %v3212_v2 = vpop.f32.mrb[187].mxu1 }
 0x6b7   :  { %v10934_v41 = vadd.f32 %v3379_v5, %v3378_v26  ;;  %v3381_v62 = vmul.f32 %v10857_v45, %v3212_v2  ;;  %v10953_v26 = vrot.slane %v10823_v30, %v12947_v19  ;;  %v13109_v19 = vld [vmem:[#allocation34_spill] sm:$0xff] }
 0x6b9   :  { %v10937_v24 = vadd.f32 %v3381_v62, %v3380_v31 }
 0x6bb   :  { %v3216_v9 = vpop.f32.mrb[188].mxu1 }
 0x6bc   :  { %v3382_v21 = vmul.f32 %v10854_v42, %v3216_v9  ;;  %v3218_v12 = vpop.f32.mrb[189].mxu1 }
 0x6bd   :  { %v3383_v56 = vmul.f32 %v10857_v45, %v3218_v12  ;;  %v3220_v34 = vpop.f32.mrb[190].mxu1 }
 0x6be   :  { %v3384_v59 = vmul.f32 %v10854_v42, %v3220_v34  ;;  %v3222_v36 = vpop.f32.mrb[191].mxu1  ;;  %v13026_v34 = vld [vmem:[#allocation97_spill] sm:$0xff] }
 0x6bf   :  { %v10942_v7 = vadd.f32 %v3383_v56, %v3382_v21  ;;  %v3385_v16 = vmul.f32 %v10857_v45, %v3222_v36  ;;  %vm13027_vm13 = vnez %v13026_v34 }
 0x6c1   :  { %v10945_v11 = vadd.f32 %v3385_v16, %v3384_v59 }
 0x6d6   :  { %v3388_v20 = vpop.xlane.xlu0 %3387 }
 0x6d7   :  { %v3490_v5 = vadd.f32 %v10949_v52, %v3388_v20  ;;  %v3491_v42 = vadd.f32 %v10953_v26, %v3388_v20 }
 0x6d8   :  { %v3391_v51 = vpop.xlane.xlu1 %3390 }
 0x6d9   :  { %vm3554_vm10 = vcmp.ge.f32.partialorder %v3490_v5, 0.0  ;;  %vm3555_vm6 = vcmp.ge.f32.partialorder %v3491_v42, 0.0  ;;  %v3618_v31 = vmul.f32 0.2, %v3490_v5  ;;  %v3619_v45 = vmul.f32 0.2, %v3491_v42 }
 0x6da   :  { %v3492_v2 = vadd.f32 %v10949_v52, %v3391_v51  ;;  %v3493_v62 = vadd.f32 %v10953_v26, %v3391_v51 }
 0x6db   :  { %v3682_v33 = vsel %vm3554_vm10, %v3490_v5, %v3618_v31  ;;  %v3683_v9 = vsel %vm3555_vm6, %v3491_v42, %v3619_v45  ;;  %v13028_v31 = vld [vmem:[#allocation94_spill] sm:$0xff] }
 0x6dc   :  { %vm3556_vm15 = vcmp.ge.f32.partialorder %v3492_v2, 0.0  ;;  %vm3557_vm12 = vcmp.ge.f32.partialorder %v3493_v62, 0.0  ;;  %v3620_v30 = vmul.f32 0.2, %v3492_v2  ;;  %v3621_v21 = vmul.f32 0.2, %v3493_v62 }
 0x6dd   :  { %v10961_v56 = vsel %vm9061_vm5, %v3682_v33, -1e+30  ;;  %v10965_v59 = vsel %vm13027_vm13, %v3683_v9, -1e+30  ;;  %vm13029_vm10 = vnez %v13028_v31  ;;  %v13030_v33 = vld [vmem:[#allocation95_spill] sm:$0xff] }
 0x6de   :  { %v3394_v36 = vpop.xlane.xlu0 %3393  ;;  %v3810_v16 = vmax.f32 %v10961_v56, %v10965_v59  ;;  %v3684_v20 = vsel %vm3556_vm15, %v3492_v2, %v3620_v30  ;;  %v3685_v51 = vsel %vm3557_vm12, %v3493_v62, %v3621_v21  ;;  %vm13031_vm5 = vnez %v13030_v33 }
 0x6df   :  { %v3494_v5 = vadd.f32 %v10949_v52, %v3394_v36  ;;  %v3495_v42 = vadd.f32 %v10953_v26, %v3394_v36  ;;  %v10973_v45 = vsel %vm13029_vm10, %v3684_v20, -1e+30  ;;  %v10977_v12 = vsel %vm13031_vm5, %v3685_v51, -1e+30 }
 0x6e0   :  { %3811 = vmax.xlane.f32.xlu0 %v3810_v16  ;;  %v3397_v9 = vpop.xlane.xlu1 %3396  ;;  %v3813_v34 = vmax.f32 %v10973_v45, %v10977_v12  ;;  %v13032_v16 = vld [vmem:[#allocation100_spill] sm:$0xff]  ;;  %vm13035_vm5 = vnez %v13034_v40 }
 0x6e1   :  { %vm3558_vm13 = vcmp.ge.f32.partialorder %v3494_v5, 0.0  ;;  %vm3559_vm6 = vcmp.ge.f32.partialorder %v3495_v42, 0.0  ;;  %v3622_v2 = vmul.f32 0.2, %v3494_v5  ;;  %v3623_v62 = vmul.f32 0.2, %v3495_v42 }
 0x6e2   :  { %v3496_v30 = vadd.f32 %v10949_v52, %v3397_v9  ;;  %v3497_v21 = vadd.f32 %v10953_v26, %v3397_v9  ;;  %3814 = vmax.xlane.f32.xlu1 %v3813_v34  ;;  %vm13033_vm10 = vnez %v13032_v16  ;;  %v13038_v16 = vld [vmem:[#allocation99_spill] sm:$0xff] }
 0x6e3   :  { %v3686_v36 = vsel %vm3558_vm13, %v3494_v5, %v3622_v2  ;;  %v3687_v20 = vsel %vm3559_vm6, %v3495_v42, %v3623_v62  ;;  %v13036_v62 = vld [vmem:[#allocation98_spill] sm:$0xff]  ;;  %vm13039_vm6 = vnez %v13038_v16 }
 0x6e4   :  { %vm3560_vm15 = vcmp.ge.f32.partialorder %v3496_v30, 0.0  ;;  %vm3561_vm12 = vcmp.ge.f32.partialorder %v3497_v21, 0.0  ;;  %v3624_v51 = vmul.f32 0.2, %v3496_v30  ;;  %v3625_v31 = vmul.f32 0.2, %v3497_v21  ;;  %3453 = vadd.xlane.f32.xlu0 %v10910_v43 }
 0x6e5   :  { %v10986_v33 = vsel %vm13033_vm10, %v3686_v36, -1e+30  ;;  %v10990_v1 = vsel %vm13035_vm5, %v3687_v20, -1e+30  ;;  %vm13037_vm13 = vnez %v13036_v62 }
 0x6e6   :  { %3456 = vadd.xlane.f32.xlu1 %v10913_v46  ;;  %v3400_v9 = vpop.xlane.xlu0 %3399  ;;  %v3816_v5 = vmax.f32 %v10986_v33, %v10990_v1  ;;  %v3688_v42 = vsel %vm3560_vm15, %v3496_v30, %v3624_v51  ;;  %v3689_v34 = vsel %vm3561_vm12, %v3497_v21, %v3625_v31 }
 0x6e7   :  { %v3498_v2 = vadd.f32 %v10949_v52, %v3400_v9  ;;  %v3499_v43 = vadd.f32 %v10953_v26, %v3400_v9  ;;  %v10999_v36 = vsel %vm13037_vm13, %v3688_v42, -1e+30  ;;  %v11003_v40 = vsel %vm13039_vm6, %v3689_v34, -1e+30 }
 0x6e8   :  { %3817 = vmax.xlane.f32.xlu0 %v3816_v5  ;;  %v3403_v46 = vpop.xlane.xlu1 %3402  ;;  %v3819_v20 = vmax.f32 %v10999_v36, %v11003_v40  ;;  %v13040_v5 = vld [vmem:[#allocation109_spill] sm:$0xff]  ;;  %vm13043_vm6 = vnez %v13042_v4 }
 0x6e9   :  { %vm3562_vm10 = vcmp.ge.f32.partialorder %v3498_v2, 0.0  ;;  %vm3563_vm15 = vcmp.ge.f32.partialorder %v3499_v43, 0.0  ;;  %v3626_v30 = vmul.f32 0.2, %v3498_v2  ;;  %v3627_v21 = vmul.f32 0.2, %v3499_v43 }
 0x6ea   :  { %v3500_v51 = vadd.f32 %v10949_v52, %v3403_v46  ;;  %v3501_v31 = vadd.f32 %v10953_v26, %v3403_v46  ;;  %3820 = vmax.xlane.f32.xlu1 %v3819_v20  ;;  %vm13041_vm13 = vnez %v13040_v5  ;;  %v13046_v5 = vld [vmem:[#allocation107_spill] sm:$0xff] }
 0x6eb   :  { %v3690_v9 = vsel %vm3562_vm10, %v3498_v2, %v3626_v30  ;;  %v3691_v42 = vsel %vm3563_vm15, %v3499_v43, %v3627_v21  ;;  %v13044_v21 = vld [vmem:[#allocation106_spill] sm:$0xff]  ;;  %vm13047_vm15 = vnez %v13046_v5 }
 0x6ec   :  { %vm3564_vm12 = vcmp.ge.f32.partialorder %v3500_v51, 0.0  ;;  %vm3565_vm5 = vcmp.ge.f32.partialorder %v3501_v31, 0.0  ;;  %v3628_v34 = vmul.f32 0.2, %v3500_v51  ;;  %v3629_v62 = vmul.f32 0.2, %v3501_v31  ;;  %3459 = vadd.xlane.f32.xlu0 %v10918_v32 }
 0x6ed   :  { %v11012_v16 = vsel %vm13041_vm13, %v3690_v9, -1e+30  ;;  %v11016_v22 = vsel %vm13043_vm6, %v3691_v42, -1e+30  ;;  %vm13045_vm10 = vnez %v13044_v21 }
 0x6ee   :  { %3462 = vadd.xlane.f32.xlu1 %v10921_v8  ;;  %v3406_v46 = vpop.xlane.xlu0 %3405  ;;  %v3822_v2 = vmax.f32 %v11012_v16, %v11016_v22  ;;  %v3692_v43 = vsel %vm3564_vm12, %v3500_v51, %v3628_v34  ;;  %v3693_v20 = vsel %vm3565_vm5, %v3501_v31, %v3629_v62 }
 0x6ef   :  { %v3502_v30 = vadd.f32 %v10949_v52, %v3406_v46  ;;  %v3503_v32 = vadd.f32 %v10953_v26, %v3406_v46  ;;  %v11025_v9 = vsel %vm13045_vm10, %v3692_v43, -1e+30  ;;  %v11029_v4 = vsel %vm13047_vm15, %v3693_v20, -1e+30 }
 0x6f0   :  { %3823 = vmax.xlane.f32.xlu0 %v3822_v2  ;;  %v3409_v8 = vpop.xlane.xlu1 %3408  ;;  %v3825_v42 = vmax.f32 %v11025_v9, %v11029_v4  ;;  %v13048_v2 = vld [vmem:[#allocation116_spill] sm:$0xff]  ;;  %vm13051_vm15 = vnez %v13050_v58 }
 0x6f1   :  { %vm3566_vm13 = vcmp.ge.f32.partialorder %v3502_v30, 0.0  ;;  %vm3567_vm12 = vcmp.ge.f32.partialorder %v3503_v32, 0.0  ;;  %v3630_v51 = vmul.f32 0.2, %v3502_v30  ;;  %v3631_v31 = vmul.f32 0.2, %v3503_v32 }
 0x6f2   :  { %v3504_v34 = vadd.f32 %v10949_v52, %v3409_v8  ;;  %v3505_v62 = vadd.f32 %v10953_v26, %v3409_v8  ;;  %3826 = vmax.xlane.f32.xlu1 %v3825_v42  ;;  %vm13049_vm10 = vnez %v13048_v2  ;;  %v13054_v2 = vld [vmem:[#allocation115_spill] sm:$0xff] }
 0x6f3   :  { %v3694_v46 = vsel %vm3566_vm13, %v3502_v30, %v3630_v51  ;;  %v3695_v43 = vsel %vm3567_vm12, %v3503_v32, %v3631_v31  ;;  %v13052_v31 = vld [vmem:[#allocation114_spill] sm:$0xff]  ;;  %vm13055_vm12 = vnez %v13054_v2 }
 0x6f4   :  { %vm3568_vm5 = vcmp.ge.f32.partialorder %v3504_v34, 0.0  ;;  %vm3569_vm6 = vcmp.ge.f32.partialorder %v3505_v62, 0.0  ;;  %v3632_v20 = vmul.f32 0.2, %v3504_v34  ;;  %v3633_v21 = vmul.f32 0.2, %v3505_v62  ;;  %3465 = vadd.xlane.f32.xlu0 %v10926_v17 }
 0x6f5   :  { %v11038_v5 = vsel %vm13049_vm10, %v3694_v46, -1e+30  ;;  %v11042_v48 = vsel %vm13051_vm15, %v3695_v43, -1e+30  ;;  %vm13053_vm13 = vnez %v13052_v31 }
 0x6f6   :  { %3468 = vadd.xlane.f32.xlu1 %v10929_v14  ;;  %v3412_v8 = vpop.xlane.xlu0 %3411  ;;  %v3828_v30 = vmax.f32 %v11038_v5, %v11042_v48  ;;  %v3696_v32 = vsel %vm3568_vm5, %v3504_v34, %v3632_v20  ;;  %v3697_v42 = vsel %vm3569_vm6, %v3505_v62, %v3633_v21 }
 0x6f7   :  { %v3506_v51 = vadd.f32 %v10949_v52, %v3412_v8  ;;  %v3507_v17 = vadd.f32 %v10953_v26, %v3412_v8  ;;  %v11051_v46 = vsel %vm13053_vm13, %v3696_v32, -1e+30  ;;  %v11055_v58 = vsel %vm13055_vm12, %v3697_v42, -1e+30 }
 0x6f8   :  { %3829 = vmax.xlane.f32.xlu0 %v3828_v30  ;;  %v3415_v14 = vpop.xlane.xlu1 %3414  ;;  %v3831_v43 = vmax.f32 %v11051_v46, %v11055_v58  ;;  %v13056_v30 = vld [vmem:[#allocation124_spill] sm:$0xff]  ;;  %vm13059_vm12 = vnez %v13058_v53 }
 0x6f9   :  { %vm3570_vm10 = vcmp.ge.f32.partialorder %v3506_v51, 0.0  ;;  %vm3571_vm5 = vcmp.ge.f32.partialorder %v3507_v17, 0.0  ;;  %v3634_v34 = vmul.f32 0.2, %v3506_v51  ;;  %v3635_v62 = vmul.f32 0.2, %v3507_v17 }
 0x6fa   :  { %v3508_v20 = vadd.f32 %v10949_v52, %v3415_v14  ;;  %v3509_v21 = vadd.f32 %v10953_v26, %v3415_v14  ;;  %3832 = vmax.xlane.f32.xlu1 %v3831_v43  ;;  %vm13057_vm13 = vnez %v13056_v30  ;;  %v13062_v30 = vld [vmem:[#allocation123_spill] sm:$0xff] }
 0x6fb   :  { %v3698_v8 = vsel %vm3570_vm10, %v3506_v51, %v3634_v34  ;;  %v3699_v32 = vsel %vm3571_vm5, %v3507_v17, %v3635_v62  ;;  %v13060_v62 = vld [vmem:[#allocation122_spill] sm:$0xff]  ;;  %vm13063_vm5 = vnez %v13062_v30 }
 0x6fc   :  { %vm3572_vm6 = vcmp.ge.f32.partialorder %v3508_v20, 0.0  ;;  %vm3573_vm15 = vcmp.ge.f32.partialorder %v3509_v21, 0.0  ;;  %v3636_v42 = vmul.f32 0.2, %v3508_v20  ;;  %v3637_v31 = vmul.f32 0.2, %v3509_v21  ;;  %3471 = vadd.xlane.f32.xlu0 %v10934_v41 }
 0x6fd   :  { %v11064_v2 = vsel %vm13057_vm13, %v3698_v8, -1e+30  ;;  %v11068_v50 = vsel %vm13059_vm12, %v3699_v32, -1e+30  ;;  %vm13061_vm10 = vnez %v13060_v62 }
 0x6fe   :  { %3474 = vadd.xlane.f32.xlu1 %v10937_v24  ;;  %v3418_v14 = vpop.xlane.xlu0 %3417  ;;  %v3834_v51 = vmax.f32 %v11064_v2, %v11068_v50  ;;  %v3700_v17 = vsel %vm3572_vm6, %v3508_v20, %v3636_v42  ;;  %v3701_v43 = vsel %vm3573_vm15, %v3509_v21, %v3637_v31 }
 0x6ff   :  { %v3510_v34 = vadd.f32 %v10949_v52, %v3418_v14  ;;  %v3511_v41 = vadd.f32 %v10953_v26, %v3418_v14  ;;  %v11077_v8 = vsel %vm13061_vm10, %v3700_v17, -1e+30  ;;  %v11081_v53 = vsel %vm13063_vm5, %v3701_v43, -1e+30 }
 0x700   :  { %3835 = vmax.xlane.f32.xlu0 %v3834_v51  ;;  %v3421_v24 = vpop.xlane.xlu1 %3420  ;;  %v3837_v32 = vmax.f32 %v11077_v8, %v11081_v53  ;;  %v13064_v51 = vld [vmem:[#allocation129_spill] sm:$0xff]  ;;  %vm13067_vm5 = vnez %v13066_v6 }
 0x701   :  { %vm3574_vm13 = vcmp.ge.f32.partialorder %v3510_v34, 0.0  ;;  %vm3575_vm6 = vcmp.ge.f32.partialorder %v3511_v41, 0.0  ;;  %v3638_v20 = vmul.f32 0.2, %v3510_v34  ;;  %v3639_v21 = vmul.f32 0.2, %v3511_v41 }
 0x702   :  { %v3512_v42 = vadd.f32 %v10949_v52, %v3421_v24  ;;  %v3513_v31 = vadd.f32 %v10953_v26, %v3421_v24  ;;  %3838 = vmax.xlane.f32.xlu1 %v3837_v32  ;;  %vm13065_vm10 = vnez %v13064_v51  ;;  %v13070_v51 = vld [vmem:[#allocation128_spill] sm:$0xff] }
 0x703   :  { %v3702_v14 = vsel %vm3574_vm13, %v3510_v34, %v3638_v20  ;;  %v3703_v17 = vsel %vm3575_vm6, %v3511_v41, %v3639_v21  ;;  %v13068_v21 = vld [vmem:[#allocation127_spill] sm:$0xff]  ;;  %vm13071_vm6 = vnez %v13070_v51 }
 0x704   :  { %vm3576_vm15 = vcmp.ge.f32.partialorder %v3512_v42, 0.0  ;;  %vm3577_vm12 = vcmp.ge.f32.partialorder %v3513_v31, 0.0  ;;  %v3640_v43 = vmul.f32 0.2, %v3512_v42  ;;  %v3641_v62 = vmul.f32 0.2, %v3513_v31  ;;  %3477 = vadd.xlane.f32.xlu0 %v10942_v7 }
 0x705   :  { %v11090_v30 = vsel %vm13065_vm10, %v3702_v14, -1e+30  ;;  %v11094_v13 = vsel %vm13067_vm5, %v3703_v17, -1e+30  ;;  %vm13069_vm13 = vnez %v13068_v21 }
 0x706   :  { %3480 = vadd.xlane.f32.xlu1 %v10945_v11  ;;  %v3424_v24 = vpop.xlane.xlu0 %3423  ;;  %v3840_v34 = vmax.f32 %v11090_v30, %v11094_v13  ;;  %v3704_v41 = vsel %vm3576_vm15, %v3512_v42, %v3640_v43  ;;  %v3705_v32 = vsel %vm3577_vm12, %v3513_v31, %v3641_v62 }
 0x707   :  { %v3514_v20 = vadd.f32 %v10949_v52, %v3424_v24  ;;  %v3515_v7 = vadd.f32 %v10953_v26, %v3424_v24  ;;  %v11103_v14 = vsel %vm13069_vm13, %v3704_v41, -1e+30  ;;  %v11107_v6 = vsel %vm13071_vm6, %v3705_v32, -1e+30 }
 0x708   :  { %3841 = vmax.xlane.f32.xlu0 %v3840_v34  ;;  %v3427_v11 = vpop.xlane.xlu1 %3426  ;;  %v3843_v17 = vmax.f32 %v11103_v14, %v11107_v6 }
 0x709   :  { %vm3578_vm10 = vcmp.ge.f32.partialorder %v3514_v20, 0.0  ;;  %vm3579_vm15 = vcmp.ge.f32.partialorder %v3515_v7, 0.0  ;;  %v3642_v42 = vmul.f32 0.2, %v3514_v20  ;;  %v3643_v31 = vmul.f32 0.2, %v3515_v7 }
 0x70a   :  { %v3516_v43 = vadd.f32 %v10949_v52, %v3427_v11  ;;  %v3517_v62 = vadd.f32 %v10953_v26, %v3427_v11  ;;  %3844 = vmax.xlane.f32.xlu1 %v3843_v17 }
 0x70b   :  { %v3706_v24 = vsel %vm3578_vm10, %v3514_v20, %v3642_v42  ;;  %v3707_v41 = vsel %vm3579_vm15, %v3515_v7, %v3643_v31  ;;  %v13074_v42 = vld [vmem:[#allocation131_spill] sm:$0xff] }
 0x70c   :  { %vm3580_vm12 = vcmp.ge.f32.partialorder %v3516_v43, 0.0  ;;  %vm3581_vm5 = vcmp.ge.f32.partialorder %v3517_v62, 0.0  ;;  %v3644_v32 = vmul.f32 0.2, %v3516_v43  ;;  %v3645_v21 = vmul.f32 0.2, %v3517_v62 }
 0x70d   :  { %v11115_v51 = vsel %vm9495_vm2, %v3706_v24, -1e+30  ;;  %v11119_v61 = vsel %vm9531_vm4, %v3707_v41, -1e+30  ;;  %vm13075_vm13 = vnez %v13074_v42  ;;  %v13076_v24 = vld [vmem:[#allocation132_spill] sm:$0xff] }
 0x70e   :  { %v3430_v15 = vpop.xlane.xlu0 %3429  ;;  %v3846_v60 = vmax.f32 %v11115_v51, %v11119_v61  ;;  %v3708_v11 = vsel %vm3580_vm12, %v3516_v43, %v3644_v32  ;;  %v3709_v17 = vsel %vm3581_vm5, %v3517_v62, %v3645_v21  ;;  %vm13077_vm2 = vnez %v13076_v24 }
 0x70f   :  { %v3518_v20 = vadd.f32 %v10949_v52, %v3430_v15  ;;  %v3519_v7 = vadd.f32 %v10953_v26, %v3430_v15  ;;  %v11127_v31 = vsel %vm13075_vm13, %v3708_v11, -1e+30  ;;  %v11131_v34 = vsel %vm13077_vm2, %v3709_v17, -1e+30 }
 0x710   :  { %3847 = vmax.xlane.f32.xlu0 %v3846_v60  ;;  %v3433_v55 = vpop.xlane.xlu1 %3432  ;;  %v3849_v41 = vmax.f32 %v11127_v31, %v11131_v34  ;;  %vm13080_vm12 = vnez %v13079_v47 }
 0x711   :  { %vm3582_vm4 = vcmp.ge.f32.partialorder %v3518_v20, 0.0  ;;  %vm3583_vm6 = vcmp.ge.f32.partialorder %v3519_v7, 0.0  ;;  %v3646_v43 = vmul.f32 0.2, %v3518_v20  ;;  %v3647_v62 = vmul.f32 0.2, %v3519_v7 }
 0x712   :  { %v3520_v32 = vadd.f32 %v10949_v52, %v3433_v55  ;;  %v3521_v15 = vadd.f32 %v10953_v26, %v3433_v55  ;;  %3850 = vmax.xlane.f32.xlu1 %v3849_v41 }
 0x713   :  { %v3710_v21 = vsel %vm3582_vm4, %v3518_v20, %v3646_v43  ;;  %v3711_v11 = vsel %vm3583_vm6, %v3519_v7, %v3647_v62  ;;  %v13081_v43 = vld [vmem:[#allocation135_spill] sm:$0xff] }
 0x714   :  { %vm3584_vm10 = vcmp.ge.f32.partialorder %v3520_v32, 0.0  ;;  %vm3585_vm15 = vcmp.ge.f32.partialorder %v3521_v15, 0.0  ;;  %v3648_v17 = vmul.f32 0.2, %v3520_v32  ;;  %v3649_v42 = vmul.f32 0.2, %v3521_v15 }
 0x715   :  { %v11139_v24 = vsel %vm9565_vm11, %v3710_v21, -1e+30  ;;  %v11143_v3 = vsel %vm13080_vm12, %v3711_v11, -1e+30  ;;  %vm13082_vm5 = vnez %v13081_v43  ;;  %v13083_v21 = vld [vmem:[#allocation136_spill] sm:$0xff] }
 0x716   :  { %v3436_v54 = vpop.xlane.xlu0 %3435  ;;  %v3852_v39 = vmax.f32 %v11139_v24, %v11143_v3  ;;  %v3712_v55 = vsel %vm3584_vm10, %v3520_v32, %v3648_v17  ;;  %v3713_v41 = vsel %vm3585_vm15, %v3521_v15, %v3649_v42  ;;  %vm13084_vm11 = vnez %v13083_v21 }
 0x717   :  { %v3522_v20 = vadd.f32 %v10949_v52, %v3436_v54  ;;  %v3523_v7 = vadd.f32 %v10953_v26, %v3436_v54  ;;  %v11151_v62 = vsel %vm13082_vm5, %v3712_v55, -1e+30  ;;  %v11155_v60 = vsel %vm13084_vm11, %v3713_v41, -1e+30 }
 0x718   :  { %3853 = vmax.xlane.f32.xlu0 %v3852_v39  ;;  %v3439_v47 = vpop.xlane.xlu1 %3438  ;;  %v3855_v11 = vmax.f32 %v11151_v62, %v11155_v60 }
 0x719   :  { %vm3586_vm13 = vcmp.ge.f32.partialorder %v3522_v20, 0.0  ;;  %vm3587_vm2 = vcmp.ge.f32.partialorder %v3523_v7, 0.0  ;;  %v3650_v32 = vmul.f32 0.2, %v3522_v20  ;;  %v3651_v15 = vmul.f32 0.2, %v3523_v7 }
 0x71a   :  { %v3524_v17 = vadd.f32 %v10949_v52, %v3439_v47  ;;  %v3525_v54 = vadd.f32 %v10953_v26, %v3439_v47  ;;  %3856 = vmax.xlane.f32.xlu1 %v3855_v11 }
 0x71b   :  { %v3714_v42 = vsel %vm3586_vm13, %v3522_v20, %v3650_v32  ;;  %v3715_v55 = vsel %vm3587_vm2, %v3523_v7, %v3651_v15  ;;  %v13087_v32 = vld [vmem:[#allocation139_spill] sm:$0xff]  ;;  %vm13094_vm13 = vnez %v13093_v63 }
 0x71c   :  { %vm3588_vm4 = vcmp.ge.f32.partialorder %v3524_v17, 0.0  ;;  %vm3589_vm6 = vcmp.ge.f32.partialorder %v3525_v54, 0.0  ;;  %v3652_v41 = vmul.f32 0.2, %v3524_v17  ;;  %v3653_v43 = vmul.f32 0.2, %v3525_v54 }
 0x71d   :  { %v11163_v21 = vsel %vm9620_vm9, %v3714_v42, -1e+30  ;;  %v11167_v57 = vsel %vm9634_vm8, %v3715_v55, -1e+30  ;;  %vm13088_vm10 = vnez %v13087_v32  ;;  %v13089_v42 = vld [vmem:[#allocation140_spill] sm:$0xff] }
 0x71e   :  { %v3442_v23 = vpop.xlane.xlu0 %3441  ;;  %v3858_v29 = vmax.f32 %v11163_v21, %v11167_v57  ;;  %v3716_v47 = vsel %vm3588_vm4, %v3524_v17, %v3652_v41  ;;  %v3717_v11 = vsel %vm3589_vm6, %v3525_v54, %v3653_v43  ;;  %vm13090_vm9 = vnez %v13089_v42 }
 0x71f   :  { %v3526_v20 = vadd.f32 %v10949_v52, %v3442_v23  ;;  %v3527_v7 = vadd.f32 %v10953_v26, %v3442_v23  ;;  %v11175_v15 = vsel %vm13088_vm10, %v3716_v47, -1e+30  ;;  %v11179_v39 = vsel %vm13090_vm9, %v3717_v11, -1e+30 }
 0x720   :  { %3859 = vmax.xlane.f32.xlu0 %v3858_v29  ;;  %v3445_v49 = vpop.xlane.xlu1 %3444  ;;  %v3861_v55 = vmax.f32 %v11175_v15, %v11179_v39  ;;  %v13091_v29 = vld [vmem:[#allocation143_spill] sm:$0xff] }
 0x721   :  { %vm3590_vm8 = vcmp.ge.f32.partialorder %v3526_v20, 0.0  ;;  %vm3591_vm15 = vcmp.ge.f32.partialorder %v3527_v7, 0.0  ;;  %v3654_v17 = vmul.f32 0.2, %v3526_v20  ;;  %v3655_v54 = vmul.f32 0.2, %v3527_v7 }
 0x722   :  { %v3528_v41 = vadd.f32 %v10949_v52, %v3445_v49  ;;  %v3529_v23 = vadd.f32 %v10953_v26, %v3445_v49  ;;  %3862 = vmax.xlane.f32.xlu1 %v3861_v55  ;;  %vm13092_vm11 = vnez %v13091_v29 }
 0x723   :  { %v3718_v43 = vsel %vm3590_vm8, %v3526_v20, %v3654_v17  ;;  %v3719_v47 = vsel %vm3591_vm15, %v3527_v7, %v3655_v54  ;;  %v13095_v17 = vld [vmem:[#allocation93_spill] sm:$0xff] }
 0x724   :  { %vm3592_vm12 = vcmp.ge.f32.partialorder %v3528_v41, 0.0  ;;  %vm3593_vm5 = vcmp.ge.f32.partialorder %v3529_v23, 0.0  ;;  %v3656_v11 = vmul.f32 0.2, %v3528_v41  ;;  %v3657_v32 = vmul.f32 0.2, %v3529_v23 }
 0x725   :  { %v11187_v42 = vsel %vm13092_vm11, %v3718_v43, -1e+30  ;;  %v11191_v27 = vsel %vm13094_vm13, %v3719_v47, -1e+30  ;;  %vm13096_vm2 = vnez %v13095_v17  ;;  %v13097_v43 = vld [vmem:[#allocation142_spill] sm:$0xff] }
 0x726   :  { %v3448_v18 = vpop.xlane.xlu0 %3447  ;;  %v3864_v44 = vmax.f32 %v11187_v42, %v11191_v27  ;;  %v3720_v49 = vsel %vm3592_vm12, %v3528_v41, %v3656_v11  ;;  %v3721_v55 = vsel %vm3593_vm5, %v3529_v23, %v3657_v32  ;;  %vm13098_vm4 = vnez %v13097_v43 }
 0x727   :  { %v3530_v20 = vadd.f32 %v10949_v52, %v3448_v18  ;;  %v3531_v7 = vadd.f32 %v10953_v26, %v3448_v18  ;;  %v11199_v54 = vsel %vm13096_vm2, %v3720_v49, -1e+30  ;;  %v11203_v29 = vsel %vm13098_vm4, %v3721_v55, -1e+30 }
 0x728   :  { %3865 = vmax.xlane.f32.xlu0 %v3864_v44  ;;  %v3451_v63 = vpop.xlane.xlu1 %3450  ;;  %v3867_v47 = vmax.f32 %v11199_v54, %v11203_v29  ;;  %v13099_v44 = vld [vmem:[#allocation147_spill] sm:$0xff]  ;;  %vm13102_vm12 = vnez %v13101_v28 }
 0x729   :  { %vm3594_vm6 = vcmp.ge.f32.partialorder %v3530_v20, 0.0  ;;  %vm3595_vm10 = vcmp.ge.f32.partialorder %v3531_v7, 0.0  ;;  %v3658_v41 = vmul.f32 0.2, %v3530_v20  ;;  %v3659_v23 = vmul.f32 0.2, %v3531_v7 }
 0x72a   :  { %v3532_v11 = vadd.f32 %v10949_v52, %v3451_v63  ;;  %v3533_v18 = vadd.f32 %v10953_v26, %v3451_v63  ;;  %3868 = vmax.xlane.f32.xlu1 %v3867_v47  ;;  %vm13100_vm15 = vnez %v13099_v44  ;;  %v13103_v47 = vld [vmem:[#allocation145_spill] sm:$0xff] }
 0x72b   :  { %v3722_v32 = vsel %vm3594_vm6, %v3530_v20, %v3658_v41  ;;  %v3723_v49 = vsel %vm3595_vm10, %v3531_v7, %v3659_v23  ;;  %vm13104_vm5 = vnez %v13103_v47  ;;  %v13105_v7 = vld [vmem:[#allocation146_spill] sm:$0xff]  ;;  %vm13110_vm10 = vnez %v13109_v19 }
 0x72c   :  { %vm3596_vm9 = vcmp.ge.f32.partialorder %v3532_v11, 0.0  ;;  %vm3597_vm8 = vcmp.ge.f32.partialorder %v3533_v18, 0.0  ;;  %v3660_v55 = vmul.f32 0.2, %v3532_v11  ;;  %v3661_v17 = vmul.f32 0.2, %v3533_v18 }
 0x72d   :  { %v11211_v43 = vsel %vm13100_vm15, %v3722_v32, -1e+30  ;;  %v11215_v35 = vsel %vm13102_vm12, %v3723_v49, -1e+30  ;;  %vm13106_vm11 = vnez %v13105_v7 }
 0x72e   :  { %v3870_v25 = vmax.f32 %v11211_v43, %v11215_v35  ;;  %v3724_v37 = vsel %vm3596_vm9, %v3532_v11, %v3660_v55  ;;  %v3725_v63 = vsel %vm3597_vm8, %v3533_v18, %v3661_v17 }
 0x72f   :  { %v11221_v20 = vsel %vm13104_vm5, %v3724_v37, -1e+30  ;;  %v11225_v41 = vsel %vm13106_vm11, %v3725_v63, -1e+30 }
 0x730   :  { %3871 = vmax.xlane.f32.xlu0 %v3870_v25  ;;  %v3873_v23 = vmax.f32 %v11221_v20, %v11225_v41 }
 0x732   :  { %3874 = vmax.xlane.f32.xlu1 %v3873_v23 }
 0x76d   :  { %v3812_v28 = vpop.xlane.xlu0 %3811 }
 0x76e   :  { %v3906_v32 = vsub.f32 %v10961_v56, %v3812_v28  ;;  %v3907_v49 = vsub.f32 %v10965_v59, %v3812_v28 }
 0x76f   :  { %v3815_v11 = vpop.xlane.xlu1 %3814 }
 0x770   :  { %v3970_v18 = vmul.f32 1.442695, %v3906_v32  ;;  %v3972_v55 = vmul.f32 1.442695, %v3907_v49  ;;  %v3908_v37 = vsub.f32 %v10973_v45, %v3815_v11  ;;  %v3909_v17 = vsub.f32 %v10977_v12, %v3815_v11 }
 0x771   :  { %v3454_v44 = vpop.xlane.xlu0 %3453 }
 0x772   :  { %7907 = vpow2.f32 %v3970_v18  ;;  %v3974_v63 = vmul.f32 1.442695, %v3908_v37  ;;  %v3976_v25 = vmul.f32 1.442695, %v3909_v17  ;;  %v3534_v47 = vadd.f32 %v10949_v52, %v3454_v44 }
 0x773   :  { %7909 = vpow2.f32 %v3972_v55  ;;  %v3535_v7 = vadd.f32 %v10953_v26, %v3454_v44  ;;  %v3457_v23 = vpop.xlane.xlu1 %3456 }
 0x774   :  { %7911 = vpow2.f32 %v3974_v63  ;;  %vm3598_vm13 = vcmp.ge.f32.partialorder %v3534_v47, 0.0  ;;  %v3662_v56 = vmul.f32 0.2, %v3534_v47  ;;  %v3536_v59 = vadd.f32 %v10949_v52, %v3457_v23 }
 0x775   :  { %7913 = vpow2.f32 %v3976_v25  ;;  %vm3599_vm2 = vcmp.ge.f32.partialorder %v3535_v7, 0.0  ;;  %v3663_v45 = vmul.f32 0.2, %v3535_v7  ;;  %v3537_v12 = vadd.f32 %v10953_v26, %v3457_v23  ;;  %v3818_v28 = vpop.xlane.xlu0 %3817 }
 0x776   :  { %vm3600_vm4 = vcmp.ge.f32.partialorder %v3536_v59, 0.0  ;;  %v3664_v32 = vmul.f32 0.2, %v3536_v59  ;;  %v3910_v49 = vsub.f32 %v10986_v33, %v3818_v28  ;;  %v3911_v11 = vsub.f32 %v10990_v1, %v3818_v28 }
 0x777   :  { %vm3601_vm6 = vcmp.ge.f32.partialorder %v3537_v12, 0.0  ;;  %v3665_v18 = vmul.f32 0.2, %v3537_v12  ;;  %v3821_v55 = vpop.xlane.xlu1 %3820  ;;  %v3726_v37 = vsel %vm3598_vm13, %v3534_v47, %v3662_v56  ;;  %v3727_v17 = vsel %vm3599_vm2, %v3535_v7, %v3663_v45 }
 0x778   :  { %v3978_v44 = vmul.f32 1.442695, %v3910_v49  ;;  %v3980_v63 = vmul.f32 1.442695, %v3911_v11  ;;  %v3912_v25 = vsub.f32 %v10999_v36, %v3821_v55  ;;  %v3913_v0 = vsub.f32 %v11003_v40, %v3821_v55  ;;  %v13112_v49 = vld [vmem:[#allocation28_spill] sm:$0xff] }
 0x779   :  { %v3460_v10 = vpop.xlane.xlu0 %3459  ;;  %v11243_v38 = vsel %vm9916_vm0, %v3726_v37, -1e+30  ;;  %v11247_v33 = vsel %vm13110_vm10, %v3727_v17, -1e+30  ;;  %v3728_v1 = vsel %vm3600_vm4, %v3536_v59, %v3664_v32  ;;  %v3729_v28 = vsel %vm3601_vm6, %v3537_v12, %v3665_v18  ;;  %v13117_v17 = vld [vmem:[#allocation30_spill] sm:$0xff] }
 0x77a   :  { %13108 = vst [vmem:[#allocation35_spill] sm:$0xff] %v11243_v38  ;;  %13111 = vst [vmem:[#allocation37_spill] sm:$0xff] %v11247_v33  ;;  %7915 = vpow2.f32 %v3978_v44  ;;  %v3982_v47 = vmul.f32 1.442695, %v3912_v25  ;;  %v3984_v7 = vmul.f32 1.442695, %v3913_v0  ;;  %v3538_v56 = vadd.f32 %v10949_v52, %v3460_v10 }
 0x77b   :  { %7917 = vpow2.f32 %v3980_v63  ;;  %v3539_v36 = vadd.f32 %v10953_v26, %v3460_v10  ;;  %v3876_v40 = vmax.f32 %v11243_v38, %v11247_v33  ;;  %v3463_v45 = vpop.xlane.xlu1 %3462  ;;  %vm13113_vm0 = vnez %v13112_v49 }
 0x77c   :  { %v11256_v19 = vsel %vm13113_vm0, %v3728_v1, -1e+30  ;;  %v11258_v11 = vpop.eup %7907  ;;  %7919 = vpow2.f32 %v3982_v47  ;;  %vm3602_vm9 = vcmp.ge.f32.partialorder %v3538_v56, 0.0  ;;  %v3666_v59 = vmul.f32 0.2, %v3538_v56 }
 0x77d   :  { %13114 = vst [vmem:[#allocation39_spill] sm:$0xff] %v11258_v11  ;;  %v3540_v0 = vadd.f32 %v10949_v52, %v3463_v45  ;;  %v11261_v12 = vpop.eup %7909  ;;  %7921 = vpow2.f32 %v3984_v7  ;;  %vm3603_vm8 = vcmp.ge.f32.partialorder %v3539_v36, 0.0  ;;  %v3667_v10 = vmul.f32 0.2, %v3539_v36  ;;  %3877 = vmax.xlane.f32.xlu0 %v3876_v40  ;;  %v3824_v18 = vpop.xlane.xlu0 %3823 }
 0x77e   :  { %13115 = vst [vmem:[#allocation41_spill] sm:$0xff] %v11261_v12  ;;  %v3541_v32 = vadd.f32 %v10953_v26, %v3463_v45  ;;  %v11264_v55 = vpop.eup %7911  ;;  %vm13118_vm12 = vnez %v13117_v17  ;;  %v3914_v63 = vsub.f32 %v11012_v16, %v3824_v18  ;;  %v3915_v47 = vsub.f32 %v11016_v22, %v3824_v18 }
 0x77f   :  { %13116 = vst [vmem:[#allocation43_spill] sm:$0xff] %v11264_v55  ;;  %vm3604_vm15 = vcmp.ge.f32.partialorder %v3540_v0, 0.0  ;;  %v3668_v37 = vmul.f32 0.2, %v3540_v0  ;;  %v11268_v44 = vsel %vm13118_vm12, %v3729_v28, -1e+30  ;;  %v11271_v25 = vpop.eup %7913  ;;  %v3827_v7 = vpop.xlane.xlu1 %3826  ;;  %v4098_v28 = vadd.f32 %v11261_v12, %v11258_v11 }
 0x780   :  { %13119 = vst [vmem:[#allocation45_spill] sm:$0xff] %v11268_v44  ;;  %13120 = vst [vmem:[#allocation47_spill] sm:$0xff] %v11271_v25  ;;  %vm3605_vm5 = vcmp.ge.f32.partialorder %v3541_v32, 0.0  ;;  %v3669_v23 = vmul.f32 0.2, %v3541_v32  ;;  %v3879_v1 = vmax.f32 %v11256_v19, %v11268_v44  ;;  %v3916_v45 = vsub.f32 %v11025_v9, %v3827_v7  ;;  %v13130_v11 = vld [vmem:[#allocation36_spill] sm:$0xff] }
 0x781   :  { %v3986_v40 = vmul.f32 1.442695, %v3914_v63  ;;  %v3917_v49 = vsub.f32 %v11029_v4, %v3827_v7  ;;  %v3988_v16 = vmul.f32 1.442695, %v3915_v47  ;;  %v3466_v17 = vpop.xlane.xlu0 %3465  ;;  %v4101_v33 = vadd.f32 %v11271_v25, %v11264_v55  ;;  %4099 = vadd.xlane.f32.xlu0 %v4098_v28  ;;  %v13124_v7 = vld [vmem:[#allocation50_spill] sm:$0xff] }
 0x782   :  { %3880 = vmax.xlane.f32.xlu1 %v3879_v1  ;;  %v3730_v38 = vsel %vm3602_vm9, %v3538_v56, %v3666_v59  ;;  %v3731_v44 = vsel %vm3603_vm8, %v3539_v36, %v3667_v10  ;;  %v3990_v22 = vmul.f32 1.442695, %v3916_v45  ;;  %v11285_v9 = vadd.f32 %v10949_v52, %v3466_v17  ;;  %v13121_v1 = vld [vmem:[#allocation48_spill] sm:$0xff] }
 0x783   :  { %7923 = vpow2.f32 %v3986_v40  ;;  %v3992_v18 = vmul.f32 1.442695, %v3917_v49  ;;  %v11288_v4 = vadd.f32 %v10953_v26, %v3466_v17  ;;  %v3469_v63 = vpop.xlane.xlu1 %3468  ;;  %vm13122_vm11 = vnez %v13121_v1 }
 0x784   :  { %7925 = vpow2.f32 %v3988_v16  ;;  %v11292_v47 = vsel %vm13122_vm11, %v3730_v38, -1e+30  ;;  %vm13125_vm13 = vnez %v13124_v7  ;;  %v11298_v36 = vpop.eup %7915  ;;  %vm3606_vm2 = vcmp.ge.f32.partialorder %v11285_v9, 0.0 }
 0x785   :  { %13123 = vst [vmem:[#allocation49_spill] sm:$0xff] %v11292_v47  ;;  %v11296_v56 = vsel %vm13125_vm13, %v3731_v44, -1e+30  ;;  %13127 = vst [vmem:[#allocation53_spill] sm:$0xff] %v11298_v36  ;;  %7927 = vpow2.f32 %v3990_v22  ;;  %v3670_v59 = vmul.f32 0.2, %v11285_v9  ;;  %v11303_v10 = vadd.f32 %v10949_v52, %v3469_v63  ;;  %v11305_v40 = vpop.eup %7917  ;;  %v3830_v45 = vpop.xlane.xlu0 %3829 }
 0x786   :  { %13126 = vst [vmem:[#allocation51_spill] sm:$0xff] %v11296_v56  ;;  %7929 = vpow2.f32 %v3992_v18  ;;  %vm3607_vm4 = vcmp.ge.f32.partialorder %v11288_v4, 0.0  ;;  %v3671_v38 = vmul.f32 0.2, %v11288_v4  ;;  %4102 = vadd.xlane.f32.xlu1 %v4101_v33  ;;  %v3545_v44 = vadd.f32 %v10953_v26, %v3469_v63  ;;  %v11310_v49 = vpop.eup %7919 }
 0x787   :  { %13128 = vst [vmem:[#allocation55_spill] sm:$0xff] %v11310_v49  ;;  %vm3608_vm6 = vcmp.ge.f32.partialorder %v11303_v10, 0.0  ;;  %v3672_v28 = vmul.f32 0.2, %v11303_v10  ;;  %v3882_v16 = vmax.f32 %v11292_v47, %v11296_v56  ;;  %v3918_v17 = vsub.f32 %v11038_v5, %v3830_v45  ;;  %v11317_v22 = vpop.eup %7921  ;;  %v3833_v1 = vpop.xlane.xlu1 %3832  ;;  %v13132_v56 = vld [vmem:[#allocation38_spill] sm:$0xff] }
 0x788   :  { %13129 = vst [vmem:[#allocation57_spill] sm:$0xff] %v11317_v22  ;;  %vm3609_vm10 = vcmp.ge.f32.partialorder %v3545_v44, 0.0  ;;  %v3673_v18 = vmul.f32 0.2, %v3545_v44  ;;  %v3919_v33 = vsub.f32 %v11042_v48, %v3830_v45  ;;  %v3732_v63 = vsel %vm3604_vm15, %v3540_v0, %v3668_v37 }
 0x789   :  { %3883 = vmax.xlane.f32.xlu0 %v3882_v16  ;;  %v3994_v7 = vmul.f32 1.442695, %v3918_v17  ;;  %v3733_v55 = vsel %vm3605_vm5, %v3541_v32, %v3669_v23  ;;  %vm13131_vm0 = vnez %v13130_v11  ;;  %v3920_v12 = vsub.f32 %v11051_v46, %v3833_v1  ;;  %v3472_v37 = vpop.xlane.xlu0 %3471 }
 0x78a   :  { %v11324_v25 = vsel %vm13131_vm0, %v3732_v63, -1e+30  ;;  %v3996_v5 = vmul.f32 1.442695, %v3919_v33  ;;  %vm13133_vm9 = vnez %v13132_v56  ;;  %v3921_v48 = vsub.f32 %v11055_v58, %v3833_v1 }
 0x78b   :  { %v11329_v47 = vsel %vm13133_vm9, %v3733_v55, -1e+30  ;;  %v4104_v0 = vadd.f32 %v11305_v40, %v11298_v36  ;;  %7931 = vpow2.f32 %v3994_v7  ;;  %v3998_v11 = vmul.f32 1.442695, %v3920_v12  ;;  %v3475_v55 = vpop.xlane.xlu1 %3474  ;;  %v13139_v36 = vld [vmem:[#allocation58_spill] sm:$0xff] }
 0x78c   :  { %v3885_v32 = vmax.f32 %v11324_v25, %v11329_v47  ;;  %v11337_v23 = vadd.f32 %v10949_v52, %v3472_v37  ;;  %7933 = vpow2.f32 %v3996_v5  ;;  %v4000_v46 = vmul.f32 1.442695, %v3921_v48 }
 0x78d   :  { %v11340_v56 = vadd.f32 %v10953_v26, %v3472_v37  ;;  %v4107_v58 = vadd.f32 %v11317_v22, %v11310_v49  ;;  %v11344_v45 = vpop.eup %7923  ;;  %7935 = vpow2.f32 %v3998_v11  ;;  %4105 = vadd.xlane.f32.xlu0 %v4104_v0  ;;  %v11349_v16 = vadd.f32 %v10949_v52, %v3475_v55  ;;  %v3836_v1 = vpop.xlane.xlu0 %3835  ;;  %v13137_v22 = vld [vmem:[#allocation66_spill] sm:$0xff] }
 0x78e   :  { %13134 = vst [vmem:[#allocation59_spill] sm:$0xff] %v11344_v45  ;;  %3886 = vmax.xlane.f32.xlu1 %v3885_v32  ;;  %vm3610_vm8 = vcmp.ge.f32.partialorder %v11337_v23, 0.0  ;;  %v3674_v12 = vmul.f32 0.2, %v11337_v23  ;;  %v11351_v17 = vpop.eup %7925  ;;  %7937 = vpow2.f32 %v4000_v46  ;;  %v11356_v63 = vadd.f32 %v10953_v26, %v3475_v55 }
 0x78f   :  { %vm3611_vm15 = vcmp.ge.f32.partialorder %v11340_v56, 0.0  ;;  %v3675_v33 = vmul.f32 0.2, %v11340_v56  ;;  %v11358_v7 = vpop.eup %7927  ;;  %vm3612_vm12 = vcmp.ge.f32.partialorder %v11349_v16, 0.0  ;;  %v3676_v5 = vmul.f32 0.2, %v11349_v16  ;;  %v3839_v49 = vpop.xlane.xlu1 %3838 }
 0x790   :  { %13135 = vst [vmem:[#allocation61_spill] sm:$0xff] %v11358_v7  ;;  %v3734_v48 = vsel %vm3606_vm2, %v11285_v9, %v3670_v59  ;;  %v3735_v0 = vsel %vm3607_vm4, %v11288_v4, %v3671_v38  ;;  %v11368_v37 = vpop.eup %7929  ;;  %vm3613_vm5 = vcmp.ge.f32.partialorder %v11356_v63, 0.0  ;;  %v3677_v32 = vmul.f32 0.2, %v11356_v63 }
 0x791   :  { %v11374_v46 = vsel %vm10058_vm14, %v3734_v48, -1e+30  ;;  %v3922_v55 = vsub.f32 %v11064_v2, %v3836_v1  ;;  %vm13138_vm11 = vnez %v13137_v22  ;;  %v3923_v4 = vsub.f32 %v11068_v50, %v3836_v1 }
 0x792   :  { %4108 = vadd.xlane.f32.xlu1 %v4107_v58  ;;  %v11379_v9 = vsel %vm13138_vm11, %v3735_v0, -1e+30  ;;  %v3736_v59 = vsel %vm3608_vm6, %v11303_v10, %v3672_v28  ;;  %v3737_v38 = vsel %vm3609_vm10, %v3545_v44, %v3673_v18  ;;  %vm13140_vm14 = vnez %v13139_v36  ;;  %v13141_v58 = vld [vmem:[#allocation62_spill] sm:$0xff]  ;;  %v3478_v0 = vpop.xlane.xlu0 %3477 }
 0x793   :  { %v3888_v48 = vmax.f32 %v11374_v46, %v11379_v9  ;;  %v4002_v11 = vmul.f32 1.442695, %v3922_v55  ;;  %v11390_v2 = vsel %vm13140_vm14, %v3736_v59, -1e+30  ;;  %vm13142_vm13 = vnez %v13141_v58  ;;  %v3481_v55 = vpop.xlane.xlu1 %3480 }
 0x794   :  { %v11394_v22 = vsel %vm13142_vm13, %v3737_v38, -1e+30  ;;  %v4004_v50 = vmul.f32 1.442695, %v3923_v4  ;;  %v3924_v10 = vsub.f32 %v11077_v8, %v3839_v49  ;;  %v3925_v44 = vsub.f32 %v11081_v53, %v3839_v49 }
 0x795   :  { %v3891_v1 = vmax.f32 %v11390_v2, %v11394_v22  ;;  %3889 = vmax.xlane.f32.xlu0 %v3888_v48  ;;  %7939 = vpow2.f32 %v4002_v11  ;;  %v4110_v36 = vadd.f32 %v11351_v17, %v11344_v45  ;;  %v3550_v28 = vadd.f32 %v10949_v52, %v3478_v0  ;;  %v11404_v59 = vpop.eup %7931  ;;  %v13145_v45 = vld [vmem:[#allocation105_spill] sm:$0xff] }
 0x796   :  { %v3551_v18 = vadd.f32 %v10953_v26, %v3478_v0  ;;  %7941 = vpow2.f32 %v4004_v50  ;;  %v4006_v4 = vmul.f32 1.442695, %v3924_v10  ;;  %v4008_v38 = vmul.f32 1.442695, %v3925_v44  ;;  %v11408_v53 = vpop.eup %7933  ;;  %v3842_v11 = vpop.xlane.xlu0 %3841  ;;  %v13143_v44 = vld [vmem:[#allocation104_spill] sm:$0xff] }
 0x797   :  { %3892 = vmax.xlane.f32.xlu1 %v3891_v1  ;;  %v4113_v8 = vadd.f32 %v11368_v37, %v11358_v7  ;;  %vm3614_vm2 = vcmp.ge.f32.partialorder %v3550_v28, 0.0  ;;  %v3678_v49 = vmul.f32 0.2, %v3550_v28  ;;  %v11410_v58 = vpop.eup %7935  ;;  %v3738_v0 = vsel %vm3610_vm8, %v11337_v23, %v3674_v12 }
 0x798   :  { %vm3615_vm4 = vcmp.ge.f32.partialorder %v3551_v18, 0.0  ;;  %v3679_v48 = vmul.f32 0.2, %v3551_v18  ;;  %7943 = vpow2.f32 %v4006_v4  ;;  %v3739_v50 = vsel %vm3611_vm15, %v11340_v56, %v3675_v33  ;;  %v11419_v10 = vpop.eup %7937  ;;  %v3845_v33 = vpop.xlane.xlu1 %3844 }
 0x799   :  { %v3552_v1 = vadd.f32 %v10949_v52, %v3481_v55  ;;  %7945 = vpow2.f32 %v4008_v38  ;;  %4111 = vadd.xlane.f32.xlu0 %v4110_v36  ;;  %vm13144_vm6 = vnez %v13143_v44  ;;  %vm13146_vm10 = vnez %v13145_v45  ;;  %v13149_v44 = vld [vmem:[#allocation68_spill] sm:$0xff] }
 0x79a   :  { %v11423_v7 = vsel %vm13144_vm6, %v3738_v0, -1e+30  ;;  %v11427_v4 = vsel %vm13146_vm10, %v3739_v50, -1e+30  ;;  %v3553_v23 = vadd.f32 %v10953_v26, %v3481_v55  ;;  %v3926_v12 = vsub.f32 %v11090_v30, %v3842_v11  ;;  %v13147_v55 = vld [vmem:[#allocation103_spill] sm:$0xff] }
 0x79b   :  { %4114 = vadd.xlane.f32.xlu1 %v4113_v8  ;;  %v3894_v56 = vmax.f32 %v11423_v7, %v11427_v4  ;;  %vm3616_vm0 = vcmp.ge.f32.partialorder %v3552_v1, 0.0  ;;  %v3680_v52 = vmul.f32 0.2, %v3552_v1  ;;  %v3927_v38 = vsub.f32 %v11094_v13, %v3842_v11 }
 0x79c   :  { %vm3617_vm9 = vcmp.ge.f32.partialorder %v3553_v23, 0.0  ;;  %v3681_v36 = vmul.f32 0.2, %v3553_v23  ;;  %v3740_v45 = vsel %vm3612_vm12, %v11349_v16, %v3676_v5  ;;  %v4010_v0 = vmul.f32 1.442695, %v3926_v12 }
 0x79d   :  { %v3741_v26 = vsel %vm3613_vm5, %v11356_v63, %v3677_v32  ;;  %vm13148_vm8 = vnez %v13147_v55  ;;  %v4116_v30 = vadd.f32 %v11408_v53, %v11404_v59  ;;  %3895 = vmax.xlane.f32.xlu0 %v3894_v56  ;;  %v4012_v50 = vmul.f32 1.442695, %v3927_v38 }
 0x79e   :  { %v11442_v8 = vsel %vm13148_vm8, %v3740_v45, -1e+30  ;;  %vm13150_vm15 = vnez %v13149_v44  ;;  %v3928_v16 = vsub.f32 %v11103_v14, %v3845_v33  ;;  %v3929_v5 = vsub.f32 %v11107_v6, %v3845_v33 }
 0x79f   :  { %v11448_v13 = vsel %vm13150_vm15, %v3741_v26, -1e+30  ;;  %7947 = vpow2.f32 %v4010_v0  ;;  %v4119_v32 = vadd.f32 %v11419_v10, %v11410_v58  ;;  %v3742_v11 = vsel %vm3614_vm2, %v3550_v28, %v3678_v49  ;;  %v11457_v12 = vpop.eup %7939  ;;  %v3848_v26 = vpop.xlane.xlu0 %3847 }
 0x7a0   :  { %v3897_v63 = vmax.f32 %v11442_v8, %v11448_v13  ;;  %7949 = vpow2.f32 %v4012_v50  ;;  %v4014_v56 = vmul.f32 1.442695, %v3928_v16  ;;  %v4016_v38 = vmul.f32 1.442695, %v3929_v5  ;;  %v11460_v14 = vpop.eup %7941  ;;  %v3851_v44 = vpop.xlane.xlu1 %3850 }
 0x7a1   :  { %v3743_v45 = vsel %vm3615_vm4, %v3551_v18, %v3679_v48  ;;  %v11464_v33 = vsel %vm10250_vm1, %v3742_v11, -1e+30  ;;  %v3930_v28 = vsub.f32 %v11115_v51, %v3848_v26  ;;  %v3931_v49 = vsub.f32 %v11119_v61, %v3848_v26  ;;  %4117 = vadd.xlane.f32.xlu0 %v4116_v30  ;;  %v13154_v30 = vld [vmem:[#allocation71_spill] sm:$0xff] }
 0x7a2   :  { %3898 = vmax.xlane.f32.xlu1 %v3897_v63  ;;  %v11468_v55 = vsel %vm10266_vm7, %v3743_v45, -1e+30  ;;  %7951 = vpow2.f32 %v4014_v56  ;;  %v3744_v48 = vsel %vm3616_vm0, %v3552_v1, %v3680_v52  ;;  %v3745_v50 = vsel %vm3617_vm9, %v3553_v23, %v3681_v36  ;;  %v11476_v16 = vpop.eup %7943 }
 0x7a3   :  { %v3900_v18 = vmax.f32 %v11464_v33, %v11468_v55  ;;  %7953 = vpow2.f32 %v4016_v38  ;;  %v4018_v5 = vmul.f32 1.442695, %v3930_v28  ;;  %v4020_v63 = vmul.f32 1.442695, %v3931_v49  ;;  %v11482_v61 = vpop.eup %7945 }
 0x7a4   :  { %v11480_v51 = vsel %vm10224_vm3, %v3744_v48, -1e+30  ;;  %vm13155_vm1 = vnez %v13154_v30  ;;  %v3932_v1 = vsub.f32 %v11127_v31, %v3851_v44  ;;  %v3933_v23 = vsub.f32 %v11131_v34, %v3851_v44 }
 0x7a5   :  { %v11486_v56 = vsel %vm13155_vm1, %v3745_v50, -1e+30  ;;  %7955 = vpow2.f32 %v4018_v5  ;;  %3901 = vmax.xlane.f32.xlu0 %v3900_v18  ;;  %v4122_v36 = vadd.f32 %v11460_v14, %v11457_v12  ;;  %v3854_v26 = vpop.xlane.xlu0 %3853  ;;  %v4125_v31 = vadd.f32 %v11482_v61, %v11476_v16 }
 0x7a6   :  { %4120 = vadd.xlane.f32.xlu1 %v4119_v32  ;;  %v3903_v52 = vmax.f32 %v11480_v51, %v11486_v56  ;;  %7957 = vpow2.f32 %v4020_v63  ;;  %v4022_v38 = vmul.f32 1.442695, %v3932_v1  ;;  %v4024_v45 = vmul.f32 1.442695, %v3933_v23 }
 0x7a7   :  { %v3934_v34 = vsub.f32 %v11139_v24, %v3854_v26  ;;  %v3935_v32 = vsub.f32 %v11143_v3, %v3854_v26  ;;  %v3857_v28 = vpop.xlane.xlu1 %3856  ;;  %vm6230_vm3 = vcmask 523264   ;;  %vm6511_vm7 = vcmask 261120  }
 0x7a8   :  { %7959 = vpow2.f32 %v4022_v38  ;;  %v3936_v50 = vsub.f32 %v11151_v62, %v3857_v28  ;;  %v3937_v5 = vsub.f32 %v11155_v60, %v3857_v28 }
 0x7a9   :  { %v11494_v6 = vpop.eup %7947  ;;  %7961 = vpow2.f32 %v4024_v45  ;;  %4123 = vadd.xlane.f32.xlu0 %v4122_v36  ;;  %v4026_v49 = vmul.f32 1.442695, %v3934_v34  ;;  %v4028_v18 = vmul.f32 1.442695, %v3935_v32 }
 0x7aa   :  { %3904 = vmax.xlane.f32.xlu1 %v3903_v52  ;;  %v11500_v0 = vpop.eup %7949  ;;  %v4030_v3 = vmul.f32 1.442695, %v3936_v50  ;;  %v4032_v24 = vmul.f32 1.442695, %v3937_v5 }
 0x7ab   :  { %v4128_v48 = vadd.f32 %v11500_v0, %v11494_v6  ;;  %7963 = vpow2.f32 %v4026_v49 }
 0x7ac   :  { %v11505_v44 = vpop.eup %7951  ;;  %7965 = vpow2.f32 %v4028_v18 }
 0x7ad   :  { %v11508_v63 = vpop.eup %7953  ;;  %4129 = vadd.xlane.f32.xlu0 %v4128_v48  ;;  %7967 = vpow2.f32 %v4030_v3  ;;  %v3860_v62 = vpop.xlane.xlu0 %3859 }
 0x7ae   :  { %4126 = vadd.xlane.f32.xlu1 %v4125_v31  ;;  %v4131_v11 = vadd.f32 %v11508_v63, %v11505_v44  ;;  %7969 = vpow2.f32 %v4032_v24  ;;  %v3938_v60 = vsub.f32 %v11163_v21, %v3860_v62  ;;  %v3939_v23 = vsub.f32 %v11167_v57, %v3860_v62 }
 0x7af   :  { %v11512_v30 = vpop.eup %7955  ;;  %v3863_v38 = vpop.xlane.xlu1 %3862 }
 0x7b0   :  { %v11514_v1 = vpop.eup %7957  ;;  %v4034_v26 = vmul.f32 1.442695, %v3938_v60  ;;  %v4036_v31 = vmul.f32 1.442695, %v3939_v23  ;;  %v3940_v34 = vsub.f32 %v11175_v15, %v3863_v38  ;;  %v3941_v32 = vsub.f32 %v11179_v39, %v3863_v38 }
 0x7b1   :  { %v4134_v52 = vadd.f32 %v11514_v1, %v11512_v30 }
 0x7b2   :  { %4132 = vadd.xlane.f32.xlu1 %v4131_v11  ;;  %v11520_v36 = vpop.eup %7959  ;;  %7971 = vpow2.f32 %v4034_v26  ;;  %v4038_v57 = vmul.f32 1.442695, %v3940_v34  ;;  %v4040_v28 = vmul.f32 1.442695, %v3941_v32 }
 0x7b3   :  { %v11522_v45 = vpop.eup %7961  ;;  %4135 = vadd.xlane.f32.xlu0 %v4134_v52  ;;  %7973 = vpow2.f32 %v4036_v31 }
 0x7b4   :  { %v4137_v21 = vadd.f32 %v11522_v45, %v11520_v36  ;;  %7975 = vpow2.f32 %v4038_v57 }
 0x7b5   :  { %v11528_v49 = vpop.eup %7963  ;;  %7977 = vpow2.f32 %v4040_v28  ;;  %v3866_v48 = vpop.xlane.xlu0 %3865 }
 0x7b6   :  { %4138 = vadd.xlane.f32.xlu1 %v4137_v21  ;;  %v11530_v18 = vpop.eup %7965  ;;  %v3942_v15 = vsub.f32 %v11187_v42, %v3866_v48  ;;  %v3943_v39 = vsub.f32 %v11191_v27, %v3866_v48 }
 0x7b7   :  { %v11532_v50 = vpop.eup %7967  ;;  %v4140_v5 = vadd.f32 %v11530_v18, %v11528_v49  ;;  %v3869_v24 = vpop.xlane.xlu1 %3868 }
 0x7b8   :  { %v11538_v3 = vpop.eup %7969  ;;  %v4042_v11 = vmul.f32 1.442695, %v3942_v15  ;;  %v4044_v62 = vmul.f32 1.442695, %v3943_v39  ;;  %v3944_v60 = vsub.f32 %v11199_v54, %v3869_v24  ;;  %v3945_v23 = vsub.f32 %v11203_v29, %v3869_v24 }
 0x7b9   :  { %4141 = vadd.xlane.f32.xlu0 %v4140_v5  ;;  %v4143_v52 = vadd.f32 %v11538_v3, %v11532_v50 }
 0x7ba   :  { %7979 = vpow2.f32 %v4042_v11  ;;  %v4046_v42 = vmul.f32 1.442695, %v3944_v60  ;;  %v4048_v38 = vmul.f32 1.442695, %v3945_v23 }
 0x7bb   :  { %7981 = vpow2.f32 %v4044_v62  ;;  %4144 = vadd.xlane.f32.xlu1 %v4143_v52 }
 0x7bc   :  { %v11544_v27 = vpop.eup %7971  ;;  %7983 = vpow2.f32 %v4046_v42 }
 0x7bd   :  { %v11546_v26 = vpop.eup %7973  ;;  %7985 = vpow2.f32 %v4048_v38  ;;  %v3872_v31 = vpop.xlane.xlu0 %3871 }
 0x7be   :  { %v11548_v34 = vpop.eup %7975  ;;  %v3946_v54 = vsub.f32 %v11211_v43, %v3872_v31  ;;  %v3947_v29 = vsub.f32 %v11215_v35, %v3872_v31  ;;  %v4146_v32 = vadd.f32 %v11546_v26, %v11544_v27 }
 0x7bf   :  { %v11554_v21 = vpop.eup %7977  ;;  %v3875_v57 = vpop.xlane.xlu1 %3874 }
 0x7c0   :  { %v4050_v28 = vmul.f32 1.442695, %v3946_v54  ;;  %v4052_v48 = vmul.f32 1.442695, %v3947_v29  ;;  %4147 = vadd.xlane.f32.xlu0 %v4146_v32  ;;  %v3948_v15 = vsub.f32 %v11221_v20, %v3875_v57  ;;  %v3949_v39 = vsub.f32 %v11225_v41, %v3875_v57  ;;  %v13160_v32 = vld [vmem:[#allocation35_spill] sm:$0xff] }
 0x7c1   :  { %v4149_v5 = vadd.f32 %v11554_v21, %v11548_v34 }
 0x7c2   :  { %7987 = vpow2.f32 %v4050_v28  ;;  %v4054_v43 = vmul.f32 1.442695, %v3948_v15  ;;  %v4056_v24 = vmul.f32 1.442695, %v3949_v39  ;;  %v13161_v28 = vld [vmem:[#allocation37_spill] sm:$0xff] }
 0x7c3   :  { %7989 = vpow2.f32 %v4052_v48  ;;  %4150 = vadd.xlane.f32.xlu1 %v4149_v5 }
 0x7c4   :  { %v11560_v35 = vpop.eup %7979  ;;  %7991 = vpow2.f32 %v4054_v43 }
 0x7c5   :  { %13156 = vst [vmem:[#allocation63_spill] sm:$0xff] %v11560_v35  ;;  %v11562_v11 = vpop.eup %7981  ;;  %7993 = vpow2.f32 %v4056_v24  ;;  %v13162_v24 = vld [vmem:[#allocation45_spill] sm:$0xff] }
 0x7c6   :  { %v11564_v62 = vpop.eup %7983  ;;  %v4152_v20 = vadd.f32 %v11562_v11, %v11560_v35 }
 0x7c7   :  { %v11568_v41 = vpop.eup %7985 }
 0x7c8   :  { %4153 = vadd.xlane.f32.xlu0 %v4152_v20  ;;  %v4155_v60 = vadd.f32 %v11568_v41, %v11564_v62 }
 0x7ca   :  { %4156 = vadd.xlane.f32.xlu1 %v4155_v60 }
 0x7cc   :  { %v11572_v23 = vpop.eup %7987 }
 0x7cd   :  { %13157 = vst [vmem:[#allocation65_spill] sm:$0xff] %v11572_v23  ;;  %v11574_v52 = vpop.eup %7989 }
 0x7ce   :  { %13158 = vst [vmem:[#allocation67_spill] sm:$0xff] %v11574_v52  ;;  %v11576_v42 = vpop.eup %7991  ;;  %v4158_v38 = vadd.f32 %v11574_v52, %v11572_v23 }
 0x7cf   :  { %13159 = vst [vmem:[#allocation69_spill] sm:$0xff] %v11576_v42  ;;  %v11580_v31 = vpop.eup %7993 }
 0x7d0   :  { %4159 = vadd.xlane.f32.xlu0 %v4158_v38  ;;  %v4161_v54 = vadd.f32 %v11580_v31, %v11576_v42 }
 0x7d2   :  { %4162 = vadd.xlane.f32.xlu1 %v4161_v54 }
 0x80a   :  { %v3878_v29 = vpop.xlane.xlu0 %3877 }
 0x80b   :  { %v3950_v57 = vsub.f32 %v13160_v32, %v3878_v29  ;;  %v3951_v48 = vsub.f32 %v13161_v28, %v3878_v29  ;;  %v13163_v32 = vld [vmem:[#allocation49_spill] sm:$0xff] }
 0x80d   :  { %v4058_v15 = vmul.f32 1.442695, %v3950_v57  ;;  %v4060_v39 = vmul.f32 1.442695, %v3951_v48  ;;  %v13164_v57 = vld [vmem:[#allocation51_spill] sm:$0xff] }
 0x80e   :  { %v4100_v60 = vpop.xlane.xlu0 %4099 }
 0x80f   :  { %v3881_v5 = vpop.xlane.xlu1 %3880  ;;  %7995 = vpow2.f32 %v4058_v15 }
 0x810   :  { %v3952_v43 = vsub.f32 %v11256_v19, %v3881_v5  ;;  %v3953_v20 = vsub.f32 %v13162_v24, %v3881_v5  ;;  %7997 = vpow2.f32 %v4060_v39 }
 0x811   :  { %7999 = vrcp.f32 %v4100_v60 }
 0x812   :  { %v4062_v38 = vmul.f32 1.442695, %v3952_v43  ;;  %v4064_v23 = vmul.f32 1.442695, %v3953_v20 }
 0x813   :  { %v4103_v42 = vpop.xlane.xlu1 %4102 }
 0x814   :  { %8001 = vpow2.f32 %v4062_v38 }
 0x815   :  { %8003 = vpow2.f32 %v4064_v23 }
 0x816   :  { %8005 = vrcp.f32 %v4103_v42  ;;  %v3884_v54 = vpop.xlane.xlu0 %3883 }
 0x817   :  { %v3954_v29 = vsub.f32 %v13163_v32, %v3884_v54  ;;  %v3955_v28 = vsub.f32 %v13164_v57, %v3884_v54 }
 0x819   :  { %v4066_v48 = vmul.f32 1.442695, %v3954_v29  ;;  %v4068_v15 = vmul.f32 1.442695, %v3955_v28  ;;  %v11590_v52 = vpop.eup %7995 }
 0x81a   :  { %13165 = vst [vmem:[#allocation82_spill] sm:$0xff] %v11590_v52  ;;  %v11592_v5 = vpop.eup %7997  ;;  %v4106_v24 = vpop.xlane.xlu0 %4105 }
 0x81b   :  { %v3887_v19 = vpop.xlane.xlu1 %3886  ;;  %13166 = vst [vmem:[#allocation83_spill] sm:$0xff] %v11592_v5  ;;  %8007 = vpow2.f32 %v4066_v48  ;;  %v4164_v23 = vadd.f32 %v11592_v5, %v11590_v52  ;;  %v8000_v42 = vpop.eup %7999  ;;  %v13170_v48 = vld [vmem:[#allocation47_spill] sm:$0xff] }
 0x81c   :  { %v3956_v39 = vsub.f32 %v11324_v25, %v3887_v19  ;;  %v3957_v43 = vsub.f32 %v11329_v47, %v3887_v19  ;;  %8009 = vpow2.f32 %v4068_v15  ;;  %v13169_v47 = vld [vmem:[#allocation41_spill] sm:$0xff]  ;;  %v13171_v19 = vld [vmem:[#allocation39_spill] sm:$0xff] }
 0x81d   :  { %8011 = vrcp.f32 %v4106_v24  ;;  %4165 = vadd.xlane.f32.xlu0 %v4164_v23  ;;  %v4227_v57 = vmul.f32 %v8000_v42, %v13169_v47 }
 0x81e   :  { %v4070_v20 = vmul.f32 1.442695, %v3956_v39  ;;  %v4072_v60 = vmul.f32 1.442695, %v3957_v43  ;;  %v11598_v38 = vpop.eup %8001  ;;  %v4226_v39 = vmul.f32 %v8000_v42, %v13171_v19  ;;  %v13172_v43 = vld [vmem:[#allocation43_spill] sm:$0xff] }
 0x81f   :  { %13167 = vst [vmem:[#allocation84_spill] sm:$0xff] %v11598_v38  ;;  %v4109_v54 = vpop.xlane.xlu1 %4108  ;;  %v11600_v32 = vpop.eup %8003 }
 0x820   :  { %13168 = vst [vmem:[#allocation85_spill] sm:$0xff] %v11600_v32  ;;  %8013 = vpow2.f32 %v4070_v20  ;;  %v8006_v29 = vpop.eup %8005  ;;  %v4167_v25 = vadd.f32 %v11600_v32, %v11598_v38 }
 0x821   :  { %8015 = vpow2.f32 %v4072_v60  ;;  %v4229_v15 = vmul.f32 %v8006_v29, %v13170_v48  ;;  %v4228_v24 = vmul.f32 %v8006_v29, %v13172_v43 }
 0x822   :  { %8017 = vrcp.f32 %v4109_v54  ;;  %v3890_v28 = vpop.xlane.xlu0 %3889  ;;  %4168 = vadd.xlane.f32.xlu1 %v4167_v25 }
 0x823   :  { %v3958_v23 = vsub.f32 %v11374_v46, %v3890_v28  ;;  %v3959_v52 = vsub.f32 %v11379_v9, %v3890_v28  ;;  %v4291_v32 = vpack.c.bf16 %v4229_v15, %v4227_v57  ;;  %v4290_v47 = vpack.c.bf16 %v4228_v24, %v4226_v39  ;;  %v13173_v15 = vld [vmem:[#allocation53_spill] sm:$0xff] }
 0x824   :  { %v3893_v20 = vpop.xlane.xlu1 %3892 }
 0x825   :  { %v3960_v60 = vsub.f32 %v11390_v2, %v3893_v20  ;;  %v3961_v38 = vsub.f32 %v11394_v22, %v3893_v20  ;;  %v4074_v54 = vmul.f32 1.442695, %v3958_v23  ;;  %v4076_v5 = vmul.f32 1.442695, %v3959_v52  ;;  %v11612_v35 = vpop.eup %8007  ;;  %4399 = vmatprep.mubr.bf16.mxu0 %v4291_v32  ;;  %v13174_v20 = vld [vmem:[#allocation57_spill] sm:$0xff] }
 0x826   :  { %v4112_v19 = vpop.xlane.xlu0 %4111  ;;  %v11614_v29 = vpop.eup %8009  ;;  %4400 = vmatmul.mubr.bf16.vlgmr.msra.gmra.mrb[132].mxu0 %v4290_v47  ;;  %v13175_v47 = vld [vmem:[#allocation55_spill] sm:$0xff] }
 0x827   :  { %v4078_v48 = vmul.f32 1.442695, %v3960_v60  ;;  %v4080_v42 = vmul.f32 1.442695, %v3961_v38  ;;  %8019 = vpow2.f32 %v4074_v54  ;;  %v4170_v9 = vadd.f32 %v11614_v29, %v11612_v35  ;;  %v8012_v2 = vpop.eup %8011 }
 0x828   :  { %v4115_v46 = vpop.xlane.xlu1 %4114  ;;  %8021 = vpow2.f32 %v4076_v5  ;;  %v4231_v28 = vmul.f32 %v8012_v2, %v11305_v40  ;;  %v4230_v39 = vmul.f32 %v8012_v2, %v13173_v15 }
 0x829   :  { %8023 = vpow2.f32 %v4078_v48  ;;  %4171 = vadd.xlane.f32.xlu0 %v4170_v9 }
 0x82a   :  { %v11618_v22 = vpop.eup %8013  ;;  %8025 = vpow2.f32 %v4080_v42  ;;  %v3896_v52 = vpop.xlane.xlu0 %3895 }
 0x82b   :  { %v11620_v25 = vpop.eup %8015  ;;  %8027 = vrcp.f32 %v4112_v19  ;;  %v3962_v38 = vsub.f32 %v11423_v7, %v3896_v52  ;;  %v3963_v32 = vsub.f32 %v11427_v4, %v3896_v52 }
 0x82c   :  { %v8018_v57 = vpop.eup %8017  ;;  %8029 = vrcp.f32 %v4115_v46  ;;  %v4173_v5 = vadd.f32 %v11620_v25, %v11618_v22 }
 0x82d   :  { %v4082_v43 = vmul.f32 1.442695, %v3962_v38  ;;  %v4084_v24 = vmul.f32 1.442695, %v3963_v32  ;;  %v4233_v60 = vmul.f32 %v8018_v57, %v13174_v20  ;;  %v4232_v54 = vmul.f32 %v8018_v57, %v13175_v47 }
 0x82e   :  { %v4118_v48 = vpop.xlane.xlu0 %4117  ;;  %4174 = vadd.xlane.f32.xlu1 %v4173_v5 }
 0x82f   :  { %v3899_v23 = vpop.xlane.xlu1 %3898  ;;  %8031 = vpow2.f32 %v4082_v43  ;;  %v4293_v42 = vpack.c.bf16 %v4233_v60, %v4231_v28  ;;  %v4292_v19 = vpack.c.bf16 %v4232_v54, %v4230_v39  ;;  %v13176_v54 = vld [vmem:[#allocation59_spill] sm:$0xff] }
 0x830   :  { %v3964_v7 = vsub.f32 %v11442_v8, %v3899_v23  ;;  %v3965_v4 = vsub.f32 %v11448_v13, %v3899_v23  ;;  %8033 = vpow2.f32 %v4084_v24 }
 0x831   :  { %v11632_v9 = vpop.eup %8019  ;;  %8035 = vrcp.f32 %v4118_v48  ;;  %4409 = vmatprep.mubr.bf16.mxu0 %v4293_v42 }
 0x832   :  { %v4086_v40 = vmul.f32 1.442695, %v3964_v7  ;;  %v4088_v46 = vmul.f32 1.442695, %v3965_v4  ;;  %v11634_v52 = vpop.eup %8021  ;;  %4410 = vmatmul.mubr.bf16.gmra.mrb[136].mxu0 %v4292_v19  ;;  %v3902_v8 = vpop.xlane.xlu0 %3901  ;;  %v13177_v4 = vld [vmem:[#allocation61_spill] sm:$0xff] }
 0x833   :  { %v4121_v2 = vpop.xlane.xlu1 %4120  ;;  %v11636_v38 = vpop.eup %8023  ;;  %v3966_v13 = vsub.f32 %v11464_v33, %v3902_v8  ;;  %v3967_v32 = vsub.f32 %v11468_v55, %v3902_v8  ;;  %v4176_v57 = vadd.f32 %v11634_v52, %v11632_v9 }
 0x834   :  { %8037 = vpow2.f32 %v4086_v40  ;;  %v11642_v5 = vpop.eup %8025 }
 0x835   :  { %8039 = vpow2.f32 %v4088_v46  ;;  %v8028_v28 = vpop.eup %8027  ;;  %v4090_v15 = vmul.f32 1.442695, %v3966_v13  ;;  %v4092_v39 = vmul.f32 1.442695, %v3967_v32  ;;  %4177 = vadd.xlane.f32.xlu0 %v4176_v57  ;;  %v4179_v24 = vadd.f32 %v11642_v5, %v11636_v38 }
 0x836   :  { %8041 = vrcp.f32 %v4121_v2  ;;  %v8030_v23 = vpop.eup %8029  ;;  %v4124_v55 = vpop.xlane.xlu0 %4123  ;;  %v4235_v60 = vmul.f32 %v8028_v28, %v11351_v17  ;;  %v4234_v7 = vmul.f32 %v8028_v28, %v13176_v54 }
 0x837   :  { %v3905_v43 = vpop.xlane.xlu1 %3904  ;;  %8043 = vpow2.f32 %v4090_v15  ;;  %4180 = vadd.xlane.f32.xlu1 %v4179_v24  ;;  %v4237_v47 = vmul.f32 %v8030_v23, %v11368_v37  ;;  %v4236_v48 = vmul.f32 %v8030_v23, %v13177_v4  ;;  %v7591_v4 = vld [vmem:[#allocation14 + $0x104] ss:$8 sps:$4 sm:$0xff]  }
 0x838   :  { %v3968_v20 = vsub.f32 %v11480_v51, %v3905_v43  ;;  %v3969_v33 = vsub.f32 %v11486_v56, %v3905_v43  ;;  %8045 = vpow2.f32 %v4092_v39  ;;  %4849 = vmatprep.subr.bf16.mxu1 %v7591_v4 }
 0x839   :  { %v11652_v40 = vpop.eup %8031  ;;  %8047 = vrcp.f32 %v4124_v55  ;;  %v4295_v51 = vpack.c.bf16 %v4237_v47, %v4235_v60  ;;  %v4294_v56 = vpack.c.bf16 %v4236_v48, %v4234_v7 }
 0x83a   :  { %v4094_v42 = vmul.f32 1.442695, %v3968_v20  ;;  %v4096_v19 = vmul.f32 1.442695, %v3969_v33  ;;  %v11654_v2 = vpop.eup %8033  ;;  %v4130_v17 = vpop.xlane.xlu0 %4129 }
 0x83b   :  { %v4127_v46 = vpop.xlane.xlu1 %4126  ;;  %v8036_v8 = vpop.eup %8035  ;;  %4419 = vmatprep.mubr.bf16.mxu0 %v4295_v51  ;;  %v4182_v37 = vadd.f32 %v11654_v2, %v11652_v40 }
 0x83c   :  { %8049 = vpow2.f32 %v4094_v42  ;;  %4420 = vmatmul.mubr.bf16.gmra.mrb[140].mxu0 %v4294_v56  ;;  %v4239_v39 = vmul.f32 %v8036_v8, %v11408_v53  ;;  %v4238_v24 = vmul.f32 %v8036_v8, %v11404_v59 }
 0x83d   :  { %8051 = vpow2.f32 %v4096_v19  ;;  %4183 = vadd.xlane.f32.xlu0 %v4182_v37 }
 0x83e   :  { %v11658_v13 = vpop.eup %8037  ;;  %8053 = vrcp.f32 %v4127_v46 }
 0x83f   :  { %v11660_v32 = vpop.eup %8039  ;;  %8055 = vrcp.f32 %v4130_v17  ;;  %v4133_v57 = vpop.xlane.xlu1 %4132 }
 0x840   :  { %v8042_v28 = vpop.eup %8041  ;;  %v4185_v15 = vadd.f32 %v11660_v32, %v11658_v13  ;;  %8057 = vrcp.f32 %v4133_v57  ;;  %v4136_v20 = vpop.xlane.xlu0 %4135 }
 0x841   :  { %v4241_v43 = vmul.f32 %v8042_v28, %v11419_v10  ;;  %v4240_v23 = vmul.f32 %v8042_v28, %v11410_v58  ;;  %v11668_v33 = vpop.eup %8043  ;;  %8059 = vrcp.f32 %v4136_v20  ;;  %v7589_v58 = vld [vmem:[#allocation14 + $0x100] ss:$8 sps:$4 sm:$0xff]  }
 0x842   :  { %4186 = vadd.xlane.f32.xlu1 %v4185_v15  ;;  %v11670_v47 = vpop.eup %8045  ;;  %4850 = vmatpush1.bf16.msra.mxu1 %v7589_v58 }
 0x843   :  { %v4297_v55 = vpack.c.bf16 %v4241_v43, %v4239_v39  ;;  %v4296_v60 = vpack.c.bf16 %v4240_v23, %v4238_v24  ;;  %v4139_v54 = vpop.xlane.xlu1 %4138  ;;  %v8048_v7 = vpop.eup %8047  ;;  %v4188_v53 = vadd.f32 %v11670_v47, %v11668_v33 }
 0x844   :  { %8061 = vrcp.f32 %v4139_v54  ;;  %v4243_v51 = vmul.f32 %v8048_v7, %v11460_v14  ;;  %v4242_v56 = vmul.f32 %v8048_v7, %v11457_v12  ;;  %v7594_v12 = vld [vmem:[#allocation14 + $0x114] ss:$8 sps:$4 sm:$0xff]  }
 0x845   :  { %4429 = vmatprep.mubr.bf16.mxu0 %v4297_v55  ;;  %4189 = vadd.xlane.f32.xlu0 %v4188_v53  ;;  %v7597_v55 = vld [vmem:[#allocation14 + $0x124] ss:$8 sps:$4 sm:$0xff]  }
 0x846   :  { %v11674_v10 = vpop.eup %8049  ;;  %4430 = vmatmul.mubr.bf16.gmra.mrb[144].mxu0 %v4296_v60  ;;  %v4142_v8 = vpop.xlane.xlu0 %4141  ;;  %4851 = vmatprep.subr.bf16.mxu1 %v7594_v12  ;;  %v7607_v12 = vld [vmem:[#allocation14 + $0x160] ss:$8 sps:$4 sm:$0xff]  }
 0x847   :  { %v11676_v59 = vpop.eup %8051  ;;  %8063 = vrcp.f32 %v4142_v8 }
 0x848   :  { %v8054_v48 = vpop.eup %8053  ;;  %v4191_v42 = vadd.f32 %v11676_v59, %v11674_v10  ;;  %v4145_v43 = vpop.xlane.xlu1 %4144 }
 0x849   :  { %v8056_v19 = vpop.eup %8055  ;;  %v4245_v46 = vmul.f32 %v8054_v48, %v11482_v61  ;;  %v4244_v17 = vmul.f32 %v8054_v48, %v11476_v16  ;;  %8065 = vrcp.f32 %v4145_v43  ;;  %v7592_v61 = vld [vmem:[#allocation14 + $0x110] ss:$8 sps:$4 sm:$0xff]   ;;  %v7600_v48 = vld [vmem:[#allocation14 + $0x134] ss:$8 sps:$4 sm:$0xff]  }
 0x84a   :  { %v8058_v37 = vpop.eup %8057  ;;  %4192 = vadd.xlane.f32.xlu1 %v4191_v42  ;;  %v4247_v15 = vmul.f32 %v8056_v19, %v11500_v0  ;;  %v4246_v20 = vmul.f32 %v8056_v19, %v11494_v6  ;;  %4852 = vmatpush1.bf16.msra.mxu1 %v7592_v61  ;;  %v7598_v6 = vld [vmem:[#allocation14 + $0x130] ss:$8 sps:$4 sm:$0xff]  }
 0x84b   :  { %v4299_v57 = vpack.c.bf16 %v4245_v46, %v4243_v51  ;;  %v4298_v28 = vpack.c.bf16 %v4244_v17, %v4242_v56  ;;  %v4249_v39 = vmul.f32 %v8058_v37, %v11508_v63  ;;  %v8060_v24 = vpop.eup %8059  ;;  %v4248_v16 = vmul.f32 %v8058_v37, %v11505_v44  ;;  %v7595_v63 = vld [vmem:[#allocation14 + $0x120] ss:$8 sps:$4 sm:$0xff]   ;;  %4853 = vmatprep.subr.bf16.mxu1 %v7597_v55 }
 0x84c   :  { %v4251_v54 = vmul.f32 %v8060_v24, %v11514_v1  ;;  %v4250_v42 = vmul.f32 %v8060_v24, %v11512_v30  ;;  %v7603_v1 = vld [vmem:[#allocation14 + $0x144] ss:$8 sps:$4 sm:$0xff]   ;;  %v7601_v56 = vld [vmem:[#allocation14 + $0x140] ss:$8 sps:$4 sm:$0xff]  }
 0x84d   :  { %4439 = vmatprep.mubr.bf16.mxu0 %v4299_v57  ;;  %v4301_v14 = vpack.c.bf16 %v4249_v39, %v4247_v15  ;;  %v4148_v60 = vpop.xlane.xlu0 %4147  ;;  %v4300_v7 = vpack.c.bf16 %v4248_v16, %v4246_v20  ;;  %v7609_v39 = vld [vmem:[#allocation14 + $0x164] ss:$8 sps:$4 sm:$0xff]   ;;  %v7610_v20 = vld [vmem:[#allocation14 + $0x170] ss:$8 sps:$4 sm:$0xff]  }
 0x84e   :  { %4440 = vmatmul.mubr.bf16.gmra.mrb[148].mxu0 %v4298_v28  ;;  %v8062_v23 = vpop.eup %8061  ;;  %8067 = vrcp.f32 %v4148_v60  ;;  %4854 = vmatpush1.bf16.msra.mxu1 %v7595_v63  ;;  %v7606_v28 = vld [vmem:[#allocation14 + $0x154] ss:$8 sps:$4 sm:$0xff]   ;;  %v7615_v63 = vld [vmem:[#allocation14 + $0x184] ss:$8 sps:$4 sm:$0xff]  }
 0x84f   :  { %4449 = vmatprep.mubr.bf16.mxu0 %v4301_v14  ;;  %v4253_v0 = vmul.f32 %v8062_v23, %v11522_v45  ;;  %v4252_v4 = vmul.f32 %v8062_v23, %v11520_v36  ;;  %4855 = vmatprep.subr.bf16.mxu1 %v7600_v48  ;;  %v13179_v48 = vld [vmem:[#allocation67_spill] sm:$0xff] }
 0x850   :  { %v4151_v58 = vpop.xlane.xlu1 %4150 }
 0x851   :  { %v4303_v53 = vpack.c.bf16 %v4253_v0, %v4251_v54  ;;  %8069 = vrcp.f32 %v4151_v58  ;;  %v8064_v44 = vpop.eup %8063  ;;  %v4302_v17 = vpack.c.bf16 %v4252_v4, %v4250_v42  ;;  %v7613_v54 = vld [vmem:[#allocation14 + $0x180] ss:$8 sps:$4 sm:$0xff]   ;;  %v7621_v4 = vld [vmem:[#allocation14 + $0x1a4] ss:$8 sps:$4 sm:$0xff]  }
 0x852   :  { %v4255_v46 = vmul.f32 %v8064_v44, %v11530_v18  ;;  %4856 = vmatpush1.bf16.msra.mxu1 %v7598_v6  ;;  %v4254_v15 = vmul.f32 %v8064_v44, %v11528_v49 }
 0x853   :  { %v8066_v45 = vpop.eup %8065  ;;  %4857 = vmatprep.subr.bf16.mxu1 %v7603_v1 }
 0x854   :  { %v4257_v19 = vmul.f32 %v8066_v45, %v11538_v3  ;;  %v4256_v30 = vmul.f32 %v8066_v45, %v11532_v50  ;;  %v7604_v3 = vld [vmem:[#allocation14 + $0x150] ss:$8 sps:$4 sm:$0xff]  }
 0x855   :  { %v4154_v51 = vpop.xlane.xlu0 %4153 }
 0x856   :  { %4450 = vmatmul.mubr.bf16.gmra.mrb[152].mxu0 %v4300_v7  ;;  %8071 = vrcp.f32 %v4154_v51  ;;  %v4305_v8 = vpack.c.bf16 %v4257_v19, %v4255_v46  ;;  %4858 = vmatpush1.bf16.msra.mxu1 %v7601_v56  ;;  %v4304_v61 = vpack.c.bf16 %v4256_v30, %v4254_v15  ;;  %v7619_v19 = vld [vmem:[#allocation14 + $0x1a0] ss:$8 sps:$4 sm:$0xff]   ;;  %v7624_v51 = vld [vmem:[#allocation14 + $0x1b4] ss:$8 sps:$4 sm:$0xff]   ;;  %v7622_v56 = vld [vmem:[#allocation14 + $0x1b0] ss:$8 sps:$4 sm:$0xff]  }
 0x857   :  { %4459 = vmatprep.mubr.bf16.mxu0 %v4303_v53  ;;  %v4157_v36 = vpop.xlane.xlu1 %4156  ;;  %4859 = vmatprep.subr.bf16.mxu1 %v7606_v28  ;;  %v7618_v53 = vld [vmem:[#allocation14 + $0x194] ss:$8 sps:$4 sm:$0xff]   ;;  %v7633_v28 = vld [vmem:[#allocation14 + $0x1e4] ss:$8 sps:$4 sm:$0xff]  }
 0x858   :  { %8073 = vrcp.f32 %v4157_v36  ;;  %v8068_v37 = vpop.eup %8067  ;;  %v13180_v46 = vld [vmem:[#allocation69_spill] sm:$0xff] }
 0x859   :  { %v4259_v14 = vmul.f32 %v8068_v37, %v11546_v26  ;;  %v7612_v26 = vld [vmem:[#allocation14 + $0x174] ss:$8 sps:$4 sm:$0xff]   ;;  %v4258_v0 = vmul.f32 %v8068_v37, %v11544_v27  ;;  %v7625_v37 = vld [vmem:[#allocation14 + $0x1c0] ss:$8 sps:$4 sm:$0xff]  }
 0x85a   :  { %4860 = vmatpush1.bf16.msra.mxu1 %v7604_v3  ;;  %v7630_v30 = vld [vmem:[#allocation14 + $0x1d4] ss:$8 sps:$4 sm:$0xff]   ;;  %v7631_v3 = vld [vmem:[#allocation14 + $0x1e0] ss:$8 sps:$4 sm:$0xff]  }
 0x85b   :  { %v8070_v57 = vpop.eup %8069  ;;  %4861 = vmatprep.subr.bf16.mxu1 %v7609_v39  ;;  %v7636_v15 = vld [vmem:[#allocation14 + $0x1f4] ss:$8 sps:$4 sm:$0xff]  }
 0x85c   :  { %v4261_v18 = vmul.f32 %v8070_v57, %v11554_v21  ;;  %v4260_v49 = vmul.f32 %v8070_v57, %v11548_v34  ;;  %v7628_v57 = vld [vmem:[#allocation14 + $0x1d0] ss:$8 sps:$4 sm:$0xff]  }
 0x85d   :  { %v4160_v43 = vpop.xlane.xlu0 %4159 }
 0x85e   :  { %4460 = vmatmul.mubr.bf16.gmra.mrb[156].mxu0 %v4302_v17  ;;  %8075 = vrcp.f32 %v4160_v43  ;;  %v4307_v24 = vpack.c.bf16 %v4261_v18, %v4259_v14  ;;  %4862 = vmatpush1.bf16.msra.mxu1 %v7607_v12  ;;  %v4306_v60 = vpack.c.bf16 %v4260_v49, %v4258_v0  ;;  %v13181_v17 = vld [vmem:[#allocation65_spill] sm:$0xff] }
 0x85f   :  { %4469 = vmatprep.mubr.bf16.mxu0 %v4305_v8  ;;  %v4163_v16 = vpop.xlane.xlu1 %4162  ;;  %4863 = vmatprep.subr.bf16.mxu1 %v7612_v26  ;;  %v7634_v18 = vld [vmem:[#allocation14 + $0x1f0] ss:$8 sps:$4 sm:$0xff]  }
 0x860   :  { %8077 = vrcp.f32 %v4163_v16  ;;  %v8072_v50 = vpop.eup %8071  ;;  %v13182_v16 = vld [vmem:[#allocation83_spill] sm:$0xff]  ;;  %v13185_v26 = vld [vmem:[#allocation84_spill] sm:$0xff] }
 0x861   :  { %v4263_v55 = vmul.f32 %v8072_v50, %v11562_v11  ;;  %v13178_v11 = vld [vmem:[#allocation63_spill] sm:$0xff] }
 0x862   :  { %v8074_v23 = vpop.eup %8073  ;;  %4864 = vmatpush1.bf16.msra.mxu1 %v7610_v20  ;;  %v4262_v6 = vmul.f32 %v8072_v50, %v13178_v11 }
 0x863   :  { %v4265_v21 = vmul.f32 %v8074_v23, %v11568_v41  ;;  %4865 = vmatprep.subr.bf16.mxu1 %v7615_v63  ;;  %v4264_v44 = vmul.f32 %v8074_v23, %v11564_v62  ;;  %v7616_v41 = vld [vmem:[#allocation14 + $0x190] ss:$8 sps:$4 sm:$0xff]  }
 0x864   :  { %v13183_v23 = vld [vmem:[#allocation85_spill] sm:$0xff] }
 0x865   :  { %v4309_v7 = vpack.c.bf16 %v4265_v21, %v4263_v55  ;;  %v4308_v42 = vpack.c.bf16 %v4264_v44, %v4262_v6  ;;  %v13184_v21 = vld [vmem:[#allocation82_spill] sm:$0xff] }
 0x866   :  { %4470 = vmatmul.mubr.bf16.gmra.mrb[160].mxu0 %v4304_v61  ;;  %4866 = vmatpush1.bf16.msra.mxu1 %v7613_v54 }
 0x867   :  { %4479 = vmatprep.mubr.bf16.mxu0 %v4307_v24  ;;  %4867 = vmatprep.subr.bf16.mxu1 %v7618_v53 }
 0x868   :  { %v8076_v58 = vpop.eup %8075 }
 0x869   :  { %v4267_v45 = vmul.f32 %v8076_v58, %v13179_v48  ;;  %v4266_v8 = vmul.f32 %v8076_v58, %v13181_v17 }
 0x86a   :  { %v8078_v34 = vpop.eup %8077  ;;  %4868 = vmatpush1.bf16.msra.mxu1 %v7616_v41 }
 0x86b   :  { %v4269_v27 = vmul.f32 %v8078_v34, %v11580_v31  ;;  %4869 = vmatprep.subr.bf16.mxu1 %v7621_v4  ;;  %v4268_v62 = vmul.f32 %v8078_v34, %v13180_v46  ;;  %v7627_v31 = vld [vmem:[#allocation14 + $0x1c4] ss:$8 sps:$4 sm:$0xff]  }
 0x86d   :  { %v4311_v1 = vpack.c.bf16 %v4269_v27, %v4267_v45  ;;  %v4310_v36 = vpack.c.bf16 %v4268_v62, %v4266_v8 }
 0x86e   :  { %4480 = vmatmul.mubr.bf16.gmra.mrb[164].mxu0 %v4306_v60  ;;  %4870 = vmatpush1.bf16.msra.mxu1 %v7619_v19 }
 0x86f   :  { %4489 = vmatprep.mubr.bf16.mxu0 %v4309_v7  ;;  %4871 = vmatprep.subr.bf16.mxu1 %v7624_v51 }
 0x872   :  { %4872 = vmatpush1.bf16.msra.mxu1 %v7622_v56 }
 0x873   :  { %4873 = vmatprep.subr.bf16.mxu1 %v7627_v31 }
 0x876   :  { %4490 = vmatmul.mubr.bf16.gmra.mrb[168].mxu0 %v4308_v42  ;;  %4874 = vmatpush1.bf16.msra.mxu1 %v7625_v37  ;;  %v7639_v42 = vld [vmem:[#allocation14 + $0x4] ss:$8 sps:$4 sm:$0xff]  }
 0x877   :  { %4499 = vmatprep.mubr.bf16.mxu0 %v4311_v1  ;;  %4875 = vmatprep.subr.bf16.mxu1 %v7630_v30 }
 0x87a   :  { %4876 = vmatpush1.bf16.msra.mxu1 %v7628_v57 }
 0x87b   :  { %4877 = vmatprep.subr.bf16.mxu1 %v7633_v28 }
 0x87e   :  { %4500 = vmatmul.mubr.bf16.gmra.mrb[172].mxu0 %v4310_v36  ;;  %4878 = vmatpush1.bf16.msra.mxu1 %v7631_v3 }
 0x87f   :  { %4879 = vmatprep.subr.bf16.mxu1 %v7636_v15  ;;  %v13187_v15 = vld [vmem:[#allocation81_spill] sm:$0xff] }
 0x882   :  { %4880 = vmatpush1.bf16.msra.mxu1 %v7634_v18 }
 0x883   :  { %5202 = vmatprep.subr.bf16.mxu1 %v7639_v42  ;;  %v7646_v42 = vld [vmem:[#allocation14 + $0x30] ss:$8 sps:$4 sm:$0xff]  }
 0x8aa   :  { %v4166_v39 = vpop.xlane.xlu0 %4165 }
 0x8ab   :  { %8079 = vrcp.f32 %v4166_v39 }
 0x8af   :  { %v4169_v43 = vpop.xlane.xlu1 %4168 }
 0x8b0   :  { %8081 = vrcp.f32 %v4169_v43 }
 0x8b5   :  { %v8080_v61 = vpop.eup %8079 }
 0x8b6   :  { %v4172_v14 = vpop.xlane.xlu0 %4171  ;;  %v4271_v50 = vmul.f32 %v8080_v61, %v13182_v16  ;;  %v4270_v20 = vmul.f32 %v8080_v61, %v13184_v21  ;;  %v7637_v21 = vld [vmem:[#allocation14] ss:$8 sps:$4 sm:$0xff]  }
 0x8b7   :  { %8083 = vrcp.f32 %v4172_v14 }
 0x8ba   :  { %v8082_v12 = vpop.eup %8081 }
 0x8bb   :  { %v4175_v24 = vpop.xlane.xlu1 %4174  ;;  %v4273_v49 = vmul.f32 %v8082_v12, %v13183_v23  ;;  %v4272_v0 = vmul.f32 %v8082_v12, %v13185_v26 }
 0x8bc   :  { %8085 = vrcp.f32 %v4175_v24 }
 0x8bd   :  { %v4313_v63 = vpack.c.bf16 %v4273_v49, %v4271_v50  ;;  %v4312_v55 = vpack.c.bf16 %v4272_v0, %v4270_v20  ;;  %v7642_v20 = vld [vmem:[#allocation14 + $0x14] ss:$8 sps:$4 sm:$0xff]  }
 0x8bf   :  { %4509 = vmatprep.mubr.bf16.mxu0 %v4313_v63 }
 0x8c0   :  { %4510 = vmatmul.mubr.bf16.gmra.mrb[176].mxu0 %v4312_v55  ;;  %v7640_v55 = vld [vmem:[#allocation14 + $0x10] ss:$8 sps:$4 sm:$0xff]  }
 0x8c1   :  { %v8084_v54 = vpop.eup %8083 }
 0x8c2   :  { %v4178_v60 = vpop.xlane.xlu0 %4177  ;;  %v4275_v58 = vmul.f32 %v8084_v54, %v11614_v29  ;;  %v4274_v44 = vmul.f32 %v8084_v54, %v11612_v35 }
 0x8c3   :  { %8087 = vrcp.f32 %v4178_v60 }
 0x8c4   :  { %v4181_v7 = vpop.xlane.xlu1 %4180 }
 0x8c5   :  { %8089 = vrcp.f32 %v4181_v7  ;;  %v7645_v7 = vld [vmem:[#allocation14 + $0x24] ss:$8 sps:$4 sm:$0xff]  }
 0x8c6   :  { %v8086_v53 = vpop.eup %8085 }
 0x8c7   :  { %v4277_v34 = vmul.f32 %v8086_v53, %v11620_v25  ;;  %v4276_v41 = vmul.f32 %v8086_v53, %v11618_v22 }
 0x8c9   :  { %v4315_v27 = vpack.c.bf16 %v4277_v34, %v4275_v58  ;;  %v4314_v4 = vpack.c.bf16 %v4276_v41, %v4274_v44 }
 0x8ca   :  { %v4184_v11 = vpop.xlane.xlu0 %4183 }
 0x8cb   :  { %4519 = vmatprep.mubr.bf16.mxu0 %v4315_v27  ;;  %8091 = vrcp.f32 %v4184_v11  ;;  %v7643_v27 = vld [vmem:[#allocation14 + $0x20] ss:$8 sps:$4 sm:$0xff]  }
 0x8cc   :  { %4520 = vmatmul.mubr.bf16.gmra.mrb[180].mxu0 %v4314_v4 }
 0x8cd   :  { %v8088_v6 = vpop.eup %8087 }
 0x8ce   :  { %v4279_v19 = vmul.f32 %v8088_v6, %v11634_v52  ;;  %v4278_v25 = vmul.f32 %v8088_v6, %v11632_v9  ;;  %v7648_v6 = vld [vmem:[#allocation14 + $0x34] ss:$8 sps:$4 sm:$0xff]  }
 0x8cf   :  { %v4187_v48 = vpop.xlane.xlu1 %4186  ;;  %v8090_v45 = vpop.eup %8089 }
 0x8d0   :  { %8093 = vrcp.f32 %v4187_v48  ;;  %v4281_v29 = vmul.f32 %v8090_v45, %v11642_v5  ;;  %v4280_v35 = vmul.f32 %v8090_v45, %v11636_v38 }
 0x8d2   :  { %v4190_v22 = vpop.xlane.xlu0 %4189  ;;  %v4317_v1 = vpack.c.bf16 %v4281_v29, %v4279_v19  ;;  %v4316_v51 = vpack.c.bf16 %v4280_v35, %v4278_v25  ;;  %v7651_v29 = vld [vmem:[#allocation14 + $0x44] ss:$8 sps:$4 sm:$0xff]  }
 0x8d3   :  { %8095 = vrcp.f32 %v4190_v22 }
 0x8d4   :  { %4529 = vmatprep.mubr.bf16.mxu0 %v4317_v1 }
 0x8d5   :  { %4530 = vmatmul.mubr.bf16.gmra.mrb[184].mxu0 %v4316_v51  ;;  %v8092_v62 = vpop.eup %8091 }
 0x8d6   :  { %v4283_v31 = vmul.f32 %v8092_v62, %v11654_v2  ;;  %v4282_v5 = vmul.f32 %v8092_v62, %v11652_v40  ;;  %v4355_v40 = vld [vmem:[#allocation13 + $0x2] sm:$0x3]  ;;  %v7649_v62 = vld [vmem:[#allocation14 + $0x40] ss:$8 sps:$4 sm:$0xff]  }
 0x8d7   :  { %v4193_v46 = vpop.xlane.xlu1 %4192  ;;  %v11732_v18 = vrot.slane %v4355_v40, %v13187_v15 }
 0x8d8   :  { %8097 = vrcp.f32 %v4193_v46 }
 0x8da   :  { %v8094_v56 = vpop.eup %8093 }
 0x8db   :  { %v4285_v52 = vmul.f32 %v8094_v56, %v11660_v32  ;;  %v4284_v9 = vmul.f32 %v8094_v56, %v11658_v13  ;;  %v13186_v13 = vld [vmem:[#allocation80_spill] sm:$0xff] }
 0x8dc   :  { %v11729_v28 = vrot.slane %v4355_v40, %v13186_v13 }
 0x8dd   :  { %v4319_v38 = vpack.c.bf16 %v4285_v52, %v4283_v31  ;;  %v4318_v17 = vpack.c.bf16 %v4284_v9, %v4282_v5  ;;  %v8096_v8 = vpop.eup %8095  ;;  %v7654_v31 = vld [vmem:[#allocation14 + $0x54] ss:$8 sps:$4 sm:$0xff]  }
 0x8de   :  { %v4287_v37 = vmul.f32 %v8096_v8, %v11670_v47  ;;  %v4286_v57 = vmul.f32 %v8096_v8, %v11668_v33 }
 0x8df   :  { %4539 = vmatprep.mubr.bf16.mxu0 %v4319_v38 }
 0x8e0   :  { %4540 = vmatmul.mubr.bf16.gmra.mrb[188].mxu0 %v4318_v17 }
 0x8e2   :  { %v8098_v36 = vpop.eup %8097 }
 0x8e3   :  { %v4289_v30 = vmul.f32 %v8098_v36, %v11676_v59  ;;  %v4288_v2 = vmul.f32 %v8098_v36, %v11674_v10 }
 0x8e5   :  { %v4321_v3 = vpack.c.bf16 %v4289_v30, %v4287_v37  ;;  %v4320_v32 = vpack.c.bf16 %v4288_v2, %v4286_v57  ;;  %v7652_v37 = vld [vmem:[#allocation14 + $0x50] ss:$8 sps:$4 sm:$0xff]   ;;  %v7657_v2 = vld [vmem:[#allocation14 + $0x64] ss:$8 sps:$4 sm:$0xff]  }
 0x8e7   :  { %4549 = vmatprep.mubr.bf16.mxu0 %v4321_v3 }
 0x8e8   :  { %4550 = vmatmul.mubr.bf16.gmra.mrb[192].mxu0 %v4320_v32 }
 0x8f9   :  { %v4401_v39 = vpop.f32.mrb[132].mxu0 }
 0x8fa   :  { %v4402_v47 = vadd.f32 %v4401_v39, %v11729_v28  ;;  %v4403_v43 = vpop.f32.mrb[133].mxu0 }
 0x8fb   :  { %v4404_v59 = vadd.f32 %v4403_v43, %v11732_v18  ;;  %v4405_v33 = vpop.f32.mrb[134].mxu0  ;;  %v7655_v43 = vld [vmem:[#allocation14 + $0x60] ss:$8 sps:$4 sm:$0xff]  }
 0x8fc   :  { %v4406_v10 = vadd.f32 %v4405_v33, %v11729_v28  ;;  %v4407_v14 = vpop.f32.mrb[135].mxu0  ;;  %v4560_v12 = vmax.f32 %v4402_v47, 0.0 }
 0x8fd   :  { %v4408_v61 = vadd.f32 %v4407_v14, %v11732_v18  ;;  %v4561_v16 = vmax.f32 %v4404_v59, 0.0 }
 0x8fe   :  { %v4562_v24 = vmax.f32 %v4406_v10, 0.0  ;;  %v7660_v10 = vld [vmem:[#allocation14 + $0x74] ss:$8 sps:$4 sm:$0xff]  }
 0x8ff   :  { %v4563_v50 = vmax.f32 %v4408_v61, 0.0 }
 0x900   :  { %v4624_v23 = vpack.c.bf16 %v4562_v24, %v4560_v12 }
 0x901   :  { %v4625_v49 = vpack.c.bf16 %v4563_v50, %v4561_v16  ;;  %v7658_v50 = vld [vmem:[#allocation14 + $0x70] ss:$8 sps:$4 sm:$0xff]  }
 0x903   :  { %4881 = vmatprep.mubr.bf16.mxu1 %v4625_v49 }
 0x904   :  { %4882 = vmatmul.mubr.bf16.vlgmr.msra.gmra.mrb[192].mxu1 %v4624_v23 }
 0x905   :  { %v4411_v26 = vpop.f32.mrb[136].mxu0  ;;  %5203 = vmatpush1.bf16.msra.mxu1 %v7637_v21  ;;  %v7663_v21 = vld [vmem:[#allocation14 + $0x84] ss:$8 sps:$4 sm:$0xff]  }
 0x906   :  { %v4412_v0 = vadd.f32 %v4411_v26, %v11729_v28  ;;  %v4413_v63 = vpop.f32.mrb[137].mxu0  ;;  %5204 = vmatprep.subr.bf16.mxu1 %v7642_v20 }
 0x907   :  { %v4414_v60 = vadd.f32 %v4413_v63, %v11732_v18  ;;  %v4415_v54 = vpop.f32.mrb[138].mxu0 }
 0x908   :  { %v4416_v53 = vadd.f32 %v4415_v54, %v11729_v28  ;;  %v4417_v58 = vpop.f32.mrb[139].mxu0  ;;  %v4564_v44 = vmax.f32 %v4412_v0, 0.0 }
 0x909   :  { %v4418_v34 = vadd.f32 %v4417_v58, %v11732_v18  ;;  %5205 = vmatpush1.bf16.msra.mxu1 %v7640_v55  ;;  %v4565_v4 = vmax.f32 %v4414_v60, 0.0  ;;  %v7661_v60 = vld [vmem:[#allocation14 + $0x80] ss:$8 sps:$4 sm:$0xff]  }
 0x90a   :  { %v4566_v41 = vmax.f32 %v4416_v53, 0.0  ;;  %5206 = vmatprep.subr.bf16.mxu1 %v7645_v7  ;;  %v7666_v53 = vld [vmem:[#allocation14 + $0x94] ss:$8 sps:$4 sm:$0xff]  }
 0x90b   :  { %v4567_v11 = vmax.f32 %v4418_v34, 0.0 }
 0x90c   :  { %v4626_v48 = vpack.c.bf16 %v4566_v41, %v4564_v44 }
 0x90d   :  { %v4627_v45 = vpack.c.bf16 %v4567_v11, %v4565_v4  ;;  %5207 = vmatpush1.bf16.msra.mxu1 %v7643_v27  ;;  %v7664_v4 = vld [vmem:[#allocation14 + $0x90] ss:$8 sps:$4 sm:$0xff]  }
 0x90e   :  { %5208 = vmatprep.subr.bf16.mxu1 %v7648_v6 }
 0x90f   :  { %v4421_v19 = vpop.f32.mrb[140].mxu0  ;;  %4891 = vmatprep.mubr.bf16.mxu1 %v4627_v45 }
 0x910   :  { %v4422_v25 = vadd.f32 %v4421_v19, %v11729_v28  ;;  %v4423_v35 = vpop.f32.mrb[141].mxu0  ;;  %4892 = vmatmul.mubr.bf16.gmra.mrb[196].mxu1 %v4626_v48  ;;  %v7669_v48 = vld [vmem:[#allocation14 + $0xa4] ss:$8 sps:$4 sm:$0xff]  }
 0x911   :  { %v4424_v22 = vadd.f32 %v4423_v35, %v11732_v18  ;;  %v4425_v1 = vpop.f32.mrb[142].mxu0  ;;  %5209 = vmatpush1.bf16.msra.mxu1 %v7646_v42  ;;  %v7667_v35 = vld [vmem:[#allocation14 + $0xa0] ss:$8 sps:$4 sm:$0xff]  }
 0x912   :  { %v4426_v51 = vadd.f32 %v4425_v1, %v11729_v28  ;;  %v4427_v46 = vpop.f32.mrb[143].mxu0  ;;  %5210 = vmatprep.subr.bf16.mxu1 %v7651_v29  ;;  %v4568_v52 = vmax.f32 %v4422_v25, 0.0 }
 0x913   :  { %v4428_v56 = vadd.f32 %v4427_v46, %v11732_v18  ;;  %v4569_v9 = vmax.f32 %v4424_v22, 0.0 }
 0x914   :  { %v4570_v5 = vmax.f32 %v4426_v51, 0.0  ;;  %v7672_v51 = vld [vmem:[#allocation14 + $0xb4] ss:$8 sps:$4 sm:$0xff]  }
 0x915   :  { %v4571_v38 = vmax.f32 %v4428_v56, 0.0  ;;  %5211 = vmatpush1.bf16.msra.mxu1 %v7649_v62 }
 0x916   :  { %v4628_v17 = vpack.c.bf16 %v4570_v5, %v4568_v52  ;;  %5212 = vmatprep.subr.bf16.mxu1 %v7654_v31  ;;  %v7670_v5 = vld [vmem:[#allocation14 + $0xb0] ss:$8 sps:$4 sm:$0xff]  }
 0x917   :  { %v4629_v8 = vpack.c.bf16 %v4571_v38, %v4569_v9 }
 0x919   :  { %v4431_v36 = vpop.f32.mrb[144].mxu0  ;;  %4901 = vmatprep.mubr.bf16.mxu1 %v4629_v8  ;;  %5213 = vmatpush1.bf16.msra.mxu1 %v7652_v37 }
 0x91a   :  { %v4432_v30 = vadd.f32 %v4431_v36, %v11729_v28  ;;  %v4433_v57 = vpop.f32.mrb[145].mxu0  ;;  %4902 = vmatmul.mubr.bf16.gmra.mrb[200].mxu1 %v4628_v17  ;;  %5214 = vmatprep.subr.bf16.mxu1 %v7657_v2  ;;  %v7675_v17 = vld [vmem:[#allocation14 + $0xc4] ss:$8 sps:$4 sm:$0xff]   ;;  %v7673_v2 = vld [vmem:[#allocation14 + $0xc0] ss:$8 sps:$4 sm:$0xff]  }
 0x91b   :  { %v4434_v3 = vadd.f32 %v4433_v57, %v11732_v18  ;;  %v4435_v32 = vpop.f32.mrb[146].mxu0 }
 0x91c   :  { %v4436_v40 = vadd.f32 %v4435_v32, %v11729_v28  ;;  %v4437_v39 = vpop.f32.mrb[147].mxu0  ;;  %v4572_v59 = vmax.f32 %v4432_v30, 0.0 }
 0x91d   :  { %v4438_v47 = vadd.f32 %v4437_v39, %v11732_v18  ;;  %v4573_v14 = vmax.f32 %v4434_v3, 0.0  ;;  %5215 = vmatpush1.bf16.msra.mxu1 %v7655_v43 }
 0x91e   :  { %v4574_v33 = vmax.f32 %v4436_v40, 0.0  ;;  %5216 = vmatprep.subr.bf16.mxu1 %v7660_v10 }
 0x91f   :  { %v4575_v61 = vmax.f32 %v4438_v47, 0.0 }
 0x920   :  { %v4630_v12 = vpack.c.bf16 %v4574_v33, %v4572_v59 }
 0x921   :  { %v4631_v24 = vpack.c.bf16 %v4575_v61, %v4573_v14  ;;  %v4441_v16 = vpop.f32.mrb[148].mxu0  ;;  %5217 = vmatpush1.bf16.msra.mxu1 %v7658_v50 }
 0x922   :  { %v4442_v23 = vadd.f32 %v4441_v16, %v11729_v28  ;;  %v4443_v49 = vpop.f32.mrb[149].mxu0  ;;  %5218 = vmatprep.subr.bf16.mxu1 %v7663_v21 }
 0x923   :  { %v4444_v20 = vadd.f32 %v4443_v49, %v11732_v18  ;;  %v4445_v26 = vpop.f32.mrb[150].mxu0  ;;  %4911 = vmatprep.mubr.bf16.mxu1 %v4631_v24  ;;  %v7678_v24 = vld [vmem:[#allocation14 + $0xd4] ss:$8 sps:$4 sm:$0xff]  }
 0x924   :  { %v4446_v0 = vadd.f32 %v4445_v26, %v11729_v28  ;;  %v4447_v63 = vpop.f32.mrb[151].mxu0  ;;  %4912 = vmatmul.mubr.bf16.gmra.mrb[204].mxu1 %v4630_v12  ;;  %v4576_v54 = vmax.f32 %v4442_v23, 0.0  ;;  %v7676_v12 = vld [vmem:[#allocation14 + $0xd0] ss:$8 sps:$4 sm:$0xff]  }
 0x925   :  { %v4448_v55 = vadd.f32 %v4447_v63, %v11732_v18  ;;  %v4577_v58 = vmax.f32 %v4444_v20, 0.0  ;;  %5219 = vmatpush1.bf16.msra.mxu1 %v7661_v60 }
 0x926   :  { %v4578_v7 = vmax.f32 %v4446_v0, 0.0  ;;  %5220 = vmatprep.subr.bf16.mxu1 %v7666_v53 }
 0x927   :  { %v4579_v34 = vmax.f32 %v4448_v55, 0.0 }
 0x928   :  { %v4632_v44 = vpack.c.bf16 %v4578_v7, %v4576_v54 }
 0x929   :  { %v4633_v41 = vpack.c.bf16 %v4579_v34, %v4577_v58  ;;  %v4451_v27 = vpop.f32.mrb[152].mxu0  ;;  %5221 = vmatpush1.bf16.msra.mxu1 %v7664_v4  ;;  %v7679_v58 = vld [vmem:[#allocation14 + $0xe0] ss:$8 sps:$4 sm:$0xff]   ;;  %v7681_v34 = vld [vmem:[#allocation14 + $0xe4] ss:$8 sps:$4 sm:$0xff]  }
 0x92a   :  { %v4452_v11 = vadd.f32 %v4451_v27, %v11729_v28  ;;  %v4453_v6 = vpop.f32.mrb[153].mxu0  ;;  %5222 = vmatprep.subr.bf16.mxu1 %v7669_v48  ;;  %v7684_v48 = vld [vmem:[#allocation14 + $0xf4] ss:$8 sps:$4 sm:$0xff]  }
 0x92b   :  { %v4454_v45 = vadd.f32 %v4453_v6, %v11732_v18  ;;  %v4455_v42 = vpop.f32.mrb[154].mxu0  ;;  %4921 = vmatprep.mubr.bf16.mxu1 %v4633_v41  ;;  %v7682_v6 = vld [vmem:[#allocation14 + $0xf0] ss:$8 sps:$4 sm:$0xff]  }
 0x92c   :  { %v4456_v19 = vadd.f32 %v4455_v42, %v11729_v28  ;;  %v4457_v29 = vpop.f32.mrb[155].mxu0  ;;  %4922 = vmatmul.mubr.bf16.gmra.mrb[208].mxu1 %v4632_v44  ;;  %v4580_v22 = vmax.f32 %v4452_v11, 0.0 }
 0x92d   :  { %v4458_v25 = vadd.f32 %v4457_v29, %v11732_v18  ;;  %v4581_v46 = vmax.f32 %v4454_v45, 0.0  ;;  %5223 = vmatpush1.bf16.msra.mxu1 %v7667_v35 }
 0x92e   :  { %v4582_v1 = vmax.f32 %v4456_v19, 0.0  ;;  %5224 = vmatprep.subr.bf16.mxu1 %v7672_v51 }
 0x92f   :  { %v4583_v62 = vmax.f32 %v4458_v25, 0.0 }
 0x930   :  { %v4634_v56 = vpack.c.bf16 %v4582_v1, %v4580_v22 }
 0x931   :  { %v4635_v31 = vpack.c.bf16 %v4583_v62, %v4581_v46  ;;  %v4461_v52 = vpop.f32.mrb[156].mxu0  ;;  %5225 = vmatpush1.bf16.msra.mxu1 %v7670_v5 }
 0x932   :  { %v4462_v9 = vadd.f32 %v4461_v52, %v11729_v28  ;;  %v4463_v38 = vpop.f32.mrb[157].mxu0  ;;  %5226 = vmatprep.subr.bf16.mxu1 %v7675_v17 }
 0x933   :  { %v4464_v8 = vadd.f32 %v4463_v38, %v11732_v18  ;;  %v4465_v36 = vpop.f32.mrb[158].mxu0  ;;  %4931 = vmatprep.mubr.bf16.mxu1 %v4635_v31 }
 0x934   :  { %v4466_v37 = vadd.f32 %v4465_v36, %v11729_v28  ;;  %v4467_v30 = vpop.f32.mrb[159].mxu0  ;;  %4932 = vmatmul.mubr.bf16.gmra.mrb[212].mxu1 %v4634_v56  ;;  %v4584_v3 = vmax.f32 %v4462_v9, 0.0 }
 0x935   :  { %v4468_v57 = vadd.f32 %v4467_v30, %v11732_v18  ;;  %v4585_v40 = vmax.f32 %v4464_v8, 0.0  ;;  %5227 = vmatpush1.bf16.msra.mxu1 %v7673_v2 }
 0x936   :  { %v4586_v32 = vmax.f32 %v4466_v37, 0.0  ;;  %5228 = vmatprep.subr.bf16.mxu1 %v7678_v24 }
 0x937   :  { %v4587_v39 = vmax.f32 %v4468_v57, 0.0 }
 0x938   :  { %v4636_v47 = vpack.c.bf16 %v4586_v32, %v4584_v3 }
 0x939   :  { %v4637_v43 = vpack.c.bf16 %v4587_v39, %v4585_v40  ;;  %v4471_v59 = vpop.f32.mrb[160].mxu0  ;;  %5229 = vmatpush1.bf16.msra.mxu1 %v7676_v12 }
 0x93a   :  { %v4472_v33 = vadd.f32 %v4471_v59, %v11729_v28  ;;  %v4473_v10 = vpop.f32.mrb[161].mxu0  ;;  %5230 = vmatprep.subr.bf16.mxu1 %v7681_v34 }
 0x93b   :  { %v4474_v14 = vadd.f32 %v4473_v10, %v11732_v18  ;;  %v4475_v61 = vpop.f32.mrb[162].mxu0  ;;  %4941 = vmatprep.mubr.bf16.mxu1 %v4637_v43 }
 0x93c   :  { %v4476_v16 = vadd.f32 %v4475_v61, %v11729_v28  ;;  %v4477_v50 = vpop.f32.mrb[163].mxu0  ;;  %4942 = vmatmul.mubr.bf16.gmra.mrb[216].mxu1 %v4636_v47  ;;  %v4588_v49 = vmax.f32 %v4472_v33, 0.0 }
 0x93d   :  { %v4478_v23 = vadd.f32 %v4477_v50, %v11732_v18  ;;  %v4589_v20 = vmax.f32 %v4474_v14, 0.0  ;;  %5231 = vmatpush1.bf16.msra.mxu1 %v7679_v58 }
 0x93e   :  { %v4590_v21 = vmax.f32 %v4476_v16, 0.0  ;;  %5232 = vmatprep.subr.bf16.mxu1 %v7684_v48 }
 0x93f   :  { %v4591_v26 = vmax.f32 %v4478_v23, 0.0 }
 0x940   :  { %v4638_v0 = vpack.c.bf16 %v4590_v21, %v4588_v49 }
 0x941   :  { %v4639_v63 = vpack.c.bf16 %v4591_v26, %v4589_v20  ;;  %v4481_v55 = vpop.f32.mrb[164].mxu0  ;;  %5233 = vmatpush1.bf16.msra.mxu1 %v7682_v6 }
 0x942   :  { %v4482_v60 = vadd.f32 %v4481_v55, %v11729_v28  ;;  %v4483_v54 = vpop.f32.mrb[165].mxu0 }
 0x943   :  { %v4484_v7 = vadd.f32 %v4483_v54, %v11732_v18  ;;  %v4485_v53 = vpop.f32.mrb[166].mxu0  ;;  %4951 = vmatprep.mubr.bf16.mxu1 %v4639_v63 }
 0x944   :  { %v4486_v44 = vadd.f32 %v4485_v53, %v11729_v28  ;;  %v4487_v41 = vpop.f32.mrb[167].mxu0  ;;  %4952 = vmatmul.mubr.bf16.gmra.mrb[220].mxu1 %v4638_v0  ;;  %v4592_v4 = vmax.f32 %v4482_v60, 0.0 }
 0x945   :  { %v4488_v27 = vadd.f32 %v4487_v41, %v11732_v18  ;;  %v4593_v45 = vmax.f32 %v4484_v7, 0.0 }
 0x946   :  { %v4594_v11 = vmax.f32 %v4486_v44, 0.0 }
 0x947   :  { %v4595_v42 = vmax.f32 %v4488_v27, 0.0 }
 0x948   :  { %v4640_v19 = vpack.c.bf16 %v4594_v11, %v4592_v4 }
 0x949   :  { %v4641_v29 = vpack.c.bf16 %v4595_v42, %v4593_v45  ;;  %v4491_v25 = vpop.f32.mrb[168].mxu0 }
 0x94a   :  { %v4492_v35 = vadd.f32 %v4491_v25, %v11729_v28  ;;  %v4493_v22 = vpop.f32.mrb[169].mxu0 }
 0x94b   :  { %v4494_v1 = vadd.f32 %v4493_v22, %v11732_v18  ;;  %v4495_v51 = vpop.f32.mrb[170].mxu0  ;;  %4961 = vmatprep.mubr.bf16.mxu1 %v4641_v29 }
 0x94c   :  { %v4496_v46 = vadd.f32 %v4495_v51, %v11729_v28  ;;  %v4497_v62 = vpop.f32.mrb[171].mxu0  ;;  %4962 = vmatmul.mubr.bf16.gmra.mrb[224].mxu1 %v4640_v19  ;;  %v4596_v31 = vmax.f32 %v4492_v35, 0.0 }
 0x94d   :  { %v4498_v56 = vadd.f32 %v4497_v62, %v11732_v18  ;;  %v4597_v5 = vmax.f32 %v4494_v1, 0.0 }
 0x94e   :  { %v4598_v52 = vmax.f32 %v4496_v46, 0.0 }
 0x94f   :  { %v4599_v9 = vmax.f32 %v4498_v56, 0.0 }
 0x950   :  { %v4642_v38 = vpack.c.bf16 %v4598_v52, %v4596_v31 }
 0x951   :  { %v4643_v17 = vpack.c.bf16 %v4599_v9, %v4597_v5  ;;  %v4501_v8 = vpop.f32.mrb[172].mxu0 }
 0x952   :  { %v4502_v36 = vadd.f32 %v4501_v8, %v11729_v28  ;;  %v4503_v37 = vpop.f32.mrb[173].mxu0 }
 0x953   :  { %v4504_v30 = vadd.f32 %v4503_v37, %v11732_v18  ;;  %v4505_v57 = vpop.f32.mrb[174].mxu0  ;;  %4971 = vmatprep.mubr.bf16.mxu1 %v4643_v17 }
 0x954   :  { %v4506_v2 = vadd.f32 %v4505_v57, %v11729_v28  ;;  %v4507_v3 = vpop.f32.mrb[175].mxu0  ;;  %4972 = vmatmul.mubr.bf16.gmra.mrb[228].mxu1 %v4642_v38  ;;  %v4600_v40 = vmax.f32 %v4502_v36, 0.0  ;;  %v7685_v57 = vld [vmem:[%s12191_s9 + $0x40] sm:$0xff]  }
 0x955   :  { %v4508_v32 = vadd.f32 %v4507_v3, %v11732_v18  ;;  %v4601_v47 = vmax.f32 %v4504_v30, 0.0  ;;  %6969 = vmatprep.subr.bf16.mxu0 %v7685_v57  ;;  %7395 = vmatprep.subr.bf16.mxu1 %v7685_v57  ;;  %v13214_v57 = vld [vmem:[#allocation44_spill] sm:$0xff] }
 0x956   :  { %v4602_v39 = vmax.f32 %v4506_v2, 0.0  ;;  %v7686_v2 = vld [vmem:[%s12191_s9] sm:$0xff]  }
 0x957   :  { %v4603_v43 = vmax.f32 %v4508_v32, 0.0  ;;  %6970 = vmatpush3.bf16.msra.mxu0 %v7686_v2 }
 0x958   :  { %v4644_v59 = vpack.c.bf16 %v4602_v39, %v4600_v40 }
 0x959   :  { %v4645_v33 = vpack.c.bf16 %v4603_v43, %v4601_v47 }
 0x95b   :  { %4981 = vmatprep.mubr.bf16.mxu1 %v4645_v33 }
 0x95c   :  { %4982 = vmatmul.mubr.bf16.gmra.mrb[232].mxu1 %v4644_v59 }
 0x993   :  { %v4511_v10 = vpop.f32.mrb[176].mxu0 }
 0x994   :  { %v4512_v14 = vadd.f32 %v4511_v10, %v11729_v28  ;;  %v4513_v61 = vpop.f32.mrb[177].mxu0 }
 0x995   :  { %v4514_v12 = vadd.f32 %v4513_v61, %v11732_v18  ;;  %v4515_v24 = vpop.f32.mrb[178].mxu0 }
 0x996   :  { %v4516_v16 = vadd.f32 %v4515_v24, %v11729_v28  ;;  %v4517_v50 = vpop.f32.mrb[179].mxu0  ;;  %v4604_v49 = vmax.f32 %v4512_v14, 0.0 }
 0x997   :  { %v4518_v23 = vadd.f32 %v4517_v50, %v11732_v18  ;;  %v4605_v20 = vmax.f32 %v4514_v12, 0.0 }
 0x998   :  { %v4606_v21 = vmax.f32 %v4516_v16, 0.0 }
 0x999   :  { %v4607_v26 = vmax.f32 %v4518_v23, 0.0 }
 0x99a   :  { %v4646_v0 = vpack.c.bf16 %v4606_v21, %v4604_v49 }
 0x99b   :  { %v4647_v63 = vpack.c.bf16 %v4607_v26, %v4605_v20 }
 0x99d   :  { %4991 = vmatprep.mubr.bf16.mxu1 %v4647_v63  ;;  %v13188_v63 = vld [vmem:[#allocation54_spill] sm:$0xff] }
 0x99e   :  { %4992 = vmatmul.mubr.bf16.gmra.mrb[236].mxu1 %v4646_v0  ;;  %v7687_v0 = vld [vmem:[%s12191_s9 + $0x48] sm:$0xff]  }
 0x99f   :  { %v4521_v55 = vpop.f32.mrb[180].mxu0  ;;  %6971 = vmatprep.subr.bf16.mxu0 %v7687_v0 }
 0x9a0   :  { %v4522_v60 = vadd.f32 %v4521_v55, %v11729_v28  ;;  %v4523_v54 = vpop.f32.mrb[181].mxu0  ;;  %v7690_v55 = vld [vmem:[%s12191_s9 + $0x10] sm:$0xff]  }
 0x9a1   :  { %v4524_v7 = vadd.f32 %v4523_v54, %v11732_v18  ;;  %v4525_v53 = vpop.f32.mrb[182].mxu0  ;;  %v7692_v54 = vld [vmem:[%s12191_s9 + $0x18] sm:$0xff]  }
 0x9a2   :  { %v4526_v58 = vadd.f32 %v4525_v53, %v11729_v28  ;;  %v4527_v34 = vpop.f32.mrb[183].mxu0  ;;  %v4608_v41 = vmax.f32 %v4522_v60, 0.0  ;;  %v7691_v60 = vld [vmem:[%s12191_s9 + $0x58] sm:$0xff]   ;;  %v7693_v53 = vld [vmem:[%s12191_s9 + $0x60] sm:$0xff]  }
 0x9a3   :  { %v4528_v44 = vadd.f32 %v4527_v34, %v11732_v18  ;;  %v4609_v4 = vmax.f32 %v4524_v7, 0.0  ;;  %v13189_v7 = vld [vmem:[#allocation52_spill] sm:$0xff]  ;;  %v7694_v34 = vld [vmem:[%s12191_s9 + $0x20] sm:$0xff]  }
 0x9a4   :  { %v4610_v27 = vmax.f32 %v4526_v58, 0.0  ;;  %v13190_v58 = vld [vmem:[#allocation102_spill] sm:$0xff] }
 0x9a5   :  { %v4611_v11 = vmax.f32 %v4528_v44, 0.0  ;;  %v7695_v44 = vld [vmem:[%s12191_s9 + $0x68] sm:$0xff]  }
 0x9a6   :  { %v4648_v6 = vpack.c.bf16 %v4610_v27, %v4608_v41  ;;  %v7696_v41 = vld [vmem:[%s12191_s9 + $0x28] sm:$0xff]   ;;  %v13191_v27 = vld [vmem:[#allocation56_spill] sm:$0xff] }
 0x9a7   :  { %v4649_v48 = vpack.c.bf16 %v4611_v11, %v4609_v4  ;;  %v7697_v4 = vld [vmem:[%s12191_s9 + $0x70] sm:$0xff]   ;;  %v13192_v11 = vld [vmem:[#allocation70_spill] sm:$0xff] }
 0x9a8   :  { %v4531_v45 = vpop.f32.mrb[184].mxu0 }
 0x9a9   :  { %v4532_v42 = vadd.f32 %v4531_v45, %v11729_v28  ;;  %v4533_v19 = vpop.f32.mrb[185].mxu0  ;;  %5001 = vmatprep.mubr.bf16.mxu1 %v4649_v48  ;;  %v13193_v48 = vld [vmem:[#allocation108_spill] sm:$0xff]  ;;  %v13194_v45 = vld [vmem:[#allocation118_spill] sm:$0xff] }
 0x9aa   :  { %v4534_v29 = vadd.f32 %v4533_v19, %v11732_v18  ;;  %v4535_v25 = vpop.f32.mrb[186].mxu0  ;;  %5002 = vmatmul.mubr.bf16.gmra.mrb[240].mxu1 %v4648_v6  ;;  %v7698_v6 = vld [vmem:[%s12191_s9 + $0x30] sm:$0xff]   ;;  %v13196_v19 = vld [vmem:[#allocation72_spill] sm:$0xff] }
 0x9ab   :  { %v4536_v35 = vadd.f32 %v4535_v25, %v11729_v28  ;;  %v4537_v22 = vpop.f32.mrb[187].mxu0  ;;  %v4612_v51 = vmax.f32 %v4532_v42, 0.0  ;;  %v13195_v42 = vld [vmem:[#allocation73_spill] sm:$0xff] }
 0x9ac   :  { %v4538_v1 = vadd.f32 %v4537_v22, %v11732_v18  ;;  %v4613_v62 = vmax.f32 %v4534_v29, 0.0  ;;  %v13197_v29 = vld [vmem:[#allocation119_spill] sm:$0xff]  ;;  %v13198_v25 = vld [vmem:[#allocation121_spill] sm:$0xff]  ;;  %v13200_v22 = vld [vmem:[#allocation120_spill] sm:$0xff] }
 0x9ad   :  { %v4614_v46 = vmax.f32 %v4536_v35, 0.0  ;;  %v13199_v35 = vld [vmem:[#allocation126_spill] sm:$0xff] }
 0x9ae   :  { %v4615_v56 = vmax.f32 %v4538_v1, 0.0  ;;  %v13201_v1 = vld [vmem:[#allocation74_spill] sm:$0xff] }
 0x9af   :  { %v4650_v31 = vpack.c.bf16 %v4614_v46, %v4612_v51  ;;  %v13202_v51 = vld [vmem:[#allocation75_spill] sm:$0xff]  ;;  %v13203_v46 = vld [vmem:[#allocation76_spill] sm:$0xff] }
 0x9b0   :  { %v4651_v52 = vpack.c.bf16 %v4615_v56, %v4613_v62  ;;  %v13204_v62 = vld [vmem:[#allocation77_spill] sm:$0xff]  ;;  %v13205_v56 = vld [vmem:[#allocation78_spill] sm:$0xff] }
 0x9b2   :  { %5011 = vmatprep.mubr.bf16.mxu1 %v4651_v52  ;;  %v13207_v52 = vld [vmem:[#allocation149_spill] sm:$0xff] }
 0x9b3   :  { %v4541_v5 = vpop.f32.mrb[188].mxu0  ;;  %5012 = vmatmul.mubr.bf16.gmra.mrb[244].mxu1 %v4650_v31  ;;  %v13206_v31 = vld [vmem:[#allocation79_spill] sm:$0xff] }
 0x9b4   :  { %v4542_v9 = vadd.f32 %v4541_v5, %v11729_v28  ;;  %v4543_v38 = vpop.f32.mrb[189].mxu0  ;;  %v13208_v5 = vld [vmem:[#allocation150_spill] sm:$0xff] }
 0x9b5   :  { %v4544_v17 = vadd.f32 %v4543_v38, %v11732_v18  ;;  %v4545_v8 = vpop.f32.mrb[190].mxu0  ;;  %v13210_v38 = vld [vmem:[#allocation152_spill] sm:$0xff] }
 0x9b6   :  { %v4546_v36 = vadd.f32 %v4545_v8, %v11729_v28  ;;  %v4547_v37 = vpop.f32.mrb[191].mxu0  ;;  %v4616_v3 = vmax.f32 %v4542_v9, 0.0  ;;  %v13209_v9 = vld [vmem:[#allocation151_spill] sm:$0xff]  ;;  %v13212_v8 = vld [vmem:[#allocation42_spill] sm:$0xff] }
 0x9b7   :  { %v4548_v30 = vadd.f32 %v4547_v37, %v11732_v18  ;;  %v4617_v40 = vmax.f32 %v4544_v17, 0.0  ;;  %v13211_v17 = vld [vmem:[#allocation40_spill] sm:$0xff] }
 0x9b8   :  { %v4618_v32 = vmax.f32 %v4546_v36, 0.0  ;;  %v7699_v36 = vld [vmem:[%s12191_s9 + $0x78] sm:$0xff]  }
 0x9b9   :  { %v4619_v39 = vmax.f32 %v4548_v30, 0.0  ;;  %v7700_v37 = vld [vmem:[%s12191_s9 + $0x38] sm:$0xff]   ;;  %v13213_v30 = vld [vmem:[#allocation46_spill] sm:$0xff] }
 0x9ba   :  { %v4652_v47 = vpack.c.bf16 %v4618_v32, %v4616_v3  ;;  %v13216_v3 = vld [vmem:[#allocation29_spill] sm:$0xff]  ;;  %v13217_v32 = vld [vmem:[#allocation27_spill] sm:$0xff] }
 0x9bb   :  { %v4653_v43 = vpack.c.bf16 %v4619_v39, %v4617_v40  ;;  %v4551_v59 = vpop.f32.mrb[192].mxu0  ;;  %v13218_v40 = vld [vmem:[#allocation33_spill] sm:$0xff]  ;;  %v13219_v39 = vld [vmem:[#allocation31_spill] sm:$0xff] }
 0x9bc   :  { %v4552_v33 = vadd.f32 %v4551_v59, %v11729_v28  ;;  %v4553_v10 = vpop.f32.mrb[193].mxu0 }
 0x9bd   :  { %v4554_v14 = vadd.f32 %v4553_v10, %v11732_v18  ;;  %v4555_v61 = vpop.f32.mrb[194].mxu0  ;;  %5021 = vmatprep.mubr.bf16.mxu1 %v4653_v43 }
 0x9be   :  { %v4556_v12 = vadd.f32 %v4555_v61, %v11729_v28  ;;  %v4557_v24 = vpop.f32.mrb[195].mxu0  ;;  %5022 = vmatmul.mubr.bf16.gmra.mrb[248].mxu1 %v4652_v47  ;;  %v4620_v50 = vmax.f32 %v4552_v33, 0.0  ;;  %v7688_v28 = vld [vmem:[%s12191_s9 + $0x8] sm:$0xff]  }
 0x9bf   :  { %v4558_v16 = vadd.f32 %v4557_v24, %v11732_v18  ;;  %v4621_v49 = vmax.f32 %v4554_v14, 0.0  ;;  %v7689_v18 = vld [vmem:[%s12191_s9 + $0x50] sm:$0xff]   ;;  %6972 = vmatpush3.bf16.msra.mxu0 %v7688_v28  ;;  %v5395_v47 = vld [vmem:[#allocation16] sm:$0x3] }
 0x9c0   :  { %v4622_v23 = vmax.f32 %v4556_v12, 0.0  ;;  %6973 = vmatprep.subr.bf16.mxu0 %v7689_v18  ;;  %v11879_v43 = vrot.slane %v5395_v47, %v13186_v13  ;;  %v11882_v59 = vrot.slane %v5395_v47, %v13187_v15 }
 0x9c1   :  { %v4623_v21 = vmax.f32 %v4558_v16, 0.0 }
 0x9c2   :  { %v4654_v20 = vpack.c.bf16 %v4622_v23, %v4620_v50  ;;  %v7701_v50 = vld [vmem:[%s12193_s11] sm:$0xff]  }
 0x9c3   :  { %v4655_v26 = vpack.c.bf16 %v4623_v21, %v4621_v49  ;;  %6974 = vmatpush3.bf16.msra.mxu0 %v7690_v55 }
 0x9c4   :  { %6975 = vmatprep.subr.bf16.mxu0 %v7691_v60 }
 0x9c5   :  { %5031 = vmatprep.mubr.bf16.mxu1 %v4655_v26 }
 0x9c6   :  { %5032 = vmatmul.mubr.bf16.gmra.mrb[252].mxu1 %v4654_v20 }
 0x9c7   :  { %5234 = vmatprep.mubr.bf16.mxu1 %v13188_v63  ;;  %6976 = vmatpush3.bf16.msra.mxu0 %v7692_v54  ;;  %v7702_v63 = vld [vmem:[%s12193_s11 + $0x8] sm:$0xff]  }
 0x9c8   :  { %6977 = vmatprep.subr.bf16.mxu0 %v7693_v53 }
 0x9cb   :  { %6978 = vmatpush3.bf16.msra.mxu0 %v7694_v34 }
 0x9cc   :  { %6979 = vmatprep.subr.bf16.mxu0 %v7695_v44 }
 0x9ce   :  { %5235 = vmatmul.mubr.bf16.vlgmr.msra.gmra.mrb[192].mxu1 %v13189_v7 }
 0x9cf   :  { %5244 = vmatprep.mubr.bf16.mxu1 %v13190_v58  ;;  %7403 = vmatpush3.bf16.msra.mxu1 %v7686_v2  ;;  %v13215_v2 = vld [vmem:[#allocation60_spill] sm:$0xff] }
 0x9d0   :  { %7396 = vmatprep.subr.bf16.mxu1 %v7687_v0  ;;  %6980 = vmatpush3.bf16.msra.mxu0 %v7696_v41 }
 0x9d1   :  { %6981 = vmatprep.subr.bf16.mxu0 %v7697_v4 }
 0x9d3   :  { %7404 = vmatpush3.bf16.msra.mxu1 %v7688_v28 }
 0x9d4   :  { %7397 = vmatprep.subr.bf16.mxu1 %v7689_v18  ;;  %6982 = vmatpush3.bf16.msra.mxu0 %v7698_v6 }
 0x9d5   :  { %6983 = vmatprep.subr.bf16.mxu0 %v7699_v36 }
 0x9d6   :  { %5245 = vmatmul.mubr.bf16.gmra.mrb[196].mxu1 %v13191_v27 }
 0x9d7   :  { %5254 = vmatprep.mubr.bf16.mxu1 %v13192_v11  ;;  %7405 = vmatpush3.bf16.msra.mxu1 %v7690_v55 }
 0x9d8   :  { %7398 = vmatprep.subr.bf16.mxu1 %v7691_v60  ;;  %6984 = vmatpush3.bf16.msra.mxu0 %v7700_v37 }
 0x9d9   :  { %7143 = vmatprep.subr.bf16.mxu0 %v7701_v50 }
 0x9db   :  { %7406 = vmatpush3.bf16.msra.mxu1 %v7692_v54 }
 0x9dc   :  { %7399 = vmatprep.subr.bf16.mxu1 %v7693_v53 }
 0x9de   :  { %5255 = vmatmul.mubr.bf16.gmra.mrb[200].mxu1 %v13193_v48 }
 0x9df   :  { %5264 = vmatprep.mubr.bf16.mxu1 %v13194_v45  ;;  %7407 = vmatpush3.bf16.msra.mxu1 %v7694_v34 }
 0x9e0   :  { %7400 = vmatprep.subr.bf16.mxu1 %v7695_v44  ;;  %v7703_v44 = vld [vmem:[%s12193_s11 + $0x10] sm:$0xff]  }
 0x9e3   :  { %7408 = vmatpush3.bf16.msra.mxu1 %v7696_v41 }
 0x9e4   :  { %7401 = vmatprep.subr.bf16.mxu1 %v7697_v4 }
 0x9e6   :  { %5265 = vmatmul.mubr.bf16.gmra.mrb[204].mxu1 %v13195_v42 }
 0x9e7   :  { %5274 = vmatprep.mubr.bf16.mxu1 %v13196_v19  ;;  %7409 = vmatpush3.bf16.msra.mxu1 %v7698_v6 }
 0x9e8   :  { %7402 = vmatprep.subr.bf16.mxu1 %v7699_v36 }
 0x9eb   :  { %7410 = vmatpush3.bf16.msra.mxu1 %v7700_v37 }
 0x9ee   :  { %5275 = vmatmul.mubr.bf16.gmra.mrb[208].mxu1 %v13197_v29 }
 0x9ef   :  { %5284 = vmatprep.mubr.bf16.mxu1 %v13198_v25 }
 0x9f6   :  { %5285 = vmatmul.mubr.bf16.gmra.mrb[212].mxu1 %v13199_v35 }
 0x9f7   :  { %5294 = vmatprep.mubr.bf16.mxu1 %v13200_v22 }
 0x9fe   :  { %5295 = vmatmul.mubr.bf16.gmra.mrb[216].mxu1 %v13201_v1 }
 0x9ff   :  { %5304 = vmatprep.mubr.bf16.mxu1 %v13202_v51 }
 0xa06   :  { %5305 = vmatmul.mubr.bf16.gmra.mrb[220].mxu1 %v13203_v46 }
 0xa07   :  { %5314 = vmatprep.mubr.bf16.mxu1 %v13204_v62 }
 0xa0e   :  { %5315 = vmatmul.mubr.bf16.gmra.mrb[224].mxu1 %v13205_v56 }
 0xa0f   :  { %5324 = vmatprep.mubr.bf16.mxu1 %v13206_v31 }
 0xa16   :  { %5325 = vmatmul.mubr.bf16.gmra.mrb[228].mxu1 %v13207_v52 }
 0xa17   :  { %5334 = vmatprep.mubr.bf16.mxu1 %v13208_v5 }
 0xa1e   :  { %5335 = vmatmul.mubr.bf16.gmra.mrb[232].mxu1 %v13209_v9 }
 0xa1f   :  { %5344 = vmatprep.mubr.bf16.mxu1 %v13210_v38 }
 0xa26   :  { %5345 = vmatmul.mubr.bf16.gmra.mrb[236].mxu1 %v13211_v17 }
 0xa27   :  { %5354 = vmatprep.mubr.bf16.mxu1 %v13212_v8 }
 0xa2e   :  { %5355 = vmatmul.mubr.bf16.gmra.mrb[240].mxu1 %v13213_v30 }
 0xa2f   :  { %5364 = vmatprep.mubr.bf16.mxu1 %v13214_v57 }
 0xa36   :  { %5365 = vmatmul.mubr.bf16.gmra.mrb[244].mxu1 %v13215_v2 }
 0xa37   :  { %5374 = vmatprep.mubr.bf16.mxu1 %v13216_v3 }
 0xa3e   :  { %5375 = vmatmul.mubr.bf16.gmra.mrb[248].mxu1 %v13217_v32 }
 0xa3f   :  { %5384 = vmatprep.mubr.bf16.mxu1 %v13218_v40 }
 0xa46   :  { %5385 = vmatmul.mubr.bf16.gmra.mrb[252].mxu1 %v13219_v39 }
 0xaa1   :  { %v5236_v33 = vpop.f32.mrb[192].mxu1 }
 0xaa2   :  { %v5407_v10 = vadd.f32 %v11879_v43, %v5236_v33  ;;  %v5238_v14 = vpop.f32.mrb[193].mxu1 }
 0xaa3   :  { %v5408_v61 = vadd.f32 %v11882_v59, %v5238_v14  ;;  %v5240_v12 = vpop.f32.mrb[194].mxu1 }
 0xaa4   :  { %v5409_v24 = vadd.f32 %v11879_v43, %v5240_v12  ;;  %v5242_v16 = vpop.f32.mrb[195].mxu1  ;;  %v5471_v23 = vmax.f32 %v5407_v10, 0.0 }
 0xaa5   :  { %v5410_v13 = vadd.f32 %v11882_v59, %v5242_v16  ;;  %v5472_v15 = vmax.f32 %v5408_v61, 0.0 }
 0xaa6   :  { %v5473_v49 = vmax.f32 %v5409_v24, 0.0 }
 0xaa7   :  { %v5474_v21 = vmax.f32 %v5410_v13, 0.0 }
 0xaa8   :  { %v5535_v20 = vpack.c.bf16 %v5473_v49, %v5471_v23 }
 0xaa9   :  { %v5536_v26 = vpack.c.bf16 %v5474_v21, %v5472_v15  ;;  %v5246_v0 = vpop.f32.mrb[196].mxu1 }
 0xaaa   :  { %v5411_v28 = vadd.f32 %v11879_v43, %v5246_v0  ;;  %v5248_v18 = vpop.f32.mrb[197].mxu1 }
 0xaab   :  { %v5412_v55 = vadd.f32 %v11882_v59, %v5248_v18  ;;  %v5250_v60 = vpop.f32.mrb[198].mxu1  ;;  %5734 = vmatprep.mubr.bf16.mxu0 %v5536_v26 }
 0xaac   :  { %v5413_v54 = vadd.f32 %v11879_v43, %v5250_v60  ;;  %v5252_v7 = vpop.f32.mrb[199].mxu1  ;;  %5735 = vmatmul.mubr.bf16.vlgmr.msra.gmra.mrb[196].mxu0 %v5535_v20  ;;  %v5475_v58 = vmax.f32 %v5411_v28, 0.0 }
 0xaad   :  { %v5414_v53 = vadd.f32 %v11882_v59, %v5252_v7  ;;  %7144 = vmatpush3.bf16.msra.mxu0 %v7701_v50  ;;  %v5476_v41 = vmax.f32 %v5412_v55, 0.0 }
 0xaae   :  { %v5477_v34 = vmax.f32 %v5413_v54, 0.0  ;;  %7145 = vmatprep.subr.bf16.mxu0 %v7702_v63 }
 0xaaf   :  { %v5478_v27 = vmax.f32 %v5414_v53, 0.0 }
 0xab0   :  { %v5537_v4 = vpack.c.bf16 %v5477_v34, %v5475_v58 }
 0xab1   :  { %v5538_v11 = vpack.c.bf16 %v5478_v27, %v5476_v41  ;;  %v5256_v6 = vpop.f32.mrb[200].mxu1  ;;  %7146 = vmatpush3.bf16.msra.mxu0 %v7702_v63 }
 0xab2   :  { %v5415_v48 = vadd.f32 %v11879_v43, %v5256_v6  ;;  %v5258_v45 = vpop.f32.mrb[201].mxu1  ;;  %7147 = vmatprep.subr.bf16.mxu0 %v7703_v44 }
 0xab3   :  { %v5416_v42 = vadd.f32 %v11882_v59, %v5258_v45  ;;  %v5260_v19 = vpop.f32.mrb[202].mxu1  ;;  %5742 = vmatprep.mubr.bf16.mxu0 %v5538_v11 }
 0xab4   :  { %v5417_v29 = vadd.f32 %v11879_v43, %v5260_v19  ;;  %v5262_v25 = vpop.f32.mrb[203].mxu1  ;;  %5743 = vmatmul.mubr.bf16.gmra.mrb[200].mxu0 %v5537_v4  ;;  %v5479_v22 = vmax.f32 %v5415_v48, 0.0 }
 0xab5   :  { %v5418_v35 = vadd.f32 %v11882_v59, %v5262_v25  ;;  %7148 = vmatpush3.bf16.msra.mxu0 %v7703_v44  ;;  %v5480_v51 = vmax.f32 %v5416_v42, 0.0 }
 0xab6   :  { %v5481_v1 = vmax.f32 %v5417_v29, 0.0 }
 0xab7   :  { %v5482_v46 = vmax.f32 %v5418_v35, 0.0 }
 0xab8   :  { %v5539_v62 = vpack.c.bf16 %v5481_v1, %v5479_v22 }
 0xab9   :  { %v5540_v56 = vpack.c.bf16 %v5482_v46, %v5480_v51  ;;  %v5266_v31 = vpop.f32.mrb[204].mxu1 }
 0xaba   :  { %v5419_v52 = vadd.f32 %v11879_v43, %v5266_v31  ;;  %v5268_v5 = vpop.f32.mrb[205].mxu1 }
 0xabb   :  { %v5420_v9 = vadd.f32 %v11882_v59, %v5268_v5  ;;  %v5270_v38 = vpop.f32.mrb[206].mxu1  ;;  %5750 = vmatprep.mubr.bf16.mxu0 %v5540_v56 }
 0xabc   :  { %v5421_v17 = vadd.f32 %v11879_v43, %v5270_v38  ;;  %v5272_v8 = vpop.f32.mrb[207].mxu1  ;;  %5751 = vmatmul.mubr.bf16.gmra.mrb[204].mxu0 %v5539_v62  ;;  %v5483_v37 = vmax.f32 %v5419_v52, 0.0 }
 0xabd   :  { %v5422_v36 = vadd.f32 %v11882_v59, %v5272_v8  ;;  %v5484_v57 = vmax.f32 %v5420_v9, 0.0 }
 0xabe   :  { %v5485_v30 = vmax.f32 %v5421_v17, 0.0 }
 0xabf   :  { %v5486_v2 = vmax.f32 %v5422_v36, 0.0 }
 0xac0   :  { %v5541_v3 = vpack.c.bf16 %v5485_v30, %v5483_v37 }
 0xac1   :  { %v5542_v32 = vpack.c.bf16 %v5486_v2, %v5484_v57  ;;  %v5276_v40 = vpop.f32.mrb[208].mxu1 }
 0xac2   :  { %v5423_v39 = vadd.f32 %v11879_v43, %v5276_v40  ;;  %v5278_v47 = vpop.f32.mrb[209].mxu1 }
 0xac3   :  { %v5424_v33 = vadd.f32 %v11882_v59, %v5278_v47  ;;  %v5280_v10 = vpop.f32.mrb[210].mxu1  ;;  %5758 = vmatprep.mubr.bf16.mxu0 %v5542_v32 }
 0xac4   :  { %v5425_v14 = vadd.f32 %v11879_v43, %v5280_v10  ;;  %v5282_v61 = vpop.f32.mrb[211].mxu1  ;;  %5759 = vmatmul.mubr.bf16.gmra.mrb[208].mxu0 %v5541_v3  ;;  %v5487_v24 = vmax.f32 %v5423_v39, 0.0 }
 0xac5   :  { %v5426_v12 = vadd.f32 %v11882_v59, %v5282_v61  ;;  %v5488_v50 = vmax.f32 %v5424_v33, 0.0 }
 0xac6   :  { %v5489_v16 = vmax.f32 %v5425_v14, 0.0 }
 0xac7   :  { %v5490_v13 = vmax.f32 %v5426_v12, 0.0 }
 0xac8   :  { %v5543_v23 = vpack.c.bf16 %v5489_v16, %v5487_v24 }
 0xac9   :  { %v5544_v49 = vpack.c.bf16 %v5490_v13, %v5488_v50  ;;  %v5286_v15 = vpop.f32.mrb[212].mxu1 }
 0xaca   :  { %v5427_v21 = vadd.f32 %v11879_v43, %v5286_v15  ;;  %v5288_v20 = vpop.f32.mrb[213].mxu1 }
 0xacb   :  { %v5428_v26 = vadd.f32 %v11882_v59, %v5288_v20  ;;  %v5290_v0 = vpop.f32.mrb[214].mxu1  ;;  %5766 = vmatprep.mubr.bf16.mxu0 %v5544_v49 }
 0xacc   :  { %v5429_v28 = vadd.f32 %v11879_v43, %v5290_v0  ;;  %v5292_v18 = vpop.f32.mrb[215].mxu1  ;;  %5767 = vmatmul.mubr.bf16.gmra.mrb[212].mxu0 %v5543_v23  ;;  %v5491_v55 = vmax.f32 %v5427_v21, 0.0 }
 0xacd   :  { %v5430_v63 = vadd.f32 %v11882_v59, %v5292_v18  ;;  %v5492_v54 = vmax.f32 %v5428_v26, 0.0 }
 0xace   :  { %v5493_v60 = vmax.f32 %v5429_v28, 0.0 }
 0xacf   :  { %v5494_v7 = vmax.f32 %v5430_v63, 0.0 }
 0xad0   :  { %v5545_v53 = vpack.c.bf16 %v5493_v60, %v5491_v55 }
 0xad1   :  { %v5546_v58 = vpack.c.bf16 %v5494_v7, %v5492_v54  ;;  %v5296_v34 = vpop.f32.mrb[216].mxu1 }
 0xad2   :  { %v5431_v44 = vadd.f32 %v11879_v43, %v5296_v34  ;;  %v5298_v41 = vpop.f32.mrb[217].mxu1 }
 0xad3   :  { %v5432_v27 = vadd.f32 %v11882_v59, %v5298_v41  ;;  %v5300_v4 = vpop.f32.mrb[218].mxu1  ;;  %5774 = vmatprep.mubr.bf16.mxu0 %v5546_v58 }
 0xad4   :  { %v5433_v11 = vadd.f32 %v11879_v43, %v5300_v4  ;;  %v5302_v6 = vpop.f32.mrb[219].mxu1  ;;  %5775 = vmatmul.mubr.bf16.gmra.mrb[216].mxu0 %v5545_v53  ;;  %v5495_v45 = vmax.f32 %v5431_v44, 0.0 }
 0xad5   :  { %v5434_v48 = vadd.f32 %v11882_v59, %v5302_v6  ;;  %v5496_v19 = vmax.f32 %v5432_v27, 0.0 }
 0xad6   :  { %v5497_v42 = vmax.f32 %v5433_v11, 0.0 }
 0xad7   :  { %v5498_v29 = vmax.f32 %v5434_v48, 0.0 }
 0xad8   :  { %v5547_v25 = vpack.c.bf16 %v5497_v42, %v5495_v45 }
 0xad9   :  { %v5548_v35 = vpack.c.bf16 %v5498_v29, %v5496_v19  ;;  %v5306_v22 = vpop.f32.mrb[220].mxu1 }
 0xada   :  { %v5435_v1 = vadd.f32 %v11879_v43, %v5306_v22  ;;  %v5308_v51 = vpop.f32.mrb[221].mxu1 }
 0xadb   :  { %v5436_v46 = vadd.f32 %v11882_v59, %v5308_v51  ;;  %v5310_v62 = vpop.f32.mrb[222].mxu1  ;;  %5782 = vmatprep.mubr.bf16.mxu0 %v5548_v35 }
 0xadc   :  { %v5437_v56 = vadd.f32 %v11879_v43, %v5310_v62  ;;  %v5312_v31 = vpop.f32.mrb[223].mxu1  ;;  %5783 = vmatmul.mubr.bf16.gmra.mrb[220].mxu0 %v5547_v25  ;;  %v5499_v5 = vmax.f32 %v5435_v1, 0.0 }
 0xadd   :  { %v5438_v52 = vadd.f32 %v11882_v59, %v5312_v31  ;;  %v5500_v38 = vmax.f32 %v5436_v46, 0.0  ;;  %v7704_v31 = vld [vmem:[%s12193_s11 + $0x18] sm:$0xff]  }
 0xade   :  { %v5501_v9 = vmax.f32 %v5437_v56, 0.0  ;;  %7149 = vmatprep.subr.bf16.mxu0 %v7704_v31 }
 0xadf   :  { %v5502_v17 = vmax.f32 %v5438_v52, 0.0  ;;  %7150 = vmatpush3.bf16.msra.mxu0 %v7704_v31 }
 0xae0   :  { %v5549_v8 = vpack.c.bf16 %v5501_v9, %v5499_v5 }
 0xae1   :  { %v5550_v36 = vpack.c.bf16 %v5502_v17, %v5500_v38  ;;  %v5316_v37 = vpop.f32.mrb[224].mxu1 }
 0xae2   :  { %v5439_v30 = vadd.f32 %v11879_v43, %v5316_v37  ;;  %v5318_v57 = vpop.f32.mrb[225].mxu1 }
 0xae3   :  { %v5440_v2 = vadd.f32 %v11882_v59, %v5318_v57  ;;  %v5320_v3 = vpop.f32.mrb[226].mxu1  ;;  %5790 = vmatprep.mubr.bf16.mxu0 %v5550_v36 }
 0xae4   :  { %v5441_v32 = vadd.f32 %v11879_v43, %v5320_v3  ;;  %v5322_v40 = vpop.f32.mrb[227].mxu1  ;;  %5791 = vmatmul.mubr.bf16.gmra.mrb[224].mxu0 %v5549_v8  ;;  %v5503_v47 = vmax.f32 %v5439_v30, 0.0 }
 0xae5   :  { %v5442_v39 = vadd.f32 %v11882_v59, %v5322_v40  ;;  %v5504_v10 = vmax.f32 %v5440_v2, 0.0 }
 0xae6   :  { %v5505_v33 = vmax.f32 %v5441_v32, 0.0 }
 0xae7   :  { %v5506_v14 = vmax.f32 %v5442_v39, 0.0  ;;  %v7705_v39 = vld [vmem:[%s12193_s11 + $0x20] sm:$0xff]  }
 0xae8   :  { %v5551_v61 = vpack.c.bf16 %v5505_v33, %v5503_v47  ;;  %v7706_v47 = vld [vmem:[%s12193_s11 + $0x28] sm:$0xff]   ;;  %7151 = vmatprep.subr.bf16.mxu0 %v7705_v39 }
 0xae9   :  { %v5552_v12 = vpack.c.bf16 %v5506_v14, %v5504_v10  ;;  %v5326_v24 = vpop.f32.mrb[228].mxu1  ;;  %7152 = vmatpush3.bf16.msra.mxu0 %v7705_v39 }
 0xaea   :  { %v5443_v16 = vadd.f32 %v11879_v43, %v5326_v24  ;;  %v5328_v50 = vpop.f32.mrb[229].mxu1  ;;  %7153 = vmatprep.subr.bf16.mxu0 %v7706_v47 }
 0xaeb   :  { %v5444_v13 = vadd.f32 %v11882_v59, %v5328_v50  ;;  %v5330_v23 = vpop.f32.mrb[230].mxu1  ;;  %5798 = vmatprep.mubr.bf16.mxu0 %v5552_v12 }
 0xaec   :  { %v5445_v49 = vadd.f32 %v11879_v43, %v5330_v23  ;;  %v5332_v15 = vpop.f32.mrb[231].mxu1  ;;  %5799 = vmatmul.mubr.bf16.gmra.mrb[228].mxu0 %v5551_v61  ;;  %v5507_v20 = vmax.f32 %v5443_v16, 0.0 }
 0xaed   :  { %v5446_v21 = vadd.f32 %v11882_v59, %v5332_v15  ;;  %v5508_v0 = vmax.f32 %v5444_v13, 0.0  ;;  %7154 = vmatpush3.bf16.msra.mxu0 %v7706_v47 }
 0xaee   :  { %v5509_v26 = vmax.f32 %v5445_v49, 0.0 }
 0xaef   :  { %v5510_v28 = vmax.f32 %v5446_v21, 0.0 }
 0xaf0   :  { %v5553_v18 = vpack.c.bf16 %v5509_v26, %v5507_v20 }
 0xaf1   :  { %v5554_v63 = vpack.c.bf16 %v5510_v28, %v5508_v0  ;;  %v5336_v55 = vpop.f32.mrb[232].mxu1 }
 0xaf2   :  { %v5447_v60 = vadd.f32 %v11879_v43, %v5336_v55  ;;  %v5338_v54 = vpop.f32.mrb[233].mxu1 }
 0xaf3   :  { %v5448_v7 = vadd.f32 %v11882_v59, %v5338_v54  ;;  %v5340_v53 = vpop.f32.mrb[234].mxu1  ;;  %5806 = vmatprep.mubr.bf16.mxu0 %v5554_v63  ;;  %v7708_v63 = vld [vmem:[%s12193_s11 + $0x38] sm:$0xff]  }
 0xaf4   :  { %v5449_v58 = vadd.f32 %v11879_v43, %v5340_v53  ;;  %v5342_v34 = vpop.f32.mrb[235].mxu1  ;;  %5807 = vmatmul.mubr.bf16.gmra.mrb[232].mxu0 %v5553_v18  ;;  %v5511_v41 = vmax.f32 %v5447_v60, 0.0  ;;  %v7707_v18 = vld [vmem:[%s12193_s11 + $0x30] sm:$0xff]  }
 0xaf5   :  { %v5450_v44 = vadd.f32 %v11882_v59, %v5342_v34  ;;  %v5512_v4 = vmax.f32 %v5448_v7, 0.0  ;;  %7155 = vmatprep.subr.bf16.mxu0 %v7707_v18 }
 0xaf6   :  { %v5513_v27 = vmax.f32 %v5449_v58, 0.0  ;;  %7156 = vmatpush3.bf16.msra.mxu0 %v7707_v18 }
 0xaf7   :  { %v5514_v11 = vmax.f32 %v5450_v44, 0.0  ;;  %7157 = vmatprep.subr.bf16.mxu0 %v7708_v63 }
 0xaf8   :  { %v5555_v6 = vpack.c.bf16 %v5513_v27, %v5511_v41 }
 0xaf9   :  { %v5556_v48 = vpack.c.bf16 %v5514_v11, %v5512_v4  ;;  %v5346_v45 = vpop.f32.mrb[236].mxu1 }
 0xafa   :  { %v5451_v42 = vadd.f32 %v11879_v43, %v5346_v45  ;;  %v5348_v19 = vpop.f32.mrb[237].mxu1  ;;  %7158 = vmatpush3.bf16.msra.mxu0 %v7708_v63 }
 0xafb   :  { %v5452_v29 = vadd.f32 %v11882_v59, %v5348_v19  ;;  %v5350_v25 = vpop.f32.mrb[238].mxu1  ;;  %5814 = vmatprep.mubr.bf16.mxu0 %v5556_v48 }
 0xafc   :  { %v5453_v35 = vadd.f32 %v11879_v43, %v5350_v25  ;;  %v5352_v22 = vpop.f32.mrb[239].mxu1  ;;  %5815 = vmatmul.mubr.bf16.gmra.mrb[236].mxu0 %v5555_v6  ;;  %v5515_v51 = vmax.f32 %v5451_v42, 0.0 }
 0xafd   :  { %v5454_v1 = vadd.f32 %v11882_v59, %v5352_v22  ;;  %v5516_v62 = vmax.f32 %v5452_v29, 0.0 }
 0xafe   :  { %v5517_v46 = vmax.f32 %v5453_v35, 0.0 }
 0xaff   :  { %v5518_v56 = vmax.f32 %v5454_v1, 0.0 }
 0xb00   :  { %v5557_v52 = vpack.c.bf16 %v5517_v46, %v5515_v51 }
 0xb01   :  { %v5558_v5 = vpack.c.bf16 %v5518_v56, %v5516_v62  ;;  %v5356_v9 = vpop.f32.mrb[240].mxu1 }
 0xb02   :  { %v5455_v38 = vadd.f32 %v11879_v43, %v5356_v9  ;;  %v5358_v17 = vpop.f32.mrb[241].mxu1 }
 0xb03   :  { %v5456_v8 = vadd.f32 %v11882_v59, %v5358_v17  ;;  %v5360_v36 = vpop.f32.mrb[242].mxu1  ;;  %5822 = vmatprep.mubr.bf16.mxu0 %v5558_v5  ;;  %v11975_v5 = vld [vmem:[%s12192_s10] ss:$0 sm:$0xff] }
 0xb04   :  { %v5457_v37 = vadd.f32 %v11879_v43, %v5360_v36  ;;  %v5362_v30 = vpop.f32.mrb[243].mxu1  ;;  %5823 = vmatmul.mubr.bf16.gmra.mrb[240].mxu0 %v5557_v52  ;;  %v5519_v2 = vmax.f32 %v5455_v38, 0.0  ;;  %v7709_v36 = vld [vmem:[%s12195_s13] sm:$0xff]  }
 0xb05   :  { %v5458_v57 = vadd.f32 %v11882_v59, %v5362_v30  ;;  %v5520_v32 = vmax.f32 %v5456_v8, 0.0  ;;  %7191 = vmatprep.subr.bf16.mxu1 %v7709_v36 }
 0xb06   :  { %v5521_v3 = vmax.f32 %v5457_v37, 0.0  ;;  %v7710_v37 = vld [vmem:[%s12195_s13 + $0x8] sm:$0xff]  }
 0xb07   :  { %v5522_v40 = vmax.f32 %v5458_v57, 0.0 }
 0xb08   :  { %v5559_v33 = vpack.c.bf16 %v5521_v3, %v5519_v2 }
 0xb09   :  { %v5560_v10 = vpack.c.bf16 %v5522_v40, %v5520_v32  ;;  %v5366_v14 = vpop.f32.mrb[244].mxu1 }
 0xb0a   :  { %v5459_v61 = vadd.f32 %v11879_v43, %v5366_v14  ;;  %v5368_v12 = vpop.f32.mrb[245].mxu1 }
 0xb0b   :  { %v5460_v24 = vadd.f32 %v11882_v59, %v5368_v12  ;;  %v5370_v16 = vpop.f32.mrb[246].mxu1  ;;  %5830 = vmatprep.mubr.bf16.mxu1 %v5560_v10 }
 0xb0c   :  { %v5461_v50 = vadd.f32 %v11879_v43, %v5370_v16  ;;  %v5372_v13 = vpop.f32.mrb[247].mxu1  ;;  %5831 = vmatmul.mubr.bf16.vlgmr.msra.gmra.mrb[0].mxu1 %v5559_v33  ;;  %v5523_v49 = vmax.f32 %v5459_v61, 0.0 }
 0xb0d   :  { %v5462_v23 = vadd.f32 %v11882_v59, %v5372_v13  ;;  %v5524_v21 = vmax.f32 %v5460_v24, 0.0  ;;  %7192 = vmatpush3.bf16.msra.mxu1 %v7709_v36 }
 0xb0e   :  { %v5525_v15 = vmax.f32 %v5461_v50, 0.0  ;;  %7193 = vmatprep.subr.bf16.mxu1 %v7710_v37 }
 0xb0f   :  { %v5526_v20 = vmax.f32 %v5462_v23, 0.0 }
 0xb10   :  { %v5561_v26 = vpack.c.bf16 %v5525_v15, %v5523_v49 }
 0xb11   :  { %v5562_v0 = vpack.c.bf16 %v5526_v20, %v5524_v21  ;;  %v5376_v28 = vpop.f32.mrb[248].mxu1  ;;  %7194 = vmatpush3.bf16.msra.mxu1 %v7710_v37 }
 0xb12   :  { %v5463_v55 = vadd.f32 %v11879_v43, %v5376_v28  ;;  %v5378_v60 = vpop.f32.mrb[249].mxu1 }
 0xb13   :  { %v5464_v54 = vadd.f32 %v11882_v59, %v5378_v60  ;;  %v5380_v7 = vpop.f32.mrb[250].mxu1  ;;  %5838 = vmatprep.mubr.bf16.mxu1 %v5562_v0 }
 0xb14   :  { %v5465_v53 = vadd.f32 %v11879_v43, %v5380_v7  ;;  %v5382_v58 = vpop.f32.mrb[251].mxu1  ;;  %5839 = vmatmul.mubr.bf16.gmra.mrb[4].mxu1 %v5561_v26  ;;  %v5527_v44 = vmax.f32 %v5463_v55, 0.0 }
 0xb15   :  { %v5466_v34 = vadd.f32 %v11882_v59, %v5382_v58  ;;  %v5528_v27 = vmax.f32 %v5464_v54, 0.0 }
 0xb16   :  { %v5529_v41 = vmax.f32 %v5465_v53, 0.0 }
 0xb17   :  { %v5530_v4 = vmax.f32 %v5466_v34, 0.0 }
 0xb18   :  { %v5563_v11 = vpack.c.bf16 %v5529_v41, %v5527_v44 }
 0xb19   :  { %v5564_v6 = vpack.c.bf16 %v5530_v4, %v5528_v27  ;;  %v5386_v48 = vpop.f32.mrb[252].mxu1 }
 0xb1a   :  { %v5467_v45 = vadd.f32 %v11879_v43, %v5386_v48  ;;  %v5388_v42 = vpop.f32.mrb[253].mxu1 }
 0xb1b   :  { %v5468_v19 = vadd.f32 %v11882_v59, %v5388_v42  ;;  %v5390_v29 = vpop.f32.mrb[254].mxu1  ;;  %5846 = vmatprep.mubr.bf16.mxu1 %v5564_v6 }
 0xb1c   :  { %v5469_v25 = vadd.f32 %v11879_v43, %v5390_v29  ;;  %v5392_v35 = vpop.f32.mrb[255].mxu1  ;;  %5847 = vmatmul.mubr.bf16.gmra.mrb[8].mxu1 %v5563_v11  ;;  %v5531_v1 = vmax.f32 %v5467_v45, 0.0 }
 0xb1d   :  { %v5470_v22 = vadd.f32 %v11882_v59, %v5392_v35  ;;  %v5532_v46 = vmax.f32 %v5468_v19, 0.0 }
 0xb1e   :  { %v5533_v51 = vmax.f32 %v5469_v25, 0.0 }
 0xb1f   :  { %v5534_v62 = vmax.f32 %v5470_v22, 0.0 }
 0xb20   :  { %v5565_v56 = vpack.c.bf16 %v5533_v51, %v5531_v1 }
 0xb21   :  { %v5566_v31 = vpack.c.bf16 %v5534_v62, %v5532_v46 }
 0xb23   :  { %5854 = vmatprep.mubr.bf16.mxu1 %v5566_v31 }
 0xb24   :  { %5855 = vmatmul.mubr.bf16.gmra.mrb[12].mxu1 %v5565_v56 }
 0xb7f   :  { %v6985_v52 = vpop.f32.mrb[196].mxu0 }
 0xb80   :  { %v6986_v9 = vpop.f32.mrb[197].mxu0 }
 0xb81   :  { %v6987_v43 = vadd.f32 %v6986_v9, %v6985_v52  ;;  %v6988_v38 = vpop.f32.mrb[198].mxu0 }
 0xb82   :  { %v6989_v17 = vpop.f32.mrb[199].mxu0 }
 0xb83   :  { %v5737_v59 = vadd.f32 %v6987_v43, %v11975_v5  ;;  %v6990_v8 = vadd.f32 %v6989_v17, %v6988_v38 }
 0xb85   :  { %v5740_v30 = vadd.f32 %v6990_v8, %v11975_v5  ;;  %v5863_v57 = vmax.f32 %v5737_v59, 0.0 }
 0xb87   :  { %v5864_v2 = vmax.f32 %v5740_v30, 0.0  ;;  %v6991_v3 = vpop.f32.mrb[200].mxu0 }
 0xb88   :  { %v6992_v32 = vpop.f32.mrb[201].mxu0 }
 0xb89   :  { %v6993_v40 = vadd.f32 %v6992_v32, %v6991_v3  ;;  %v6994_v39 = vpop.f32.mrb[202].mxu0  ;;  %v5895_v47 = vpack.c.bf16 %v5864_v2, %v5863_v57 }
 0xb8a   :  { %v6995_v33 = vpop.f32.mrb[203].mxu0 }
 0xb8b   :  { %v5745_v10 = vadd.f32 %v6993_v40, %v11975_v5  ;;  %v6996_v14 = vadd.f32 %v6995_v33, %v6994_v39  ;;  %7159 = vmatprep.mubr.bf16.mxu0 %v5895_v47 }
 0xb8d   :  { %v5748_v61 = vadd.f32 %v6996_v14, %v11975_v5  ;;  %v5865_v12 = vmax.f32 %v5745_v10, 0.0 }
 0xb8f   :  { %v5866_v24 = vmax.f32 %v5748_v61, 0.0  ;;  %v6997_v16 = vpop.f32.mrb[204].mxu0 }
 0xb90   :  { %v6998_v50 = vpop.f32.mrb[205].mxu0 }
 0xb91   :  { %v5896_v13 = vpack.c.bf16 %v5866_v24, %v5865_v12  ;;  %v6999_v23 = vadd.f32 %v6998_v50, %v6997_v16  ;;  %v7000_v49 = vpop.f32.mrb[206].mxu0 }
 0xb92   :  { %v7001_v15 = vpop.f32.mrb[207].mxu0 }
 0xb93   :  { %v5753_v21 = vadd.f32 %v6999_v23, %v11975_v5  ;;  %v7002_v20 = vadd.f32 %v7001_v15, %v7000_v49  ;;  %7160 = vmatmul.mubr.bf16.vlgmr.msra.gmra.mrb[244].mxu0 %v5896_v13 }
 0xb95   :  { %v5756_v26 = vadd.f32 %v7002_v20, %v11975_v5  ;;  %v5867_v0 = vmax.f32 %v5753_v21, 0.0 }
 0xb97   :  { %v5868_v28 = vmax.f32 %v5756_v26, 0.0  ;;  %v7003_v18 = vpop.f32.mrb[208].mxu0 }
 0xb98   :  { %v7004_v63 = vpop.f32.mrb[209].mxu0 }
 0xb99   :  { %v7005_v55 = vadd.f32 %v7004_v63, %v7003_v18  ;;  %v7006_v60 = vpop.f32.mrb[210].mxu0  ;;  %v5897_v54 = vpack.c.bf16 %v5868_v28, %v5867_v0 }
 0xb9a   :  { %v7007_v7 = vpop.f32.mrb[211].mxu0 }
 0xb9b   :  { %v5761_v53 = vadd.f32 %v7005_v55, %v11975_v5  ;;  %v7008_v58 = vadd.f32 %v7007_v7, %v7006_v60  ;;  %7163 = vmatprep.mubr.bf16.mxu0 %v5897_v54 }
 0xb9d   :  { %v5764_v34 = vadd.f32 %v7008_v58, %v11975_v5  ;;  %v5869_v44 = vmax.f32 %v5761_v53, 0.0 }
 0xb9f   :  { %v5870_v41 = vmax.f32 %v5764_v34, 0.0  ;;  %v7009_v27 = vpop.f32.mrb[212].mxu0 }
 0xba0   :  { %v7010_v4 = vpop.f32.mrb[213].mxu0 }
 0xba1   :  { %v7011_v11 = vadd.f32 %v7010_v4, %v7009_v27  ;;  %v7012_v6 = vpop.f32.mrb[214].mxu0  ;;  %v5898_v48 = vpack.c.bf16 %v5870_v41, %v5869_v44 }
 0xba2   :  { %v7013_v45 = vpop.f32.mrb[215].mxu0 }
 0xba3   :  { %v5769_v42 = vadd.f32 %v7011_v11, %v11975_v5  ;;  %v7014_v19 = vadd.f32 %v7013_v45, %v7012_v6  ;;  %7164 = vmatmul.mubr.bf16.gmra.mrb[248].mxu0 %v5898_v48 }
 0xba5   :  { %v5772_v29 = vadd.f32 %v7014_v19, %v11975_v5  ;;  %v5871_v25 = vmax.f32 %v5769_v42, 0.0 }
 0xba7   :  { %v5872_v35 = vmax.f32 %v5772_v29, 0.0  ;;  %v7015_v22 = vpop.f32.mrb[216].mxu0 }
 0xba8   :  { %v7016_v1 = vpop.f32.mrb[217].mxu0 }
 0xba9   :  { %v7017_v51 = vadd.f32 %v7016_v1, %v7015_v22  ;;  %v7018_v46 = vpop.f32.mrb[218].mxu0  ;;  %v5899_v62 = vpack.c.bf16 %v5872_v35, %v5871_v25 }
 0xbaa   :  { %v7019_v56 = vpop.f32.mrb[219].mxu0 }
 0xbab   :  { %v5777_v31 = vadd.f32 %v7017_v51, %v11975_v5  ;;  %v7020_v52 = vadd.f32 %v7019_v56, %v7018_v46  ;;  %7167 = vmatprep.mubr.bf16.mxu0 %v5899_v62 }
 0xbad   :  { %v5780_v9 = vadd.f32 %v7020_v52, %v11975_v5  ;;  %v5873_v43 = vmax.f32 %v5777_v31, 0.0 }
 0xbaf   :  { %v5874_v38 = vmax.f32 %v5780_v9, 0.0  ;;  %v7021_v17 = vpop.f32.mrb[220].mxu0 }
 0xbb0   :  { %v7022_v59 = vpop.f32.mrb[221].mxu0 }
 0xbb1   :  { %v7023_v8 = vadd.f32 %v7022_v59, %v7021_v17  ;;  %v7024_v36 = vpop.f32.mrb[222].mxu0  ;;  %v5900_v37 = vpack.c.bf16 %v5874_v38, %v5873_v43 }
 0xbb2   :  { %v7025_v30 = vpop.f32.mrb[223].mxu0 }
 0xbb3   :  { %v5785_v57 = vadd.f32 %v7023_v8, %v11975_v5  ;;  %v7026_v2 = vadd.f32 %v7025_v30, %v7024_v36  ;;  %7168 = vmatmul.mubr.bf16.gmra.mrb[252].mxu0 %v5900_v37 }
 0xbb5   :  { %v5788_v3 = vadd.f32 %v7026_v2, %v11975_v5  ;;  %v5875_v32 = vmax.f32 %v5785_v57, 0.0 }
 0xbb7   :  { %v5876_v40 = vmax.f32 %v5788_v3, 0.0  ;;  %v7027_v39 = vpop.f32.mrb[224].mxu0 }
 0xbb8   :  { %v7028_v47 = vpop.f32.mrb[225].mxu0 }
 0xbb9   :  { %v7029_v33 = vadd.f32 %v7028_v47, %v7027_v39  ;;  %v7030_v10 = vpop.f32.mrb[226].mxu0  ;;  %v5901_v14 = vpack.c.bf16 %v5876_v40, %v5875_v32 }
 0xbba   :  { %v7031_v61 = vpop.f32.mrb[227].mxu0 }
 0xbbb   :  { %v5793_v12 = vadd.f32 %v7029_v33, %v11975_v5  ;;  %v7032_v24 = vadd.f32 %v7031_v61, %v7030_v10  ;;  %7171 = vmatprep.mubr.bf16.mxu0 %v5901_v14 }
 0xbbd   :  { %v5796_v16 = vadd.f32 %v7032_v24, %v11975_v5  ;;  %v5877_v50 = vmax.f32 %v5793_v12, 0.0 }
 0xbbf   :  { %v5878_v13 = vmax.f32 %v5796_v16, 0.0  ;;  %v7033_v23 = vpop.f32.mrb[228].mxu0 }
 0xbc0   :  { %v7034_v49 = vpop.f32.mrb[229].mxu0 }
 0xbc1   :  { %v5902_v15 = vpack.c.bf16 %v5878_v13, %v5877_v50  ;;  %v7035_v21 = vadd.f32 %v7034_v49, %v7033_v23  ;;  %v7036_v20 = vpop.f32.mrb[230].mxu0  ;;  %v7711_v49 = vld [vmem:[%s12195_s13 + $0x10] sm:$0xff]  }
 0xbc2   :  { %v7037_v26 = vpop.f32.mrb[231].mxu0  ;;  %7195 = vmatprep.subr.bf16.mxu1 %v7711_v49 }
 0xbc3   :  { %v5801_v0 = vadd.f32 %v7035_v21, %v11975_v5  ;;  %v7038_v28 = vadd.f32 %v7037_v26, %v7036_v20  ;;  %7172 = vmatmul.mubr.bf16.gmra.mrb[0].mxu0 %v5902_v15  ;;  %v7712_v15 = vld [vmem:[%s12195_s13 + $0x18] sm:$0xff]   ;;  %7196 = vmatpush3.bf16.msra.mxu1 %v7711_v49 }
 0xbc4   :  { %7197 = vmatprep.subr.bf16.mxu1 %v7712_v15 }
 0xbc5   :  { %v5804_v18 = vadd.f32 %v7038_v28, %v11975_v5  ;;  %v5879_v63 = vmax.f32 %v5801_v0, 0.0 }
 0xbc7   :  { %v5880_v55 = vmax.f32 %v5804_v18, 0.0  ;;  %v7039_v60 = vpop.f32.mrb[232].mxu0  ;;  %7198 = vmatpush3.bf16.msra.mxu1 %v7712_v15 }
 0xbc8   :  { %v7040_v54 = vpop.f32.mrb[233].mxu0 }
 0xbc9   :  { %v7041_v7 = vadd.f32 %v7040_v54, %v7039_v60  ;;  %v7042_v53 = vpop.f32.mrb[234].mxu0  ;;  %v5903_v58 = vpack.c.bf16 %v5880_v55, %v5879_v63 }
 0xbca   :  { %v7043_v34 = vpop.f32.mrb[235].mxu0 }
 0xbcb   :  { %v5809_v44 = vadd.f32 %v7041_v7, %v11975_v5  ;;  %v7044_v41 = vadd.f32 %v7043_v34, %v7042_v53  ;;  %7175 = vmatprep.mubr.bf16.mxu0 %v5903_v58 }
 0xbcd   :  { %v5812_v27 = vadd.f32 %v7044_v41, %v11975_v5  ;;  %v5881_v4 = vmax.f32 %v5809_v44, 0.0 }
 0xbcf   :  { %v5882_v11 = vmax.f32 %v5812_v27, 0.0  ;;  %v7045_v6 = vpop.f32.mrb[236].mxu0 }
 0xbd0   :  { %v7046_v48 = vpop.f32.mrb[237].mxu0 }
 0xbd1   :  { %v5904_v45 = vpack.c.bf16 %v5882_v11, %v5881_v4  ;;  %v7047_v42 = vadd.f32 %v7046_v48, %v7045_v6  ;;  %v7048_v19 = vpop.f32.mrb[238].mxu0 }
 0xbd2   :  { %v7049_v29 = vpop.f32.mrb[239].mxu0 }
 0xbd3   :  { %v5817_v25 = vadd.f32 %v7047_v42, %v11975_v5  ;;  %v7050_v35 = vadd.f32 %v7049_v29, %v7048_v19  ;;  %7176 = vmatmul.mubr.bf16.gmra.mrb[4].mxu0 %v5904_v45 }
 0xbd5   :  { %v5820_v22 = vadd.f32 %v7050_v35, %v11975_v5  ;;  %v5883_v1 = vmax.f32 %v5817_v25, 0.0  ;;  %v12021_v25 = vld [vmem:[#allocation17] ss:$0 sm:$0xff] }
 0xbd7   :  { %v5884_v51 = vmax.f32 %v5820_v22, 0.0  ;;  %v7051_v46 = vpop.f32.mrb[240].mxu0 }
 0xbd8   :  { %v7052_v62 = vpop.f32.mrb[241].mxu0 }
 0xbd9   :  { %v7053_v56 = vadd.f32 %v7052_v62, %v7051_v46  ;;  %v7054_v31 = vpop.f32.mrb[242].mxu0  ;;  %v5905_v52 = vpack.c.bf16 %v5884_v51, %v5883_v1 }
 0xbda   :  { %v7055_v9 = vpop.f32.mrb[243].mxu0 }
 0xbdb   :  { %v5825_v43 = vadd.f32 %v7053_v56, %v11975_v5  ;;  %v7056_v38 = vadd.f32 %v7055_v9, %v7054_v31  ;;  %7179 = vmatprep.mubr.bf16.mxu0 %v5905_v52 }
 0xbdd   :  { %v5828_v17 = vadd.f32 %v7056_v38, %v11975_v5  ;;  %v5885_v59 = vmax.f32 %v5825_v43, 0.0 }
 0xbdf   :  { %v5886_v8 = vmax.f32 %v5828_v17, 0.0  ;;  %v7057_v36 = vpop.f32.mrb[0].mxu1 }
 0xbe0   :  { %v7058_v37 = vpop.f32.mrb[1].mxu1 }
 0xbe1   :  { %v5906_v30 = vpack.c.bf16 %v5886_v8, %v5885_v59  ;;  %v7059_v57 = vadd.f32 %v7058_v37, %v7057_v36  ;;  %v7060_v2 = vpop.f32.mrb[2].mxu1 }
 0xbe2   :  { %v7061_v3 = vpop.f32.mrb[3].mxu1 }
 0xbe3   :  { %v5833_v32 = vadd.f32 %v7059_v57, %v11975_v5  ;;  %v7062_v40 = vadd.f32 %v7061_v3, %v7060_v2  ;;  %7180 = vmatmul.mubr.bf16.gmra.mrb[8].mxu0 %v5906_v30 }
 0xbe5   :  { %v5836_v39 = vadd.f32 %v7062_v40, %v11975_v5  ;;  %v5887_v47 = vmax.f32 %v5833_v32, 0.0 }
 0xbe7   :  { %v5888_v33 = vmax.f32 %v5836_v39, 0.0  ;;  %v7063_v10 = vpop.f32.mrb[4].mxu1 }
 0xbe8   :  { %v7064_v14 = vpop.f32.mrb[5].mxu1 }
 0xbe9   :  { %v7065_v61 = vadd.f32 %v7064_v14, %v7063_v10  ;;  %v7066_v12 = vpop.f32.mrb[6].mxu1  ;;  %v5907_v24 = vpack.c.bf16 %v5888_v33, %v5887_v47 }
 0xbea   :  { %v7067_v16 = vpop.f32.mrb[7].mxu1 }
 0xbeb   :  { %v5841_v50 = vadd.f32 %v7065_v61, %v11975_v5  ;;  %v7068_v13 = vadd.f32 %v7067_v16, %v7066_v12  ;;  %7183 = vmatprep.mubr.bf16.mxu0 %v5907_v24 }
 0xbed   :  { %v5844_v23 = vadd.f32 %v7068_v13, %v11975_v5  ;;  %v5889_v21 = vmax.f32 %v5841_v50, 0.0 }
 0xbef   :  { %v5890_v20 = vmax.f32 %v5844_v23, 0.0  ;;  %v7069_v26 = vpop.f32.mrb[8].mxu1 }
 0xbf0   :  { %v7070_v0 = vpop.f32.mrb[9].mxu1 }
 0xbf1   :  { %v5908_v28 = vpack.c.bf16 %v5890_v20, %v5889_v21  ;;  %v7071_v18 = vadd.f32 %v7070_v0, %v7069_v26  ;;  %v7072_v63 = vpop.f32.mrb[10].mxu1 }
 0xbf2   :  { %v7073_v55 = vpop.f32.mrb[11].mxu1 }
 0xbf3   :  { %v5849_v60 = vadd.f32 %v7071_v18, %v11975_v5  ;;  %v7074_v54 = vadd.f32 %v7073_v55, %v7072_v63  ;;  %7184 = vmatmul.mubr.bf16.gmra.mrb[12].mxu0 %v5908_v28 }
 0xbf5   :  { %v5852_v7 = vadd.f32 %v7074_v54, %v11975_v5  ;;  %v5891_v53 = vmax.f32 %v5849_v60, 0.0 }
 0xbf7   :  { %v5892_v58 = vmax.f32 %v5852_v7, 0.0  ;;  %v7075_v34 = vpop.f32.mrb[12].mxu1 }
 0xbf8   :  { %v7076_v44 = vpop.f32.mrb[13].mxu1 }
 0xbf9   :  { %v7077_v41 = vadd.f32 %v7076_v44, %v7075_v34  ;;  %v7078_v27 = vpop.f32.mrb[14].mxu1  ;;  %v5909_v4 = vpack.c.bf16 %v5892_v58, %v5891_v53 }
 0xbfa   :  { %v7079_v11 = vpop.f32.mrb[15].mxu1 }
 0xbfb   :  { %v5857_v6 = vadd.f32 %v7077_v41, %v11975_v5  ;;  %v7080_v48 = vadd.f32 %v7079_v11, %v7078_v27  ;;  %7187 = vmatprep.mubr.bf16.mxu0 %v5909_v4 }
 0xbfd   :  { %v5860_v45 = vadd.f32 %v7080_v48, %v11975_v5  ;;  %v5893_v42 = vmax.f32 %v5857_v6, 0.0 }
 0xbff   :  { %v5894_v19 = vmax.f32 %v5860_v45, 0.0 }
 0xc01   :  { %v5910_v29 = vpack.c.bf16 %v5894_v19, %v5893_v42 }
 0xc03   :  { %7188 = vmatmul.mubr.bf16.gmra.mrb[16].mxu0 %v5910_v29 }
 0xc66   :  { %v7161_v35 = vpop.f32.mrb[244].mxu0 }
 0xc67   :  { %v6025_v22 = vadd.f32 %v7161_v35, %v12021_v25  ;;  %v6016_v1 = vpop.f32.mrb[245].mxu0 }
 0xc68   :  { %v6017_v51 = vadd.f32 %v12021_v25, %v6016_v1  ;;  %v7162_v46 = vpop.f32.mrb[246].mxu0 }
 0xc69   :  { %v6028_v62 = vadd.f32 %v7162_v46, %v12021_v25  ;;  %v6019_v56 = vpop.f32.mrb[247].mxu0  ;;  %v6145_v52 = vmax.f32 %v6025_v22, 0.0 }
 0xc6a   :  { %v6020_v31 = vadd.f32 %v12021_v25, %v6019_v56  ;;  %v6143_v9 = vmax.f32 %v6017_v51, 0.0 }
 0xc6b   :  { %v6146_v5 = vmax.f32 %v6028_v62, 0.0 }
 0xc6c   :  { %v6144_v43 = vmax.f32 %v6020_v31, 0.0 }
 0xc6d   :  { %v6176_v38 = vpack.c.bf16 %v6146_v5, %v6145_v52 }
 0xc6e   :  { %v6175_v17 = vpack.c.bf16 %v6144_v43, %v6143_v9 }
 0xc70   :  { %7199 = vmatprep.mubr.msk.bf16.mxu1 %vm6230_vm3, %v6175_v17 }
 0xc71   :  { %7200 = vmatmul.mubr.msk.bf16.vlgmr.msra.gmra.mrb[16].mxu1 %vm6230_vm3, %v6176_v38 }
 0xc76   :  { %v7165_v59 = vpop.f32.mrb[248].mxu0 }
 0xc77   :  { %v6041_v8 = vadd.f32 %v7165_v59, %v12021_v25  ;;  %v6032_v36 = vpop.f32.mrb[249].mxu0 }
 0xc78   :  { %v6033_v37 = vadd.f32 %v12021_v25, %v6032_v36  ;;  %v7166_v30 = vpop.f32.mrb[250].mxu0 }
 0xc79   :  { %v6044_v57 = vadd.f32 %v7166_v30, %v12021_v25  ;;  %v6035_v2 = vpop.f32.mrb[251].mxu0  ;;  %v6149_v32 = vmax.f32 %v6041_v8, 0.0 }
 0xc7a   :  { %v6036_v3 = vadd.f32 %v12021_v25, %v6035_v2  ;;  %v6147_v39 = vmax.f32 %v6033_v37, 0.0 }
 0xc7b   :  { %v6150_v40 = vmax.f32 %v6044_v57, 0.0 }
 0xc7c   :  { %v6148_v47 = vmax.f32 %v6036_v3, 0.0 }
 0xc7d   :  { %v6178_v33 = vpack.c.bf16 %v6150_v40, %v6149_v32 }
 0xc7e   :  { %v6177_v10 = vpack.c.bf16 %v6148_v47, %v6147_v39 }
 0xc80   :  { %7203 = vmatprep.mubr.msk.bf16.mxu1 %vm6230_vm3, %v6177_v10 }
 0xc81   :  { %7204 = vmatmul.mubr.msk.bf16.gmra.mrb[20].mxu1 %vm6230_vm3, %v6178_v33 }
 0xc86   :  { %v7169_v14 = vpop.f32.mrb[252].mxu0 }
 0xc87   :  { %v6057_v61 = vadd.f32 %v7169_v14, %v12021_v25  ;;  %v6048_v12 = vpop.f32.mrb[253].mxu0 }
 0xc88   :  { %v6049_v24 = vadd.f32 %v12021_v25, %v6048_v12  ;;  %v7170_v16 = vpop.f32.mrb[254].mxu0 }
 0xc89   :  { %v6060_v50 = vadd.f32 %v7170_v16, %v12021_v25  ;;  %v6051_v13 = vpop.f32.mrb[255].mxu0  ;;  %v6153_v49 = vmax.f32 %v6057_v61, 0.0 }
 0xc8a   :  { %v6052_v23 = vadd.f32 %v12021_v25, %v6051_v13  ;;  %v6151_v21 = vmax.f32 %v6049_v24, 0.0  ;;  %v7714_v13 = vld [vmem:[%s12197_s15 + $0x8] sm:$0xff]  }
 0xc8b   :  { %v6154_v15 = vmax.f32 %v6060_v50, 0.0  ;;  %v7713_v50 = vld [vmem:[%s12197_s15] sm:$0xff]  }
 0xc8c   :  { %v6152_v20 = vmax.f32 %v6052_v23, 0.0  ;;  %7231 = vmatprep.subr.bf16.mxu0 %v7713_v50 }
 0xc8d   :  { %v6180_v26 = vpack.c.bf16 %v6154_v15, %v6153_v49  ;;  %7232 = vmatpush3.bf16.msra.mxu0 %v7713_v50 }
 0xc8e   :  { %v6179_v0 = vpack.c.bf16 %v6152_v20, %v6151_v21  ;;  %7233 = vmatprep.subr.bf16.mxu0 %v7714_v13 }
 0xc90   :  { %7207 = vmatprep.mubr.msk.bf16.mxu1 %vm6230_vm3, %v6179_v0 }
 0xc91   :  { %7208 = vmatmul.mubr.msk.bf16.gmra.mrb[24].mxu1 %vm6230_vm3, %v6180_v26  ;;  %7234 = vmatpush3.bf16.msra.mxu0 %v7714_v13 }
 0xc96   :  { %v7173_v28 = vpop.f32.mrb[0].mxu0 }
 0xc97   :  { %v6073_v18 = vadd.f32 %v7173_v28, %v12021_v25  ;;  %v6064_v63 = vpop.f32.mrb[1].mxu0 }
 0xc98   :  { %v6065_v55 = vadd.f32 %v12021_v25, %v6064_v63  ;;  %v7174_v60 = vpop.f32.mrb[2].mxu0 }
 0xc99   :  { %v6076_v54 = vadd.f32 %v7174_v60, %v12021_v25  ;;  %v6067_v7 = vpop.f32.mrb[3].mxu0  ;;  %v6157_v58 = vmax.f32 %v6073_v18, 0.0 }
 0xc9a   :  { %v6068_v53 = vadd.f32 %v12021_v25, %v6067_v7  ;;  %v6155_v44 = vmax.f32 %v6065_v55, 0.0 }
 0xc9b   :  { %v6158_v34 = vmax.f32 %v6076_v54, 0.0 }
 0xc9c   :  { %v6156_v41 = vmax.f32 %v6068_v53, 0.0 }
 0xc9d   :  { %v6182_v27 = vpack.c.bf16 %v6158_v34, %v6157_v58  ;;  %v12080_v34 = vld [vmem:[%s12196_s14] ss:$0 sm:$0xff] }
 0xc9e   :  { %v6181_v4 = vpack.c.bf16 %v6156_v41, %v6155_v44 }
 0xca0   :  { %7211 = vmatprep.mubr.msk.bf16.mxu1 %vm6230_vm3, %v6181_v4 }
 0xca1   :  { %7212 = vmatmul.mubr.msk.bf16.gmra.mrb[28].mxu1 %vm6230_vm3, %v6182_v27 }
 0xca6   :  { %v7177_v11 = vpop.f32.mrb[4].mxu0 }
 0xca7   :  { %v6089_v6 = vadd.f32 %v7177_v11, %v12021_v25  ;;  %v6080_v48 = vpop.f32.mrb[5].mxu0 }
 0xca8   :  { %v6081_v45 = vadd.f32 %v12021_v25, %v6080_v48  ;;  %v7178_v42 = vpop.f32.mrb[6].mxu0 }
 0xca9   :  { %v6092_v19 = vadd.f32 %v7178_v42, %v12021_v25  ;;  %v6083_v29 = vpop.f32.mrb[7].mxu0  ;;  %v6161_v22 = vmax.f32 %v6089_v6, 0.0 }
 0xcaa   :  { %v6084_v35 = vadd.f32 %v12021_v25, %v6083_v29  ;;  %v6159_v51 = vmax.f32 %v6081_v45, 0.0 }
 0xcab   :  { %v6162_v1 = vmax.f32 %v6092_v19, 0.0 }
 0xcac   :  { %v6160_v46 = vmax.f32 %v6084_v35, 0.0 }
 0xcad   :  { %v6184_v62 = vpack.c.bf16 %v6162_v1, %v6161_v22 }
 0xcae   :  { %v6183_v56 = vpack.c.bf16 %v6160_v46, %v6159_v51 }
 0xcb0   :  { %7215 = vmatprep.mubr.msk.bf16.mxu1 %vm6230_vm3, %v6183_v56 }
 0xcb1   :  { %7216 = vmatmul.mubr.msk.bf16.gmra.mrb[32].mxu1 %vm6230_vm3, %v6184_v62 }
 0xcb6   :  { %v7181_v31 = vpop.f32.mrb[8].mxu0 }
 0xcb7   :  { %v6105_v52 = vadd.f32 %v7181_v31, %v12021_v25  ;;  %v6096_v5 = vpop.f32.mrb[9].mxu0 }
 0xcb8   :  { %v6097_v9 = vadd.f32 %v12021_v25, %v6096_v5  ;;  %v7182_v43 = vpop.f32.mrb[10].mxu0 }
 0xcb9   :  { %v6108_v38 = vadd.f32 %v7182_v43, %v12021_v25  ;;  %v6099_v17 = vpop.f32.mrb[11].mxu0  ;;  %v6165_v8 = vmax.f32 %v6105_v52, 0.0 }
 0xcba   :  { %v6100_v59 = vadd.f32 %v12021_v25, %v6099_v17  ;;  %v6163_v37 = vmax.f32 %v6097_v9, 0.0 }
 0xcbb   :  { %v6166_v36 = vmax.f32 %v6108_v38, 0.0 }
 0xcbc   :  { %v6164_v30 = vmax.f32 %v6100_v59, 0.0 }
 0xcbd   :  { %v6186_v57 = vpack.c.bf16 %v6166_v36, %v6165_v8 }
 0xcbe   :  { %v6185_v2 = vpack.c.bf16 %v6164_v30, %v6163_v37 }
 0xcc0   :  { %7219 = vmatprep.mubr.msk.bf16.mxu1 %vm6230_vm3, %v6185_v2 }
 0xcc1   :  { %7220 = vmatmul.mubr.msk.bf16.gmra.mrb[36].mxu1 %vm6230_vm3, %v6186_v57 }
 0xcc6   :  { %v7185_v3 = vpop.f32.mrb[12].mxu0 }
 0xcc7   :  { %v6121_v32 = vadd.f32 %v7185_v3, %v12021_v25  ;;  %v6112_v40 = vpop.f32.mrb[13].mxu0 }
 0xcc8   :  { %v6113_v39 = vadd.f32 %v12021_v25, %v6112_v40  ;;  %v7186_v47 = vpop.f32.mrb[14].mxu0 }
 0xcc9   :  { %v6124_v33 = vadd.f32 %v7186_v47, %v12021_v25  ;;  %v6115_v10 = vpop.f32.mrb[15].mxu0  ;;  %v6169_v61 = vmax.f32 %v6121_v32, 0.0 }
 0xcca   :  { %v6116_v14 = vadd.f32 %v12021_v25, %v6115_v10  ;;  %v6167_v24 = vmax.f32 %v6113_v39, 0.0 }
 0xccb   :  { %v6170_v12 = vmax.f32 %v6124_v33, 0.0 }
 0xccc   :  { %v6168_v16 = vmax.f32 %v6116_v14, 0.0 }
 0xccd   :  { %v6188_v23 = vpack.c.bf16 %v6170_v12, %v6169_v61 }
 0xcce   :  { %v6187_v49 = vpack.c.bf16 %v6168_v16, %v6167_v24 }
 0xcd0   :  { %7223 = vmatprep.mubr.msk.bf16.mxu1 %vm6230_vm3, %v6187_v49 }
 0xcd1   :  { %7224 = vmatmul.mubr.msk.bf16.gmra.mrb[40].mxu1 %vm6230_vm3, %v6188_v23 }
 0xcd6   :  { %v7189_v15 = vpop.f32.mrb[16].mxu0 }
 0xcd7   :  { %v6137_v21 = vadd.f32 %v7189_v15, %v12021_v25  ;;  %v6128_v20 = vpop.f32.mrb[17].mxu0 }
 0xcd8   :  { %v6129_v26 = vadd.f32 %v12021_v25, %v6128_v20  ;;  %v7190_v0 = vpop.f32.mrb[18].mxu0 }
 0xcd9   :  { %v6140_v28 = vadd.f32 %v7190_v0, %v12021_v25  ;;  %v6131_v18 = vpop.f32.mrb[19].mxu0  ;;  %v6173_v55 = vmax.f32 %v6137_v21, 0.0 }
 0xcda   :  { %v6132_v63 = vadd.f32 %v12021_v25, %v6131_v18  ;;  %v6171_v54 = vmax.f32 %v6129_v26, 0.0 }
 0xcdb   :  { %v6174_v60 = vmax.f32 %v6140_v28, 0.0 }
 0xcdc   :  { %v6172_v7 = vmax.f32 %v6132_v63, 0.0 }
 0xcdd   :  { %v6190_v53 = vpack.c.bf16 %v6174_v60, %v6173_v55 }
 0xcde   :  { %v6189_v58 = vpack.c.bf16 %v6172_v7, %v6171_v54 }
 0xce0   :  { %7227 = vmatprep.mubr.msk.bf16.mxu1 %vm6230_vm3, %v6189_v58 }
 0xce1   :  { %7228 = vmatmul.mubr.msk.bf16.gmra.mrb[44].mxu1 %vm6230_vm3, %v6190_v53 }
 0xd44   :  { %v7201_v44 = vpop.f32.mrb[16].mxu1 }
 0xd45   :  { %v6322_v41 = vadd.f32 %v7201_v44, %v12080_v34  ;;  %v6313_v27 = vpop.f32.mrb[17].mxu1 }
 0xd46   :  { %v6314_v25 = vadd.f32 %v12080_v34, %v6313_v27  ;;  %v7202_v4 = vpop.f32.mrb[18].mxu1 }
 0xd47   :  { %v6325_v11 = vadd.f32 %v7202_v4, %v12080_v34  ;;  %v6316_v6 = vpop.f32.mrb[19].mxu1  ;;  %v6442_v45 = vmax.f32 %v6322_v41, 0.0 }
 0xd48   :  { %v6317_v48 = vadd.f32 %v12080_v34, %v6316_v6  ;;  %v6440_v19 = vmax.f32 %v6314_v25, 0.0 }
 0xd49   :  { %v6443_v42 = vmax.f32 %v6325_v11, 0.0 }
 0xd4a   :  { %v6441_v29 = vmax.f32 %v6317_v48, 0.0 }
 0xd4b   :  { %v6473_v35 = vpack.c.bf16 %v6443_v42, %v6442_v45 }
 0xd4c   :  { %v6472_v22 = vpack.c.bf16 %v6441_v29, %v6440_v19 }
 0xd4e   :  { %7235 = vmatprep.mubr.msk.bf16.mxu0 %vm6511_vm7, %v6472_v22 }
 0xd4f   :  { %7236 = vmatmul.mubr.msk.bf16.vlgmr.msra.gmra.mrb[20].mxu0 %vm6511_vm7, %v6473_v35 }
 0xd54   :  { %v7205_v1 = vpop.f32.mrb[20].mxu1 }
 0xd55   :  { %v6338_v51 = vadd.f32 %v7205_v1, %v12080_v34  ;;  %v6329_v46 = vpop.f32.mrb[21].mxu1 }
 0xd56   :  { %v6330_v62 = vadd.f32 %v12080_v34, %v6329_v46  ;;  %v7206_v56 = vpop.f32.mrb[22].mxu1 }
 0xd57   :  { %v6341_v31 = vadd.f32 %v7206_v56, %v12080_v34  ;;  %v6332_v52 = vpop.f32.mrb[23].mxu1  ;;  %v6446_v9 = vmax.f32 %v6338_v51, 0.0 }
 0xd58   :  { %v6333_v5 = vadd.f32 %v12080_v34, %v6332_v52  ;;  %v6444_v38 = vmax.f32 %v6330_v62, 0.0 }
 0xd59   :  { %v6447_v43 = vmax.f32 %v6341_v31, 0.0 }
 0xd5a   :  { %v6445_v17 = vmax.f32 %v6333_v5, 0.0 }
 0xd5b   :  { %v6475_v59 = vpack.c.bf16 %v6447_v43, %v6446_v9 }
 0xd5c   :  { %v6474_v8 = vpack.c.bf16 %v6445_v17, %v6444_v38 }
 0xd5e   :  { %7239 = vmatprep.mubr.msk.bf16.mxu0 %vm6511_vm7, %v6474_v8 }
 0xd5f   :  { %7240 = vmatmul.mubr.msk.bf16.gmra.mrb[24].mxu0 %vm6511_vm7, %v6475_v59 }
 0xd64   :  { %v7209_v36 = vpop.f32.mrb[24].mxu1 }
 0xd65   :  { %v6354_v37 = vadd.f32 %v7209_v36, %v12080_v34  ;;  %v6345_v30 = vpop.f32.mrb[25].mxu1 }
 0xd66   :  { %v6346_v57 = vadd.f32 %v12080_v34, %v6345_v30  ;;  %v7210_v2 = vpop.f32.mrb[26].mxu1 }
 0xd67   :  { %v6357_v3 = vadd.f32 %v7210_v2, %v12080_v34  ;;  %v6348_v32 = vpop.f32.mrb[27].mxu1  ;;  %v6450_v39 = vmax.f32 %v6354_v37, 0.0 }
 0xd68   :  { %v6349_v40 = vadd.f32 %v12080_v34, %v6348_v32  ;;  %v6448_v33 = vmax.f32 %v6346_v57, 0.0 }
 0xd69   :  { %v6451_v47 = vmax.f32 %v6357_v3, 0.0 }
 0xd6a   :  { %v6449_v10 = vmax.f32 %v6349_v40, 0.0 }
 0xd6b   :  { %v6477_v14 = vpack.c.bf16 %v6451_v47, %v6450_v39 }
 0xd6c   :  { %v6476_v61 = vpack.c.bf16 %v6449_v10, %v6448_v33 }
 0xd6e   :  { %7243 = vmatprep.mubr.msk.bf16.mxu0 %vm6511_vm7, %v6476_v61 }
 0xd6f   :  { %7244 = vmatmul.mubr.msk.bf16.gmra.mrb[28].mxu0 %vm6511_vm7, %v6477_v14 }
 0xd74   :  { %v7213_v12 = vpop.f32.mrb[28].mxu1 }
 0xd75   :  { %v6370_v24 = vadd.f32 %v7213_v12, %v12080_v34  ;;  %v6361_v16 = vpop.f32.mrb[29].mxu1 }
 0xd76   :  { %v6362_v50 = vadd.f32 %v12080_v34, %v6361_v16  ;;  %v7214_v13 = vpop.f32.mrb[30].mxu1 }
 0xd77   :  { %v6373_v23 = vadd.f32 %v7214_v13, %v12080_v34  ;;  %v6364_v49 = vpop.f32.mrb[31].mxu1  ;;  %v6454_v21 = vmax.f32 %v6370_v24, 0.0 }
 0xd78   :  { %v6365_v15 = vadd.f32 %v12080_v34, %v6364_v49  ;;  %v6452_v26 = vmax.f32 %v6362_v50, 0.0 }
 0xd79   :  { %v6455_v20 = vmax.f32 %v6373_v23, 0.0 }
 0xd7a   :  { %v6453_v0 = vmax.f32 %v6365_v15, 0.0  ;;  %v12133_v15 = vld [vmem:[%s12198_s16] ss:$0 sm:$0xff]  ;;  %s8403_s16 = smov [#allocation19]  }
 0xd7b   :  { %v6479_v28 = vpack.c.bf16 %v6455_v20, %v6454_v21  ;;  %s6758_s4 = sshll.u32 %s8403_s16, 4  ;;  %s6759_s4 = int_to_ptr.vmem [resolvable:$true] %s6758_s4 }
 0xd7c   :  { %v6478_v18 = vpack.c.bf16 %v6453_v0, %v6452_v26  ;;  %s8350_s0 = scalar_lea.vmem %s6759_s4, 4096  ;;  %p8355_p11 = scmp.lt.s32.totalorder %s6759_s4, %s6759_s4 }
 0xd7d   :  { %p8351_p10 = scmp.ne.s32.totalorder %s6759_s4, %s8350_s0  ;;  %p8356_p12 = scmp.lt.s32.totalorder %s8350_s0, %s8350_s0 }
 0xd7e   :  { %7247 = vmatprep.mubr.msk.bf16.mxu0 %vm6511_vm7, %v6478_v18 }
 0xd7f   :  { %7248 = vmatmul.mubr.msk.bf16.gmra.mrb[32].mxu0 %vm6511_vm7, %v6479_v28  ;;  %p8357_p13 = por %p8356_p12, %p8355_p11 }
 0xd81   :  { %p8358_p0 = pnand %p8357_p13, %p8351_p10 }
 0xd84   :  { %v7217_v63 = vpop.f32.mrb[32].mxu1 }
 0xd85   :  { %v6386_v55 = vadd.f32 %v7217_v63, %v12080_v34  ;;  %v6377_v60 = vpop.f32.mrb[33].mxu1 }
 0xd86   :  { %v6378_v54 = vadd.f32 %v12080_v34, %v6377_v60  ;;  %v7218_v7 = vpop.f32.mrb[34].mxu1 }
 0xd87   :  { %v6389_v53 = vadd.f32 %v7218_v7, %v12080_v34  ;;  %v6380_v58 = vpop.f32.mrb[35].mxu1  ;;  %v6458_v41 = vmax.f32 %v6386_v55, 0.0 }
 0xd88   :  { %v6381_v44 = vadd.f32 %v12080_v34, %v6380_v58  ;;  %v6456_v25 = vmax.f32 %v6378_v54, 0.0 }
 0xd89   :  { %v6459_v27 = vmax.f32 %v6389_v53, 0.0 }
 0xd8a   :  { %v6457_v4 = vmax.f32 %v6381_v44, 0.0 }
 0xd8b   :  { %v6481_v11 = vpack.c.bf16 %v6459_v27, %v6458_v41 }
 0xd8c   :  { %v6480_v6 = vpack.c.bf16 %v6457_v4, %v6456_v25 }
 0xd8e   :  { %7251 = vmatprep.mubr.msk.bf16.mxu0 %vm6511_vm7, %v6480_v6 }
 0xd8f   :  { %7252 = vmatmul.mubr.msk.bf16.gmra.mrb[36].mxu0 %vm6511_vm7, %v6481_v11 }
 0xd94   :  { %v7221_v48 = vpop.f32.mrb[36].mxu1 }
 0xd95   :  { %v6402_v45 = vadd.f32 %v7221_v48, %v12080_v34  ;;  %v6393_v42 = vpop.f32.mrb[37].mxu1 }
 0xd96   :  { %v6394_v19 = vadd.f32 %v12080_v34, %v6393_v42  ;;  %v7222_v29 = vpop.f32.mrb[38].mxu1 }
 0xd97   :  { %v6405_v35 = vadd.f32 %v7222_v29, %v12080_v34  ;;  %v6396_v22 = vpop.f32.mrb[39].mxu1  ;;  %v6462_v51 = vmax.f32 %v6402_v45, 0.0 }
 0xd98   :  { %v6397_v1 = vadd.f32 %v12080_v34, %v6396_v22  ;;  %v6460_v62 = vmax.f32 %v6394_v19, 0.0 }
 0xd99   :  { %v6463_v46 = vmax.f32 %v6405_v35, 0.0 }
 0xd9a   :  { %v6461_v56 = vmax.f32 %v6397_v1, 0.0 }
 0xd9b   :  { %v6483_v31 = vpack.c.bf16 %v6463_v46, %v6462_v51 }
 0xd9c   :  { %v6482_v52 = vpack.c.bf16 %v6461_v56, %v6460_v62 }
 0xd9e   :  { %7255 = vmatprep.mubr.msk.bf16.mxu0 %vm6511_vm7, %v6482_v52 }
 0xd9f   :  { %7256 = vmatmul.mubr.msk.bf16.gmra.mrb[40].mxu0 %vm6511_vm7, %v6483_v31 }
 0xda4   :  { %v7225_v5 = vpop.f32.mrb[40].mxu1 }
 0xda5   :  { %v6418_v9 = vadd.f32 %v7225_v5, %v12080_v34  ;;  %v6409_v43 = vpop.f32.mrb[41].mxu1 }
 0xda6   :  { %v6410_v38 = vadd.f32 %v12080_v34, %v6409_v43  ;;  %v7226_v17 = vpop.f32.mrb[42].mxu1 }
 0xda7   :  { %v6421_v59 = vadd.f32 %v7226_v17, %v12080_v34  ;;  %v6412_v8 = vpop.f32.mrb[43].mxu1  ;;  %v6466_v37 = vmax.f32 %v6418_v9, 0.0 }
 0xda8   :  { %v6413_v36 = vadd.f32 %v12080_v34, %v6412_v8  ;;  %v6464_v57 = vmax.f32 %v6410_v38, 0.0 }
 0xda9   :  { %v6467_v30 = vmax.f32 %v6421_v59, 0.0 }
 0xdaa   :  { %v6465_v2 = vmax.f32 %v6413_v36, 0.0 }
 0xdab   :  { %v6485_v3 = vpack.c.bf16 %v6467_v30, %v6466_v37 }
 0xdac   :  { %v6484_v32 = vpack.c.bf16 %v6465_v2, %v6464_v57 }
 0xdae   :  { %7259 = vmatprep.mubr.msk.bf16.mxu0 %vm6511_vm7, %v6484_v32 }
 0xdaf   :  { %7260 = vmatmul.mubr.msk.bf16.gmra.mrb[44].mxu0 %vm6511_vm7, %v6485_v3 }
 0xdb4   :  { %v7229_v40 = vpop.f32.mrb[44].mxu1 }
 0xdb5   :  { %v6434_v39 = vadd.f32 %v7229_v40, %v12080_v34  ;;  %v6425_v47 = vpop.f32.mrb[45].mxu1 }
 0xdb6   :  { %v6426_v33 = vadd.f32 %v12080_v34, %v6425_v47  ;;  %v7230_v10 = vpop.f32.mrb[46].mxu1 }
 0xdb7   :  { %v6437_v14 = vadd.f32 %v7230_v10, %v12080_v34  ;;  %v6428_v61 = vpop.f32.mrb[47].mxu1  ;;  %v6470_v24 = vmax.f32 %v6434_v39, 0.0 }
 0xdb8   :  { %v6429_v12 = vadd.f32 %v12080_v34, %v6428_v61  ;;  %v6468_v50 = vmax.f32 %v6426_v33, 0.0 }
 0xdb9   :  { %v6471_v16 = vmax.f32 %v6437_v14, 0.0 }
 0xdba   :  { %v6469_v13 = vmax.f32 %v6429_v12, 0.0 }
 0xdbb   :  { %v6487_v23 = vpack.c.bf16 %v6471_v16, %v6470_v24 }
 0xdbc   :  { %v6486_v49 = vpack.c.bf16 %v6469_v13, %v6468_v50 }
 0xdbe   :  { %7263 = vmatprep.mubr.msk.bf16.mxu0 %vm6511_vm7, %v6486_v49 }
 0xdbf   :  { %7264 = vmatmul.mubr.msk.bf16.gmra.mrb[48].mxu0 %vm6511_vm7, %v6487_v23 }
 0xe22   :  { %v7237_v21 = vpop.f32.mrb[20].mxu0 }
 0xe23   :  { %v6603_v20 = vadd.f32 %v7237_v21, %v12133_v15  ;;  %v6594_v26 = vpop.f32.mrb[21].mxu0 }
 0xe24   :  { %v6595_v34 = vadd.f32 %v12133_v15, %v6594_v26  ;;  %v7238_v0 = vpop.f32.mrb[22].mxu0 }
 0xe25   :  { %6723 = vst [vmem:[#allocation19 + $0x10] sm:$0xff] %v6603_v20  ;;  %v6606_v28 = vadd.f32 %v7238_v0, %v12133_v15  ;;  %v6597_v18 = vpop.f32.mrb[23].mxu0 }
 0xe26   :  { %6721 = vst [vmem:[#allocation19] sm:$0xff] %v6595_v34  ;;  %v6598_v63 = vadd.f32 %v12133_v15, %v6597_v18 }
 0xe27   :  { %6724 = vst [vmem:[#allocation19 + $0x18] sm:$0xff] %v6606_v28 }
 0xe28   :  { %6722 = vst [vmem:[#allocation19 + $0x8] sm:$0xff] %v6598_v63 }
 0xe32   :  { %v7241_v55 = vpop.f32.mrb[24].mxu0 }
 0xe33   :  { %v6619_v60 = vadd.f32 %v7241_v55, %v12133_v15  ;;  %v6610_v54 = vpop.f32.mrb[25].mxu0 }
 0xe34   :  { %v6611_v7 = vadd.f32 %v12133_v15, %v6610_v54  ;;  %v7242_v53 = vpop.f32.mrb[26].mxu0 }
 0xe35   :  { %6727 = vst [vmem:[#allocation19 + $0x30] sm:$0xff] %v6619_v60  ;;  %v6622_v58 = vadd.f32 %v7242_v53, %v12133_v15  ;;  %v6613_v44 = vpop.f32.mrb[27].mxu0 }
 0xe36   :  { %6725 = vst [vmem:[#allocation19 + $0x20] sm:$0xff] %v6611_v7  ;;  %v6614_v41 = vadd.f32 %v12133_v15, %v6613_v44 }
 0xe37   :  { %6728 = vst [vmem:[#allocation19 + $0x38] sm:$0xff] %v6622_v58 }
 0xe38   :  { %6726 = vst [vmem:[#allocation19 + $0x28] sm:$0xff] %v6614_v41 }
 0xe42   :  { %v7245_v27 = vpop.f32.mrb[28].mxu0 }
 0xe43   :  { %v6635_v25 = vadd.f32 %v7245_v27, %v12133_v15  ;;  %v6626_v4 = vpop.f32.mrb[29].mxu0 }
 0xe44   :  { %v6627_v11 = vadd.f32 %v12133_v15, %v6626_v4  ;;  %v7246_v6 = vpop.f32.mrb[30].mxu0 }
 0xe45   :  { %6731 = vst [vmem:[#allocation19 + $0x50] sm:$0xff] %v6635_v25  ;;  %v6638_v48 = vadd.f32 %v7246_v6, %v12133_v15  ;;  %v6629_v45 = vpop.f32.mrb[31].mxu0 }
 0xe46   :  { %6729 = vst [vmem:[#allocation19 + $0x40] sm:$0xff] %v6627_v11  ;;  %v6630_v42 = vadd.f32 %v12133_v15, %v6629_v45 }
 0xe47   :  { %6732 = vst [vmem:[#allocation19 + $0x58] sm:$0xff] %v6638_v48 }
 0xe48   :  { %6730 = vst [vmem:[#allocation19 + $0x48] sm:$0xff] %v6630_v42 }
 0xe52   :  { %v7249_v19 = vpop.f32.mrb[32].mxu0 }
 0xe53   :  { %v6651_v29 = vadd.f32 %v7249_v19, %v12133_v15  ;;  %v6642_v35 = vpop.f32.mrb[33].mxu0 }
 0xe54   :  { %v6643_v22 = vadd.f32 %v12133_v15, %v6642_v35  ;;  %v7250_v1 = vpop.f32.mrb[34].mxu0 }
 0xe55   :  { %6735 = vst [vmem:[#allocation19 + $0x70] sm:$0xff] %v6651_v29  ;;  %v6654_v51 = vadd.f32 %v7250_v1, %v12133_v15  ;;  %v6645_v46 = vpop.f32.mrb[35].mxu0 }
 0xe56   :  { %6733 = vst [vmem:[#allocation19 + $0x60] sm:$0xff] %v6643_v22  ;;  %v6646_v62 = vadd.f32 %v12133_v15, %v6645_v46 }
 0xe57   :  { %6736 = vst [vmem:[#allocation19 + $0x78] sm:$0xff] %v6654_v51 }
 0xe58   :  { %6734 = vst [vmem:[#allocation19 + $0x68] sm:$0xff] %v6646_v62 }
 0xe62   :  { %v7253_v56 = vpop.f32.mrb[36].mxu0 }
 0xe63   :  { %v6667_v31 = vadd.f32 %v7253_v56, %v12133_v15  ;;  %v6658_v52 = vpop.f32.mrb[37].mxu0 }
 0xe64   :  { %v6659_v5 = vadd.f32 %v12133_v15, %v6658_v52  ;;  %v7254_v9 = vpop.f32.mrb[38].mxu0 }
 0xe65   :  { %6739 = vst [vmem:[#allocation19 + $0x90] sm:$0xff] %v6667_v31  ;;  %v6670_v43 = vadd.f32 %v7254_v9, %v12133_v15  ;;  %v6661_v38 = vpop.f32.mrb[39].mxu0 }
 0xe66   :  { %6737 = vst [vmem:[#allocation19 + $0x80] sm:$0xff] %v6659_v5  ;;  %v6662_v17 = vadd.f32 %v12133_v15, %v6661_v38 }
 0xe67   :  { %6740 = vst [vmem:[#allocation19 + $0x98] sm:$0xff] %v6670_v43 }
 0xe68   :  { %6738 = vst [vmem:[#allocation19 + $0x88] sm:$0xff] %v6662_v17 }
 0xe72   :  { %v7257_v59 = vpop.f32.mrb[40].mxu0 }
 0xe73   :  { %v6683_v8 = vadd.f32 %v7257_v59, %v12133_v15  ;;  %v6674_v36 = vpop.f32.mrb[41].mxu0 }
 0xe74   :  { %v6675_v37 = vadd.f32 %v12133_v15, %v6674_v36  ;;  %v7258_v30 = vpop.f32.mrb[42].mxu0 }
 0xe75   :  { %6743 = vst [vmem:[#allocation19 + $0xb0] sm:$0xff] %v6683_v8  ;;  %v6686_v57 = vadd.f32 %v7258_v30, %v12133_v15  ;;  %v6677_v2 = vpop.f32.mrb[43].mxu0 }
 0xe76   :  { %6741 = vst [vmem:[#allocation19 + $0xa0] sm:$0xff] %v6675_v37  ;;  %v6678_v3 = vadd.f32 %v12133_v15, %v6677_v2 }
 0xe77   :  { %6744 = vst [vmem:[#allocation19 + $0xb8] sm:$0xff] %v6686_v57 }
 0xe78   :  { %6742 = vst [vmem:[#allocation19 + $0xa8] sm:$0xff] %v6678_v3 }
 0xe82   :  { %v7261_v32 = vpop.f32.mrb[44].mxu0 }
 0xe83   :  { %v6699_v40 = vadd.f32 %v7261_v32, %v12133_v15  ;;  %v6690_v39 = vpop.f32.mrb[45].mxu0 }
 0xe84   :  { %v6691_v47 = vadd.f32 %v12133_v15, %v6690_v39  ;;  %v7262_v33 = vpop.f32.mrb[46].mxu0 }
 0xe85   :  { %6747 = vst [vmem:[#allocation19 + $0xd0] sm:$0xff] %v6699_v40  ;;  %v6702_v10 = vadd.f32 %v7262_v33, %v12133_v15  ;;  %v6693_v14 = vpop.f32.mrb[47].mxu0 }
 0xe86   :  { %6745 = vst [vmem:[#allocation19 + $0xc0] sm:$0xff] %v6691_v47  ;;  %v6694_v61 = vadd.f32 %v12133_v15, %v6693_v14 }
 0xe87   :  { %6748 = vst [vmem:[#allocation19 + $0xd8] sm:$0xff] %v6702_v10 }
 0xe88   :  { %6746 = vst [vmem:[#allocation19 + $0xc8] sm:$0xff] %v6694_v61 }
 0xe92   :  { %v7265_v12 = vpop.f32.mrb[48].mxu0 }
 0xe93   :  { %v6715_v24 = vadd.f32 %v7265_v12, %v12133_v15  ;;  %v6706_v16 = vpop.f32.mrb[49].mxu0 }
 0xe94   :  { %v6707_v50 = vadd.f32 %v12133_v15, %v6706_v16  ;;  %v7266_v13 = vpop.f32.mrb[50].mxu0 }
 0xe95   :  { %6751 = vst [vmem:[#allocation19 + $0xf0] sm:$0xff] %v6715_v24  ;;  %v6718_v23 = vadd.f32 %v7266_v13, %v12133_v15  ;;  %v6709_v49 = vpop.f32.mrb[51].mxu0 }
 0xe96   :  { %6749 = vst [vmem:[#allocation19 + $0xe0] sm:$0xff] %v6707_v50  ;;  %v6710_v21 = vadd.f32 %v12133_v15, %v6709_v49 }
 0xe97   :  { %6752 = vst [vmem:[#allocation19 + $0xf8] sm:$0xff] %v6718_v23 }
 0xe98   :  { %6750 = vst [vmem:[#allocation19 + $0xe8] sm:$0xff] %v6710_v21 }
 0xe99   :  { %8361 = shalt.err (!%p8358_p0)
}
 0xe9a   :  { %s13220_s23 = sld [smem:[#allocation155_spill]] }
 0xea0   :  { %s8362_s8 = scalar_lea.hbm %s13220_s23, 4096 }
 0xea1   :  { %p8363_p1 = scmp.ne.s32.totalorder %s13220_s23, %s8362_s8  ;;  %p8366_p2 = scmp.lt.u32.totalorder %s8362_s8, %s13220_s23 }
 0xea3   :  { %p8368_p3 = pnand %p8366_p2, %p8363_p1 }
 0xea5   :  { %8371 = shalt.err (!%p8368_p3)
}
 0xea6   :  { %6764 = dma.vmem_to_hbm [thread:$0]  %s6759_s4, 4096, %s13220_s23, [#allocation4], %s8390_s25, %s8390_s25, %s8391_s28  }
 0xea7   :  { %8384 = dma.done.wait [#allocation4], 4096  }
 0xea8   :  { %8385 = vsyncadd [#allocation4], 4294963200 }
 0xea9   :  { %6768 = vsyncpa [#allocation3], 1 }
 0xeaa   :  { %6769 = vsyncpa [#allocation6], 1 }
 0xeab   :  { %6770 = vsyncpa [#allocation9], 1 }
 0xeac   :  { %6771 = vsyncpa [#allocation12], 1 }
 0xead   :  { %6772 = vsyncpa [#allocation15], 1 }
 0xeae   :  { %6773 = vsyncpa [#allocation18], 1 }
 0xeaf   :  { %6774 = vsyncpa [#allocation4], 1 }

</bundles_post_ra>
